<compile_context>
chip_gen: v5e
topology: v5e:2x2
jax: 0.10.0
libtpu: 0.0.40
codegen_flags: <defaults>
</compile_context>

<pallas_src>
import functools

import jax
import jax.numpy as jnp
from jax import lax
from jax.experimental import pallas as pl
from jax.experimental.pallas import tpu as pltpu


# ---------------------------------------------------------------------------
# Fused kernel
# ---------------------------------------------------------------------------
def _fused_attention_kernel(
    x_ref, wqkv_ref, bqkv_ref, wproj_ref, bproj_ref, mask_ref, o_ref,
    *, num_heads, head_dim, score_tile,
):
    """One grid step processes TILE_M rows (whole (b, s) sequences).

    x_ref     : (TILE_M, C) f32
    wqkv_ref  : (C, 3C)     bf16   (scale folded into the q columns)
    bqkv_ref  : (1, 3C)     f32
    wproj_ref : (C, C)      f32
    bproj_ref : (1, C)      f32
    mask_ref  : (ST, ST)    f32    block-diagonal mask (0 / -1e30)
    o_ref     : (TILE_M, C)
    """
    f32 = jnp.float32
    tile_m = x_ref.shape[0]
    C = o_ref.shape[1]
    n_blocks = tile_m // score_tile          # static

    # Loop-invariant loads (tiny, VMEM-resident tiles) hoisted out of the loop.
    wqkv = wqkv_ref[...]                     # (C, 3C) bf16
    bqkv = bqkv_ref[...]                     # (1, 3C) f32
    wproj = wproj_ref[...]                   # (C, C)  f32
    bproj = bproj_ref[...]                   # (1, C)  f32
    mask = mask_ref[...]                     # (ST, ST) f32

    def block_body(g, carry):
        r0 = pl.multiple_of(g * score_tile, score_tile)
        xb = x_ref[pl.ds(r0, score_tile), :].astype(jnp.bfloat16)

        # Fused QKV projection: one (ST, C) x (C, 3C) bf16 matmul, f32 acc.
        qkv = jnp.dot(xb, wqkv, preferred_element_type=f32) + bqkv

        # Per-head attention.  Each head's output is folded straight into the
        # output projection, so only `acc` (ST, C) and one (ST, ST) s/p pair
        # are live at any time (the acc dependency chains the heads).
        acc = jnp.zeros((score_tile, C), f32)
        for h in range(num_heads):
            lo = h * head_dim
            qh = qkv[:, lo:lo + head_dim]                       # (ST, D)
            kh = qkv[:, C + lo:C + lo + head_dim]               # (ST, D)
            vh = qkv[:, 2 * C + lo:2 * C + lo + head_dim]       # (ST, D)

            # s = qh @ kh.T  (contract last dims; no explicit transpose)
            s = lax.dot_general(qh, kh, (((1,), (1,)), ((), ())),
                                preferred_element_type=f32) + mask
            s = s - jnp.max(s, axis=-1, keepdims=True)
            p = jnp.exp(s)
            p = p / jnp.sum(p, axis=-1, keepdims=True)          # exact divide

            oh = jnp.dot(p, vh, preferred_element_type=f32)     # (ST, D)
            # out += oh @ Wp[h*D:(h+1)*D, :]   (== concat-heads @ Wp)
            acc = acc + jnp.dot(oh, wproj[lo:lo + head_dim, :],
                                preferred_element_type=f32)

        o_ref[pl.ds(r0, score_tile), :] = (acc + bproj).astype(o_ref.dtype)
        return carry

    lax.fori_loop(0, n_blocks, block_body, 0)


# ---------------------------------------------------------------------------
# Tile selection
# ---------------------------------------------------------------------------
def _choose_tiles(M, seq_len, *, score_target=128, row_target=1024):
    """Pick (row_tile, score_tile):
      * score_tile = k whole sequences, k | n_seq, k*seq_len <= 128 (min 1 seq)
      * row_tile   = nb score blocks, nb | total blocks, <= row_target rows,
                     and >= 2 grid tiles whenever possible (v7x megacore).
    """
    n_seq = M // seq_len
    k = 1
    for cand in range(1, n_seq + 1):
        if n_seq % cand == 0 and cand * seq_len <= score_target:
            k = cand
    score_tile = k * seq_len

    blocks_total = M // score_tile
    nb = 1
    for cand in range(1, blocks_total + 1):
        if blocks_total % cand:
            continue
        if cand * score_tile > row_target:
            continue
        if blocks_total >= 2 and cand > blocks_total // 2:
            continue
        nb = cand
    tile_m = nb * score_tile
    if tile_m % 8 != 0 and tile_m != M:      # (8,128) block-shape constraint
        tile_m = M
    return tile_m, score_tile


# ---------------------------------------------------------------------------
# Wrapper
# ---------------------------------------------------------------------------
def attention_forward(x, params, num_heads):
    """Pallas implementation of Attention.forward.  x: (B, S, N, C)."""
    B, S, N, C = x.shape
    D = C // num_heads
    scale = D ** (-0.5)
    M = B * S * N

    x2d = x.reshape(M, C)                                # metadata-only

    # Fold the softmax scale into the q columns of the fused qkv weight/bias;
    # cast the qkv weight to bf16 once here (never re-cast in the kernel).
    col_scale = jnp.concatenate(
        [jnp.full((C,), scale, jnp.float32), jnp.ones((2 * C,), jnp.float32)])
    w_qkv = (params["w_qkv"].astype(jnp.float32)
             * col_scale[None, :]).astype(jnp.bfloat16)            # (C, 3C)
    b_qkv = (params["b_qkv"].astype(jnp.float32)
             * col_scale).reshape(1, 3 * C)                        # (1, 3C)
    w_proj = params["w_proj"].astype(jnp.float32)                  # (C, C)
    b_proj = params["b_proj"].astype(jnp.float32).reshape(1, C)    # (1, C)

    tile_m, score_tile = _choose_tiles(M, N)
    n_tiles = M // tile_m
    n_blocks_total = M // score_tile

    # Block-diagonal mask for one score tile (0 inside a sequence, -1e30 out),
    # computed once and kept VMEM-resident.
    seq_id = jnp.arange(score_tile, dtype=jnp.int32) // N
    mask = jnp.where(seq_id[:, None] == seq_id[None, :],
                     jnp.float32(0.0), jnp.float32(-1e30))

    kernel = functools.partial(
        _fused_attention_kernel,
        num_heads=num_heads, head_dim=D, score_tile=score_tile)

    row_spec = pl.BlockSpec((tile_m, C), lambda i: (i, 0))
    resident = lambda shape: pl.BlockSpec(shape, lambda i: (0, 0))

    cost = pl.CostEstimate(
        flops=(2 * M * C * 3 * C                              # qkv projection
               + 2 * M * C * C                                # output proj
               + n_blocks_total * num_heads * 4 * score_tile * score_tile * D),
        transcendentals=n_blocks_total * num_heads * score_tile * score_tile,
        bytes_accessed=(8 * M * C + 2 * C * 3 * C + 4 * C * C
                        + 4 * score_tile * score_tile + 4 * 4 * C),
    )

    out2d = pl.pallas_call(
        kernel,
        out_shape=jax.ShapeDtypeStruct((M, C), x.dtype),
        grid=(n_tiles,),
        in_specs=[row_spec,
                  resident((C, 3 * C)),
                  resident((1, 3 * C)),
                  resident((C, C)),
                  resident((1, C)),
                  resident((score_tile, score_tile))],
        out_specs=row_spec,
        compiler_params=pltpu.CompilerParams(
            dimension_semantics=("parallel",),
            vmem_limit_bytes=32 * 1024 * 1024,   # safe on v5e/v6e/v7x
        ),
        cost_estimate=cost,
    )(x2d, w_qkv, b_qkv, w_proj, b_proj, mask)

    return out2d.reshape(B, S, N, C)


# ---------------------------------------------------------------------------
# Reference (pure jnp, f32) for verification
# ---------------------------------------------------------------------------
def attention_reference(x, params, num_heads):
    B, S, N, C = x.shape
    D = C // num_heads
    scale = D ** (-0.5)
    qkv = x.reshape(B * S * N, C) @ params["w_qkv"] + params["b_qkv"]
    qkv = qkv.reshape(B * S, N, 3, num_heads, D).transpose(2, 0, 3, 1, 4)
    q, k, v = qkv[0], qkv[1], qkv[2]
    attn = jnp.einsum("bhnd,bhmd->bhnm", q, k) * scale
    attn = jax.nn.softmax(attn, axis=-1)
    o = jnp.einsum("bhnm,bhmd->bhnd", attn, v)
    o = jnp.transpose(o, (0, 2, 1, 3)).reshape(B * S * N, C)
    out = o @ params["w_proj"] + params["b_proj"]
    return out.reshape(B, S, N, C)


# ---------------------------------------------------------------------------
# Main
# ---------------------------------------------------------------------------
if __name__ == "__main__":
    # Small shapes consistent with the module's forward: x (B, S, N, C).
    # M = B*S*N = 256 rows -> score_tile = 128, 2 parallel grid tiles.
    B, S, N, C = 2, 16, 8, 32
    num_heads = 8                      # head_dim = 4

    key = jax.random.PRNGKey(0)
    k_x, k_wqkv, k_wproj, k_bproj = jax.random.split(key, 4)

    x = jax.random.normal(k_x, (B, S, N, C), dtype=jnp.float32)

    # Deterministic parameter init (PyTorch-style uniform bounds).
    bound = 1.0 / (C ** 0.5)
    params = {
        # qkv_bias=False in the reference -> zero bias
        "w_qkv": jax.random.uniform(k_wqkv, (C, 3 * C), jnp.float32,
                                    -bound, bound),
        "b_qkv": jnp.zeros((3 * C,), jnp.float32),
        "w_proj": jax.random.uniform(k_wproj, (C, C), jnp.float32,
                                     -bound, bound),
        "b_proj": jax.random.uniform(k_bproj, (C,), jnp.float32,
                                     -bound, bound),
    }

    fwd = jax.jit(attention_forward, static_argnums=2)
    out = fwd(x, params, num_heads)
    out = jax.block_until_ready(out)

    ref = attention_reference(x, params, num_heads)
    assert out.shape == (B, S, N, C)
    # bf16 projection weights / MXU truncation vs the pure-f32 reference ->
    # relaxed tolerance; real structural bugs would be O(0.1-1).
    assert jnp.allclose(out, ref, atol=5e-2, rtol=5e-2), "mismatch vs reference"

    print("KERNEL_OK")
</pallas_src>

<mosaic_0001>
module attributes {stable_mosaic.version = 11 : i64} {
  func.func @_fused_attention_kernel(%arg0: i32, %arg1: memref<128x32xf32, #tpu.memory_space<vmem>>, %arg2: memref<32x96xbf16, #tpu.memory_space<vmem>>, %arg3: memref<1x96xf32, #tpu.memory_space<vmem>>, %arg4: memref<32x32xf32, #tpu.memory_space<vmem>>, %arg5: memref<1x32xf32, #tpu.memory_space<vmem>>, %arg6: memref<128x128xf32, #tpu.memory_space<vmem>>, %arg7: memref<128x32xf32, #tpu.memory_space<vmem>>) attributes {dimension_semantics = [#tpu.dimension_semantics<parallel>], iteration_bounds = array<i64: 2>, scalar_prefetch = 0 : i64, scratch_operands = 0 : i64, tpu.core_type = #tpu.core_type<tc>, window_params = [{transform_indices = @transform_0, window_bounds = array<i64: 128, 32>}, {pipeline_mode = #tpu.pipeline_mode<synchronous>, transform_indices = @transform_1, window_bounds = array<i64: 32, 96>}, {pipeline_mode = #tpu.pipeline_mode<synchronous>, transform_indices = @transform_2, window_bounds = array<i64: 1, 96>}, {pipeline_mode = #tpu.pipeline_mode<synchronous>, transform_indices = @transform_3, window_bounds = array<i64: 32, 32>}, {pipeline_mode = #tpu.pipeline_mode<synchronous>, transform_indices = @transform_4, window_bounds = array<i64: 1, 32>}, {pipeline_mode = #tpu.pipeline_mode<synchronous>, transform_indices = @transform_5, window_bounds = array<i64: 128, 128>}, {transform_indices = @transform_6, window_bounds = array<i64: 128, 32>}]} {
    %c0 = arith.constant 0 : index
    %c0_0 = arith.constant 0 : index
    %0 = vector.load %arg2[%c0, %c0_0] : memref<32x96xbf16, #tpu.memory_space<vmem>>, vector<32x96xbf16>
    %c0_1 = arith.constant 0 : index
    %c0_2 = arith.constant 0 : index
    %1 = vector.load %arg3[%c0_1, %c0_2] : memref<1x96xf32, #tpu.memory_space<vmem>>, vector<1x96xf32>
    %c0_3 = arith.constant 0 : index
    %c0_4 = arith.constant 0 : index
    %2 = vector.load %arg4[%c0_3, %c0_4] : memref<32x32xf32, #tpu.memory_space<vmem>>, vector<32x32xf32>
    %c0_5 = arith.constant 0 : index
    %c0_6 = arith.constant 0 : index
    %3 = vector.load %arg5[%c0_5, %c0_6] : memref<1x32xf32, #tpu.memory_space<vmem>>, vector<1x32xf32>
    %c0_7 = arith.constant 0 : index
    %c0_8 = arith.constant 0 : index
    %4 = vector.load %arg6[%c0_7, %c0_8] : memref<128x128xf32, #tpu.memory_space<vmem>>, vector<128x128xf32>
    %c0_i32 = arith.constant 0 : i32
    %c128_i32 = arith.constant 128 : i32
    %5 = arith.muli %c0_i32, %c128_i32 : i32
    %6 = tpu.assume_multiple %5, 128 : i32
    %7 = arith.index_cast %6 : i32 to index
    %c0_9 = arith.constant 0 : index
    %8 = vector.load %arg1[%7, %c0_9] : memref<128x32xf32, #tpu.memory_space<vmem>>, vector<128x32xf32>
    %9 = arith.truncf %8 : vector<128x32xf32> to vector<128x32xbf16>
    %cst = arith.constant dense<0.000000e+00> : vector<128x96xf32>
    %10 = tpu.matmul %9, %0, %cst {dimension_numbers = #tpu.dot_dimension_numbers<[1], [0], [0], [1], [0, 0, 1, 1], [], []>} : vector<128x32xbf16>, vector<32x96xbf16>, vector<128x96xf32> -> vector<128x96xf32>
    %11 = vector.broadcast %1 : vector<1x96xf32> to vector<128x96xf32>
    %12 = arith.addf %10, %11 : vector<128x96xf32>
    %cst_10 = arith.constant 0.000000e+00 : f32
    %13 = vector.broadcast %cst_10 : f32 to vector<128x32xf32>
    %14 = vector.extract_strided_slice %12 {offsets = [0, 0], sizes = [128, 4], strides = [1, 1]} : vector<128x96xf32> to vector<128x4xf32>
    %15 = vector.extract_strided_slice %12 {offsets = [0, 32], sizes = [128, 4], strides = [1, 1]} : vector<128x96xf32> to vector<128x4xf32>
    %16 = vector.extract_strided_slice %12 {offsets = [0, 64], sizes = [128, 4], strides = [1, 1]} : vector<128x96xf32> to vector<128x4xf32>
    %cst_11 = arith.constant dense<0.000000e+00> : vector<128x128xf32>
    %17 = tpu.matmul %14, %15, %cst_11 {dimension_numbers = #tpu.dot_dimension_numbers<[1], [1], [0], [0], [0, 0, 1, 0], [], []>} : vector<128x4xf32>, vector<128x4xf32>, vector<128x128xf32> -> vector<128x128xf32>
    %18 = arith.addf %17, %4 : vector<128x128xf32>
    %cst_12 = arith.constant dense<0xFF800000> : vector<128xf32>
    %19 = vector.multi_reduction <maximumf>, %18, %cst_12 [1] : vector<128x128xf32> to vector<128xf32>
    %20 = vector.shape_cast %19 : vector<128xf32> to vector<128x1xf32>
    %21 = vector.broadcast %20 : vector<128x1xf32> to vector<128x128xf32>
    %22 = arith.subf %18, %21 : vector<128x128xf32>
    %23 = math.exp %22 : vector<128x128xf32>
    %cst_13 = arith.constant dense<0.000000e+00> : vector<128xf32>
    %24 = vector.multi_reduction <add>, %23, %cst_13 [1] : vector<128x128xf32> to vector<128xf32>
    %25 = vector.shape_cast %24 : vector<128xf32> to vector<128x1xf32>
    %26 = vector.broadcast %25 : vector<128x1xf32> to vector<128x128xf32>
    %27 = arith.divf %23, %26 : vector<128x128xf32>
    %cst_14 = arith.constant dense<0.000000e+00> : vector<128x4xf32>
    %28 = tpu.matmul %27, %16, %cst_14 {dimension_numbers = #tpu.dot_dimension_numbers<[1], [0], [0], [1], [0, 0, 1, 1], [], []>} : vector<128x128xf32>, vector<128x4xf32>, vector<128x4xf32> -> vector<128x4xf32>
    %29 = vector.extract_strided_slice %2 {offsets = [0, 0], sizes = [4, 32], strides = [1, 1]} : vector<32x32xf32> to vector<4x32xf32>
    %cst_15 = arith.constant dense<0.000000e+00> : vector<128x32xf32>
    %30 = tpu.matmul %28, %29, %cst_15 {dimension_numbers = #tpu.dot_dimension_numbers<[1], [0], [0], [1], [0, 0, 1, 1], [], []>} : vector<128x4xf32>, vector<4x32xf32>, vector<128x32xf32> -> vector<128x32xf32>
    %31 = arith.addf %13, %30 : vector<128x32xf32>
    %32 = vector.extract_strided_slice %12 {offsets = [0, 4], sizes = [128, 4], strides = [1, 1]} : vector<128x96xf32> to vector<128x4xf32>
    %33 = vector.extract_strided_slice %12 {offsets = [0, 36], sizes = [128, 4], strides = [1, 1]} : vector<128x96xf32> to vector<128x4xf32>
    %34 = vector.extract_strided_slice %12 {offsets = [0, 68], sizes = [128, 4], strides = [1, 1]} : vector<128x96xf32> to vector<128x4xf32>
    %cst_16 = arith.constant dense<0.000000e+00> : vector<128x128xf32>
    %35 = tpu.matmul %32, %33, %cst_16 {dimension_numbers = #tpu.dot_dimension_numbers<[1], [1], [0], [0], [0, 0, 1, 0], [], []>} : vector<128x4xf32>, vector<128x4xf32>, vector<128x128xf32> -> vector<128x128xf32>
    %36 = arith.addf %35, %4 : vector<128x128xf32>
    %cst_17 = arith.constant dense<0xFF800000> : vector<128xf32>
    %37 = vector.multi_reduction <maximumf>, %36, %cst_17 [1] : vector<128x128xf32> to vector<128xf32>
    %38 = vector.shape_cast %37 : vector<128xf32> to vector<128x1xf32>
    %39 = vector.broadcast %38 : vector<128x1xf32> to vector<128x128xf32>
    %40 = arith.subf %36, %39 : vector<128x128xf32>
    %41 = math.exp %40 : vector<128x128xf32>
    %cst_18 = arith.constant dense<0.000000e+00> : vector<128xf32>
    %42 = vector.multi_reduction <add>, %41, %cst_18 [1] : vector<128x128xf32> to vector<128xf32>
    %43 = vector.shape_cast %42 : vector<128xf32> to vector<128x1xf32>
    %44 = vector.broadcast %43 : vector<128x1xf32> to vector<128x128xf32>
    %45 = arith.divf %41, %44 : vector<128x128xf32>
    %cst_19 = arith.constant dense<0.000000e+00> : vector<128x4xf32>
    %46 = tpu.matmul %45, %34, %cst_19 {dimension_numbers = #tpu.dot_dimension_numbers<[1], [0], [0], [1], [0, 0, 1, 1], [], []>} : vector<128x128xf32>, vector<128x4xf32>, vector<128x4xf32> -> vector<128x4xf32>
    %47 = vector.extract_strided_slice %2 {offsets = [4, 0], sizes = [4, 32], strides = [1, 1]} : vector<32x32xf32> to vector<4x32xf32>
    %cst_20 = arith.constant dense<0.000000e+00> : vector<128x32xf32>
    %48 = tpu.matmul %46, %47, %cst_20 {dimension_numbers = #tpu.dot_dimension_numbers<[1], [0], [0], [1], [0, 0, 1, 1], [], []>} : vector<128x4xf32>, vector<4x32xf32>, vector<128x32xf32> -> vector<128x32xf32>
    %49 = arith.addf %31, %48 : vector<128x32xf32>
    %50 = vector.extract_strided_slice %12 {offsets = [0, 8], sizes = [128, 4], strides = [1, 1]} : vector<128x96xf32> to vector<128x4xf32>
    %51 = vector.extract_strided_slice %12 {offsets = [0, 40], sizes = [128, 4], strides = [1, 1]} : vector<128x96xf32> to vector<128x4xf32>
    %52 = vector.extract_strided_slice %12 {offsets = [0, 72], sizes = [128, 4], strides = [1, 1]} : vector<128x96xf32> to vector<128x4xf32>
    %cst_21 = arith.constant dense<0.000000e+00> : vector<128x128xf32>
    %53 = tpu.matmul %50, %51, %cst_21 {dimension_numbers = #tpu.dot_dimension_numbers<[1], [1], [0], [0], [0, 0, 1, 0], [], []>} : vector<128x4xf32>, vector<128x4xf32>, vector<128x128xf32> -> vector<128x128xf32>
    %54 = arith.addf %53, %4 : vector<128x128xf32>
    %cst_22 = arith.constant dense<0xFF800000> : vector<128xf32>
    %55 = vector.multi_reduction <maximumf>, %54, %cst_22 [1] : vector<128x128xf32> to vector<128xf32>
    %56 = vector.shape_cast %55 : vector<128xf32> to vector<128x1xf32>
    %57 = vector.broadcast %56 : vector<128x1xf32> to vector<128x128xf32>
    %58 = arith.subf %54, %57 : vector<128x128xf32>
    %59 = math.exp %58 : vector<128x128xf32>
    %cst_23 = arith.constant dense<0.000000e+00> : vector<128xf32>
    %60 = vector.multi_reduction <add>, %59, %cst_23 [1] : vector<128x128xf32> to vector<128xf32>
    %61 = vector.shape_cast %60 : vector<128xf32> to vector<128x1xf32>
    %62 = vector.broadcast %61 : vector<128x1xf32> to vector<128x128xf32>
    %63 = arith.divf %59, %62 : vector<128x128xf32>
    %cst_24 = arith.constant dense<0.000000e+00> : vector<128x4xf32>
    %64 = tpu.matmul %63, %52, %cst_24 {dimension_numbers = #tpu.dot_dimension_numbers<[1], [0], [0], [1], [0, 0, 1, 1], [], []>} : vector<128x128xf32>, vector<128x4xf32>, vector<128x4xf32> -> vector<128x4xf32>
    %65 = vector.extract_strided_slice %2 {offsets = [8, 0], sizes = [4, 32], strides = [1, 1]} : vector<32x32xf32> to vector<4x32xf32>
    %cst_25 = arith.constant dense<0.000000e+00> : vector<128x32xf32>
    %66 = tpu.matmul %64, %65, %cst_25 {dimension_numbers = #tpu.dot_dimension_numbers<[1], [0], [0], [1], [0, 0, 1, 1], [], []>} : vector<128x4xf32>, vector<4x32xf32>, vector<128x32xf32> -> vector<128x32xf32>
    %67 = arith.addf %49, %66 : vector<128x32xf32>
    %68 = vector.extract_strided_slice %12 {offsets = [0, 12], sizes = [128, 4], strides = [1, 1]} : vector<128x96xf32> to vector<128x4xf32>
    %69 = vector.extract_strided_slice %12 {offsets = [0, 44], sizes = [128, 4], strides = [1, 1]} : vector<128x96xf32> to vector<128x4xf32>
    %70 = vector.extract_strided_slice %12 {offsets = [0, 76], sizes = [128, 4], strides = [1, 1]} : vector<128x96xf32> to vector<128x4xf32>
    %cst_26 = arith.constant dense<0.000000e+00> : vector<128x128xf32>
    %71 = tpu.matmul %68, %69, %cst_26 {dimension_numbers = #tpu.dot_dimension_numbers<[1], [1], [0], [0], [0, 0, 1, 0], [], []>} : vector<128x4xf32>, vector<128x4xf32>, vector<128x128xf32> -> vector<128x128xf32>
    %72 = arith.addf %71, %4 : vector<128x128xf32>
    %cst_27 = arith.constant dense<0xFF800000> : vector<128xf32>
    %73 = vector.multi_reduction <maximumf>, %72, %cst_27 [1] : vector<128x128xf32> to vector<128xf32>
    %74 = vector.shape_cast %73 : vector<128xf32> to vector<128x1xf32>
    %75 = vector.broadcast %74 : vector<128x1xf32> to vector<128x128xf32>
    %76 = arith.subf %72, %75 : vector<128x128xf32>
    %77 = math.exp %76 : vector<128x128xf32>
    %cst_28 = arith.constant dense<0.000000e+00> : vector<128xf32>
    %78 = vector.multi_reduction <add>, %77, %cst_28 [1] : vector<128x128xf32> to vector<128xf32>
    %79 = vector.shape_cast %78 : vector<128xf32> to vector<128x1xf32>
    %80 = vector.broadcast %79 : vector<128x1xf32> to vector<128x128xf32>
    %81 = arith.divf %77, %80 : vector<128x128xf32>
    %cst_29 = arith.constant dense<0.000000e+00> : vector<128x4xf32>
    %82 = tpu.matmul %81, %70, %cst_29 {dimension_numbers = #tpu.dot_dimension_numbers<[1], [0], [0], [1], [0, 0, 1, 1], [], []>} : vector<128x128xf32>, vector<128x4xf32>, vector<128x4xf32> -> vector<128x4xf32>
    %83 = vector.extract_strided_slice %2 {offsets = [12, 0], sizes = [4, 32], strides = [1, 1]} : vector<32x32xf32> to vector<4x32xf32>
    %cst_30 = arith.constant dense<0.000000e+00> : vector<128x32xf32>
    %84 = tpu.matmul %82, %83, %cst_30 {dimension_numbers = #tpu.dot_dimension_numbers<[1], [0], [0], [1], [0, 0, 1, 1], [], []>} : vector<128x4xf32>, vector<4x32xf32>, vector<128x32xf32> -> vector<128x32xf32>
    %85 = arith.addf %67, %84 : vector<128x32xf32>
    %86 = vector.extract_strided_slice %12 {offsets = [0, 16], sizes = [128, 4], strides = [1, 1]} : vector<128x96xf32> to vector<128x4xf32>
    %87 = vector.extract_strided_slice %12 {offsets = [0, 48], sizes = [128, 4], strides = [1, 1]} : vector<128x96xf32> to vector<128x4xf32>
    %88 = vector.extract_strided_slice %12 {offsets = [0, 80], sizes = [128, 4], strides = [1, 1]} : vector<128x96xf32> to vector<128x4xf32>
    %cst_31 = arith.constant dense<0.000000e+00> : vector<128x128xf32>
    %89 = tpu.matmul %86, %87, %cst_31 {dimension_numbers = #tpu.dot_dimension_numbers<[1], [1], [0], [0], [0, 0, 1, 0], [], []>} : vector<128x4xf32>, vector<128x4xf32>, vector<128x128xf32> -> vector<128x128xf32>
    %90 = arith.addf %89, %4 : vector<128x128xf32>
    %cst_32 = arith.constant dense<0xFF800000> : vector<128xf32>
    %91 = vector.multi_reduction <maximumf>, %90, %cst_32 [1] : vector<128x128xf32> to vector<128xf32>
    %92 = vector.shape_cast %91 : vector<128xf32> to vector<128x1xf32>
    %93 = vector.broadcast %92 : vector<128x1xf32> to vector<128x128xf32>
    %94 = arith.subf %90, %93 : vector<128x128xf32>
    %95 = math.exp %94 : vector<128x128xf32>
    %cst_33 = arith.constant dense<0.000000e+00> : vector<128xf32>
    %96 = vector.multi_reduction <add>, %95, %cst_33 [1] : vector<128x128xf32> to vector<128xf32>
    %97 = vector.shape_cast %96 : vector<128xf32> to vector<128x1xf32>
    %98 = vector.broadcast %97 : vector<128x1xf32> to vector<128x128xf32>
    %99 = arith.divf %95, %98 : vector<128x128xf32>
    %cst_34 = arith.constant dense<0.000000e+00> : vector<128x4xf32>
    %100 = tpu.matmul %99, %88, %cst_34 {dimension_numbers = #tpu.dot_dimension_numbers<[1], [0], [0], [1], [0, 0, 1, 1], [], []>} : vector<128x128xf32>, vector<128x4xf32>, vector<128x4xf32> -> vector<128x4xf32>
    %101 = vector.extract_strided_slice %2 {offsets = [16, 0], sizes = [4, 32], strides = [1, 1]} : vector<32x32xf32> to vector<4x32xf32>
    %cst_35 = arith.constant dense<0.000000e+00> : vector<128x32xf32>
    %102 = tpu.matmul %100, %101, %cst_35 {dimension_numbers = #tpu.dot_dimension_numbers<[1], [0], [0], [1], [0, 0, 1, 1], [], []>} : vector<128x4xf32>, vector<4x32xf32>, vector<128x32xf32> -> vector<128x32xf32>
    %103 = arith.addf %85, %102 : vector<128x32xf32>
    %104 = vector.extract_strided_slice %12 {offsets = [0, 20], sizes = [128, 4], strides = [1, 1]} : vector<128x96xf32> to vector<128x4xf32>
    %105 = vector.extract_strided_slice %12 {offsets = [0, 52], sizes = [128, 4], strides = [1, 1]} : vector<128x96xf32> to vector<128x4xf32>
    %106 = vector.extract_strided_slice %12 {offsets = [0, 84], sizes = [128, 4], strides = [1, 1]} : vector<128x96xf32> to vector<128x4xf32>
    %cst_36 = arith.constant dense<0.000000e+00> : vector<128x128xf32>
    %107 = tpu.matmul %104, %105, %cst_36 {dimension_numbers = #tpu.dot_dimension_numbers<[1], [1], [0], [0], [0, 0, 1, 0], [], []>} : vector<128x4xf32>, vector<128x4xf32>, vector<128x128xf32> -> vector<128x128xf32>
    %108 = arith.addf %107, %4 : vector<128x128xf32>
    %cst_37 = arith.constant dense<0xFF800000> : vector<128xf32>
    %109 = vector.multi_reduction <maximumf>, %108, %cst_37 [1] : vector<128x128xf32> to vector<128xf32>
    %110 = vector.shape_cast %109 : vector<128xf32> to vector<128x1xf32>
    %111 = vector.broadcast %110 : vector<128x1xf32> to vector<128x128xf32>
    %112 = arith.subf %108, %111 : vector<128x128xf32>
    %113 = math.exp %112 : vector<128x128xf32>
    %cst_38 = arith.constant dense<0.000000e+00> : vector<128xf32>
    %114 = vector.multi_reduction <add>, %113, %cst_38 [1] : vector<128x128xf32> to vector<128xf32>
    %115 = vector.shape_cast %114 : vector<128xf32> to vector<128x1xf32>
    %116 = vector.broadcast %115 : vector<128x1xf32> to vector<128x128xf32>
    %117 = arith.divf %113, %116 : vector<128x128xf32>
    %cst_39 = arith.constant dense<0.000000e+00> : vector<128x4xf32>
    %118 = tpu.matmul %117, %106, %cst_39 {dimension_numbers = #tpu.dot_dimension_numbers<[1], [0], [0], [1], [0, 0, 1, 1], [], []>} : vector<128x128xf32>, vector<128x4xf32>, vector<128x4xf32> -> vector<128x4xf32>
    %119 = vector.extract_strided_slice %2 {offsets = [20, 0], sizes = [4, 32], strides = [1, 1]} : vector<32x32xf32> to vector<4x32xf32>
    %cst_40 = arith.constant dense<0.000000e+00> : vector<128x32xf32>
    %120 = tpu.matmul %118, %119, %cst_40 {dimension_numbers = #tpu.dot_dimension_numbers<[1], [0], [0], [1], [0, 0, 1, 1], [], []>} : vector<128x4xf32>, vector<4x32xf32>, vector<128x32xf32> -> vector<128x32xf32>
    %121 = arith.addf %103, %120 : vector<128x32xf32>
    %122 = vector.extract_strided_slice %12 {offsets = [0, 24], sizes = [128, 4], strides = [1, 1]} : vector<128x96xf32> to vector<128x4xf32>
    %123 = vector.extract_strided_slice %12 {offsets = [0, 56], sizes = [128, 4], strides = [1, 1]} : vector<128x96xf32> to vector<128x4xf32>
    %124 = vector.extract_strided_slice %12 {offsets = [0, 88], sizes = [128, 4], strides = [1, 1]} : vector<128x96xf32> to vector<128x4xf32>
    %cst_41 = arith.constant dense<0.000000e+00> : vector<128x128xf32>
    %125 = tpu.matmul %122, %123, %cst_41 {dimension_numbers = #tpu.dot_dimension_numbers<[1], [1], [0], [0], [0, 0, 1, 0], [], []>} : vector<128x4xf32>, vector<128x4xf32>, vector<128x128xf32> -> vector<128x128xf32>
    %126 = arith.addf %125, %4 : vector<128x128xf32>
    %cst_42 = arith.constant dense<0xFF800000> : vector<128xf32>
    %127 = vector.multi_reduction <maximumf>, %126, %cst_42 [1] : vector<128x128xf32> to vector<128xf32>
    %128 = vector.shape_cast %127 : vector<128xf32> to vector<128x1xf32>
    %129 = vector.broadcast %128 : vector<128x1xf32> to vector<128x128xf32>
    %130 = arith.subf %126, %129 : vector<128x128xf32>
    %131 = math.exp %130 : vector<128x128xf32>
    %cst_43 = arith.constant dense<0.000000e+00> : vector<128xf32>
    %132 = vector.multi_reduction <add>, %131, %cst_43 [1] : vector<128x128xf32> to vector<128xf32>
    %133 = vector.shape_cast %132 : vector<128xf32> to vector<128x1xf32>
    %134 = vector.broadcast %133 : vector<128x1xf32> to vector<128x128xf32>
    %135 = arith.divf %131, %134 : vector<128x128xf32>
    %cst_44 = arith.constant dense<0.000000e+00> : vector<128x4xf32>
    %136 = tpu.matmul %135, %124, %cst_44 {dimension_numbers = #tpu.dot_dimension_numbers<[1], [0], [0], [1], [0, 0, 1, 1], [], []>} : vector<128x128xf32>, vector<128x4xf32>, vector<128x4xf32> -> vector<128x4xf32>
    %137 = vector.extract_strided_slice %2 {offsets = [24, 0], sizes = [4, 32], strides = [1, 1]} : vector<32x32xf32> to vector<4x32xf32>
    %cst_45 = arith.constant dense<0.000000e+00> : vector<128x32xf32>
    %138 = tpu.matmul %136, %137, %cst_45 {dimension_numbers = #tpu.dot_dimension_numbers<[1], [0], [0], [1], [0, 0, 1, 1], [], []>} : vector<128x4xf32>, vector<4x32xf32>, vector<128x32xf32> -> vector<128x32xf32>
    %139 = arith.addf %121, %138 : vector<128x32xf32>
    %140 = vector.extract_strided_slice %12 {offsets = [0, 28], sizes = [128, 4], strides = [1, 1]} : vector<128x96xf32> to vector<128x4xf32>
    %141 = vector.extract_strided_slice %12 {offsets = [0, 60], sizes = [128, 4], strides = [1, 1]} : vector<128x96xf32> to vector<128x4xf32>
    %142 = vector.extract_strided_slice %12 {offsets = [0, 92], sizes = [128, 4], strides = [1, 1]} : vector<128x96xf32> to vector<128x4xf32>
    %cst_46 = arith.constant dense<0.000000e+00> : vector<128x128xf32>
    %143 = tpu.matmul %140, %141, %cst_46 {dimension_numbers = #tpu.dot_dimension_numbers<[1], [1], [0], [0], [0, 0, 1, 0], [], []>} : vector<128x4xf32>, vector<128x4xf32>, vector<128x128xf32> -> vector<128x128xf32>
    %144 = arith.addf %143, %4 : vector<128x128xf32>
    %cst_47 = arith.constant dense<0xFF800000> : vector<128xf32>
    %145 = vector.multi_reduction <maximumf>, %144, %cst_47 [1] : vector<128x128xf32> to vector<128xf32>
    %146 = vector.shape_cast %145 : vector<128xf32> to vector<128x1xf32>
    %147 = vector.broadcast %146 : vector<128x1xf32> to vector<128x128xf32>
    %148 = arith.subf %144, %147 : vector<128x128xf32>
    %149 = math.exp %148 : vector<128x128xf32>
    %cst_48 = arith.constant dense<0.000000e+00> : vector<128xf32>
    %150 = vector.multi_reduction <add>, %149, %cst_48 [1] : vector<128x128xf32> to vector<128xf32>
    %151 = vector.shape_cast %150 : vector<128xf32> to vector<128x1xf32>
    %152 = vector.broadcast %151 : vector<128x1xf32> to vector<128x128xf32>
    %153 = arith.divf %149, %152 : vector<128x128xf32>
    %cst_49 = arith.constant dense<0.000000e+00> : vector<128x4xf32>
    %154 = tpu.matmul %153, %142, %cst_49 {dimension_numbers = #tpu.dot_dimension_numbers<[1], [0], [0], [1], [0, 0, 1, 1], [], []>} : vector<128x128xf32>, vector<128x4xf32>, vector<128x4xf32> -> vector<128x4xf32>
    %155 = vector.extract_strided_slice %2 {offsets = [28, 0], sizes = [4, 32], strides = [1, 1]} : vector<32x32xf32> to vector<4x32xf32>
    %cst_50 = arith.constant dense<0.000000e+00> : vector<128x32xf32>
    %156 = tpu.matmul %154, %155, %cst_50 {dimension_numbers = #tpu.dot_dimension_numbers<[1], [0], [0], [1], [0, 0, 1, 1], [], []>} : vector<128x4xf32>, vector<4x32xf32>, vector<128x32xf32> -> vector<128x32xf32>
    %157 = arith.addf %139, %156 : vector<128x32xf32>
    %158 = vector.broadcast %3 : vector<1x32xf32> to vector<128x32xf32>
    %159 = arith.addf %157, %158 : vector<128x32xf32>
    %160 = arith.index_cast %6 : i32 to index
    %c0_51 = arith.constant 0 : index
    %161 = vector.load %arg7[%160, %c0_51] : memref<128x32xf32, #tpu.memory_space<vmem>>, vector<128x32xf32>
    tpu.vector_store %arg7[%160, %c0_51], %159 {strides = array<i32>} : memref<128x32xf32, #tpu.memory_space<vmem>>, vector<128x32xf32>,
    %c1_i32 = arith.constant 1 : i32
    return
  }
  func.func @transform_0(%arg0: i32) -> (i32, i32) {
    %c0_i32 = arith.constant 0 : i32
    %c0_i32_0 = arith.constant 0 : i32
    return %arg0, %c0_i32 : i32, i32
  }
  func.func @transform_1(%arg0: i32) -> (i32, i32) {
    %c0_i32 = arith.constant 0 : i32
    %c0_i32_0 = arith.constant 0 : i32
    %c0_i32_1 = arith.constant 0 : i32
    return %c0_i32, %c0_i32_0 : i32, i32
  }
  func.func @transform_2(%arg0: i32) -> (i32, i32) {
    %c0_i32 = arith.constant 0 : i32
    %c0_i32_0 = arith.constant 0 : i32
    %c0_i32_1 = arith.constant 0 : i32
    return %c0_i32, %c0_i32_0 : i32, i32
  }
  func.func @transform_3(%arg0: i32) -> (i32, i32) {
    %c0_i32 = arith.constant 0 : i32
    %c0_i32_0 = arith.constant 0 : i32
    %c0_i32_1 = arith.constant 0 : i32
    return %c0_i32, %c0_i32_0 : i32, i32
  }
  func.func @transform_4(%arg0: i32) -> (i32, i32) {
    %c0_i32 = arith.constant 0 : i32
    %c0_i32_0 = arith.constant 0 : i32
    %c0_i32_1 = arith.constant 0 : i32
    return %c0_i32, %c0_i32_0 : i32, i32
  }
  func.func @transform_5(%arg0: i32) -> (i32, i32) {
    %c0_i32 = arith.constant 0 : i32
    %c0_i32_0 = arith.constant 0 : i32
    %c0_i32_1 = arith.constant 0 : i32
    return %c0_i32, %c0_i32_0 : i32, i32
  }
  func.func @transform_6(%arg0: i32) -> (i32, i32) {
    %c0_i32 = arith.constant 0 : i32
    %c0_i32_0 = arith.constant 0 : i32
    return %arg0, %c0_i32 : i32, i32
  }
}

</mosaic_0001>

<bundles_post_ra>
// kernel: attention_forward.1
= control target key start
LH: loop header
LB: loop body
LE: loop exit
PB: predicated region body
PF: predicated region fallthrough
CT: control target
= control target key end

     0   :  { %11 = vsyncpa [#allocation3], 0  ;;  %s12743_s0 = inlined_call_operand.hbm [shape: f32[256,32], index: 0, kind: input, shape index: {}]   ;;  %s12744_s1 = inlined_call_operand.vmem [shape: bf16[32,96], index: 1, kind: input, shape index: {}]   ;;  %s12745_s2 = inlined_call_operand.vmem [shape: f32[1,96], index: 2, kind: input, shape index: {}]   ;;  %s12746_s3 = inlined_call_operand.vmem [shape: f32[32,32], index: 3, kind: input, shape index: {}]   ;;  %s12747_s4 = inlined_call_operand.vmem [shape: f32[1,32], index: 4, kind: input, shape index: {}]   ;;  %s12748_s5 = inlined_call_operand.vmem [shape: f32[128,128], index: 5, kind: input, shape index: {}]   ;;  %s12749_s6 = inlined_call_operand.hbm [shape: f32[256,32], index: 6, kind: output, shape index: {}]  }
   0x1   :  { %13 = vsyncpa [#allocation3 + $0x1], 0 }
   0x2   :  { %14 = vsyncpa [#allocation4], 0 }
   0x3   :  { %16 = vsyncpa [#allocation4 + $0x1], 0  ;;  %s8372_s21 = smov 0   ;;  %s8374_s22 = smov 0  }
   0x4   :  { %s8376_s23 = smov 0   ;;  %s8378_s24 = smov 0  }
   0x5 LB: > { %s8393_s25 = sadd.s32 4294967295, %s8308_s24   ;;  %s6812_s26 = sadd.s32 4294967294, %s8308_s24   ;;  %s8308_s24 = sphi %s8378_s24, %s13134_s24   ;;  %s8304_s23 = sphi %s8376_s23, %s13133_s23   ;;  %s8300_s22 = sphi %s8374_s22, %s13132_s22   ;;  %s8296_s21 = sphi %s8372_s21, %s13131_s21  }
   0x6   : > { %s8397_s27 = sadd.s32 1, %s8308_s24   ;;  %s29_s28 = sadd.s32 1, %s8304_s23 }
   0x7   : > { %s26_s29 = ssub.s32 %s8308_s24, %s8397_s27  ;;  %p36_p0 = scmp.ne.s32.totalorder %s8304_s23, %s8300_s22 }
   0x8   : > { %p27_p1 = scmp.eq.s32.totalorder %s26_s29, 0  ;;  %p37_p2 = scmp.eq.s32.totalorder %s8308_s24, 0 }
   0x9   : > { %p42_p3 = scmp.ne.s32.totalorder %s8300_s22, %s8296_s21  ;;  %p43_p4 = scmp.eq.s32.totalorder %s8393_s25, 0 }
   0xa   : > { %s8409_s30 = scalar_select %p27_p1, %s8304_s23, %s29_s28  }
   0xb   : > { %p8411_p5 = por %p37_p2, %p36_p0  ;;  %p8415_p6 = por %p43_p4, %p42_p3 }
   0xc   : > { %p171_p7 = scmp.eq.s32.totalorder %s8393_s25, 1  ;;  %p177_p8 = scmp.eq.s32.totalorder %s6812_s26, 1 }
   0xd   : > { %p7252_p10 = scmp.lt.s32.totalorder %s8308_s24, 2  ;;  %s212_s11 = sand.u32 1, %s8304_s23  }
   0xe   : > { %p8422_p11 = por %p171_p7, %p36_p0  ;;  %p8426_p12 = por %p177_p8, %p42_p3 }
   0xf   : > { %s7234_s12 = sshll.u32 %s8308_s24, 7  ;;  %s6815_s13 = sshll.u32 %s212_s11, 7 }
  0x10   : > { %s221_s16 = scalar_lea.hbm %s12743_s0, %s7234_s12  ;;  %s216_s18 = scalar_lea.vmem [#allocation2], %s6815_s13 }
  0x11   : > { %s222_s17 = sshll.u32 %s221_s16, 4  ;;  %s224_s19 = sshll.u32 %s216_s18, 4  ;;  %s223_s17 = int_to_ptr.hbm [resolvable:$true] %s222_s17  ;;  %s225_s19 = int_to_ptr.vmem [resolvable:$true] %s224_s19 }
  0x12   : > { %p8437_p13 = pnand %p7252_p10, %p8411_p5  ;;  %p6818_p0 = scmp.ge.s32.totalorder %s8308_s24, 1 }
  0x13   : > { %p232_p1 = scmp.lt.s32.totalorder %s8308_s24, 3  ;;  %s213_s26 = scalar_lea.sflag [#allocation3], %s212_s11 }
  0x14   : > { %s8212_s28 = sshra.s32 %s223_s17, 4  ;;  %p8216_p3 = pneg %p8437_p13  ;;  %s8213_s28 = int_to_ptr.hbm [resolvable:$true] %s8212_s28 }
  0x15   : > { %s8214_s29 = scalar_lea.hbm %s8213_s28, 128  ;;  %s8219_s7 = scalar_lea.hbm %s12743_s0, 256 }
  0x16   : > { %p8215_p2 = scmp.ne.s32.totalorder %s8213_s28, %s8214_s29  ;;  %p8220_p5 = scmp.lt.s32.totalorder %s8213_s28, %s12743_s0 }
  0x17   : > { %p8221_p8 = scmp.lt.s32.totalorder %s8219_s7, %s8214_s29 }
  0x18   : > { %p8217_p4 = pnand %p8216_p3, %p8215_p2 }
  0x19   : > { %p8222_p10 = por %p8221_p8, %p8220_p5 }
  0x1a   : > { %p8218_p7 = pneg %p8217_p4 }
  0x1c   : > { %p8223_p9 = pnand %p8222_p10, %p8218_p7 }
  0x1e   : > { %8226 = shalt.err (!%p8223_p9)
}
  0x1f   : > { %s8310_s11 = smov 128   ;;  %s8311_s16 = smov 8  }
  0x20   : > { %7247 = dma.hbm_to_vmem [thread:$0]  (!%p8437_p13), %s223_s17, 2048, %s225_s19, %s213_s26, %s8310_s11, %s8310_s11, %s8311_s16  }
  0x21   : > { %p233_p2 = pnand %p6818_p0, %p232_p1 }
  0x23   : > { %236 = sbr.rel (%p233_p2) target bundleno = 4115 (0x1013), region = 44 }
  0x28   : > { %s8458_s18 = sand.u32 1, %s8300_s22  }
  0x29   : > { %s6819_s28 = sshll.u32 %s8458_s18, 7  ;;  %s239_s29 = scalar_lea.sflag [#allocation3], %s8458_s18 }
  0x2a   : > { %s8464_s12 = scalar_lea.vmem [#allocation2], %s6819_s28 }
  0x2b   : > { %8287 = dma.done.wait (%p8415_p6), %s239_s29, 2048  }
  0x2c   : > { %8289 = vsyncadd (%p8415_p6), %s239_s29, 4294965248  ;;  %v7236_v0 = vld [vmem:[%s12744_s1 + $0x8] sm:$0xff]  ;;  %v7235_v1 = vld [vmem:[%s12744_s1] sm:$0xff]  ;;  %vm340_vm0 = vcmask 261120   ;;  %s8312_s7 = smov 92   ;;  %s8313_s14 = smov 96  }
  0x2d   : > { %v301_v2 = vld [vmem:[%s8464_s12] sm:$0xff]  ;;  %371 = vmatpush.bf16.msra.mxu0 %v7236_v0  ;;  %7238 = vmatpush.bf16.msra.mxu2 %v7236_v0  ;;  %v302_v3 = vld [vmem:[%s8464_s12 + $0x8] sm:$0xff]  ;;  %v303_v8 = vld [vmem:[%s8464_s12 + $0x10] sm:$0xff]  ;;  %s8314_s15 = smov 124   ;;  %s8315_s11 = smov 64   ;;  %vm462_vm1 = vcmask 31744  }
  0x2e   : > { %v309_v4 = vld [vmem:[%s8464_s12 + $0x40] sm:$0xff]  ;;  %v310_v5 = vld [vmem:[%s8464_s12 + $0x48] sm:$0xff]  ;;  %v317_v6 = vpack.c.bf16 %v302_v3, %v301_v2  ;;  %v304_v9 = vld [vmem:[%s8464_s12 + $0x18] sm:$0xff]  ;;  %s8316_s16 = smov 88   ;;  %s8317_s29 = smov 84   ;;  %vm1765_vm2 = vcmask 1043456  }
  0x2f   : > { %v321_v7 = vpack.c.bf16 %v310_v5, %v309_v4  ;;  %v311_v10 = vld [vmem:[%s8464_s12 + $0x50] sm:$0xff]  ;;  %v312_v11 = vld [vmem:[%s8464_s12 + $0x58] sm:$0xff]  ;;  %v318_v12 = vpack.c.bf16 %v304_v9, %v303_v8  ;;  %v305_v14 = vld [vmem:[%s8464_s12 + $0x20] sm:$0xff]  ;;  %s8319_s17 = smov 116   ;;  %s8320_s26 = smov 60  }
  0x30   : > { %v322_v13 = vpack.c.bf16 %v312_v11, %v311_v10  ;;  %v306_v15 = vld [vmem:[%s8464_s12 + $0x28] sm:$0xff]  ;;  %v313_v16 = vld [vmem:[%s8464_s12 + $0x60] sm:$0xff]  ;;  %v307_v20 = vld [vmem:[%s8464_s12 + $0x30] sm:$0xff]  ;;  %s8323_s20 = smov 80   ;;  %s8324_s8 = smov 76  }
  0x31   : > { %372 = vmatpush.bf16.msra.mxu0 %v7235_v1  ;;  %7239 = vmatpush.bf16.msra.mxu2 %v7235_v1  ;;  %v314_v17 = vld [vmem:[%s8464_s12 + $0x68] sm:$0xff]  ;;  %v319_v18 = vpack.c.bf16 %v306_v15, %v305_v14  ;;  %v308_v21 = vld [vmem:[%s8464_s12 + $0x38] sm:$0xff]  ;;  %v315_v22 = vld [vmem:[%s8464_s12 + $0x70] sm:$0xff]  ;;  %s8262_s13 = scalar_lea.hbm %s12749_s6, 256 }
  0x32   : > { %v323_v19 = vpack.c.bf16 %v314_v17, %v313_v16  ;;  %v316_v23 = vld [vmem:[%s8464_s12 + $0x78] sm:$0xff]  ;;  %v320_v24 = vpack.c.bf16 %v308_v21, %v307_v20  ;;  %v8503_v26 = vld [vmem:[%s12745_s2] ss:$0 sm:$0xff]  ;;  %s8318_s12 = smov 120  }
  0x33   : > { %v324_v25 = vpack.c.bf16 %v316_v23, %v315_v22 }
  0x34   : > { %6829 = vmatmul.msk.bf16.vlgmr.msra.gmra.mxu0 %vm340_vm0, %v317_v6  ;;  %6833 = vmatmul.msk.bf16.vlgmr.msra.gmra.mxu2 %vm340_vm0, %v321_v7 }
  0x44   : > { %6830 = vmatmul.msk.bf16.gmra.mxu0 %vm340_vm0, %v318_v12  ;;  %6834 = vmatmul.msk.bf16.gmra.mxu2 %vm340_vm0, %v322_v13 }
  0x54   : > { %6831 = vmatmul.msk.bf16.gmra.mxu0 %vm340_vm0, %v319_v18  ;;  %6835 = vmatmul.msk.bf16.gmra.mxu2 %vm340_vm0, %v323_v19 }
  0x64   : > { %6832 = vmatmul.msk.bf16.gmra.mxu0 %vm340_vm0, %v320_v24  ;;  %6836 = vmatmul.msk.bf16.gmra.mxu2 %vm340_vm0, %v324_v25 }
  0xb1   : > { %v374_v27 = vpop.f32.mrf.mxu0 }
  0xb2   : > { %v8506_v28 = vadd.f32 %v8503_v26, %v374_v27 }
  0xb4   : > { %12821 = vst [vmem:[#allocation8_spill] sm:$0xff] %v8506_v28  ;;  %1089 = vrot.lane.b32.xlu1 %v8506_v28, %s8312_s7  ;;  %430 = vrot.lane.b32.xlu0 %v8506_v28, %s8313_s14 }
  0xb7   : > { %v394_v29 = vpop.f32.mrf.mxu2 }
  0xb8   : > { %v8513_v30 = vadd.f32 %v8503_v26, %v394_v29 }
  0xb9   : > { %v376_v31 = vpop.f32.mrf.mxu0 }
  0xba   : > { %12822 = vst [vmem:[#allocation9_spill] sm:$0xff] %v8513_v30  ;;  %1105 = vrot.lane.b32.xlu2 %v8513_v30, %s8312_s7  ;;  %v8522_v33 = vadd.f32 %v8503_v26, %v376_v31 }
  0xbc   : > { %446 = vrot.lane.b32.xlu1 %v8513_v30, %s8313_s14  ;;  %1057 = vrot.lane.b32.xlu0 %v8506_v28, %s8314_s15  ;;  %12823 = vst [vmem:[#allocation10_spill] sm:$0xff] %v8522_v33  ;;  %v8539_v38 = vpack.i.bf16 %v8506_v28, %v8522_v33 }
  0xbe   : > { %12826 = vst [vmem:[#allocation13_spill] sm:$0xff] %v8539_v38 }
  0xbf   : > { %v396_v32 = vpop.f32.mrf.mxu2 }
  0xc0   : > { %v8525_v34 = vadd.f32 %v8503_v26, %v396_v32 }
  0xc1   : > { %v379_v35 = vpop.f32.mrf.mxu0 }
  0xc2   : > { %12824 = vst [vmem:[#allocation11_spill] sm:$0xff] %v8525_v34  ;;  %432 = vrot.lane.b32.xlu2 %v8522_v33, %s8313_s14  ;;  %v8531_v36 = vpack.i.bf16 %v8513_v30, %v8525_v34  ;;  %v8542_v40 = vadd.f32 %v8503_v26, %v379_v35 }
  0xc4   : > { %12825 = vst [vmem:[#allocation12_spill] sm:$0xff] %v8531_v36  ;;  %7319 = vrot.lane.b32.xlu1 %v8531_v36, %s8315_s11  ;;  %448 = vrot.lane.b32.xlu0 %v8525_v34, %s8313_s14 }
  0xc5   : > { %12827 = vst [vmem:[#allocation14_spill] sm:$0xff] %v8542_v40 }
  0xc7   : > { %v399_v37 = vpop.f32.mrf.mxu2 }
  0xc8   : > { %v8589_v52 = vadd.f32 %v8503_v26, %v399_v37 }
  0xc9   : > { %v381_v39 = vpop.f32.mrf.mxu0 }
  0xca   : > { %v8545_v41 = vadd.f32 %v8503_v26, %v381_v39  ;;  %7314 = vrot.lane.b32.xlu2 %v8539_v38, %s8315_s11  ;;  %12834 = vst [vmem:[#allocation21_spill] sm:$0xff] %v8589_v52 }
  0xcc   : > { %12828 = vst [vmem:[#allocation15_spill] sm:$0xff] %v8545_v41  ;;  %434 = vrot.lane.b32.xlu1 %v8542_v40, %s8313_s14  ;;  %436 = vrot.lane.b32.xlu0 %v8545_v41, %s8313_s14  ;;  %v8557_v44 = vpack.i.bf16 %v8542_v40, %v8545_v41 }
  0xce   : > { %12829 = vst [vmem:[#allocation16_spill] sm:$0xff] %v8557_v44 }
  0xcf   : > { %v401_v42 = vpop.f32.mrf.mxu2 }
  0xd0   : > { %v8616_v57 = vadd.f32 %v8503_v26, %v401_v42 }
  0xd1   : > { %v384_v43 = vpop.f32.mrf.mxu0 }
  0xd2   : > { %1091 = vrot.lane.b32.xlu2 %v8522_v33, %s8312_s7  ;;  %v8576_v49 = vadd.f32 %v8503_v26, %v384_v43  ;;  %12837 = vst [vmem:[#allocation24_spill] sm:$0xff] %v8616_v57  ;;  %v8629_v59 = vpack.i.bf16 %v8589_v52, %v8616_v57 }
  0xd4   : > { %1093 = vrot.lane.b32.xlu1 %v8542_v40, %s8312_s7  ;;  %7324 = vrot.lane.b32.xlu0 %v8557_v44, %s8315_s11  ;;  %12832 = vst [vmem:[#allocation19_spill] sm:$0xff] %v8576_v49 }
  0xd5   : > { %12839 = vst [vmem:[#allocation26_spill] sm:$0xff] %v8629_v59 }
  0xd7   : > { %v404_v45 = vpop.f32.mrf.mxu2 }
  0xd8   : > { %v8564_v46 = vadd.f32 %v8503_v26, %v404_v45 }
  0xd9   : > { %v386_v47 = vpop.f32.mrf.mxu0 }
  0xda   : > { %12830 = vst [vmem:[#allocation17_spill] sm:$0xff] %v8564_v46  ;;  %1059 = vrot.lane.b32.xlu2 %v8522_v33, %s8314_s15  ;;  %v8573_v48 = vadd.f32 %v8503_v26, %v386_v47 }
  0xdc   : > { %1061 = vrot.lane.b32.xlu1 %v8542_v40, %s8314_s15  ;;  %1113 = vrot.lane.b32.xlu0 %v8564_v46, %s8312_s7  ;;  %12831 = vst [vmem:[#allocation18_spill] sm:$0xff] %v8573_v48  ;;  %v8582_v50 = vpack.i.bf16 %v8576_v49, %v8573_v48 }
  0xde   : > { %12833 = vst [vmem:[#allocation20_spill] sm:$0xff] %v8582_v50 }
  0xdf   : > { %v406_v54 = vpop.f32.mrf.mxu2 }
  0xe0   : > { %v8619_v58 = vadd.f32 %v8503_v26, %v406_v54 }
  0xe1   : > { %v389_v51 = vpop.f32.mrf.mxu0 }
  0xe2   : > { %1107 = vrot.lane.b32.xlu2 %v8525_v34, %s8312_s7  ;;  %v8592_v53 = vadd.f32 %v8503_v26, %v389_v51  ;;  %12838 = vst [vmem:[#allocation25_spill] sm:$0xff] %v8619_v58  ;;  %v8641_v60 = vpack.i.bf16 %v8564_v46, %v8619_v58 }
  0xe4   : > { %1095 = vrot.lane.b32.xlu1 %v8545_v41, %s8312_s7  ;;  %7334 = vrot.lane.b32.xlu0 %v8582_v50, %s8315_s11  ;;  %12835 = vst [vmem:[#allocation22_spill] sm:$0xff] %v8592_v53 }
  0xe5   : > { %12840 = vst [vmem:[#allocation27_spill] sm:$0xff] %v8641_v60 }
  0xe7   : > { %v409_v55 = vpop.f32.mrf.mxu2 }
  0xe8   : > { %v8607_v56 = vadd.f32 %v8503_v26, %v409_v55 }
  0xe9   : > { %v391_v63 = vpop.f32.mrf.mxu0 }
  0xea   : > { %450 = vrot.lane.b32.xlu2 %v8589_v52, %s8313_s14  ;;  %12836 = vst [vmem:[#allocation23_spill] sm:$0xff] %v8607_v56  ;;  %v8658_v0 = vadd.f32 %v8503_v26, %v391_v63 }
  0xec   : > { %1097 = vrot.lane.b32.xlu1 %v8576_v49, %s8312_s7  ;;  %442 = vrot.lane.b32.xlu0 %v8592_v53, %s8313_s14  ;;  %12841 = vst [vmem:[#allocation28_spill] sm:$0xff] %v8658_v0  ;;  %v8717_v16 = vpack.i.bf16 %v8592_v53, %v8658_v0 }
  0xee   : > { %12845 = vst [vmem:[#allocation32_spill] sm:$0xff] %v8717_v16 }
  0xef   : > { %v411_v4 = vpop.f32.mrf.mxu2 }
  0xf0   : > { %v8673_v5 = vadd.f32 %v8503_v26, %v411_v4 }
  0xf2   : > { %1109 = vrot.lane.b32.xlu2 %v8589_v52, %s8312_s7  ;;  %12842 = vst [vmem:[#allocation29_spill] sm:$0xff] %v8673_v5  ;;  %v8691_v9 = vpack.i.bf16 %v8607_v56, %v8673_v5 }
  0xf4   : > { %1065 = vrot.lane.b32.xlu1 %v8576_v49, %s8314_s15  ;;  %1069 = vrot.lane.b32.xlu0 %v8592_v53, %s8314_s15  ;;  %12843 = vst [vmem:[#allocation30_spill] sm:$0xff] %v8691_v9 }
  0xfa   : > { %1063 = vrot.lane.b32.xlu2 %v8545_v41, %s8314_s15 }
  0xfc   : > { %454 = vrot.lane.b32.xlu1 %v8564_v46, %s8313_s14  ;;  %458 = vrot.lane.b32.xlu0 %v8607_v56, %s8313_s14 }
 0x102   : > { %452 = vrot.lane.b32.xlu2 %v8616_v57, %s8313_s14 }
 0x104   : > { %440 = vrot.lane.b32.xlu1 %v8573_v48, %s8313_s14  ;;  %2006 = vrot.lane.b32.xlu0 %v8619_v58, %s8316_s16 }
 0x10a   : > { %7329 = vrot.lane.b32.xlu2 %v8629_v59, %s8315_s11 }
 0x10c   : > { %456 = vrot.lane.b32.xlu1 %v8619_v58, %s8313_s14  ;;  %2798 = vrot.lane.b32.xlu0 %v8607_v56, %s8317_s29 }
 0x112   : > { %1111 = vrot.lane.b32.xlu2 %v8616_v57, %s8312_s7 }
 0x114   : > { %v8643_v61 = vpop.permute.xlu2 %1105  ;;  %7339 = vrot.lane.b32.xlu1 %v8641_v60, %s8315_s11  ;;  %2796 = vrot.lane.b32.xlu0 %v8619_v58, %s8317_s29 }
 0x11a   : > { %438 = vrot.lane.b32.xlu2 %v8576_v49, %s8313_s14 }
 0x11c   : > { %v8651_v62 = vpop.permute.xlu2 %432  ;;  %1115 = vrot.lane.b32.xlu1 %v8619_v58, %s8312_s7  ;;  %1079 = vrot.lane.b32.xlu0 %v8616_v57, %s8314_s15 }
 0x122   : > { %1099 = vrot.lane.b32.xlu2 %v8573_v48, %s8312_s7 }
 0x124   : > { %v8662_v1 = vpop.permute.xlu2 %7314  ;;  %1101 = vrot.lane.b32.xlu1 %v8592_v53, %s8312_s7  ;;  %1103 = vrot.lane.b32.xlu0 %v8658_v0, %s8312_s7 }
 0x126   : > { %v8668_v2 = vpop.permute.xlu1 %1089  ;;  %v8670_v3 = vpop.permute.xlu0 %430 }
 0x12a   : > { %1067 = vrot.lane.b32.xlu2 %v8573_v48, %s8314_s15 }
 0x12c   : > { %v8677_v6 = vpop.permute.xlu2 %1091  ;;  %2008 = vrot.lane.b32.xlu1 %v8607_v56, %s8316_s16  ;;  %460 = vrot.lane.b32.xlu0 %v8673_v5, %s8313_s14 }
 0x12e   : > { %v8683_v7 = vpop.permute.xlu1 %446  ;;  %v8685_v8 = vpop.permute.xlu0 %1057 }
 0x132   : > { %1117 = vrot.lane.b32.xlu2 %v8607_v56, %s8312_s7 }
 0x134   : > { %v8693_v10 = vpop.permute.xlu2 %1059  ;;  %1077 = vrot.lane.b32.xlu1 %v8589_v52, %s8314_s15  ;;  %7349 = vrot.lane.b32.xlu0 %v8691_v9, %s8315_s11 }
 0x135   : > { %12844 = vst [vmem:[#allocation31_spill] sm:$0xff] %v8693_v10 }
 0x136   : > { %v8699_v11 = vpop.permute.xlu1 %7319  ;;  %v8701_v12 = vpop.permute.xlu0 %448 }
 0x13a   : > { %444 = vrot.lane.b32.xlu2 %v8658_v0, %s8313_s14  ;;  %s8321_s14 = smov 56  }
 0x13c   : > { %v8705_v13 = vpop.permute.xlu2 %1107  ;;  %2000 = vrot.lane.b32.xlu1 %v8589_v52, %s8316_s16  ;;  %1119 = vrot.lane.b32.xlu0 %v8673_v5, %s8312_s7  ;;  %s8325_s7 = smov 112  }
 0x13e   : > { %v8711_v14 = vpop.permute.xlu1 %434  ;;  %v8713_v15 = vpop.permute.xlu0 %436 }
 0x142   : > { %7344 = vrot.lane.b32.xlu2 %v8717_v16, %s8315_s11 }
 0x144   : > { %v8721_v17 = vpop.permute.xlu2 %450  ;;  %1071 = vrot.lane.b32.xlu1 %v8658_v0, %s8314_s15  ;;  %2010 = vrot.lane.b32.xlu0 %v8673_v5, %s8316_s16 }
 0x146   : > { %v8727_v18 = vpop.permute.xlu1 %1093  ;;  %v8729_v19 = vpop.permute.xlu0 %7324 }
 0x14a   : > { %1073 = vrot.lane.b32.xlu2 %v8513_v30, %s8314_s15 }
 0x14c   : > { %v8733_v20 = vpop.permute.xlu2 %1109  ;;  %2800 = vrot.lane.b32.xlu1 %v8673_v5, %s8317_s29  ;;  %1996 = vrot.lane.b32.xlu0 %v8513_v30, %s8316_s16 }
 0x14e   : > { %v8739_v21 = vpop.permute.xlu1 %1061  ;;  %v8741_v22 = vpop.permute.xlu0 %1113 }
 0x14f   : > { %12846 = vst [vmem:[#allocation33_spill] sm:$0xff] %v8739_v21 }
 0x152   : > { %1075 = vrot.lane.b32.xlu2 %v8525_v34, %s8314_s15 }
 0x154   : > { %v8745_v23 = vpop.permute.xlu2 %1063  ;;  %1998 = vrot.lane.b32.xlu1 %v8525_v34, %s8316_s16  ;;  %1994 = vrot.lane.b32.xlu0 %v8658_v0, %s8316_s16 }
 0x155   : > { %12847 = vst [vmem:[#allocation34_spill] sm:$0xff] %v8745_v23 }
 0x156   : > { %v8751_v24 = vpop.permute.xlu1 %1095  ;;  %v8753_v25 = vpop.permute.xlu0 %7334 }
 0x15a   : > { %2004 = vrot.lane.b32.xlu2 %v8564_v46, %s8316_s16 }
 0x15c   : > { %v8757_v26 = vpop.permute.xlu2 %452  ;;  %2790 = vrot.lane.b32.xlu1 %v8589_v52, %s8317_s29  ;;  %2786 = vrot.lane.b32.xlu0 %v8513_v30, %s8317_s29 }
 0x15e   : > { %v8763_v27 = vpop.permute.xlu1 %1097  ;;  %v8765_v29 = vpop.permute.xlu0 %442 }
 0x162   : > { %2002 = vrot.lane.b32.xlu2 %v8616_v57, %s8316_s16 }
 0x164   : > { %v8769_v31 = vpop.permute.xlu2 %7329  ;;  %2788 = vrot.lane.b32.xlu1 %v8525_v34, %s8317_s29  ;;  %2784 = vrot.lane.b32.xlu0 %v8658_v0, %s8317_s29 }
 0x166   : > { %v8775_v32 = vpop.permute.xlu1 %1065  ;;  %v8777_v35 = vpop.permute.xlu0 %1069 }
 0x167   : > { %12848 = vst [vmem:[#allocation35_spill] sm:$0xff] %v8775_v32 }
 0x168   : > { %12849 = vst [vmem:[#allocation36_spill] sm:$0xff] %v8777_v35 }
 0x16a   : > { %2794 = vrot.lane.b32.xlu2 %v8564_v46, %s8317_s29 }
 0x16c   : > { %v8781_v37 = vpop.permute.xlu2 %1111  ;;  %1083 = vrot.lane.b32.xlu1 %v8619_v58, %s8314_s15  ;;  %1085 = vrot.lane.b32.xlu0 %v8607_v56, %s8314_s15 }
 0x16e   : > { %v455_v39 = vpop.permute.xlu1 %454  ;;  %v459_v42 = vpop.permute.xlu0 %458 }
 0x172   : > { %2792 = vrot.lane.b32.xlu2 %v8616_v57, %s8317_s29 }
 0x174   : > { %v8789_v43 = vpop.permute.xlu2 %438  ;;  %1988 = vrot.lane.b32.xlu1 %v8576_v49, %s8316_s16  ;;  %1984 = vrot.lane.b32.xlu0 %v8542_v40, %s8316_s16 }
 0x176   : > { %v8795_v45 = vpop.permute.xlu1 %440  ;;  %v8797_v47 = vpop.permute.xlu0 %2006 }
 0x17a   : > { %1081 = vrot.lane.b32.xlu2 %v8564_v46, %s8314_s15 }
 0x17c   : > { %v8801_v51 = vpop.permute.xlu2 %1099  ;;  %1986 = vrot.lane.b32.xlu1 %v8545_v41, %s8316_s16  ;;  %1982 = vrot.lane.b32.xlu0 %v8522_v33, %s8316_s16 }
 0x17e   : > { %v457_v54 = vpop.permute.xlu1 %456  ;;  %v8807_v55 = vpop.permute.xlu0 %2798 }
 0x182   : > { %1992 = vrot.lane.b32.xlu2 %v8592_v53, %s8316_s16 }
 0x184   : > { %v8811_v63 = vpop.permute.xlu2 %1067  ;;  %2778 = vrot.lane.b32.xlu1 %v8576_v49, %s8317_s29  ;;  %2774 = vrot.lane.b32.xlu0 %v8542_v40, %s8317_s29 }
 0x185   : > { %12850 = vst [vmem:[#allocation37_spill] sm:$0xff] %v8811_v63 }
 0x186   : > { %v7340_v4 = vpop.permute.xlu1 %7339  ;;  %v8817_v38 = vpop.permute.xlu0 %2796 }
 0x18a   : > { %1990 = vrot.lane.b32.xlu2 %v8573_v48, %s8316_s16 }
 0x18c   : > { %v1118_v44 = vpop.permute.xlu2 %1117  ;;  %2776 = vrot.lane.b32.xlu1 %v8545_v41, %s8317_s29  ;;  %2770 = vrot.lane.b32.xlu0 %v8506_v28, %s8317_s29 }
 0x18e   : > { %v1116_v16 = vpop.permute.xlu1 %1115  ;;  %v8825_v36 = vpop.permute.xlu0 %1079 }
 0x18f   : > { %12851 = vst [vmem:[#allocation38_spill] sm:$0xff] %v8825_v36 }
 0x192   : > { %2782 = vrot.lane.b32.xlu2 %v8592_v53, %s8317_s29 }
 0x194   : > { %v8829_v50 = vpop.permute.xlu2 %444  ;;  %1948 = vrot.lane.b32.xlu1 %v8506_v28, %s8318_s12  ;;  %1952 = vrot.lane.b32.xlu0 %v8542_v40, %s8318_s12 }
 0x196   : > { %v8835_v56 = vpop.permute.xlu1 %1101  ;;  %v8837_v58 = vpop.permute.xlu0 %1103 }
 0x19a   : > { %2780 = vrot.lane.b32.xlu2 %v8573_v48, %s8317_s29 }
 0x19c   : > { %v7345_v36 = vpop.permute.xlu2 %7344  ;;  %1950 = vrot.lane.b32.xlu1 %v8522_v33, %s8318_s12  ;;  %2742 = vrot.lane.b32.xlu0 %v8542_v40, %s8319_s17 }
 0x19e   : > { %v8845_v35 = vpop.permute.xlu1 %2008  ;;  %v461_v63 = vpop.permute.xlu0 %460 }
 0x19f   : > { %6837 = vmatpush.xpose.msk.msra.mxu1 %vm462_vm1, %v461_v63 }
 0x1a2   : > { %1087 = vrot.lane.b32.xlu2 %v8673_v5, %s8314_s15  ;;  %s8322_s15 = smov 52  }
 0x1a3   : > { %6838 = vmatpush.xpose.msk.msra.mxu1 %vm462_vm1, %v459_v42  ;;  %v7341_v42 = vunpack.i.l.bf16 %v7340_v4 }
 0x1a4   : > { %v8851_v32 = vpop.permute.xlu2 %1073  ;;  %2740 = vrot.lane.b32.xlu1 %v8522_v33, %s8319_s17  ;;  %1958 = vrot.lane.b32.xlu0 %v8573_v48, %s8318_s12 }
 0x1a6   : > { %v8857_v23 = vpop.permute.xlu1 %1077  ;;  %v7350_v21 = vpop.permute.xlu0 %7349 }
 0x1a7   : > { %12852 = vst [vmem:[#allocation39_spill] sm:$0xff] %v8857_v23  ;;  %6839 = vmatpush.xpose.msk.msra.mxu1 %vm462_vm1, %v457_v54  ;;  %v7351_v10 = vunpack.i.l.bf16 %v7350_v21  ;;  %v7352_v63 = vunpack.i.h.bf16 %v7350_v21  ;;  %v7342_v54 = vunpack.i.h.bf16 %v7340_v4  ;;  %v7331_v21 = vunpack.i.l.bf16 %v8769_v31 }
 0x1a8   : > { %v7321_v4 = vunpack.i.l.bf16 %v8699_v11 }
 0x1a9   : > { %992 = vmatpush.msrb.mxu2 %v7351_v10 }
 0x1aa   : > { %1980 = vrot.lane.b32.xlu2 %v8506_v28, %s8316_s16 }
 0x1ab   : > { %6840 = vmatpush.xpose.msk.msra.mxu1 %vm462_vm1, %v455_v39  ;;  %993 = vmatpush.msrb.mxu2 %v7352_v63  ;;  %v7332_v39 = vunpack.i.h.bf16 %v8769_v31  ;;  %v7322_v31 = vunpack.i.h.bf16 %v8699_v11  ;;  %v7336_v11 = vunpack.i.l.bf16 %v8753_v25 }
 0x1ac   : > { %v8863_v5 = vpop.permute.xlu2 %1075  ;;  %1956 = vrot.lane.b32.xlu1 %v8576_v49, %s8318_s12  ;;  %1960 = vrot.lane.b32.xlu0 %v8592_v53, %s8318_s12 }
 0x1ad   : > { %994 = vmatpush.msrb.mxu2 %v7341_v42 }
 0x1ae   : > { %v8869_v23 = vpop.permute.xlu1 %2000  ;;  %v1120_v10 = vpop.permute.xlu0 %1119 }
 0x1af   : > { %6841 = vmatpush.xpose.msk.msra.mxu1 %vm462_vm1, %v8757_v26  ;;  %995 = vmatpush.msrb.mxu2 %v7342_v54 }
 0x1b0   : > { %6869 = vmatpush.xpose.msk.msra.mxu3 %vm462_vm1, %v1120_v10 }
 0x1b1   : > { %996 = vmatpush.msrb.mxu2 %v7331_v21  ;;  %v12855_v21 = vld [vmem:[#allocation34_spill] sm:$0xff] }
 0x1b2   : > { %2772 = vrot.lane.b32.xlu2 %v8522_v33, %s8317_s29 }
 0x1b3   : > { %6842 = vmatpush.xpose.msk.msra.mxu1 %vm462_vm1, %v8721_v17  ;;  %997 = vmatpush.msrb.mxu2 %v7332_v39  ;;  %v7346_v17 = vunpack.i.l.bf16 %v7345_v36 }
 0x1b4   : > { %6870 = vmatpush.xpose.msk.msra.mxu3 %vm462_vm1, %v1118_v44  ;;  %v8882_v26 = vpop.permute.xlu2 %2004  ;;  %2746 = vrot.lane.b32.xlu1 %v8576_v49, %s8319_s17  ;;  %v7347_v44 = vunpack.i.h.bf16 %v7345_v36  ;;  %v7337_v36 = vunpack.i.h.bf16 %v8753_v25  ;;  %v280_v25 = vld [vmem:[%s12746_s3] sm:$0xff] }
 0x1b5   : > { %2752 = vrot.lane.b32.xlu0 %v8658_v0, %s8319_s17  ;;  %998 = vmatpush.msrb.mxu2 %v7321_v4  ;;  %v12856_v4 = vld [vmem:[#allocation35_spill] sm:$0xff] }
 0x1b6   : > { %v8889_v63 = vpop.permute.xlu1 %1071 }
 0x1b7   : > { %6843 = vmatpush.xpose.msk.msra.mxu1 %vm462_vm1, %v8701_v12  ;;  %999 = vmatpush.msrb.mxu2 %v7322_v31 }
 0x1b8   : > { %6871 = vmatpush.xpose.msk.msra.mxu3 %vm462_vm1, %v1116_v16  ;;  %v8911_v16 = vpop.permute.xlu0 %2010 }
 0x1b9   : > { %1000 = vmatpush.msrb.mxu2 %v7346_v17 }
 0x1ba   : > { %2738 = vrot.lane.b32.xlu2 %v8506_v28, %s8319_s17 }
 0x1bb   : > { %6844 = vmatpush.xpose.msk.msra.mxu1 %vm462_vm1, %v8683_v7  ;;  %1001 = vmatpush.msrb.mxu2 %v7347_v44  ;;  %v7326_v7 = vunpack.i.l.bf16 %v8729_v19  ;;  %v12858_v44 = vld [vmem:[#allocation37_spill] sm:$0xff] }
 0x1bc   : > { %6872 = vmatpush.xpose.msk.msra.mxu3 %vm462_vm1, %v8741_v22  ;;  %v8901_v42 = vpop.permute.xlu2 %2002  ;;  %2748 = vrot.lane.b32.xlu1 %v8573_v48, %s8319_s17  ;;  %v7327_v22 = vunpack.i.h.bf16 %v8729_v19  ;;  %v1716_v19 = vrot.slane %v280_v25, 4 }
 0x1bd   : > { %2754 = vrot.lane.b32.xlu0 %v8513_v30, %s8319_s17  ;;  %1002 = vmatpush.msrb.mxu2 %v7336_v11 }
 0x1be   : > { %v2801_v12 = vpop.permute.xlu1 %2800 }
 0x1bf   : > { %6845 = vmatpush.xpose.msk.msra.mxu1 %vm462_vm1, %v8829_v50  ;;  %1003 = vmatpush.msrb.mxu2 %v7337_v36  ;;  %v7316_v50 = vunpack.i.l.bf16 %v8662_v1  ;;  %v12859_v36 = vld [vmem:[#allocation36_spill] sm:$0xff] }
 0x1c0   : > { %6873 = vmatpush.xpose.msk.msra.mxu3 %vm462_vm1, %v8781_v37 }
 0x1c1   : > { %1004 = vmatpush.msrb.mxu2 %v7326_v7 }
 0x1c2   : > { %1954 = vrot.lane.b32.xlu2 %v8545_v41, %s8318_s12 }
 0x1c3   : > { %6846 = vmatpush.xpose.msk.msra.mxu1 %vm462_vm1, %v8765_v29  ;;  %1005 = vmatpush.msrb.mxu2 %v7327_v22  ;;  %v7317_v29 = vunpack.i.h.bf16 %v8662_v1 }
 0x1c4   : > { %6874 = vmatpush.xpose.msk.msra.mxu3 %vm462_vm1, %v8733_v20  ;;  %v2795_v37 = vpop.permute.xlu2 %2794  ;;  %1962 = vrot.lane.b32.xlu1 %v8658_v0, %s8318_s12  ;;  %v8938_v20 = vpop.permute.xlu0 %1996 }
 0x1c5   : > { %7359 = vrot.lane.b32.xlu0 %v8641_v60, %s8320_s26  ;;  %1006 = vmatpush.msrb.mxu2 %v7316_v50 }
 0x1c6   : > { %v8931_v54 = vpop.permute.xlu1 %1998 }
 0x1c7   : > { %6847 = vmatpush.xpose.msk.msra.mxu1 %vm462_vm1, %v8795_v45  ;;  %1007 = vmatpush.msrb.mxu2 %v7317_v29 }
 0x1c8   : > { %6875 = vmatpush.xpose.msk.msra.mxu3 %vm462_vm1, %v8705_v13 }
 0x1c9   : > { %6901 = vmatpush.msk.msra.mxu2 %vm1765_vm2, %v1716_v19 }
 0x1ca   : > { %2744 = vrot.lane.b32.xlu2 %v8545_v41, %s8319_s17 }
 0x1cb   : > { %6848 = vmatpush.xpose.msk.msra.mxu1 %vm462_vm1, %v8789_v43 }
 0x1cc   : > { %6876 = vmatpush.xpose.msk.msra.mxu3 %vm462_vm1, %v8643_v61  ;;  %v2793_v1 = vpop.permute.xlu2 %2792  ;;  %2750 = vrot.lane.b32.xlu1 %v8592_v53, %s8319_s17  ;;  %v8956_v13 = vpop.permute.xlu0 %1994 }
 0x1ce   : > { %v2791_v45 = vpop.permute.xlu1 %2790 }
 0x1cf   : > { %6849 = vmatpush.xpose.msk.msra.mxu1 %vm462_vm1, %v8713_v15 }
 0x1d0   : > { %6877 = vmatpush.xpose.msk.msra.mxu3 %vm462_vm1, %v8837_v58 }
 0x1d2   : > { %1964 = vrot.lane.b32.xlu2 %v8513_v30, %s8318_s12 }
 0x1d3   : > { %6850 = vmatpush.xpose.msk.msra.mxu1 %vm462_vm1, %v8711_v14 }
 0x1d4   : > { %6878 = vmatpush.xpose.msk.msra.mxu3 %vm462_vm1, %v8835_v56  ;;  %v8960_v61 = vpop.permute.xlu2 %1081  ;;  %1966 = vrot.lane.b32.xlu1 %v8525_v34, %s8318_s12  ;;  %v2787_v58 = vpop.permute.xlu0 %2786 }
 0x1d6   : > { %v2789_v15 = vpop.permute.xlu1 %2788 }
 0x1d7   : > { %6851 = vmatpush.xpose.msk.msra.mxu1 %vm462_vm1, %v8651_v62 }
 0x1d8   : > { %6879 = vmatpush.xpose.msk.msra.mxu3 %vm462_vm1, %v8801_v51 }
 0x1da   : > { %1970 = vrot.lane.b32.xlu2 %v8616_v57, %s8318_s12 }
 0x1db   : > { %6852 = vmatpush.xpose.msk.msra.mxu1 %vm462_vm1, %v8670_v3 }
 0x1dc   : > { %6880 = vmatpush.xpose.msk.msra.mxu3 %vm462_vm1, %v8763_v27  ;;  %v8974_v56 = vpop.permute.xlu2 %1992  ;;  %1968 = vrot.lane.b32.xlu1 %v8589_v52, %s8318_s12 }
 0x1de   : > { %v8979_v62 = vpop.permute.xlu1 %1083  ;;  %6853 = vmatmul.msk.f32.vlgmr.msra.gmra.mxu1 %vm462_vm1, %v8506_v28 }
 0x1df   : > { %6918 = vmatpush.msk.msrb.mxu1 %vm1765_vm2, %v280_v25 }
 0x1e0   : > { %6881 = vmatpush.xpose.msk.msra.mxu3 %vm462_vm1, %v8751_v24  ;;  %v2785_v24 = vpop.permute.xlu0 %2784 }
 0x1e1   : > { %6984 = vmatpush.xpose.msk.msra.mxu1 %vm462_vm1, %v2801_v12 }
 0x1e2   : > { %7364 = vrot.lane.b32.xlu2 %v8629_v59, %s8320_s26 }
 0x1e4   : > { %6882 = vmatpush.xpose.msk.msra.mxu3 %vm462_vm1, %v8727_v18  ;;  %v1991_v3 = vpop.permute.xlu2 %1990  ;;  %2756 = vrot.lane.b32.xlu1 %v8525_v34, %s8319_s17 }
 0x1e5   : > { %6985 = vmatpush.xpose.msk.msra.mxu1 %vm462_vm1, %v8807_v55 }
 0x1e6   : > { %v1989_v14 = vpop.permute.xlu1 %1988  ;;  %6854 = vmatmul.msk.f32.gmra.mxu1 %vm462_vm1, %v8522_v33 }
 0x1e8   : > { %6883 = vmatpush.xpose.msk.msra.mxu3 %vm462_vm1, %v8677_v6 }
 0x1e9   : > { %6986 = vmatpush.xpose.msk.msra.mxu1 %vm462_vm1, %v8817_v38 }
 0x1ea   : > { %1972 = vrot.lane.b32.xlu2 %v8564_v46, %s8318_s12 }
 0x1ec   : > { %6884 = vmatpush.xpose.msk.msra.mxu3 %vm462_vm1, %v8668_v2  ;;  %7354 = vrot.lane.b32.xlu1 %v8691_v9, %s8320_s26  ;;  %v2783_v18 = vpop.permute.xlu2 %2782  ;;  %v9016_v2 = vpop.permute.xlu0 %1085 }
 0x1ed   : > { %6987 = vmatpush.xpose.msk.msra.mxu1 %vm462_vm1, %v2795_v37 }
 0x1ee   : > { %v1987_v38 = vpop.permute.xlu1 %1986  ;;  %6855 = vmatmul.msk.f32.gmra.mxu1 %vm462_vm1, %v8542_v40 }
 0x1ef   : > { %6885 = vmatmul.msk.f32.vlgmr.msra.gmra.mxu3 %vm462_vm1, %v8685_v8  ;;  %v12853_v8 = vld [vmem:[#allocation31_spill] sm:$0xff] }
 0x1f0   : > { %6935 = vmatpush.xpose.msk.msrb.mxu3 %vm462_vm1, %v8911_v16 }
 0x1f1   : > { %6988 = vmatpush.xpose.msk.msra.mxu1 %vm462_vm1, %v2793_v1  ;;  %v12866_v1 = vld [vmem:[#allocation25_spill] sm:$0xff] }
 0x1f4   : > { %6936 = vmatpush.xpose.msk.msrb.mxu3 %vm462_vm1, %v8845_v35  ;;  %2758 = vrot.lane.b32.xlu1 %v8589_v52, %s8319_s17  ;;  %v2781_v27 = vpop.permute.xlu2 %2780  ;;  %v1985_v35 = vpop.permute.xlu0 %1984 }
 0x1f5   : > { %6989 = vmatpush.xpose.msk.msra.mxu1 %vm462_vm1, %v2791_v45 }
 0x1f6   : > { %v2779_v6 = vpop.permute.xlu1 %2778  ;;  %6856 = vmatmul.msk.f32.gmra.mxu1 %vm462_vm1, %v8545_v41 }
 0x1f7   : > { %6886 = vmatmul.msk.f32.gmra.mxu3 %vm462_vm1, %v12853_v8 }
 0x1f8   : > { %6937 = vmatpush.xpose.msk.msrb.mxu3 %vm462_vm1, %v8797_v47  ;;  %v12854_v47 = vld [vmem:[#allocation33_spill] sm:$0xff] }
 0x1f9   : > { %6990 = vmatpush.xpose.msk.msra.mxu1 %vm462_vm1, %v2789_v15  ;;  %v12869_v15 = vld [vmem:[#allocation23_spill] sm:$0xff] }
 0x1fc   : > { %6938 = vmatpush.xpose.msk.msrb.mxu3 %vm462_vm1, %v8882_v26  ;;  %v9040_v51 = vpop.permute.xlu2 %1087  ;;  %v1983_v55 = vpop.permute.xlu0 %1982 }
 0x1fd   : > { %6991 = vmatpush.xpose.msk.msra.mxu1 %vm462_vm1, %v2787_v58 }
 0x1fe   : > { %v2777_v43 = vpop.permute.xlu1 %2776  ;;  %6857 = vmatmul.msk.f32.gmra.mxu1 %vm462_vm1, %v8576_v49 }
 0x1ff   : > { %6887 = vmatmul.msk.f32.gmra.mxu3 %vm462_vm1, %v12854_v47 }
 0x200   : > { %6939 = vmatpush.xpose.msk.msrb.mxu3 %vm462_vm1, %v8901_v42 }
 0x201   : > { %6992 = vmatpush.xpose.msk.msra.mxu1 %vm462_vm1, %v2785_v24  ;;  %v285_v24 = vld [vmem:[%s12748_s5] sm:$0xff] }
 0x204   : > { %6940 = vmatpush.xpose.msk.msrb.mxu3 %vm462_vm1, %v8869_v23  ;;  %v1981_v23 = vpop.permute.xlu2 %1980  ;;  %v2775_v26 = vpop.permute.xlu0 %2774 }
 0x205   : > { %6993 = vmatpush.xpose.msk.msra.mxu1 %vm462_vm1, %v2783_v18 }
 0x206   : > { %v9045_v10 = vpop.permute.xlu1 %1948  ;;  %6858 = vmatmul.msk.f32.gmra.mxu1 %vm462_vm1, %v8573_v48 }
 0x207   : > { %6888 = vmatmul.msk.f32.gmra.mxu3 %vm462_vm1, %v12855_v21 }
 0x208   : > { %6941 = vmatpush.xpose.msk.msrb.mxu3 %vm462_vm1, %v8931_v54 }
 0x209   : > { %6994 = vmatpush.xpose.msk.msra.mxu1 %vm462_vm1, %v2781_v27 }
 0x20c   : > { %6942 = vmatpush.xpose.msk.msrb.mxu3 %vm462_vm1, %v8938_v20  ;;  %v2773_v31 = vpop.permute.xlu2 %2772  ;;  %v2771_v11 = vpop.permute.xlu0 %2770 }
 0x20d   : > { %6995 = vmatpush.xpose.msk.msra.mxu1 %vm462_vm1, %v2779_v6 }
 0x20e   : > { %v9057_v39 = vpop.permute.xlu1 %1950  ;;  %6859 = vmatmul.msk.f32.gmra.mxu1 %vm462_vm1, %v8592_v53 }
 0x20f   : > { %6889 = vmatmul.msk.f32.gmra.mxu3 %vm462_vm1, %v12856_v4 }
 0x210   : > { %6943 = vmatpush.xpose.msk.msrb.mxu3 %vm462_vm1, %v8956_v13 }
 0x211   : > { %6996 = vmatpush.xpose.msk.msra.mxu1 %vm462_vm1, %v2777_v43 }
 0x214   : > { %6944 = vmatpush.xpose.msk.msrb.mxu3 %vm462_vm1, %v8974_v56  ;;  %v9085_v12 = vpop.permute.xlu0 %1952  ;;  %v9103_v50 = vpop.permute.xlu2 %2738 }
 0x215   : > { %6997 = vmatpush.xpose.msk.msra.mxu1 %vm462_vm1, %v2775_v26 }
 0x216   : > { %v9068_v17 = vpop.permute.xlu1 %2740  ;;  %6860 = vmatmul.msk.f32.gmra.mxu1 %vm462_vm1, %v8658_v0 }
 0x217   : > { %12857 = vst [vmem:[#allocation31_spill] sm:$0xff] %v9068_v17  ;;  %6890 = vmatmul.msk.f32.gmra.mxu3 %vm462_vm1, %v12858_v44 }
 0x218   : > { %6945 = vmatpush.xpose.msk.msrb.mxu3 %vm462_vm1, %v1991_v3 }
 0x219   : > { %6998 = vmatpush.xpose.msk.msra.mxu1 %vm462_vm1, %v2773_v31 }
 0x21c   : > { %6946 = vmatpush.xpose.msk.msrb.mxu3 %vm462_vm1, %v1989_v14  ;;  %v9095_v16 = vpop.permute.xlu0 %2742  ;;  %v9113_v37 = vpop.permute.xlu2 %1954  ;;  %v12872_v14 = vld [vmem:[#allocation29_spill] sm:$0xff] }
 0x21d   : > { %6999 = vmatpush.xpose.msk.msra.mxu1 %vm462_vm1, %v2771_v11  ;;  %12861 = vst [vmem:[#allocation34_spill] sm:$0xff] %v9095_v16 }
 0x21e   : > { %v9078_v42 = vpop.permute.xlu1 %1956  ;;  %6861 = vmatmul.msk.f32.gmra.mxu1 %vm462_vm1, %v8513_v30 }
 0x21f   : > { %6891 = vmatmul.msk.f32.gmra.mxu3 %vm462_vm1, %v12859_v36 }
 0x220   : > { %6947 = vmatpush.xpose.msk.msrb.mxu3 %vm462_vm1, %v1987_v38 }
 0x224   : > { %6948 = vmatpush.xpose.msk.msrb.mxu3 %vm462_vm1, %v1985_v35  ;;  %v9123_v54 = vpop.permute.xlu2 %2744 }
 0x225   : > { %12865 = vst [vmem:[#allocation36_spill] sm:$0xff] %v9123_v54 }
 0x226   : > { %v9088_v7 = vpop.permute.xlu1 %2746  ;;  %6862 = vmatmul.msk.f32.gmra.mxu1 %vm462_vm1, %v8525_v34 }
 0x227   : > { %12860 = vst [vmem:[#allocation33_spill] sm:$0xff] %v9088_v7  ;;  %6892 = vmatmul.msk.f32.gmra.mxu3 %vm462_vm1, %v8889_v63  ;;  %v9111_v63 = vpop.permute.xlu0 %1958 }
 0x228   : > { %6949 = vmatpush.xpose.msk.msrb.mxu3 %vm462_vm1, %v1983_v55 }
 0x22c   : > { %6950 = vmatpush.xpose.msk.msrb.mxu3 %vm462_vm1, %v1981_v23  ;;  %v9139_v56 = vpop.permute.xlu2 %1964 }
 0x22e   : > { %v9097_v22 = vpop.permute.xlu1 %2748  ;;  %6863 = vmatmul.msk.f32.gmra.mxu1 %vm462_vm1, %v8589_v52 }
 0x22f   : > { %12862 = vst [vmem:[#allocation35_spill] sm:$0xff] %v9097_v22  ;;  %6893 = vmatmul.msk.f32.gmra.mxu3 %vm462_vm1, %v8851_v32  ;;  %v12864_v32 = vld [vmem:[#allocation39_spill] sm:$0xff]  ;;  %v9121_v29 = vpop.permute.xlu0 %1960 }
 0x234   : > { %v9152_v18 = vpop.permute.xlu2 %1970 }
 0x236   : > { %v9105_v25 = vpop.permute.xlu1 %1962  ;;  %6864 = vmatmul.msk.f32.gmra.mxu1 %vm462_vm1, %v8616_v57 }
 0x237   : > { %6894 = vmatmul.msk.f32.gmra.mxu3 %vm462_vm1, %v8863_v5  ;;  %v12867_v5 = vld [vmem:[#allocation38_spill] sm:$0xff]  ;;  %v9131_v45 = vpop.permute.xlu0 %2752 }
 0x238   : > { %12868 = vst [vmem:[#allocation39_spill] sm:$0xff] %v9131_v45 }
 0x23c   : > { %v7365_v47 = vpop.permute.xlu2 %7364 }
 0x23d   : > { %v7366_v21 = vunpack.i.l.bf16 %v7365_v47  ;;  %v7367_v23 = vunpack.i.h.bf16 %v7365_v47 }
 0x23e   : > { %v9115_v19 = vpop.permute.xlu1 %2750  ;;  %6865 = vmatmul.msk.f32.gmra.mxu1 %vm462_vm1, %v8564_v46 }
 0x23f   : > { %12863 = vst [vmem:[#allocation37_spill] sm:$0xff] %v9115_v19  ;;  %6895 = vmatmul.msk.f32.gmra.mxu3 %vm462_vm1, %v12864_v32  ;;  %v9141_v58 = vpop.permute.xlu0 %2754 }
 0x240   : > { %12870 = vst [vmem:[#allocation38_spill] sm:$0xff] %v9141_v58 }
 0x244   : > { %v1973_v28 = vpop.permute.xlu2 %1972 }
 0x246   : > { %v9125_v20 = vpop.permute.xlu1 %1966  ;;  %6866 = vmatmul.msk.f32.gmra.mxu1 %vm462_vm1, %v12866_v1 }
 0x247   : > { %6896 = vmatmul.msk.f32.gmra.mxu3 %vm462_vm1, %v12867_v5  ;;  %v7360_v27 = vpop.permute.xlu0 %7359 }
 0x248   : > { %v7361_v43 = vunpack.i.l.bf16 %v7360_v27  ;;  %v7362_v55 = vunpack.i.h.bf16 %v7360_v27 }
 0x24e   : > { %v9133_v13 = vpop.permute.xlu1 %1968  ;;  %6867 = vmatmul.msk.f32.gmra.mxu1 %vm462_vm1, %v12869_v15 }
 0x24f   : > { %6897 = vmatmul.msk.f32.gmra.mxu3 %vm462_vm1, %v8960_v61 }
 0x256   : > { %v9143_v3 = vpop.permute.xlu1 %2756  ;;  %6868 = vmatmul.msk.f32.gmra.mxu1 %vm462_vm1, %v12872_v14 }
 0x257   : > { %12871 = vst [vmem:[#allocation40_spill] sm:$0xff] %v9143_v3  ;;  %6898 = vmatmul.msk.f32.gmra.mxu3 %vm462_vm1, %v8979_v62 }
 0x25b   : > { %v544_v38 = vpop.f32.mrf.mxu1 }
 0x25c   : > { %v9154_v61 = vadd.f32 %v544_v38, %v285_v24 }
 0x25e   : > { %v7355_v6 = vpop.permute.xlu1 %7354  ;;  %592 = vmax.xlane.f32.xlu1 %v9154_v61 }
 0x25f   : > { %6899 = vmatmul.msk.f32.gmra.mxu3 %vm462_vm1, %v9016_v2  ;;  %v7356_v8 = vunpack.i.l.bf16 %v7355_v6  ;;  %v7357_v35 = vunpack.i.h.bf16 %v7355_v6 }
 0x261   : > { %1650 = vmatpush.msrb.mxu0 %v7356_v8 }
 0x263   : > { %v547_v62 = vpop.f32.mrf.mxu1  ;;  %1651 = vmatpush.msrb.mxu0 %v7357_v35 }
 0x265   : > { %1652 = vmatpush.msrb.mxu0 %v7361_v43 }
 0x267   : > { %6900 = vmatmul.msk.f32.gmra.mxu3 %vm462_vm1, %v9040_v51  ;;  %1653 = vmatpush.msrb.mxu0 %v7362_v55  ;;  %v286_v51 = vld [vmem:[%s12748_s5 + $0x8] sm:$0xff] }
 0x268   : > { %v9173_v32 = vadd.f32 %v547_v62, %v286_v51 }
 0x269   : > { %1654 = vmatpush.msrb.mxu0 %v7366_v21 }
 0x26b   : > { %v550_v4 = vpop.f32.mrf.mxu1  ;;  %1655 = vmatpush.msrb.mxu0 %v7367_v23 }
 0x26f   : > { %6951 = vmatmul.msk.f32.vlgmr.msrb.gmra.mxu3 %vm462_vm1, %v9045_v10  ;;  %v287_v10 = vld [vmem:[%s12748_s5 + $0x10] sm:$0xff] }
 0x270   : > { %v9187_v6 = vadd.f32 %v550_v4, %v287_v10 }
 0x272   : > { %v1202_v2 = vpop.f32.mrf.mxu3 }
 0x273   : > { %v553_v26 = vpop.f32.mrf.mxu1  ;;  %v9163_v31 = vadd.f32 %v1202_v2, %v285_v24 }
 0x275   : > { %1250 = vmax.xlane.f32.xlu2 %v9163_v31 }
 0x277   : > { %6952 = vmatmul.msk.f32.gmra.mxu3 %vm462_vm1, %v9057_v39  ;;  %v288_v39 = vld [vmem:[%s12748_s5 + $0x18] sm:$0xff] }
 0x278   : > { %v9189_v8 = vadd.f32 %v553_v26, %v288_v39  ;;  %v291_v26 = vld [vmem:[%s12748_s5 + $0x30] sm:$0xff] }
 0x27a   : > { %v1205_v44 = vpop.f32.mrf.mxu3 }
 0x27b   : > { %v556_v11 = vpop.f32.mrf.mxu1  ;;  %v9171_v36 = vadd.f32 %v1205_v44, %v286_v51  ;;  %v9229_v51 = vld [vmem:[%s12748_s5 + $0x48] sm:$0xff] }
 0x27d   : > { %1252 = vmax.xlane.f32.xlu0 %v9171_v36  ;;  %594 = vmax.xlane.f32.xlu2 %v9173_v32 }
 0x27f   : > { %6953 = vmatmul.msk.f32.gmra.mxu3 %vm462_vm1, %v9085_v12  ;;  %v289_v12 = vld [vmem:[%s12748_s5 + $0x20] sm:$0xff] }
 0x280   : > { %v9199_v62 = vadd.f32 %v556_v11, %v289_v12 }
 0x282   : > { %v1208_v5 = vpop.f32.mrf.mxu3 }
 0x283   : > { %v559_v24 = vpop.f32.mrf.mxu1  ;;  %v9185_v38 = vadd.f32 %v1208_v5, %v287_v10 }
 0x285   : > { %1254 = vmax.xlane.f32.xlu1 %v9185_v38  ;;  %596 = vmax.xlane.f32.xlu0 %v9187_v6 }
 0x286   : > { %598 = vmax.xlane.f32.xlu2 %v9189_v8 }
 0x287   : > { %6954 = vmatmul.msk.f32.gmra.mxu3 %vm462_vm1, %v9113_v37  ;;  %v290_v37 = vld [vmem:[%s12748_s5 + $0x28] sm:$0xff] }
 0x288   : > { %v9212_v23 = vadd.f32 %v559_v24, %v290_v37 }
 0x28a   : > { %v1211_v27 = vpop.f32.mrf.mxu3 }
 0x28b   : > { %v562_v35 = vpop.f32.mrf.mxu1  ;;  %v9201_v43 = vadd.f32 %v1211_v27, %v288_v39 }
 0x28c   : > { %v9233_v10 = vadd.f32 %v562_v35, %v291_v26 }
 0x28d   : > { %600 = vmax.xlane.f32.xlu1 %v9199_v62 }
 0x28e   : > { %1256 = vmax.xlane.f32.xlu2 %v9201_v43 }
 0x28f   : > { %6955 = vmatmul.msk.f32.gmra.mxu3 %vm462_vm1, %v9078_v42 }
 0x292   : > { %v1214_v47 = vpop.f32.mrf.mxu3 }
 0x293   : > { %v565_v55 = vpop.f32.mrf.mxu1  ;;  %v9210_v21 = vadd.f32 %v1214_v47, %v289_v12  ;;  %v9254_v12 = vld [vmem:[%s12748_s5 + $0x40] sm:$0xff] }
 0x295   : > { %1258 = vmax.xlane.f32.xlu0 %v9210_v21 }
 0x296   : > { %602 = vmax.xlane.f32.xlu2 %v9212_v23 }
 0x297   : > { %6956 = vmatmul.msk.f32.gmra.mxu3 %vm462_vm1, %v9111_v63 }
 0x29a   : > { %v1217_v4 = vpop.f32.mrf.mxu3 }
 0x29b   : > { %v568_v2 = vpop.f32.mrf.mxu1  ;;  %v9218_v42 = vadd.f32 %v1217_v4, %v290_v37  ;;  %v9285_v4 = vld [vmem:[%s12748_s5 + $0x60] sm:$0xff] }
 0x29c   : > { %v9262_v35 = vadd.f32 %v568_v2, %v9254_v12 }
 0x29e   : > { %1260 = vmax.xlane.f32.xlu2 %v9218_v42 }
 0x29f   : > { %6957 = vmatmul.msk.f32.gmra.mxu3 %vm462_vm1, %v9121_v29  ;;  %v292_v29 = vld [vmem:[%s12748_s5 + $0x38] sm:$0xff] }
 0x2a0   : > { %v9246_v24 = vadd.f32 %v565_v55, %v292_v29 }
 0x2a2   : > { %v1220_v44 = vpop.f32.mrf.mxu3 }
 0x2a3   : > { %v571_v63 = vpop.f32.mrf.mxu1  ;;  %v9231_v11 = vadd.f32 %v1220_v44, %v291_v26 }
 0x2a4   : > { %v9236_v39 = vadd.f32 %v571_v63, %v9229_v51  ;;  %v9302_v63 = vpop.permute.xlu1 %2758 }
 0x2a5   : > { %1262 = vmax.xlane.f32.xlu1 %v9231_v11  ;;  %12873 = vst [vmem:[#allocation41_spill] sm:$0xff] %v9302_v63 }
 0x2a6   : > { %604 = vmax.xlane.f32.xlu2 %v9233_v10  ;;  %610 = vmax.xlane.f32.xlu0 %v9236_v39 }
 0x2a7   : > { %6958 = vmatmul.msk.f32.gmra.mxu3 %vm462_vm1, %v9105_v25  ;;  %v9259_v25 = vld [vmem:[%s12748_s5 + $0x58] sm:$0xff] }
 0x2ab   : > { %v574_v5 = vpop.f32.mrf.mxu1 }
 0x2ad   : > { %606 = vmax.xlane.f32.xlu1 %v9246_v24 }
 0x2af   : > { %6959 = vmatmul.msk.f32.gmra.mxu3 %vm462_vm1, %v9139_v56  ;;  %v9274_v56 = vld [vmem:[%s12748_s5 + $0x50] sm:$0xff] }
 0x2b0   : > { %v9277_v55 = vadd.f32 %v574_v5, %v9274_v56  ;;  %v9307_v5 = vld [vmem:[%s12748_s5 + $0x70] sm:$0xff] }
 0x2b3   : > { %v577_v27 = vpop.f32.mrf.mxu1 }
 0x2b4   : > { %v9265_v37 = vadd.f32 %v577_v27, %v9259_v25 }
 0x2b5   : > { %608 = vmax.xlane.f32.xlu1 %v9262_v35 }
 0x2b6   : > { %614 = vmax.xlane.f32.xlu2 %v9265_v37 }
 0x2b7   : > { %6960 = vmatmul.msk.f32.gmra.mxu3 %vm462_vm1, %v9125_v20  ;;  %v9290_v20 = vld [vmem:[%s12748_s5 + $0x68] sm:$0xff] }
 0x2bb   : > { %v580_v47 = vpop.f32.mrf.mxu1 }
 0x2bc   : > { %v9293_v26 = vadd.f32 %v580_v47, %v9285_v4 }
 0x2bd   : > { %612 = vmax.xlane.f32.xlu1 %v9277_v55 }
 0x2bf   : > { %6961 = vmatmul.msk.f32.gmra.mxu3 %vm462_vm1, %v9133_v13  ;;  %v1223_v13 = vpop.f32.mrf.mxu3 }
 0x2c0   : > { %v9309_v27 = vadd.f32 %v1223_v13, %v292_v29  ;;  %v9322_v29 = vld [vmem:[%s12748_s5 + $0x78] sm:$0xff] }
 0x2c3   : > { %v583_v2 = vpop.f32.mrf.mxu1 }
 0x2c4   : > { %v9296_v44 = vadd.f32 %v583_v2, %v9290_v20 }
 0x2c5   : > { %616 = vmax.xlane.f32.xlu1 %v9293_v26 }
 0x2c6   : > { %618 = vmax.xlane.f32.xlu0 %v9296_v44 }
 0x2c7   : > { %6962 = vmatmul.msk.f32.gmra.mxu3 %vm462_vm1, %v9152_v18 }
 0x2cb   : > { %v586_v47 = vpop.f32.mrf.mxu1 }
 0x2cc   : > { %v9312_v2 = vadd.f32 %v586_v47, %v9307_v5 }
 0x2cd   : > { %1264 = vmax.xlane.f32.xlu1 %v9309_v27 }
 0x2ce   : > { %620 = vmax.xlane.f32.xlu0 %v9312_v2  ;;  %2760 = vrot.lane.b32.xlu2 %v8616_v57, %s8319_s17 }
 0x2cf   : > { %6963 = vmatmul.msk.f32.gmra.mxu3 %vm462_vm1, %v1973_v28  ;;  %v12874_v28 = vld [vmem:[#allocation20_spill] sm:$0xff] }
 0x2d1   : > { %v593_v18 = vpop.xlane.xlu1 %592 }
 0x2d2   : > { %v624_v13 = vsub.f32 %v9154_v61, %v593_v18 }
 0x2d3   : > { %v589_v47 = vpop.f32.mrf.mxu1 }
 0x2d4   : > { %v640_v40 = vmul.f32 1.442695, %v624_v13  ;;  %v9326_v41 = vadd.f32 %v589_v47, %v9322_v29 }
 0x2d6   : > { %7635 = vpow2.f32 %v640_v40  ;;  %622 = vmax.xlane.f32.xlu0 %v9326_v41 }
 0x2dc   : > { %v9329_v53 = vpop.eup %7635 }
 0x2de   : > { %672 = vadd.xlane.f32.xlu0 %v9329_v53 }
 0x2e6   : > { %7379 = vrot.lane.b32.xlu1 %v12874_v28, %s8320_s26 }
 0x2e8   : > { %v1251_v33 = vpop.xlane.xlu2 %1250 }
 0x2e9   : > { %v1282_v48 = vsub.f32 %v9163_v31, %v1251_v33 }
 0x2eb   : > { %v1298_v49 = vmul.f32 1.442695, %v1282_v48 }
 0x2ed   : > { %7637 = vpow2.f32 %v1298_v49 }
 0x2f0   : > { %v595_v61 = vpop.xlane.xlu2 %594  ;;  %v1253_v34 = vpop.xlane.xlu0 %1252 }
 0x2f1   : > { %v625_v18 = vsub.f32 %v9173_v32, %v595_v61  ;;  %v1283_v0 = vsub.f32 %v9171_v36, %v1253_v34  ;;  %v12875_v36 = vld [vmem:[#allocation12_spill] sm:$0xff] }
 0x2f3   : > { %v9336_v13 = vpop.eup %7637  ;;  %v642_v40 = vmul.f32 1.442695, %v625_v18  ;;  %v1300_v33 = vmul.f32 1.442695, %v1283_v0 }
 0x2f4   : > { %1330 = vadd.xlane.f32.xlu0 %v9336_v13 }
 0x2f5   : > { %7639 = vpow2.f32 %v642_v40 }
 0x2f6   : > { %7641 = vpow2.f32 %v1300_v33 }
 0x2f8   : > { %v9343_v48 = vpop.xlane.xlu1 %1254  ;;  %v597_v49 = vpop.xlane.xlu0 %596 }
 0x2f9   : > { %v599_v30 = vpop.xlane.xlu2 %598  ;;  %v626_v32 = vsub.f32 %v9187_v6, %v597_v49  ;;  %v12876_v49 = vld [vmem:[#allocation32_spill] sm:$0xff] }
 0x2fa   : > { %v627_v34 = vsub.f32 %v9189_v8, %v599_v30 }
 0x2fb   : > { %v9339_v47 = vpop.eup %7639  ;;  %v644_v61 = vmul.f32 1.442695, %v626_v32 }
 0x2fc   : > { %674 = vadd.xlane.f32.xlu2 %v9339_v47  ;;  %v9350_v18 = vpop.eup %7641  ;;  %v646_v57 = vmul.f32 1.442695, %v627_v34 }
 0x2fd   : > { %7643 = vpow2.f32 %v644_v61 }
 0x2fe   : > { %7645 = vpow2.f32 %v646_v57 }
 0x300   : > { %v601_v40 = vpop.xlane.xlu1 %600 }
 0x301   : > { %v9345_v31 = vpop.xlane.xlu2 %1256  ;;  %v628_v6 = vsub.f32 %v9199_v62, %v601_v40 }
 0x303   : > { %v9356_v52 = vpop.eup %7643  ;;  %v648_v30 = vmul.f32 1.442695, %v628_v6 }
 0x304   : > { %v9366_v8 = vpop.eup %7645 }
 0x305   : > { %7647 = vpow2.f32 %v648_v30 }
 0x308   : > { %2762 = vrot.lane.b32.xlu0 %v8564_v46, %s8319_s17  ;;  %v9375_v6 = vpop.xlane.xlu0 %1258 }
 0x309   : > { %v603_v0 = vpop.xlane.xlu2 %602 }
 0x30a   : > { %v629_v61 = vsub.f32 %v9212_v23, %v603_v0 }
 0x30b   : > { %v9372_v62 = vpop.eup %7647 }
 0x30c   : > { %v650_v57 = vmul.f32 1.442695, %v629_v61 }
 0x30e   : > { %7649 = vpow2.f32 %v650_v57 }
 0x310   : > { %1332 = vadd.xlane.f32.xlu1 %v9350_v18 }
 0x311   : > { %v9362_v33 = vpop.xlane.xlu2 %1260 }
 0x314   : > { %7369 = vrot.lane.b32.xlu2 %v12875_v36, %s8320_s26  ;;  %v9378_v58 = vpop.eup %7649 }
 0x318   : > { %v9358_v46 = vpop.xlane.xlu1 %1262  ;;  %676 = vadd.xlane.f32.xlu1 %v9356_v52 }
 0x319   : > { %v605_v34 = vpop.xlane.xlu2 %604  ;;  %v611_v23 = vpop.xlane.xlu0 %610 }
 0x31a   : > { %v630_v63 = vsub.f32 %v9233_v10, %v605_v34 }
 0x31c   : > { %7374 = vrot.lane.b32.xlu2 %v12876_v49, %s8320_s26  ;;  %v652_v3 = vmul.f32 1.442695, %v630_v63 }
 0x31e   : > { %7651 = vpow2.f32 %v652_v3  ;;  %v633_v3 = vsub.f32 %v9236_v39, %v611_v23 }
 0x320   : > { %v607_v32 = vpop.xlane.xlu1 %606  ;;  %678 = vadd.xlane.f32.xlu1 %v9366_v8 }
 0x321   : > { %v631_v0 = vsub.f32 %v9246_v24, %v607_v32 }
 0x323   : > { %v654_v61 = vmul.f32 1.442695, %v631_v0  ;;  %v658_v0 = vmul.f32 1.442695, %v633_v3 }
 0x324   : > { %1974 = vrot.lane.b32.xlu2 %v12866_v1, %s8318_s12  ;;  %v9382_v45 = vpop.eup %7651 }
 0x325   : > { %7653 = vpow2.f32 %v654_v61 }
 0x328   : > { %v609_v40 = vpop.xlane.xlu1 %608  ;;  %680 = vadd.xlane.f32.xlu1 %v9372_v62 }
 0x329   : > { %v632_v57 = vsub.f32 %v9262_v35, %v609_v40  ;;  %v615_v35 = vpop.xlane.xlu2 %614 }
 0x32a   : > { %v635_v39 = vsub.f32 %v9265_v37, %v615_v35 }
 0x32b   : > { %v656_v22 = vmul.f32 1.442695, %v632_v57  ;;  %v9388_v7 = vpop.eup %7653 }
 0x32c   : > { %v662_v23 = vmul.f32 1.442695, %v635_v39 }
 0x330   : > { %v613_v30 = vpop.xlane.xlu1 %612  ;;  %682 = vadd.xlane.f32.xlu1 %v9378_v58 }
 0x331   : > { %v634_v24 = vsub.f32 %v9277_v55, %v613_v30 }
 0x338   : > { %v617_v19 = vpop.xlane.xlu1 %616  ;;  %684 = vadd.xlane.f32.xlu1 %v9382_v45 }
 0x339   : > { %v636_v10 = vsub.f32 %v9293_v26, %v617_v19  ;;  %v619_v63 = vpop.xlane.xlu0 %618  ;;  %v660_v19 = vmul.f32 1.442695, %v634_v24 }
 0x33b   : > { %v664_v34 = vmul.f32 1.442695, %v636_v10 }
 0x33d   : > { %7655 = vpow2.f32 %v664_v34 }
 0x33e   : > { %7657 = vpow2.f32 %v656_v22 }
 0x33f   : > { %7659 = vpow2.f32 %v658_v0  ;;  %v12877_v0 = vld [vmem:[#allocation16_spill] sm:$0xff] }
 0x340   : > { %686 = vadd.xlane.f32.xlu1 %v9388_v7  ;;  %7661 = vpow2.f32 %v660_v19  ;;  %v1284_v19 = vsub.f32 %v9185_v38, %v9343_v48 }
 0x341   : > { %v621_v32 = vpop.xlane.xlu0 %620 }
 0x342   : > { %v638_v26 = vsub.f32 %v9312_v2, %v621_v32  ;;  %v637_v2 = vsub.f32 %v9296_v44, %v619_v63  ;;  %v1226_v32 = vpop.f32.mrf.mxu3  ;;  %v1302_v39 = vmul.f32 1.442695, %v1284_v19  ;;  %v9431_v19 = vpop.permute.xlu2 %2760 }
 0x343   : > { %v9392_v61 = vpop.eup %7655  ;;  %v9420_v63 = vadd.f32 %v1226_v32, %v9254_v12  ;;  %12878 = vst [vmem:[#allocation42_spill] sm:$0xff] %v9431_v19 }
 0x344   : > { %696 = vadd.xlane.f32.xlu0 %v9392_v61  ;;  %v9396_v40 = vpop.eup %7657  ;;  %v668_v55 = vmul.f32 1.442695, %v638_v26  ;;  %v666_v34 = vmul.f32 1.442695, %v637_v2 }
 0x345   : > { %v9402_v30 = vpop.eup %7659 }
 0x346   : > { %7663 = vpow2.f32 %v668_v55  ;;  %v9405_v57 = vpop.eup %7661 }
 0x347   : > { %7665 = vpow2.f32 %v662_v23 }
 0x348   : > { %688 = vadd.xlane.f32.xlu1 %v9396_v40 }
 0x349   : > { %v9400_v22 = vpop.xlane.xlu0 %622 }
 0x34c   : > { %v9409_v37 = vpop.eup %7663 }
 0x34d   : > { %690 = vadd.xlane.f32.xlu2 %v9402_v30  ;;  %v9412_v3 = vpop.eup %7665 }
 0x350   : > { %692 = vadd.xlane.f32.xlu1 %v9405_v57 }
 0x351   : > { %v673_v10 = vpop.xlane.xlu0 %672 }
 0x352   : > { %7667 = vrcp.f32 %v673_v10  ;;  %v715_v26 = vand.u32 2147483648, %v673_v10  ;;  %v713_v23 = vand.u32 2147483647, %v673_v10  ;;  %vm709_vm4 = vweird.f32 %v673_v10 }
 0x353   : > { %7669 = vpow2.f32 %v666_v34 }
 0x354   : > { %v716_v38 = vor.u32 1.1754944e-38, %v715_v26  ;;  %7671 = vpow2.f32 %v1302_v39  ;;  %vm714_vm6 = vcmp.eq.f32.partialorder %v713_v23, 8.507059e+37 }
 0x355   : > { %700 = vadd.xlane.f32.xlu2 %v9409_v37 }
 0x358   : > { %v7668_v24 = vpop.eup %7667  ;;  %7384 = vrot.lane.b32.xlu0 %v12877_v0, %s8320_s26  ;;  %694 = vadd.xlane.f32.xlu1 %v9412_v3 }
 0x359   : > { %v705_v44 = vmul.f32 %v7668_v24, %v673_v10  ;;  %vm710_vm3 = vweird.f32 %v7668_v24  ;;  %v9423_v2 = vpop.eup %7669 }
 0x35a   : > { %vm711_vm5 = vmor %vm709_vm4, %vm710_vm3  ;;  %v9429_v32 = vpop.eup %7671 }
 0x35b   : > { %v706_v35 = vsub.f32 1.0, %v705_v44  ;;  %v9436_v44 = vpop.xlane.xlu1 %1264 }
 0x35d   : > { %1266 = vmax.xlane.f32.xlu2 %v9420_v63  ;;  %v707_v55 = vmul.f32 %v7668_v24, %v706_v35 }
 0x35f   : > { %v708_v54 = vadd.f32 %v7668_v24, %v707_v55 }
 0x360   : > { %1976 = vrot.lane.b32.xlu0 %v12869_v15, %s8318_s12  ;;  %698 = vadd.xlane.f32.xlu1 %v9423_v2 }
 0x361   : > { %v712_v12 = vsel %vm711_vm5, %v7668_v24, %v708_v54  ;;  %v12879_v54 = vld [vmem:[#allocation13_spill] sm:$0xff] }
 0x362   : > { %v717_v48 = vsel %vm714_vm6, %v716_v38, %v712_v12 }
 0x363   : > { %v718_v34 = vmul.f32 %v9329_v53, %v717_v48  ;;  %v7380_v38 = vpop.permute.xlu1 %7379 }
 0x365   : > { %1008 = vmatmul.f32.vlgmr.msrb.gmra.mxu2 %v718_v34 }
 0x368   : > { %2764 = vrot.lane.b32.xlu0 %v12866_v1, %s8319_s17  ;;  %1334 = vadd.xlane.f32.xlu1 %v9429_v32 }
 0x36f   : > { %v675_v10 = vpop.xlane.xlu2 %674 }
 0x370   : > { %7673 = vrcp.f32 %v675_v10  ;;  %v730_v23 = vand.u32 2147483648, %v675_v10  ;;  %v728_v48 = vand.u32 2147483647, %v675_v10  ;;  %vm724_vm8 = vweird.f32 %v675_v10 }
 0x372   : > { %v731_v1 = vor.u32 1.1754944e-38, %v730_v23  ;;  %vm729_vm10 = vcmp.eq.f32.partialorder %v728_v48, 8.507059e+37 }
 0x375   : > { %7389 = vrot.lane.b32.xlu2 %v12879_v54, %s8320_s26  ;;  %s8329_s26 = smov 72  }
 0x376   : > { %v7674_v24 = vpop.eup %7673 }
 0x377   : > { %v720_v35 = vmul.f32 %v7674_v24, %v675_v10  ;;  %v7370_v53 = vpop.permute.xlu2 %7369  ;;  %vm725_vm7 = vweird.f32 %v7674_v24  ;;  %v7381_v10 = vunpack.i.l.bf16 %v7380_v38 }
 0x378   : > { %v7371_v26 = vunpack.i.l.bf16 %v7370_v53  ;;  %v7372_v55 = vunpack.i.h.bf16 %v7370_v53  ;;  %vm726_vm9 = vmor %vm724_vm8, %vm725_vm7 }
 0x379   : > { %v721_v39 = vsub.f32 1.0, %v720_v35 }
 0x37a   : > { %1656 = vmatpush.msrb.mxu0 %v7371_v26  ;;  %v639_v26 = vsub.f32 %v9326_v41, %v9400_v22 }
 0x37b   : > { %v722_v12 = vmul.f32 %v7674_v24, %v721_v39 }
 0x37c   : > { %1657 = vmatpush.msrb.mxu0 %v7372_v55  ;;  %v670_v55 = vmul.f32 1.442695, %v639_v26 }
 0x37d   : > { %v723_v34 = vadd.f32 %v7674_v24, %v722_v12 }
 0x37e   : > { %7675 = vpow2.f32 %v670_v55 }
 0x37f   : > { %v7375_v19 = vpop.permute.xlu2 %7374  ;;  %v727_v16 = vsel %vm726_vm9, %v7674_v24, %v723_v34  ;;  %v7382_v24 = vunpack.i.h.bf16 %v7380_v38 }
 0x380   : > { %v7376_v54 = vunpack.i.l.bf16 %v7375_v19  ;;  %v732_v17 = vsel %vm729_vm10, %v731_v1, %v727_v16  ;;  %v7377_v53 = vunpack.i.h.bf16 %v7375_v19 }
 0x381   : > { %1978 = vrot.lane.b32.xlu1 %v12872_v14, %s8318_s12  ;;  %v733_v35 = vmul.f32 %v9339_v47, %v732_v17  ;;  %v1285_v17 = vsub.f32 %v9201_v43, %v9345_v31  ;;  %v1229_v47 = vpop.f32.mrf.mxu3 }
 0x382   : > { %1658 = vmatpush.msrb.mxu0 %v7376_v54 }
 0x383   : > { %v9445_v39 = vpop.xlane.xlu1 %1332  ;;  %1011 = vmatmul.f32.gmra.mxu2 %v733_v35  ;;  %v1304_v22 = vmul.f32 1.442695, %v1285_v17  ;;  %v9454_v35 = vadd.f32 %v1229_v47, %v9229_v51 }
 0x384   : > { %1659 = vmatpush.msrb.mxu0 %v7377_v53  ;;  %v9450_v1 = vpop.eup %7675 }
 0x386   : > { %1660 = vmatpush.msrb.mxu0 %v7381_v10 }
 0x387   : > { %v1975_v23 = vpop.permute.xlu2 %1974 }
 0x388   : > { %1661 = vmatpush.msrb.mxu0 %v7382_v24  ;;  %6964 = vmatmul.msk.f32.gmra.mxu3 %vm462_vm1, %v1975_v23 }
 0x389   : > { %v1232_v55 = vpop.f32.mrf.mxu3 }
 0x38b   : > { %v677_v16 = vpop.xlane.xlu1 %676 }
 0x38c   : > { %7677 = vrcp.f32 %v677_v16  ;;  %v745_v12 = vand.u32 2147483648, %v677_v16  ;;  %v743_v34 = vand.u32 2147483647, %v677_v16  ;;  %vm739_vm12 = vweird.f32 %v677_v16 }
 0x38e   : > { %v746_v53 = vor.u32 1.1754944e-38, %v745_v12  ;;  %vm744_vm14 = vcmp.eq.f32.partialorder %v743_v34, 8.507059e+37 }
 0x392   : > { %v7678_v41 = vpop.eup %7677  ;;  %702 = vadd.xlane.f32.xlu0 %v9450_v1 }
 0x393   : > { %v735_v19 = vmul.f32 %v7678_v41, %v677_v16  ;;  %v679_v54 = vpop.xlane.xlu1 %678  ;;  %vm740_vm11 = vweird.f32 %v7678_v41 }
 0x394   : > { %7679 = vrcp.f32 %v679_v54  ;;  %vm741_vm13 = vmor %vm739_vm12, %vm740_vm11  ;;  %v760_v16 = vand.u32 2147483648, %v679_v54  ;;  %vm754_vm3 = vweird.f32 %v679_v54 }
 0x395   : > { %v736_v38 = vsub.f32 1.0, %v735_v19  ;;  %7681 = vpow2.f32 %v1304_v22  ;;  %v758_v19 = vand.u32 2147483647, %v679_v54 }
 0x397   : > { %v737_v48 = vmul.f32 %v7678_v41, %v736_v38  ;;  %vm759_vm5 = vcmp.eq.f32.partialorder %v758_v19, 8.507059e+37 }
 0x399   : > { %v738_v43 = vadd.f32 %v7678_v41, %v737_v48  ;;  %v1287_v48 = vsub.f32 %v9218_v42, %v9362_v33 }
 0x39a   : > { %v7680_v31 = vpop.eup %7679  ;;  %1268 = vmax.xlane.f32.xlu0 %v9454_v35 }
 0x39b   : > { %v750_v26 = vmul.f32 %v7680_v31, %v679_v54  ;;  %v681_v10 = vpop.xlane.xlu1 %680  ;;  %v742_v24 = vsel %vm741_vm13, %v7678_v41, %v738_v43  ;;  %v9457_v17 = vpop.eup %7681  ;;  %vm755_vm15 = vweird.f32 %v7680_v31  ;;  %v761_v41 = vor.u32 1.1754944e-38, %v760_v16 }
 0x39c   : > { %7683 = vrcp.f32 %v681_v10  ;;  %v747_v23 = vsel %vm744_vm14, %v746_v53, %v742_v24  ;;  %vm756_vm4 = vmor %vm754_vm3, %vm755_vm15  ;;  %v773_v16 = vand.u32 2147483647, %v681_v10  ;;  %vm769_vm7 = vweird.f32 %v681_v10 }
 0x39d   : > { %v751_v22 = vsub.f32 1.0, %v750_v26  ;;  %v748_v51 = vmul.f32 %v9356_v52, %v747_v23  ;;  %v9464_v23 = vpop.f32.mrf.mxu3 }
 0x39e   : > { %1336 = vadd.xlane.f32.xlu2 %v9457_v17  ;;  %vm774_vm9 = vcmp.eq.f32.partialorder %v773_v16, 8.507059e+37 }
 0x39f   : > { %1014 = vmatmul.f32.gmra.mxu2 %v748_v51  ;;  %v752_v47 = vmul.f32 %v7680_v31, %v751_v22  ;;  %v775_v22 = vand.u32 2147483648, %v681_v10  ;;  %v1308_v51 = vmul.f32 1.442695, %v1287_v48 }
 0x3a1   : > { %v753_v38 = vadd.f32 %v7680_v31, %v752_v47  ;;  %v9467_v47 = vadd.f32 %v1232_v55, %v9274_v56 }
 0x3a2   : > { %v7684_v12 = vpop.eup %7683 }
 0x3a3   : > { %v765_v34 = vmul.f32 %v7684_v12, %v681_v10  ;;  %v683_v43 = vpop.xlane.xlu1 %682  ;;  %v757_v53 = vsel %vm756_vm4, %v7680_v31, %v753_v38  ;;  %vm770_vm6 = vweird.f32 %v7684_v12  ;;  %v776_v31 = vor.u32 1.1754944e-38, %v775_v22 }
 0x3a4   : > { %7685 = vrcp.f32 %v683_v43  ;;  %v762_v52 = vsel %vm759_vm5, %v761_v41, %v757_v53  ;;  %vm771_vm8 = vmor %vm769_vm7, %vm770_vm6  ;;  %v790_v56 = vand.u32 2147483648, %v683_v43  ;;  %v788_v55 = vand.u32 2147483647, %v683_v43 }
 0x3a5   : > { %v766_v26 = vsub.f32 1.0, %v765_v34  ;;  %v763_v24 = vmul.f32 %v9366_v8, %v762_v52  ;;  %7687 = vpow2.f32 %v1308_v51  ;;  %v1238_v53 = vpop.f32.mrf.mxu3  ;;  %vm784_vm11 = vweird.f32 %v683_v43 }
 0x3a6   : > { %v791_v22 = vor.u32 1.1754944e-38, %v790_v56  ;;  %vm789_vm13 = vcmp.eq.f32.partialorder %v788_v55, 8.507059e+37 }
 0x3a7   : > { %1017 = vmatmul.f32.gmra.mxu2 %v763_v24  ;;  %v767_v54 = vmul.f32 %v7684_v12, %v766_v26  ;;  %v9475_v24 = vpop.xlane.xlu0 %1330 }
 0x3a9   : > { %v768_v42 = vadd.f32 %v7684_v12, %v767_v54 }
 0x3aa   : > { %v7686_v33 = vpop.eup %7685 }
 0x3ab   : > { %v780_v19 = vmul.f32 %v7686_v33, %v683_v43  ;;  %v685_v38 = vpop.xlane.xlu1 %684  ;;  %1270 = vmax.xlane.f32.xlu1 %v9467_v47  ;;  %v772_v8 = vsel %vm771_vm8, %v7684_v12, %v768_v42  ;;  %vm785_vm10 = vweird.f32 %v7686_v33  ;;  %v9473_v52 = vpop.eup %7687 }
 0x3ac   : > { %7689 = vrcp.f32 %v685_v38  ;;  %v777_v41 = vsel %vm774_vm9, %v776_v31, %v772_v8  ;;  %vm786_vm12 = vmor %vm784_vm11, %vm785_vm10  ;;  %v805_v43 = vand.u32 2147483648, %v685_v38  ;;  %v803_v8 = vand.u32 2147483647, %v685_v38 }
 0x3ad   : > { %v781_v48 = vsub.f32 1.0, %v780_v19  ;;  %v778_v34 = vmul.f32 %v9372_v62, %v777_v41  ;;  %v9483_v41 = vadd.f32 %v1238_v53, %v9285_v4  ;;  %vm799_vm15 = vweird.f32 %v685_v38 }
 0x3ae   : > { %2766 = vrot.lane.b32.xlu0 %v12869_v15, %s8319_s17  ;;  %vm804_vm4 = vcmp.eq.f32.partialorder %v803_v8, 8.507059e+37 }
 0x3af   : > { %1020 = vmatmul.f32.gmra.mxu2 %v778_v34  ;;  %v782_v10 = vmul.f32 %v7686_v33, %v781_v48  ;;  %v1241_v34 = vpop.f32.mrf.mxu3  ;;  %v9485_v56 = vpop.permute.xlu0 %2762 }
 0x3b0   : > { %12880 = vst [vmem:[#allocation43_spill] sm:$0xff] %v9485_v56  ;;  %v1288_v56 = vsub.f32 %v9231_v11, %v9358_v46 }
 0x3b1   : > { %v783_v26 = vadd.f32 %v7686_v33, %v782_v10 }
 0x3b2   : > { %v7690_v12 = vpop.eup %7689 }
 0x3b3   : > { %v795_v51 = vmul.f32 %v7690_v12, %v685_v38  ;;  %v687_v62 = vpop.xlane.xlu1 %686  ;;  %1340 = vadd.xlane.f32.xlu1 %v9473_v52  ;;  %v787_v54 = vsel %vm786_vm12, %v7686_v33, %v783_v26  ;;  %vm800_vm14 = vweird.f32 %v7690_v12 }
 0x3b4   : > { %7691 = vrcp.f32 %v687_v62  ;;  %v792_v16 = vsel %vm789_vm13, %v791_v22, %v787_v54  ;;  %vm801_vm3 = vmor %vm799_vm15, %vm800_vm14  ;;  %v820_v38 = vand.u32 2147483648, %v687_v62  ;;  %vm814_vm6 = vweird.f32 %v687_v62 }
 0x3b5   : > { %v796_v42 = vsub.f32 1.0, %v795_v51  ;;  %v793_v31 = vmul.f32 %v9378_v58, %v792_v16  ;;  %7693 = vrcp.f32 %v9475_v24  ;;  %v806_v58 = vor.u32 1.1754944e-38, %v805_v43 }
 0x3b6   : > { %2768 = vrot.lane.b32.xlu2 %v12872_v14, %s8319_s17  ;;  %v818_v16 = vand.u32 2147483647, %v687_v62  ;;  %v821_v8 = vor.u32 1.1754944e-38, %v820_v38  ;;  %s8331_s17 = smov 104  }
 0x3b7   : > { %1023 = vmatmul.f32.gmra.mxu2 %v793_v31  ;;  %v797_v19 = vmul.f32 %v7690_v12, %v796_v42  ;;  %v9492_v42 = vadd.f32 %v1241_v34, %v9290_v20  ;;  %v1244_v34 = vpop.f32.mrf.mxu3 }
 0x3b8   : > { %vm819_vm8 = vcmp.eq.f32.partialorder %v818_v16, 8.507059e+37 }
 0x3b9   : > { %v798_v33 = vadd.f32 %v7690_v12, %v797_v19  ;;  %v9499_v19 = vpop.xlane.xlu0 %696 }
 0x3ba   : > { %v7692_v48 = vpop.eup %7691 }
 0x3bb   : > { %v810_v10 = vmul.f32 %v7692_v48, %v687_v62  ;;  %v689_v55 = vpop.xlane.xlu1 %688  ;;  %1274 = vmax.xlane.f32.xlu1 %v9483_v41  ;;  %v802_v26 = vsel %vm801_vm3, %v7690_v12, %v798_v33  ;;  %v9489_v53 = vpop.eup %7693  ;;  %vm815_vm5 = vweird.f32 %v7692_v48 }
 0x3bc   : > { %7695 = vrcp.f32 %v689_v55  ;;  %v807_v22 = vsel %vm804_vm4, %v806_v58, %v802_v26  ;;  %v1363_v12 = vmul.f32 %v9489_v53, %v9475_v24  ;;  %vm816_vm7 = vmor %vm814_vm6, %vm815_vm5  ;;  %v835_v38 = vand.u32 2147483648, %v689_v55 }
 0x3bd   : > { %v811_v51 = vsub.f32 1.0, %v810_v10  ;;  %v808_v4 = vmul.f32 %v9382_v45, %v807_v22  ;;  %v1286_v10 = vsub.f32 %v9210_v21, %v9375_v6  ;;  %vm829_vm10 = vweird.f32 %v689_v55 }
 0x3be   : > { %v1364_v62 = vsub.f32 1.0, %v1363_v12  ;;  %vm1368_vm3 = vweird.f32 %v9489_v53  ;;  %vm1367_vm5 = vweird.f32 %v9475_v24 }
 0x3bf   : > { %1026 = vmatmul.f32.gmra.mxu2 %v808_v4  ;;  %v812_v54 = vmul.f32 %v7692_v48, %v811_v51  ;;  %v833_v4 = vand.u32 2147483647, %v689_v55  ;;  %v1306_v16 = vmul.f32 1.442695, %v1286_v10  ;;  %v1247_v15 = vpop.f32.mrf.mxu3  ;;  %vm9558_vm6 = vmor %vm1367_vm5, %vm1368_vm3 }
 0x3c0   : > { %v9494_v31 = vpop.xlane.xlu2 %690 }
 0x3c1   : > { %7697 = vrcp.f32 %v9494_v31  ;;  %v813_v43 = vadd.f32 %v7692_v48, %v812_v54  ;;  %vm834_vm12 = vcmp.eq.f32.partialorder %v833_v4, 8.507059e+37  ;;  %v850_v10 = vand.u32 2147483648, %v9494_v31 }
 0x3c2   : > { %v7696_v45 = vpop.eup %7695  ;;  %vm844_vm14 = vweird.f32 %v9494_v31 }
 0x3c3   : > { %v825_v33 = vmul.f32 %v7696_v45, %v689_v55  ;;  %v9501_v58 = vpop.xlane.xlu1 %692  ;;  %1276 = vmax.xlane.f32.xlu1 %v9492_v42  ;;  %v817_v20 = vsel %vm816_vm7, %v7692_v48, %v813_v43  ;;  %vm830_vm9 = vweird.f32 %v7696_v45  ;;  %v9510_v48 = vadd.f32 %v1244_v34, %v9307_v5 }
 0x3c4   : > { %7699 = vrcp.f32 %v9501_v58  ;;  %v822_v26 = vsel %vm819_vm8, %v821_v8, %v817_v20  ;;  %v1365_v43 = vmul.f32 %v9489_v53, %v1364_v62  ;;  %vm831_vm11 = vmor %vm829_vm10, %vm830_vm9  ;;  %v836_v20 = vor.u32 1.1754944e-38, %v835_v38 }
 0x3c5   : > { %7701 = vrcp.f32 %v9445_v39  ;;  %v826_v22 = vsub.f32 1.0, %v825_v33  ;;  %v823_v51 = vmul.f32 %v9388_v7, %v822_v26  ;;  %vm859_vm9 = vweird.f32 %v9501_v58 }
 0x3c6   : > { %7703 = vrcp.f32 %v9499_v19 }
 0x3c7   : > { %v7698_v54 = vpop.eup %7697  ;;  %1029 = vmatmul.f32.gmra.mxu2 %v823_v51  ;;  %v827_v14 = vmul.f32 %v7696_v45, %v826_v22 }
 0x3c8   : > { %v840_v21 = vmul.f32 %v7698_v54, %v9494_v31  ;;  %v9513_v6 = vpop.xlane.xlu2 %700  ;;  %vm845_vm13 = vweird.f32 %v7698_v54 }
 0x3c9   : > { %v828_v12 = vadd.f32 %v7696_v45, %v827_v14  ;;  %vm9535_vm15 = vmor %vm844_vm14, %vm845_vm13  ;;  %vm1382_vm14 = vweird.f32 %v9445_v39 }
 0x3ca   : > { %v9516_v8 = vpop.eup %7699  ;;  %v841_v7 = vsub.f32 1.0, %v840_v21  ;;  %v7385_v33 = vpop.permute.xlu0 %7384  ;;  %v848_v21 = vand.u32 2147483647, %v9494_v31  ;;  %v851_v31 = vor.u32 1.1754944e-38, %v850_v10 }
 0x3cb   : > { %v9519_v5 = vpop.eup %7701  ;;  %v855_v34 = vmul.f32 %v9516_v8, %v9501_v58  ;;  %v9523_v26 = vpop.xlane.xlu1 %694  ;;  %1278 = vmax.xlane.f32.xlu1 %v9510_v48  ;;  %v7386_v14 = vunpack.i.l.bf16 %v7385_v33  ;;  %v832_v55 = vsel %vm831_vm11, %v7696_v45, %v828_v12  ;;  %v7387_v38 = vunpack.i.h.bf16 %v7385_v33 }
 0x3cc   : > { %7705 = vrcp.f32 %v9523_v26  ;;  %v837_v62 = vsel %vm834_vm12, %v836_v20, %v832_v55  ;;  %v842_v22 = vmul.f32 %v7698_v54, %v841_v7  ;;  %v1378_v45 = vmul.f32 %v9519_v5, %v9445_v39  ;;  %v9542_v20 = vpop.eup %7703 }
 0x3cd   : > { %v856_v51 = vsub.f32 1.0, %v855_v34  ;;  %1662 = vmatpush.msrb.mxu0 %v7386_v14  ;;  %v838_v4 = vmul.f32 %v9396_v40, %v837_v62  ;;  %v1366_v40 = vadd.f32 %v9489_v53, %v1365_v43  ;;  %v1371_v34 = vand.u32 2147483647, %v9475_v24 }
 0x3ce   : > { %v843_v12 = vadd.f32 %v7698_v54, %v842_v22  ;;  %v1373_v14 = vand.u32 2147483648, %v9475_v24  ;;  %v9551_v55 = vadd.f32 %v1247_v15, %v9322_v29  ;;  %7707 = vpow2.f32 %v1306_v16 }
 0x3cf   : > { %1032 = vmatmul.f32.gmra.mxu2 %v838_v4  ;;  %1663 = vmatpush.msrb.mxu0 %v7387_v38  ;;  %v857_v33 = vmul.f32 %v9516_v8, %v856_v51  ;;  %vm849_vm4 = vcmp.eq.f32.partialorder %v848_v21, 8.507059e+37  ;;  %v1310_v62 = vmul.f32 1.442695, %v1288_v56  ;;  %v1379_v22 = vsub.f32 1.0, %v1378_v45 }
 0x3d0   : > { %v9544_v46 = vpop.xlane.xlu2 %1266  ;;  %v847_v11 = vsel %vm9535_vm15, %v7698_v54, %v843_v12  ;;  %v1370_v24 = vsel %vm9558_vm6, %v9489_v53, %v1366_v40  ;;  %vm860_vm7 = vweird.f32 %v9516_v8  ;;  %v1289_v16 = vsub.f32 %v9309_v27, %v9436_v44 }
 0x3d1   : > { %v852_v4 = vsel %vm849_vm4, %v851_v31, %v847_v11  ;;  %v858_v56 = vadd.f32 %v9516_v8, %v857_v33  ;;  %vm1372_vm8 = vcmp.eq.f32.partialorder %v1371_v34, 8.507059e+37  ;;  %v1374_v10 = vor.u32 1.1754944e-38, %v1373_v14  ;;  %vm9582_vm10 = vmor %vm859_vm9, %vm860_vm7  ;;  %v2093_v11 = vpop.f32.mrf.mxu3 }
 0x3d2   : > { %v9554_v43 = vpop.eup %7705  ;;  %v1977_v51 = vpop.permute.xlu0 %1976  ;;  %v865_v38 = vand.u32 2147483648, %v9501_v58  ;;  %v853_v45 = vmul.f32 %v9402_v30, %v852_v4  ;;  %v863_v12 = vand.u32 2147483647, %v9501_v58  ;;  %v885_v53 = vmul.f32 %v9542_v20, %v9499_v19 }
 0x3d3   : > { %v870_v15 = vmul.f32 %v9554_v43, %v9523_v26  ;;  %1280 = vmax.xlane.f32.xlu1 %v9551_v55  ;;  %v9565_v29 = vpop.xlane.xlu1 %698  ;;  %6965 = vmatmul.msk.f32.gmra.mxu3 %vm462_vm1, %v1977_v51  ;;  %v1375_v7 = vsel %vm1372_vm8, %v1374_v10, %v1370_v24  ;;  %v1380_v27 = vmul.f32 %v9519_v5, %v1379_v22  ;;  %v1312_v14 = vmul.f32 1.442695, %v1289_v16 }
 0x3d4   : > { %7709 = vrcp.f32 %v9565_v29  ;;  %v9587_v44 = vpop.eup %7707  ;;  %v862_v30 = vsel %vm9582_vm10, %v9516_v8, %v858_v56  ;;  %v9595_v33 = vadd.f32 %v9464_v23, %v9259_v25  ;;  %v866_v34 = vor.u32 1.1754944e-38, %v865_v38 }
 0x3d5   : > { %v871_v21 = vsub.f32 1.0, %v870_v15  ;;  %7711 = vpow2.f32 %v1310_v62  ;;  %v1376_v51 = vmul.f32 %v9336_v13, %v1375_v7  ;;  %vm864_vm11 = vcmp.eq.f32.partialorder %v863_v12, 8.507059e+37 }
 0x3d6   : > { %v886_v4 = vsub.f32 1.0, %v885_v53  ;;  %v867_v54 = vsel %vm864_vm11, %v866_v34, %v862_v30  ;;  %v1381_v8 = vadd.f32 %v9519_v5, %v1380_v27  ;;  %vm1383_vm12 = vweird.f32 %v9519_v5 }
 0x3d7   : > { %1035 = vmatmul.f32.gmra.mxu2 %v853_v45  ;;  %v872_v58 = vmul.f32 %v9554_v43, %v871_v21  ;;  %v1388_v23 = vand.u32 2147483648, %v9445_v39  ;;  %vm875_vm13 = vweird.f32 %v9554_v43  ;;  %v1386_v13 = vand.u32 2147483647, %v9445_v39  ;;  %vm9616_vm15 = vmor %vm1382_vm14, %vm1383_vm12 }
 0x3d8   : > { %v7390_v31 = vpop.permute.xlu2 %7389  ;;  %1338 = vadd.xlane.f32.xlu0 %v9587_v44  ;;  %v880_v56 = vand.u32 2147483648, %v9523_v26  ;;  %v868_v16 = vmul.f32 %v9405_v57, %v867_v54  ;;  %vm874_vm3 = vweird.f32 %v9523_v26  ;;  %v878_v38 = vand.u32 2147483647, %v9523_v26 }
 0x3d9   : > { %v7391_v22 = vunpack.i.l.bf16 %v7390_v31  ;;  %v7392_v25 = vunpack.i.h.bf16 %v7390_v31  ;;  %v873_v62 = vadd.f32 %v9554_v43, %v872_v58  ;;  %v1385_v39 = vsel %vm9616_vm15, %v9519_v5, %v1381_v8  ;;  %vm9629_vm4 = vmor %vm874_vm3, %vm875_vm13  ;;  %v2096_v30 = vpop.f32.mrf.mxu3 }
 0x3da   : > { %v9606_v24 = vpop.eup %7709  ;;  %v887_v45 = vmul.f32 %v9542_v20, %v886_v4  ;;  %v1389_v26 = vor.u32 1.1754944e-38, %v1388_v23  ;;  %vm1387_vm5 = vcmp.eq.f32.partialorder %v1386_v13, 8.507059e+37  ;;  %v881_v5 = vor.u32 1.1754944e-38, %v880_v56 }
 0x3db   : > { %v9601_v15 = vpop.xlane.xlu1 %1334  ;;  %1664 = vmatpush.msrb.mxu0 %v7391_v22  ;;  %v9622_v21 = vpop.eup %7711  ;;  %v900_v12 = vmul.f32 %v9606_v24, %v9565_v29  ;;  %v877_v53 = vsel %vm9629_vm4, %v9554_v43, %v873_v62  ;;  %v1290_v7 = vsub.f32 %v9420_v63, %v9544_v46  ;;  %vm879_vm6 = vcmp.eq.f32.partialorder %v878_v38, 8.507059e+37 }
 0x3dc   : > { %7713 = vrcp.f32 %v9601_v15  ;;  %v1390_v40 = vsel %vm1387_vm5, %v1389_v26, %v1385_v39  ;;  %v882_v58 = vsel %vm879_vm6, %v881_v5, %v877_v53  ;;  %v888_v31 = vadd.f32 %v9542_v20, %v887_v45  ;;  %v8148_v26 = vld [vmem:[%s12748_s5 + $0x8] sm:$0xff] }
 0x3dd   : > { %7715 = vrcp.f32 %v9513_v6  ;;  %1665 = vmatpush.msrb.mxu0 %v7392_v25  ;;  %vm890_vm7 = vweird.f32 %v9542_v20  ;;  %v901_v43 = vsub.f32 1.0, %v900_v12  ;;  %v1391_v63 = vmul.f32 %v9350_v18, %v1390_v40 }
 0x3de   : > { %1666 = vmatmul.f32.vlgmr.msrb.gmra.mxu0 %v1376_v51  ;;  %7717 = vpow2.f32 %v1312_v14  ;;  %v8147_v14 = vld [vmem:[%s12748_s5] sm:$0xff]  ;;  %vm889_vm8 = vweird.f32 %v9499_v19  ;;  %v895_v46 = vand.u32 2147483648, %v9499_v19  ;;  %v1314_v4 = vmul.f32 1.442695, %v1290_v7 }
 0x3df   : > { %1272 = vmax.xlane.f32.xlu2 %v9595_v33  ;;  %1038 = vmatmul.f32.gmra.mxu2 %v868_v16  ;;  %v9651_v51 = vadd.f32 %v8147_v14, %v2093_v11  ;;  %v883_v8 = vmul.f32 %v9412_v3, %v882_v58  ;;  %vm9657_vm9 = vmor %vm889_vm8, %vm890_vm7  ;;  %v893_v23 = vand.u32 2147483647, %v9499_v19  ;;  %v1403_v62 = vand.u32 2147483648, %v9601_v15 }
 0x3e0   : > { %1342 = vadd.xlane.f32.xlu0 %v9622_v21  ;;  %v892_v18 = vsel %vm9657_vm9, %v9542_v20, %v888_v31  ;;  %v1401_v56 = vand.u32 2147483647, %v9601_v15  ;;  %v902_v19 = vmul.f32 %v9606_v24, %v901_v43  ;;  %v896_v10 = vor.u32 1.1754944e-38, %v895_v46 }
 0x3e1   : > { %7719 = vpow2.f32 %v1314_v4  ;;  %vm894_vm11 = vcmp.eq.f32.partialorder %v893_v23, 8.507059e+37  ;;  %vm1397_vm12 = vweird.f32 %v9601_v15  ;;  %v1404_v57 = vor.u32 1.1754944e-38, %v1403_v62  ;;  %v2099_v5 = vpop.f32.mrf.mxu3  ;;  %v8151_v62 = vld [vmem:[%s12748_s5 + $0x20] sm:$0xff] }
 0x3e2   : > { %v7714_v27 = vpop.eup %7713  ;;  %v897_v39 = vsel %vm894_vm11, %v896_v10, %v892_v18  ;;  %vm1402_vm14 = vcmp.eq.f32.partialorder %v1401_v56, 8.507059e+37  ;;  %v903_v12 = vadd.f32 %v9606_v24, %v902_v19  ;;  %vm905_vm15 = vweird.f32 %v9606_v24  ;;  %v8152_v10 = vld [vmem:[%s12748_s5 + $0x28] sm:$0xff] }
 0x3e3   : > { %v9645_v34 = vpop.eup %7715  ;;  %v1393_v22 = vmul.f32 %v7714_v27, %v9601_v15  ;;  %vm1398_vm10 = vweird.f32 %v7714_v27  ;;  %v9681_v53 = vadd.f32 %v8148_v26, %v2096_v30  ;;  %v910_v7 = vand.u32 2147483648, %v9565_v29 }
 0x3e4   : > { %v915_v11 = vmul.f32 %v9645_v34, %v9513_v6  ;;  %v9668_v13 = vpop.eup %7717  ;;  %vm1399_vm13 = vmor %vm1397_vm12, %vm1398_vm10  ;;  %v898_v40 = vmul.f32 %v9392_v61, %v897_v39  ;;  %vm904_vm3 = vweird.f32 %v9565_v29  ;;  %v908_v58 = vand.u32 2147483647, %v9565_v29 }
 0x3e5   : > { %v1394_v54 = vsub.f32 1.0, %v1393_v22  ;;  %vm906_vm4 = vmor %vm904_vm3, %vm905_vm15  ;;  %v911_v61 = vor.u32 1.1754944e-38, %v910_v7  ;;  %vm920_vm6 = vweird.f32 %v9645_v34  ;;  %v925_v29 = vand.u32 2147483648, %v9513_v6 }
 0x3e6   : > { %1669 = vmatmul.f32.gmra.mxu0 %v1391_v63  ;;  %v916_v38 = vsub.f32 1.0, %v915_v11  ;;  %v907_v30 = vsel %vm906_vm4, %v9606_v24, %v903_v12  ;;  %vm909_vm5 = vcmp.eq.f32.partialorder %v908_v58, 8.507059e+37  ;;  %v8149_v24 = vld [vmem:[%s12748_s5 + $0x10] sm:$0xff]  ;;  %vm919_vm7 = vweird.f32 %v9513_v6 }
 0x3e7   : > { %2141 = vmax.xlane.f32.xlu2 %v9651_v51  ;;  %1041 = vmatmul.f32.gmra.mxu2 %v883_v8  ;;  %v1395_v3 = vmul.f32 %v7714_v27, %v1394_v54  ;;  %v9690_v31 = vpop.eup %7719  ;;  %v9705_v63 = vadd.f32 %v8149_v24, %v2099_v5  ;;  %v923_v4 = vand.u32 2147483647, %v9513_v6  ;;  %vm921_vm8 = vmor %vm919_vm7, %vm920_vm6  ;;  %v926_v25 = vor.u32 1.1754944e-38, %v925_v29  ;;  %v9719_v6 = vpop.permute.xlu0 %2764 }
 0x3e8   : > { %1344 = vadd.xlane.f32.xlu0 %v9668_v13  ;;  %v1009_v16 = vpop.f32.mrf.mxu2  ;;  %v917_v43 = vmul.f32 %v9645_v34, %v916_v38 }
 0x3e9   : > { %6919 = vmatmul.msk.f32.vlgmr.msrb.gmra.mxu1 %vm462_vm1, %v1009_v16  ;;  %v1396_v20 = vadd.f32 %v7714_v27, %v1395_v3  ;;  %v2102_v54 = vpop.f32.mrf.mxu3  ;;  %vm924_vm9 = vcmp.eq.f32.partialorder %v923_v4, 8.507059e+37 }
 0x3ea   : > { %v918_v14 = vadd.f32 %v9645_v34, %v917_v43 }
 0x3eb   : > { %v1400_v45 = vsel %vm1399_vm13, %v7714_v27, %v1396_v20 }
 0x3ec   : > { %7394 = vrot.lane.b32.xlu1 %v8691_v9, %s8321_s14  ;;  %v1405_v15 = vsel %vm1402_vm14, %v1404_v57, %v1400_v45  ;;  %v922_v8 = vsel %vm921_vm8, %v9645_v34, %v918_v14 }
 0x3ed   : > { %v1406_v27 = vmul.f32 %v9429_v32, %v1405_v15  ;;  %v912_v32 = vsel %vm909_vm5, %v911_v61, %v907_v30  ;;  %v927_v23 = vsel %vm924_vm9, %v926_v25, %v922_v8 }
 0x3ee   : > { %v913_v46 = vmul.f32 %v9423_v2, %v912_v32  ;;  %v8150_v2 = vld [vmem:[%s12748_s5 + $0x18] sm:$0xff]  ;;  %v928_v18 = vmul.f32 %v9409_v37, %v927_v23 }
 0x3ef   : > { %2143 = vmax.xlane.f32.xlu2 %v9681_v53  ;;  %1044 = vmatmul.f32.gmra.mxu2 %v898_v40  ;;  %v9717_v11 = vadd.f32 %v8150_v2, %v2102_v54 }
 0x3f0   : > { %1672 = vmatmul.f32.gmra.mxu0 %v1406_v27  ;;  %1346 = vadd.xlane.f32.xlu0 %v9690_v31 }
 0x3f1   : > { %v2105_v34 = vpop.f32.mrf.mxu3 }
 0x3f2   : > { %v9728_v3 = vadd.f32 %v8151_v62, %v2105_v34 }
 0x3f3   : > { %v1979_v22 = vpop.permute.xlu1 %1978 }
 0x3f4   : > { %7409 = vrot.lane.b32.xlu1 %v8641_v60, %s8322_s15  ;;  %6966 = vmatmul.msk.f32.gmra.mxu3 %vm462_vm1, %v1979_v22 }
 0x3f7   : > { %2145 = vmax.xlane.f32.xlu2 %v9705_v63  ;;  %1047 = vmatmul.f32.gmra.mxu2 %v913_v46 }
 0x3f9   : > { %v2108_v37 = vpop.f32.mrf.mxu3 }
 0x3fa   : > { %v9735_v20 = vadd.f32 %v8152_v10, %v2108_v37 }
 0x3fc   : > { %7414 = vrot.lane.b32.xlu1 %v8629_v59, %s8321_s14 }
 0x3ff   : > { %2147 = vmax.xlane.f32.xlu2 %v9717_v11  ;;  %1050 = vmatmul.f32.gmra.mxu2 %v928_v18 }
 0x404   : > { %7419 = vrot.lane.b32.xlu1 %v8629_v59, %s8322_s15 }
 0x405   : > { %v703_v56 = vpop.xlane.xlu0 %702 }
 0x406   : > { %7721 = vrcp.f32 %v703_v56  ;;  %v1012_v19 = vpop.f32.mrf.mxu2  ;;  %v940_v26 = vand.u32 2147483648, %v703_v56  ;;  %v938_v7 = vand.u32 2147483647, %v703_v56  ;;  %vm934_vm11 = vweird.f32 %v703_v56 }
 0x407   : > { %2149 = vmax.xlane.f32.xlu2 %v9728_v3  ;;  %6920 = vmatmul.msk.f32.gmra.mxu1 %vm462_vm1, %v1012_v19 }
 0x408   : > { %v941_v27 = vor.u32 1.1754944e-38, %v940_v26  ;;  %vm939_vm13 = vcmp.eq.f32.partialorder %v938_v7, 8.507059e+37 }
 0x40c   : > { %v7722_v16 = vpop.eup %7721 }
 0x40d   : > { %v930_v38 = vmul.f32 %v7722_v16, %v703_v56  ;;  %v1269_v39 = vpop.xlane.xlu0 %1268  ;;  %vm935_vm10 = vweird.f32 %v7722_v16 }
 0x40e   : > { %v1291_v57 = vsub.f32 %v9454_v35, %v1269_v39  ;;  %vm936_vm12 = vmor %vm934_vm11, %vm935_vm10 }
 0x40f   : > { %v931_v45 = vsub.f32 1.0, %v930_v38  ;;  %2151 = vmax.xlane.f32.xlu2 %v9735_v20 }
 0x410   : > { %v1316_v12 = vmul.f32 1.442695, %v1291_v57 }
 0x411   : > { %v1337_v5 = vpop.xlane.xlu2 %1336  ;;  %v932_v15 = vmul.f32 %v7722_v16, %v931_v45  ;;  %v2111_v45 = vpop.f32.mrf.mxu3 }
 0x412   : > { %7723 = vpow2.f32 %v1316_v12  ;;  %v1418_v14 = vand.u32 2147483648, %v1337_v5  ;;  %v1416_v46 = vand.u32 2147483647, %v1337_v5  ;;  %vm1412_vm15 = vweird.f32 %v1337_v5 }
 0x413   : > { %7725 = vrcp.f32 %v1337_v5  ;;  %v933_v40 = vadd.f32 %v7722_v16, %v932_v15 }
 0x414   : > { %vm1417_vm4 = vcmp.eq.f32.partialorder %v1416_v46, 8.507059e+37 }
 0x415   : > { %v937_v58 = vsel %vm936_vm12, %v7722_v16, %v933_v40 }
 0x416   : > { %v942_v30 = vsel %vm939_vm13, %v941_v27, %v937_v58 }
 0x417   : > { %v943_v35 = vmul.f32 %v9450_v1, %v942_v30  ;;  %v1419_v1 = vor.u32 1.1754944e-38, %v1418_v14 }
 0x418   : > { %v9740_v43 = vpop.eup %7723 }
 0x419   : > { %v7726_v61 = vpop.eup %7725  ;;  %1348 = vadd.xlane.f32.xlu0 %v9740_v43  ;;  %1053 = vmatmul.f32.gmra.mxu2 %v943_v35  ;;  %v9762_v38 = vpop.permute.xlu2 %2768 }
 0x41a   : > { %v1408_v32 = vmul.f32 %v7726_v61, %v1337_v5  ;;  %vm1413_vm14 = vweird.f32 %v7726_v61  ;;  %v8153_v5 = vld [vmem:[%s12748_s5 + $0x30] sm:$0xff] }
 0x41b   : > { %vm1414_vm3 = vmor %vm1412_vm15, %vm1413_vm14  ;;  %v9772_v15 = vadd.f32 %v8153_v5, %v2111_v45 }
 0x41c   : > { %v1409_v22 = vsub.f32 1.0, %v1408_v32 }
 0x41e   : > { %v1271_v29 = vpop.xlane.xlu1 %1270  ;;  %v1410_v24 = vmul.f32 %v7726_v61, %v1409_v22 }
 0x41f   : > { %v1292_v4 = vsub.f32 %v9467_v47, %v1271_v29 }
 0x420   : > { %v1411_v54 = vadd.f32 %v7726_v61, %v1410_v24  ;;  %v9758_v10 = vpop.permute.xlu0 %2766 }
 0x421   : > { %v1318_v8 = vmul.f32 1.442695, %v1292_v4 }
 0x422   : > { %v1015_v25 = vpop.f32.mrf.mxu2  ;;  %v1415_v23 = vsel %vm1414_vm3, %v7726_v61, %v1411_v54 }
 0x423   : > { %7727 = vpow2.f32 %v1318_v8  ;;  %6921 = vmatmul.msk.f32.gmra.mxu1 %vm462_vm1, %v1015_v25  ;;  %v1420_v2 = vsel %vm1417_vm4, %v1419_v1, %v1415_v23 }
 0x424   : > { %v1421_v18 = vmul.f32 %v9457_v17, %v1420_v2 }
 0x426   : > { %1675 = vmatmul.f32.gmra.mxu0 %v1421_v18  ;;  %v9752_v62 = vpop.xlane.xlu1 %1340 }
 0x427   : > { %7399 = vrot.lane.b32.xlu2 %v8691_v9, %s8322_s15  ;;  %7729 = vrcp.f32 %v9752_v62  ;;  %vm1442_vm10 = vweird.f32 %v9752_v62  ;;  %v1448_v45 = vand.u32 2147483648, %v9752_v62 }
 0x429   : > { %v9748_v34 = vpop.eup %7727 }
 0x42a   : > { %1350 = vadd.xlane.f32.xlu0 %v9748_v34  ;;  %v1018_v47 = vpop.f32.mrf.mxu2 }
 0x42b   : > { %6922 = vmatmul.msk.f32.gmra.mxu1 %vm462_vm1, %v1018_v47 }
 0x42d   : > { %v9764_v57 = vpop.eup %7729 }
 0x42e   : > { %v1275_v19 = vpop.xlane.xlu1 %1274  ;;  %v1438_v7 = vmul.f32 %v9764_v57, %v9752_v62  ;;  %vm1443_vm8 = vweird.f32 %v9764_v57 }
 0x42f   : > { %v1294_v29 = vsub.f32 %v9483_v41, %v1275_v19  ;;  %vm1444_vm11 = vmor %vm1442_vm10, %vm1443_vm8 }
 0x430   : > { %v1439_v27 = vsub.f32 1.0, %v1438_v7 }
 0x431   : > { %v1322_v25 = vmul.f32 1.442695, %v1294_v29 }
 0x432   : > { %v1021_v56 = vpop.f32.mrf.mxu2  ;;  %v1440_v4 = vmul.f32 %v9764_v57, %v1439_v27  ;;  %v1446_v27 = vand.u32 2147483647, %v9752_v62 }
 0x433   : > { %6923 = vmatmul.msk.f32.gmra.mxu1 %vm462_vm1, %v1021_v56 }
 0x434   : > { %v1441_v41 = vadd.f32 %v9764_v57, %v1440_v4  ;;  %vm1447_vm12 = vcmp.eq.f32.partialorder %v1446_v27, 8.507059e+37 }
 0x436   : > { %v9756_v17 = vpop.xlane.xlu1 %1276 }
 0x43a   : > { %v1024_v37 = vpop.f32.mrf.mxu2 }
 0x43b   : > { %6924 = vmatmul.msk.f32.gmra.mxu1 %vm462_vm1, %v1024_v37 }
 0x43e   : > { %v9767_v26 = vpop.xlane.xlu1 %1278 }
 0x442   : > { %v1027_v16 = vpop.f32.mrf.mxu2 }
 0x443   : > { %6925 = vmatmul.msk.f32.gmra.mxu1 %vm462_vm1, %v1027_v16 }
 0x446   : > { %v9783_v24 = vpop.xlane.xlu1 %1280 }
 0x44a   : > { %v1030_v39 = vpop.f32.mrf.mxu2 }
 0x44b   : > { %v1339_v12 = vpop.xlane.xlu0 %1338  ;;  %6926 = vmatmul.msk.f32.gmra.mxu1 %vm462_vm1, %v1030_v39 }
 0x44c   : > { %7731 = vrcp.f32 %v1339_v12  ;;  %v1433_v46 = vand.u32 2147483648, %v1339_v12  ;;  %v1431_v8 = vand.u32 2147483647, %v1339_v12  ;;  %vm1427_vm6 = vweird.f32 %v1339_v12 }
 0x44e   : > { %v1434_v18 = vor.u32 1.1754944e-38, %v1433_v46  ;;  %vm1432_vm9 = vcmp.eq.f32.partialorder %v1431_v8, 8.507059e+37 }
 0x450   : > { %2153 = vmax.xlane.f32.xlu2 %v9772_v15 }
 0x452   : > { %v7732_v40 = vpop.eup %7731  ;;  %v1273_v58 = vpop.xlane.xlu2 %1272 }
 0x453   : > { %v1033_v30 = vpop.f32.mrf.mxu2  ;;  %v1423_v35 = vmul.f32 %v7732_v40, %v1339_v12  ;;  %v1293_v61 = vsub.f32 %v9595_v33, %v1273_v58  ;;  %v9778_v32 = vpop.xlane.xlu0 %1342  ;;  %vm1428_vm5 = vweird.f32 %v7732_v40 }
 0x454   : > { %6927 = vmatmul.msk.f32.gmra.mxu1 %vm462_vm1, %v1033_v30  ;;  %7733 = vrcp.f32 %v9778_v32  ;;  %vm1429_vm7 = vmor %vm1427_vm6, %vm1428_vm5  ;;  %v1445_v30 = vsel %vm1444_vm11, %v9764_v57, %v1441_v41  ;;  %vm1457_vm14 = vweird.f32 %v9778_v32 }
 0x455   : > { %v1424_v22 = vsub.f32 1.0, %v1423_v35  ;;  %v1320_v14 = vmul.f32 1.442695, %v1293_v61  ;;  %v1295_v61 = vsub.f32 %v9492_v42, %v9756_v17 }
 0x457   : > { %7735 = vpow2.f32 %v1320_v14  ;;  %v1425_v54 = vmul.f32 %v7732_v40, %v1424_v22  ;;  %v1324_v8 = vmul.f32 1.442695, %v1295_v61 }
 0x459   : > { %v1426_v33 = vadd.f32 %v7732_v40, %v1425_v54 }
 0x45a   : > { %v9786_v1 = vpop.eup %7733  ;;  %v2142_v23 = vpop.xlane.xlu2 %2141 }
 0x45b   : > { %v1036_v2 = vpop.f32.mrf.mxu2  ;;  %v1453_v47 = vmul.f32 %v9786_v1, %v9778_v32  ;;  %v2173_v56 = vsub.f32 %v9651_v51, %v2142_v23  ;;  %v9793_v19 = vpop.xlane.xlu0 %1344  ;;  %v1430_v16 = vsel %vm1429_vm7, %v7732_v40, %v1426_v33  ;;  %vm1458_vm13 = vweird.f32 %v9786_v1 }
 0x45c   : > { %v1667_v37 = vpop.f32.mrf.mxu0  ;;  %6928 = vmatmul.msk.f32.gmra.mxu1 %vm462_vm1, %v1036_v2  ;;  %7737 = vrcp.f32 %v9793_v19  ;;  %v1435_v39 = vsel %vm1432_vm9, %v1434_v18, %v1430_v16  ;;  %v1463_v33 = vand.u32 2147483648, %v9778_v32  ;;  %v1461_v18 = vand.u32 2147483647, %v9778_v32  ;;  %vm1459_vm15 = vmor %vm1457_vm14, %vm1458_vm13 }
 0x45d   : > { %6902 = vmatmul.msk.f32.vlgmr.msra.gmra.mxu2 %vm462_vm1, %v1667_v37  ;;  %v9800_v12 = vpop.eup %7735  ;;  %v1454_v5 = vsub.f32 1.0, %v1453_v47  ;;  %v2189_v51 = vmul.f32 1.442695, %v2173_v56  ;;  %v1436_v7 = vmul.f32 %v9587_v44, %v1435_v39  ;;  %7739 = vpow2.f32 %v1322_v25  ;;  %v2114_v37 = vpop.f32.mrf.mxu3 }
 0x45e   : > { %v7395_v40 = vpop.permute.xlu1 %7394  ;;  %1352 = vadd.xlane.f32.xlu0 %v9800_v12  ;;  %v1449_v44 = vor.u32 1.1754944e-38, %v1448_v45  ;;  %v1464_v32 = vor.u32 1.1754944e-38, %v1463_v33  ;;  %vm1462_vm3 = vcmp.eq.f32.partialorder %v1461_v18, 8.507059e+37  ;;  %v1478_v27 = vand.u32 2147483648, %v9793_v19 }
 0x45f   : > { %7741 = vpow2.f32 %v2189_v51  ;;  %v7396_v58 = vunpack.i.l.bf16 %v7395_v40  ;;  %1678 = vmatmul.f32.gmra.mxu0 %v1436_v7  ;;  %v1455_v35 = vmul.f32 %v9786_v1, %v1454_v5  ;;  %v7397_v22 = vunpack.i.h.bf16 %v7395_v40 }
 0x460   : > { %v1450_v46 = vsel %vm1447_vm12, %v1449_v44, %v1445_v30  ;;  %vm1472_vm5 = vweird.f32 %v9793_v19 }
 0x461   : > { %2541 = vmatpush.msra.mxu0 %v7396_v58  ;;  %v1456_v42 = vadd.f32 %v9786_v1, %v1455_v35  ;;  %v1451_v2 = vmul.f32 %v9473_v52, %v1450_v46  ;;  %v1296_v52 = vsub.f32 %v9510_v48, %v9767_v26  ;;  %v8154_v48 = vld [vmem:[%s12748_s5 + $0x38] sm:$0xff]  ;;  %v1476_v35 = vand.u32 2147483647, %v9793_v19 }
 0x462   : > { %v9811_v62 = vpop.eup %7737  ;;  %v2144_v14 = vpop.xlane.xlu2 %2143  ;;  %v9848_v26 = vadd.f32 %v8154_v48, %v2114_v37 }
 0x463   : > { %v1039_v29 = vpop.f32.mrf.mxu2  ;;  %v1468_v4 = vmul.f32 %v9811_v62, %v9793_v19  ;;  %v9815_v54 = vpop.xlane.xlu0 %1346  ;;  %2542 = vmatpush.msra.mxu0 %v7397_v22  ;;  %v2174_v41 = vsub.f32 %v9681_v53, %v2144_v14  ;;  %v1460_v47 = vsel %vm1459_vm15, %v9786_v1, %v1456_v42  ;;  %vm1473_vm4 = vweird.f32 %v9811_v62 }
 0x464   : > { %v1670_v57 = vpop.f32.mrf.mxu0  ;;  %6929 = vmatmul.msk.f32.gmra.mxu1 %vm462_vm1, %v1039_v29  ;;  %v9820_v17 = vpop.eup %7739  ;;  %7743 = vrcp.f32 %v9815_v54  ;;  %v1465_v53 = vsel %vm1462_vm3, %v1464_v32, %v1460_v47  ;;  %v1326_v7 = vmul.f32 1.442695, %v1296_v52  ;;  %vm1474_vm6 = vmor %vm1472_vm5, %vm1473_vm4  ;;  %v1479_v19 = vor.u32 1.1754944e-38, %v1478_v27 }
 0x465   : > { %6903 = vmatmul.msk.f32.gmra.mxu2 %vm462_vm1, %v1670_v57  ;;  %v9825_v25 = vpop.eup %7741  ;;  %v1469_v23 = vsub.f32 1.0, %v1468_v4  ;;  %7745 = vpow2.f32 %v1324_v8  ;;  %v2191_v5 = vmul.f32 1.442695, %v2174_v41  ;;  %v1466_v30 = vmul.f32 %v9622_v21, %v1465_v53 }
 0x466   : > { %2221 = vadd.xlane.f32.xlu1 %v9825_v25  ;;  %1354 = vadd.xlane.f32.xlu0 %v9820_v17  ;;  %v1297_v21 = vsub.f32 %v9551_v55, %v9783_v24  ;;  %vm1477_vm7 = vcmp.eq.f32.partialorder %v1476_v35, 8.507059e+37  ;;  %vm1487_vm9 = vweird.f32 %v9815_v54  ;;  %v1491_v24 = vand.u32 2147483647, %v9815_v54  ;;  %v7410_v41 = vpop.permute.xlu1 %7409 }
 0x467   : > { %1681 = vmatmul.f32.gmra.mxu0 %v1451_v2  ;;  %v1470_v56 = vmul.f32 %v9811_v62, %v1469_v23  ;;  %7747 = vpow2.f32 %v2191_v5 }
 0x468   : > { %7424 = vrot.lane.b32.xlu2 %v12875_v36, %s8321_s14  ;;  %7749 = vpow2.f32 %v1326_v7  ;;  %v1328_v57 = vmul.f32 1.442695, %v1297_v21  ;;  %vm1492_vm11 = vcmp.eq.f32.partialorder %v1491_v24, 8.507059e+37  ;;  %v7412_v7 = vunpack.i.h.bf16 %v7410_v41 }
 0x469   : > { %v1471_v51 = vadd.f32 %v9811_v62, %v1470_v56 }
 0x46a   : > { %v7744_v16 = vpop.eup %7743  ;;  %v9839_v39 = vpop.xlane.xlu2 %2145  ;;  %7751 = vpow2.f32 %v1328_v57 }
 0x46b   : > { %v1042_v45 = vpop.f32.mrf.mxu2  ;;  %v1483_v1 = vmul.f32 %v7744_v16, %v9815_v54  ;;  %v9854_v61 = vpop.eup %7745  ;;  %v1475_v44 = vsel %vm1474_vm6, %v9811_v62, %v1471_v51  ;;  %vm1488_vm8 = vweird.f32 %v7744_v16  ;;  %v1493_v62 = vand.u32 2147483648, %v9815_v54 }
 0x46c   : > { %6930 = vmatmul.msk.f32.gmra.mxu1 %vm462_vm1, %v1042_v45  ;;  %v1480_v46 = vsel %vm1477_vm7, %v1479_v19, %v1475_v44  ;;  %vm1489_vm10 = vmor %vm1487_vm9, %vm1488_vm8  ;;  %v9882_v54 = vpop.f32.mrf.mxu3 }
 0x46d   : > { %v1484_v40 = vsub.f32 1.0, %v1483_v1  ;;  %v1673_v58 = vpop.f32.mrf.mxu0  ;;  %v9868_v42 = vpop.eup %7747  ;;  %v1481_v55 = vmul.f32 %v9668_v13, %v1480_v46  ;;  %v1494_v23 = vor.u32 1.1754944e-38, %v1493_v62  ;;  %v7411_v1 = vunpack.i.l.bf16 %v7410_v41  ;;  %v8155_v41 = vld [vmem:[%s12748_s5 + $0x60] sm:$0xff] }
 0x46e   : > { %6904 = vmatmul.msk.f32.gmra.mxu2 %vm462_vm1, %v1673_v58  ;;  %2155 = vmax.xlane.f32.xlu1 %v9848_v26  ;;  %v9873_v8 = vpop.eup %7749 }
 0x46f   : > { %1356 = vadd.xlane.f32.xlu0 %v9854_v61  ;;  %1684 = vmatmul.f32.gmra.mxu0 %v1466_v30  ;;  %v1485_v22 = vmul.f32 %v7744_v16, %v1484_v40 }
 0x470   : > { %7434 = vrot.lane.b32.xlu2 %v12876_v49, %s8321_s14  ;;  %v9885_v56 = vpop.eup %7751 }
 0x471   : > { %v1486_v4 = vadd.f32 %v7744_v16, %v1485_v22 }
 0x472   : > { %v9864_v14 = vpop.xlane.xlu2 %2147 }
 0x473   : > { %v1045_v29 = vpop.f32.mrf.mxu2  ;;  %v1490_v33 = vsel %vm1489_vm10, %v7744_v16, %v1486_v4  ;;  %v9895_v16 = vpop.permute.xlu1 %7414 }
 0x474   : > { %6931 = vmatmul.msk.f32.gmra.mxu1 %vm462_vm1, %v1045_v29  ;;  %v1495_v18 = vsel %vm1492_vm11, %v1494_v23, %v1490_v33  ;;  %v9893_v37 = vpop.f32.mrf.mxu3 }
 0x475   : > { %v1496_v47 = vmul.f32 %v9690_v31, %v1495_v18 }
 0x476   : > { %2223 = vadd.xlane.f32.xlu1 %v9868_v42 }
 0x477   : > { %1358 = vadd.xlane.f32.xlu0 %v9873_v8  ;;  %1687 = vmatmul.f32.gmra.mxu0 %v1481_v55 }
 0x478   : > { %7439 = vrot.lane.b32.xlu2 %v12876_v49, %s8322_s15 }
 0x47a   : > { %v9879_v13 = vpop.xlane.xlu2 %2149 }
 0x47b   : > { %v1048_v2 = vpop.f32.mrf.mxu2  ;;  %v7420_v48 = vpop.permute.xlu1 %7419 }
 0x47c   : > { %6932 = vmatmul.msk.f32.gmra.mxu1 %vm462_vm1, %v1048_v2  ;;  %v9899_v51 = vpop.f32.mrf.mxu3  ;;  %v7421_v40 = vunpack.i.l.bf16 %v7420_v48  ;;  %v7422_v30 = vunpack.i.h.bf16 %v7420_v48 }
 0x47f   : > { %1360 = vadd.xlane.f32.xlu0 %v9885_v56  ;;  %1690 = vmatmul.f32.gmra.mxu0 %v1496_v47 }
 0x480   : > { %7459 = vrot.lane.b32.xlu2 %v12877_v0, %s8322_s15 }
 0x482   : > { %v9890_v52 = vpop.xlane.xlu2 %2151 }
 0x483   : > { %v1051_v32 = vpop.f32.mrf.mxu2 }
 0x484   : > { %6933 = vmatmul.msk.f32.gmra.mxu1 %vm462_vm1, %v1051_v32  ;;  %v9905_v19 = vpop.f32.mrf.mxu3 }
 0x48a   : > { %v7400_v45 = vpop.permute.xlu2 %7399 }
 0x48b   : > { %v7401_v53 = vunpack.i.l.bf16 %v7400_v45  ;;  %v7402_v5 = vunpack.i.h.bf16 %v7400_v45 }
 0x48c   : > { %v1349_v31 = vpop.xlane.xlu0 %1348  ;;  %v2129_v2 = vpop.f32.mrf.mxu3 }
 0x48d   : > { %7753 = vrcp.f32 %v1349_v31  ;;  %3331 = vmatpush.msra.mxu3 %v7401_v53  ;;  %v1508_v44 = vand.u32 2147483648, %v1349_v31  ;;  %v1506_v21 = vand.u32 2147483647, %v1349_v31  ;;  %vm1502_vm13 = vweird.f32 %v1349_v31 }
 0x48e   : > { %v9919_v47 = vadd.f32 %v8155_v41, %v2129_v2 }
 0x48f   : > { %7449 = vrot.lane.b32.xlu1 %v12874_v28, %s8322_s15  ;;  %3332 = vmatpush.msra.mxu3 %v7402_v5  ;;  %v1509_v46 = vor.u32 1.1754944e-38, %v1508_v44  ;;  %vm1507_vm15 = vcmp.eq.f32.partialorder %v1506_v21, 8.507059e+37  ;;  %v2177_v21 = vsub.f32 %v9728_v3, %v9879_v13  ;;  %v9963_v3 = vld [vmem:[%s12748_s5 + $0x50] sm:$0xff] }
 0x491   : > { %3333 = vmatpush.msra.mxu3 %v7411_v1  ;;  %v12893_v1 = vld [vmem:[#allocation31_spill] sm:$0xff] }
 0x493   : > { %v7754_v27 = vpop.eup %7753  ;;  %7404 = vrot.lane.b32.xlu0 %v8641_v60, %s8321_s14  ;;  %3334 = vmatpush.msra.mxu3 %v7412_v7 }
 0x494   : > { %v1498_v58 = vmul.f32 %v7754_v27, %v1349_v31  ;;  %vm1503_vm12 = vweird.f32 %v7754_v27 }
 0x495   : > { %3335 = vmatpush.msra.mxu3 %v7421_v40  ;;  %vm1504_vm14 = vmor %vm1502_vm13, %vm1503_vm12  ;;  %v2176_v40 = vsub.f32 %v9717_v11, %v9864_v14  ;;  %v2175_v11 = vsub.f32 %v9705_v63, %v9839_v39  ;;  %v12899_v63 = vld [vmem:[#allocation35_spill] sm:$0xff]  ;;  %v9967_v39 = vadd.f32 %v9963_v3, %v9899_v51 }
 0x496   : > { %v1499_v35 = vsub.f32 1.0, %v1498_v58  ;;  %v12895_v58 = vld [vmem:[#allocation36_spill] sm:$0xff] }
 0x497   : > { %7454 = vrot.lane.b32.xlu1 %v12877_v0, %s8321_s14  ;;  %3336 = vmatpush.msra.mxu3 %v7422_v30  ;;  %v2195_v30 = vmul.f32 1.442695, %v2176_v40 }
 0x498   : > { %v1500_v22 = vmul.f32 %v7754_v27, %v1499_v35  ;;  %v8156_v35 = vld [vmem:[%s12748_s5 + $0x48] sm:$0xff] }
 0x499   : > { %v9935_v44 = vadd.f32 %v8156_v35, %v9893_v37  ;;  %v2193_v37 = vmul.f32 1.442695, %v2175_v11 }
 0x49a   : > { %v1501_v29 = vadd.f32 %v7754_v27, %v1500_v22  ;;  %v12897_v22 = vld [vmem:[#allocation33_spill] sm:$0xff] }
 0x49b   : > { %7429 = vrot.lane.b32.xlu0 %v12875_v36, %s8322_s15 }
 0x49c   : > { %v1054_v4 = vpop.f32.mrf.mxu2  ;;  %v1505_v57 = vsel %vm1504_vm14, %v7754_v27, %v1501_v29  ;;  %v12894_v27 = vld [vmem:[#allocation34_spill] sm:$0xff] }
 0x49d   : > { %v1351_v62 = vpop.xlane.xlu0 %1350  ;;  %6934 = vmatmul.msk.f32.gmra.mxu1 %vm462_vm1, %v1054_v4  ;;  %v1510_v55 = vsel %vm1507_vm15, %v1509_v46, %v1505_v57  ;;  %v8157_v46 = vld [vmem:[%s12748_s5 + $0x40] sm:$0xff]  ;;  %v2197_v57 = vmul.f32 1.442695, %v2177_v21 }
 0x49e   : > { %7755 = vrcp.f32 %v1351_v62  ;;  %v1511_v24 = vmul.f32 %v9740_v43, %v1510_v55  ;;  %v1523_v32 = vand.u32 2147483648, %v1351_v62  ;;  %v1521_v53 = vand.u32 2147483647, %v1351_v62  ;;  %v12901_v55 = vld [vmem:[#allocation37_spill] sm:$0xff] }
 0x49f   : > { %vm1517_vm4 = vweird.f32 %v1351_v62  ;;  %7757 = vpow2.f32 %v2195_v30  ;;  %v9955_v4 = vadd.f32 %v8157_v46, %v9882_v54 }
 0x4a0   : > { %1693 = vmatmul.f32.gmra.mxu0 %v1511_v24  ;;  %v1524_v5 = vor.u32 1.1754944e-38, %v1523_v32  ;;  %vm1522_vm6 = vcmp.eq.f32.partialorder %v1521_v53, 8.507059e+37  ;;  %7759 = vpow2.f32 %v2193_v37 }
 0x4a1   : > { %7761 = vpow2.f32 %v2197_v57 }
 0x4a3   : > { %7444 = vrot.lane.b32.xlu0 %v12874_v28, %s8321_s14  ;;  %v1676_v33 = vpop.f32.mrf.mxu0 }
 0x4a4   : > { %v7756_v23 = vpop.eup %7755  ;;  %6905 = vmatmul.msk.f32.gmra.mxu2 %vm462_vm1, %v1676_v33 }
 0x4a5   : > { %v1513_v18 = vmul.f32 %v7756_v23, %v1351_v62  ;;  %7000 = vmatmul.msk.f32.vlgmr.msra.gmra.mxu1 %vm462_vm1, %v9103_v50  ;;  %vm1518_vm3 = vweird.f32 %v7756_v23  ;;  %v9944_v14 = vpop.eup %7757 }
 0x4a6   : > { %vm1519_vm5 = vmor %vm1517_vm4, %vm1518_vm3  ;;  %v9972_v62 = vpop.eup %7759 }
 0x4a7   : > { %v1514_v43 = vsub.f32 1.0, %v1513_v18  ;;  %v9977_v24 = vpop.eup %7761 }
 0x4a9   : > { %2165 = vmax.xlane.f32.xlu2 %v9919_v47  ;;  %v1515_v45 = vmul.f32 %v7756_v23, %v1514_v43 }
 0x4ab   : > { %v1516_v31 = vadd.f32 %v7756_v23, %v1515_v45 }
 0x4ad   : > { %7001 = vmatmul.msk.f32.gmra.mxu1 %vm462_vm1, %v12893_v1  ;;  %v1520_v50 = vsel %vm1519_vm5, %v7756_v23, %v1516_v31  ;;  %v12903_v31 = vld [vmem:[#allocation39_spill] sm:$0xff] }
 0x4ae   : > { %v1525_v48 = vsel %vm1522_vm6, %v1524_v5, %v1520_v50 }
 0x4af   : > { %v1526_v7 = vmul.f32 %v9748_v34, %v1525_v48  ;;  %v9938_v34 = vpop.f32.mrf.mxu1  ;;  %v9991_v48 = vld [vmem:[%s12748_s5 + $0x58] sm:$0xff] }
 0x4b0   : > { %12896 = vst [vmem:[#allocation31_spill] sm:$0xff] %v9938_v34 }
 0x4b1   : > { %1696 = vmatmul.f32.gmra.mxu0 %v1526_v7 }
 0x4b5   : > { %7002 = vmatmul.msk.f32.gmra.mxu1 %vm462_vm1, %v12894_v27  ;;  %v9997_v27 = vpop.f32.mrf.mxu3 }
 0x4b7   : > { %v9949_v29 = vpop.f32.mrf.mxu1 }
 0x4b8   : > { %12898 = vst [vmem:[#allocation34_spill] sm:$0xff] %v9949_v29 }
 0x4bd   : > { %7003 = vmatmul.msk.f32.gmra.mxu1 %vm462_vm1, %v12895_v58 }
 0x4bf   : > { %v9970_v54 = vpop.f32.mrf.mxu1 }
 0x4c0   : > { %12900 = vst [vmem:[#allocation36_spill] sm:$0xff] %v9970_v54 }
 0x4c1   : > { %2159 = vmax.xlane.f32.xlu1 %v9935_v44 }
 0x4c3   : > { %v2154_v33 = vpop.xlane.xlu2 %2153 }
 0x4c4   : > { %v2179_v41 = vsub.f32 %v9772_v15, %v2154_v33  ;;  %v9995_v15 = vadd.f32 %v9991_v48, %v9905_v19  ;;  %v12905_v33 = vld [vmem:[#allocation38_spill] sm:$0xff] }
 0x4c5   : > { %7004 = vmatmul.msk.f32.gmra.mxu1 %vm462_vm1, %v12897_v22 }
 0x4c6   : > { %v2201_v50 = vmul.f32 1.442695, %v2179_v41  ;;  %v2135_v41 = vpop.f32.mrf.mxu3 }
 0x4c7   : > { %v9983_v32 = vpop.f32.mrf.mxu1 }
 0x4c8   : > { %12902 = vst [vmem:[#allocation33_spill] sm:$0xff] %v9983_v32 }
 0x4c9   : > { %2227 = vadd.xlane.f32.xlu1 %v9944_v14 }
 0x4cd   : > { %2157 = vmax.xlane.f32.xlu0 %v9955_v4  ;;  %7005 = vmatmul.msk.f32.gmra.mxu1 %vm462_vm1, %v12899_v63 }
 0x4d1   : > { %2161 = vmax.xlane.f32.xlu1 %v9967_v39  ;;  %v1353_v13 = vpop.xlane.xlu0 %1352 }
 0x4d2   : > { %7763 = vrcp.f32 %v1353_v13  ;;  %v1538_v53 = vand.u32 2147483648, %v1353_v13  ;;  %v1536_v1 = vand.u32 2147483647, %v1353_v13  ;;  %vm1532_vm8 = vweird.f32 %v1353_v13 }
 0x4d4   : > { %v1539_v40 = vor.u32 1.1754944e-38, %v1538_v53  ;;  %vm1537_vm10 = vcmp.eq.f32.partialorder %v1536_v1, 8.507059e+37 }
 0x4d5   : > { %2225 = vadd.xlane.f32.xlu0 %v9972_v62  ;;  %7006 = vmatmul.msk.f32.gmra.mxu1 %vm462_vm1, %v12901_v55  ;;  %v10003_v55 = vpop.f32.mrf.mxu1 }
 0x4d6   : > { %12904 = vst [vmem:[#allocation35_spill] sm:$0xff] %v10003_v55 }
 0x4d8   : > { %v7764_v23 = vpop.eup %7763 }
 0x4d9   : > { %v1528_v51 = vmul.f32 %v7764_v23, %v1353_v13  ;;  %v9979_v2 = vpop.xlane.xlu1 %2221  ;;  %2229 = vadd.xlane.f32.xlu1 %v9977_v24  ;;  %v1355_v18 = vpop.xlane.xlu0 %1354  ;;  %vm1533_vm7 = vweird.f32 %v7764_v23 }
 0x4da   : > { %7765 = vrcp.f32 %v1355_v18  ;;  %vm1534_vm9 = vmor %vm1532_vm8, %vm1533_vm7  ;;  %v1553_v13 = vand.u32 2147483648, %v1355_v18  ;;  %vm1547_vm12 = vweird.f32 %v1355_v18 }
 0x4db   : > { %v1529_v43 = vsub.f32 1.0, %v1528_v51  ;;  %7767 = vpow2.f32 %v2201_v50 }
 0x4dc   : > { %v1679_v45 = vpop.f32.mrf.mxu0  ;;  %v1554_v53 = vor.u32 1.1754944e-38, %v1553_v13 }
 0x4dd   : > { %6906 = vmatmul.msk.f32.gmra.mxu2 %vm462_vm1, %v1679_v45  ;;  %7007 = vmatmul.msk.f32.gmra.mxu1 %vm462_vm1, %v12903_v31  ;;  %v1530_v5 = vmul.f32 %v7764_v23, %v1529_v43  ;;  %v12906_v45 = vld [vmem:[#allocation13_spill] sm:$0xff] }
 0x4df   : > { %v1531_v7 = vadd.f32 %v7764_v23, %v1530_v5 }
 0x4e0   : > { %v7766_v58 = vpop.eup %7765 }
 0x4e1   : > { %v2156_v30 = vpop.xlane.xlu1 %2155  ;;  %2163 = vmax.xlane.f32.xlu1 %v9995_v15  ;;  %v1535_v35 = vsel %vm1534_vm9, %v7764_v23, %v1531_v7  ;;  %v1543_v22 = vmul.f32 %v7766_v58, %v1355_v18  ;;  %vm1548_vm11 = vweird.f32 %v7766_v58  ;;  %v10007_v51 = vpop.eup %7767 }
 0x4e2   : > { %v2180_v11 = vsub.f32 %v9848_v26, %v2156_v30  ;;  %v1357_v21 = vpop.xlane.xlu0 %1356  ;;  %v1540_v37 = vsel %vm1537_vm10, %v1539_v40, %v1535_v35  ;;  %v1551_v26 = vand.u32 2147483647, %v1355_v18  ;;  %vm1549_vm13 = vmor %vm1547_vm12, %vm1548_vm11 }
 0x4e3   : > { %7769 = vrcp.f32 %v1357_v21  ;;  %v1541_v19 = vmul.f32 %v9800_v12, %v1540_v37  ;;  %v1544_v46 = vsub.f32 1.0, %v1543_v22  ;;  %v1568_v35 = vand.u32 2147483648, %v1357_v21  ;;  %v12907_v22 = vld [vmem:[#allocation40_spill] sm:$0xff]  ;;  %v10022_v37 = vld [vmem:[%s12748_s5 + $0x70] sm:$0xff] }
 0x4e4   : > { %v2203_v57 = vmul.f32 1.442695, %v2180_v11  ;;  %v1682_v63 = vpop.f32.mrf.mxu0  ;;  %vm1552_vm14 = vcmp.eq.f32.partialorder %v1551_v26, 8.507059e+37  ;;  %vm1562_vm3 = vweird.f32 %v1357_v21 }
 0x4e5   : > { %1699 = vmatmul.f32.gmra.mxu0 %v1541_v19  ;;  %6907 = vmatmul.msk.f32.gmra.mxu2 %vm462_vm1, %v1682_v63  ;;  %v1545_v23 = vmul.f32 %v7766_v58, %v1544_v46  ;;  %v10025_v19 = vadd.f32 %v10022_v37, %v2135_v41  ;;  %v10027_v46 = vpop.f32.mrf.mxu1  ;;  %v1569_v13 = vor.u32 1.1754944e-38, %v1568_v35  ;;  %v8161_v41 = vld [vmem:[%s12748_s5 + $0x78] sm:$0xff] }
 0x4e6   : > { %7771 = vpow2.f32 %v2203_v57  ;;  %7008 = vmatmul.msk.f32.gmra.mxu1 %vm462_vm1, %v12905_v33  ;;  %12908 = vst [vmem:[#allocation37_spill] sm:$0xff] %v10027_v46 }
 0x4e7   : > { %v1546_v12 = vadd.f32 %v7766_v58, %v1545_v23 }
 0x4e9   : > { %v7770_v43 = vpop.eup %7769  ;;  %7464 = vrot.lane.b32.xlu0 %v12906_v45, %s8321_s14  ;;  %2233 = vadd.xlane.f32.xlu1 %v10007_v51  ;;  %v1550_v1 = vsel %vm1549_vm13, %v7766_v58, %v1546_v12  ;;  %v1566_v58 = vand.u32 2147483647, %v1357_v21 }
 0x4ea   : > { %v1558_v31 = vmul.f32 %v7770_v43, %v1357_v21  ;;  %v1359_v5 = vpop.xlane.xlu0 %1358  ;;  %v1555_v50 = vsel %vm1552_vm14, %v1554_v53, %v1550_v1  ;;  %vm1563_vm15 = vweird.f32 %v7770_v43 }
 0x4eb   : > { %7773 = vrcp.f32 %v1359_v5  ;;  %v1556_v18 = vmul.f32 %v9820_v17, %v1555_v50  ;;  %v2138_v17 = vpop.f32.mrf.mxu3  ;;  %vm1564_vm4 = vmor %vm1562_vm3, %vm1563_vm15  ;;  %vm1567_vm5 = vcmp.eq.f32.partialorder %v1566_v58, 8.507059e+37  ;;  %v1583_v50 = vand.u32 2147483648, %v1359_v5 }
 0x4ec   : > { %v10012_v7 = vpop.eup %7771  ;;  %v1559_v40 = vsub.f32 1.0, %v1558_v31  ;;  %v1685_v30 = vpop.f32.mrf.mxu0  ;;  %v10035_v12 = vadd.f32 %v8161_v41, %v2138_v17  ;;  %vm1577_vm7 = vweird.f32 %v1359_v5  ;;  %vm2258_vm15 = vweird.f32 %v9979_v2 }
 0x4ed   : > { %2235 = vadd.xlane.f32.xlu2 %v10012_v7  ;;  %6908 = vmatmul.msk.f32.gmra.mxu2 %vm462_vm1, %v1685_v30  ;;  %v1581_v30 = vand.u32 2147483647, %v1359_v5 }
 0x4ee   : > { %1702 = vmatmul.f32.gmra.mxu0 %v1556_v18  ;;  %7009 = vmatmul.msk.f32.gmra.mxu1 %vm462_vm1, %v12907_v22  ;;  %v1560_v11 = vmul.f32 %v7770_v43, %v1559_v40  ;;  %v1584_v22 = vor.u32 1.1754944e-38, %v1583_v50 }
 0x4ef   : > { %vm1582_vm9 = vcmp.eq.f32.partialorder %v1581_v30, 8.507059e+37  ;;  %v10051_v30 = vpop.xlane.xlu1 %2223 }
 0x4f0   : > { %v1561_v57 = vadd.f32 %v7770_v43, %v1560_v11  ;;  %v10042_v11 = vpop.f32.mrf.mxu1 }
 0x4f1   : > { %v7774_v63 = vpop.eup %7773  ;;  %7469 = vrot.lane.b32.xlu0 %v12906_v45, %s8322_s15  ;;  %2169 = vmax.xlane.f32.xlu1 %v10025_v19  ;;  %12910 = vst [vmem:[#allocation39_spill] sm:$0xff] %v10042_v11 }
 0x4f2   : > { %v1573_v33 = vmul.f32 %v7774_v63, %v1359_v5  ;;  %v1361_v23 = vpop.xlane.xlu0 %1360  ;;  %v1565_v26 = vsel %vm1564_vm4, %v7770_v43, %v1561_v57  ;;  %v12909_v43 = vld [vmem:[#allocation41_spill] sm:$0xff]  ;;  %vm1578_vm6 = vweird.f32 %v7774_v63 }
 0x4f3   : > { %7775 = vrcp.f32 %v1361_v23  ;;  %v1570_v21 = vsel %vm1567_vm5, %v1569_v13, %v1565_v26  ;;  %vm1579_vm8 = vmor %vm1577_vm7, %vm1578_vm6  ;;  %v1598_v41 = vand.u32 2147483648, %v1361_v23  ;;  %vm1592_vm11 = vweird.f32 %v1361_v23 }
 0x4f4   : > { %v1574_v53 = vsub.f32 1.0, %v1573_v33  ;;  %v1688_v31 = vpop.f32.mrf.mxu0  ;;  %v1571_v1 = vmul.f32 %v9854_v61, %v1570_v21  ;;  %v7425_v61 = vpop.permute.xlu2 %7424  ;;  %v12911_v21 = vld [vmem:[#allocation42_spill] sm:$0xff]  ;;  %vm2273_vm6 = vweird.f32 %v10051_v30 }
 0x4f5   : > { %2171 = vmax.xlane.f32.xlu2 %v10035_v12  ;;  %6909 = vmatmul.msk.f32.gmra.mxu2 %vm462_vm1, %v1688_v31 }
 0x4f6   : > { %1705 = vmatmul.f32.gmra.mxu0 %v1571_v1  ;;  %7010 = vmatmul.msk.f32.gmra.mxu1 %vm462_vm1, %v12909_v43  ;;  %v1575_v40 = vmul.f32 %v7774_v63, %v1574_v53  ;;  %v1596_v53 = vand.u32 2147483647, %v1361_v23 }
 0x4f8   : > { %v1576_v18 = vadd.f32 %v7774_v63, %v1575_v40  ;;  %vm1597_vm13 = vcmp.eq.f32.partialorder %v1596_v53, 8.507059e+37  ;;  %v10048_v43 = vpop.f32.mrf.mxu1  ;;  %v7427_v53 = vunpack.i.h.bf16 %v7425_v61 }
 0x4f9   : > { %v7776_v35 = vpop.eup %7775  ;;  %12912 = vst [vmem:[#allocation38_spill] sm:$0xff] %v10048_v43 }
 0x4fa   : > { %v1588_v58 = vmul.f32 %v7776_v35, %v1361_v23  ;;  %v1580_v17 = vsel %vm1579_vm8, %v7774_v63, %v1576_v18  ;;  %vm1593_vm10 = vweird.f32 %v7776_v35  ;;  %v1599_v63 = vor.u32 1.1754944e-38, %v1598_v41 }
 0x4fb   : > { %v1585_v57 = vsel %vm1582_vm9, %v1584_v22, %v1580_v17  ;;  %vm1594_vm12 = vmor %vm1592_vm11, %vm1593_vm10  ;;  %v7416_v23 = vunpack.i.l.bf16 %v9895_v16 }
 0x4fc   : > { %v1589_v13 = vsub.f32 1.0, %v1588_v58  ;;  %v1691_v33 = vpop.f32.mrf.mxu0  ;;  %v1586_v26 = vmul.f32 %v9873_v8, %v1585_v57  ;;  %v7435_v8 = vpop.permute.xlu2 %7434  ;;  %v12913_v58 = vld [vmem:[#allocation43_spill] sm:$0xff]  ;;  %v2178_v57 = vsub.f32 %v9735_v20, %v9890_v52 }
 0x4fd   : > { %6910 = vmatmul.msk.f32.gmra.mxu2 %vm462_vm1, %v1691_v33  ;;  %v7426_v33 = vunpack.i.l.bf16 %v7425_v61  ;;  %v7437_v20 = vunpack.i.h.bf16 %v7435_v8 }
 0x4fe   : > { %1708 = vmatmul.f32.gmra.mxu0 %v1586_v26  ;;  %7011 = vmatmul.msk.f32.gmra.mxu1 %vm462_vm1, %v12911_v21  ;;  %v1590_v5 = vmul.f32 %v7776_v35, %v1589_v13 }
 0x500   : > { %v1591_v31 = vadd.f32 %v7776_v35, %v1590_v5  ;;  %v10061_v21 = vpop.f32.mrf.mxu1  ;;  %v2199_v5 = vmul.f32 1.442695, %v2178_v57 }
 0x501   : > { %12914 = vst [vmem:[#allocation40_spill] sm:$0xff] %v10061_v21 }
 0x502   : > { %v1595_v1 = vsel %vm1594_vm12, %v7776_v35, %v1591_v31  ;;  %v7417_v35 = vunpack.i.h.bf16 %v9895_v16  ;;  %v7436_v16 = vunpack.i.l.bf16 %v7435_v8  ;;  %7777 = vpow2.f32 %v2199_v5 }
 0x503   : > { %v1600_v50 = vsel %vm1597_vm13, %v1599_v63, %v1595_v1 }
 0x504   : > { %v1601_v40 = vmul.f32 %v9885_v56, %v1600_v50  ;;  %v7450_v56 = vpop.permute.xlu1 %7449  ;;  %v7440_v26 = vpop.permute.xlu2 %7439 }
 0x505   : > { %v7405_v18 = vpop.permute.xlu0 %7404  ;;  %v7441_v63 = vunpack.i.l.bf16 %v7440_v26  ;;  %v7442_v52 = vunpack.i.h.bf16 %v7440_v26 }
 0x506   : > { %v7406_v22 = vunpack.i.l.bf16 %v7405_v18  ;;  %1711 = vmatmul.f32.gmra.mxu0 %v1601_v40  ;;  %7012 = vmatmul.msk.f32.gmra.mxu1 %vm462_vm1, %v12913_v58  ;;  %v7407_v17 = vunpack.i.h.bf16 %v7405_v18  ;;  %v7452_v58 = vunpack.i.h.bf16 %v7450_v56 }
 0x508   : > { %2543 = vmatpush.msra.mxu0 %v7406_v22  ;;  %v10065_v22 = vpop.f32.mrf.mxu1  ;;  %v10067_v8 = vpop.eup %7777 }
 0x509   : > { %12915 = vst [vmem:[#allocation41_spill] sm:$0xff] %v10065_v22 }
 0x50a   : > { %2544 = vmatpush.msra.mxu0 %v7407_v17 }
 0x50c   : > { %2545 = vmatpush.msra.mxu0 %v7416_v23  ;;  %v7455_v61 = vpop.permute.xlu1 %7454  ;;  %v7460_v40 = vpop.permute.xlu2 %7459 }
 0x50d   : > { %v7430_v13 = vpop.permute.xlu0 %7429  ;;  %v7456_v17 = vunpack.i.l.bf16 %v7455_v61  ;;  %v7461_v23 = vunpack.i.l.bf16 %v7460_v40 }
 0x50e   : > { %v7431_v41 = vunpack.i.l.bf16 %v7430_v13  ;;  %2546 = vmatpush.msra.mxu0 %v7417_v35  ;;  %7013 = vmatmul.msk.f32.gmra.mxu1 %vm462_vm1, %v9719_v6  ;;  %v7432_v31 = vunpack.i.h.bf16 %v7430_v13  ;;  %v7451_v6 = vunpack.i.l.bf16 %v7450_v56  ;;  %v7457_v35 = vunpack.i.h.bf16 %v7455_v61  ;;  %v10076_v56 = vld [vmem:[%s12748_s5 + $0x68] sm:$0xff] }
 0x50f   : > { %v10080_v13 = vadd.f32 %v10076_v56, %v9997_v27 }
 0x510   : > { %2547 = vmatpush.msra.mxu0 %v7426_v33  ;;  %3337 = vmatpush.msra.mxu3 %v7431_v41  ;;  %v10082_v33 = vpop.f32.mrf.mxu1 }
 0x511   : > { %12916 = vst [vmem:[#allocation42_spill] sm:$0xff] %v10082_v33 }
 0x512   : > { %2548 = vmatpush.msra.mxu0 %v7427_v53  ;;  %3338 = vmatpush.msra.mxu3 %v7432_v31 }
 0x514   : > { %2549 = vmatpush.msra.mxu0 %v7436_v16  ;;  %3339 = vmatpush.msra.mxu3 %v7441_v63 }
 0x515   : > { %v7445_v1 = vpop.permute.xlu0 %7444 }
 0x516   : > { %v7446_v50 = vunpack.i.l.bf16 %v7445_v1  ;;  %2550 = vmatpush.msra.mxu0 %v7437_v20  ;;  %7014 = vmatmul.msk.f32.gmra.mxu1 %vm462_vm1, %v9758_v10  ;;  %v7447_v18 = vunpack.i.h.bf16 %v7445_v1  ;;  %v7462_v10 = vunpack.i.h.bf16 %v7460_v40 }
 0x517   : > { %3340 = vmatpush.msra.mxu3 %v7442_v52 }
 0x518   : > { %2551 = vmatpush.msra.mxu0 %v7446_v50  ;;  %v10085_v26 = vpop.f32.mrf.mxu1 }
 0x519   : > { %3341 = vmatpush.msra.mxu3 %v7451_v6  ;;  %12917 = vst [vmem:[#allocation43_spill] sm:$0xff] %v10085_v26 }
 0x51a   : > { %2552 = vmatpush.msra.mxu0 %v7447_v18 }
 0x51b   : > { %3342 = vmatpush.msra.mxu3 %v7452_v58  ;;  %2231 = vadd.xlane.f32.xlu0 %v10067_v8 }
 0x51c   : > { %2553 = vmatpush.msra.mxu0 %v7456_v17  ;;  %v2166_v53 = vpop.xlane.xlu2 %2165 }
 0x51d   : > { %3343 = vmatpush.msra.mxu3 %v7461_v23  ;;  %v1694_v57 = vpop.f32.mrf.mxu0  ;;  %v2185_v63 = vsub.f32 %v9919_v47, %v2166_v53 }
 0x51e   : > { %2554 = vmatpush.msra.mxu0 %v7457_v35  ;;  %7015 = vmatmul.msk.f32.gmra.mxu1 %vm462_vm1, %v9762_v38 }
 0x51f   : > { %3344 = vmatpush.msra.mxu3 %v7462_v10  ;;  %6911 = vmatmul.msk.f32.gmra.mxu2 %vm462_vm1, %v1694_v57  ;;  %v2213_v20 = vmul.f32 1.442695, %v2185_v63 }
 0x520   : > { %v10089_v31 = vpop.f32.mrf.mxu1 }
 0x521   : > { %12918 = vst [vmem:[#allocation44_spill] sm:$0xff] %v10089_v31 }
 0x523   : > { %2167 = vmax.xlane.f32.xlu0 %v10080_v13 }
 0x528   : > { %v10098_v50 = vpop.f32.mrf.mxu1 }
 0x529   : > { %12919 = vst [vmem:[#allocation45_spill] sm:$0xff] %v10098_v50 }
 0x52e   : > { %v1697_v41 = vpop.f32.mrf.mxu0 }
 0x52f   : > { %6912 = vmatmul.msk.f32.gmra.mxu2 %vm462_vm1, %v1697_v41 }
 0x530   : > { %v10109_v35 = vpop.f32.mrf.mxu1 }
 0x531   : > { %12920 = vst [vmem:[#allocation46_spill] sm:$0xff] %v10109_v35 }
 0x534   : > { %v2160_v38 = vpop.xlane.xlu1 %2159 }
 0x535   : > { %v2182_v5 = vsub.f32 %v9935_v44, %v2160_v38 }
 0x537   : > { %v2207_v16 = vmul.f32 1.442695, %v2182_v5 }
 0x538   : > { %v10120_v53 = vpop.f32.mrf.mxu1 }
 0x539   : > { %7779 = vpow2.f32 %v2207_v16  ;;  %12921 = vst [vmem:[#allocation47_spill] sm:$0xff] %v10120_v53 }
 0x53a   : > { %7781 = vrcp.f32 %v9979_v2 }
 0x53b   : > { %7783 = vpow2.f32 %v2213_v20 }
 0x53c   : > { %v10092_v27 = vpop.xlane.xlu1 %2227 }
 0x53f   : > { %v10094_v52 = vpop.eup %7779 }
 0x540   : > { %v2158_v1 = vpop.xlane.xlu0 %2157  ;;  %2239 = vadd.xlane.f32.xlu1 %v10094_v52  ;;  %v7782_v40 = vpop.eup %7781 }
 0x541   : > { %v2181_v44 = vsub.f32 %v9955_v4, %v2158_v1  ;;  %v10102_v18 = vpop.eup %7783  ;;  %v2254_v58 = vmul.f32 %v7782_v40, %v9979_v2  ;;  %vm2259_vm14 = vweird.f32 %v7782_v40 }
 0x542   : > { %vm2260_vm3 = vmor %vm2258_vm15, %vm2259_vm14  ;;  %vm2303_vm14 = vweird.f32 %v10092_v27 }
 0x543   : > { %v2205_v6 = vmul.f32 1.442695, %v2181_v44  ;;  %v2255_v10 = vsub.f32 1.0, %v2254_v58 }
 0x544   : > { %v2162_v61 = vpop.xlane.xlu1 %2161 }
 0x545   : > { %7785 = vpow2.f32 %v2205_v6  ;;  %v2183_v47 = vsub.f32 %v9967_v39, %v2162_v61  ;;  %v2256_v41 = vmul.f32 %v7782_v40, %v2255_v10  ;;  %v2264_v6 = vand.u32 2147483648, %v9979_v2 }
 0x546   : > { %7787 = vrcp.f32 %v10051_v30  ;;  %v2262_v61 = vand.u32 2147483647, %v9979_v2  ;;  %v10136_v2 = vpop.f32.mrf.mxu1 }
 0x547   : > { %v2209_v17 = vmul.f32 1.442695, %v2183_v47  ;;  %v2257_v63 = vadd.f32 %v7782_v40, %v2256_v41  ;;  %v2265_v41 = vor.u32 1.1754944e-38, %v2264_v6  ;;  %v2277_v6 = vand.u32 2147483647, %v10051_v30 }
 0x548   : > { %2245 = vadd.xlane.f32.xlu1 %v10102_v18  ;;  %v10114_v39 = vpop.xlane.xlu0 %2225  ;;  %vm2263_vm4 = vcmp.eq.f32.partialorder %v2262_v61, 8.507059e+37 }
 0x549   : > { %7789 = vpow2.f32 %v2209_v17  ;;  %v2261_v58 = vsel %vm2260_vm3, %v7782_v40, %v2257_v63  ;;  %v2279_v63 = vand.u32 2147483648, %v10051_v30  ;;  %vm2278_vm8 = vcmp.eq.f32.partialorder %v2277_v6, 8.507059e+37 }
 0x54a   : > { %7791 = vrcp.f32 %v10114_v39  ;;  %v2266_v53 = vsel %vm2263_vm4, %v2265_v41, %v2261_v58  ;;  %vm2288_vm10 = vweird.f32 %v10114_v39 }
 0x54b   : > { %v10107_v23 = vpop.eup %7785  ;;  %7793 = vrcp.f32 %v10092_v27 }
 0x54c   : > { %2237 = vadd.xlane.f32.xlu0 %v10107_v23  ;;  %v10112_v4 = vpop.xlane.xlu1 %2229  ;;  %v7788_v57 = vpop.eup %7787 }
 0x54d   : > { %v2269_v38 = vmul.f32 %v7788_v57, %v10051_v30  ;;  %vm2274_vm5 = vweird.f32 %v7788_v57 }
 0x54e   : > { %vm2275_vm7 = vmor %vm2273_vm6, %vm2274_vm5  ;;  %vm2318_vm5 = vweird.f32 %v10112_v4 }
 0x54f   : > { %v10118_v5 = vpop.eup %7789  ;;  %v2270_v20 = vsub.f32 1.0, %v2269_v38 }
 0x550   : > { %v10124_v44 = vpop.eup %7791 }
 0x551   : > { %v2284_v17 = vmul.f32 %v10124_v44, %v10114_v39  ;;  %v2271_v10 = vmul.f32 %v7788_v57, %v2270_v20  ;;  %v10134_v35 = vpop.eup %7793  ;;  %v2267_v20 = vmul.f32 %v9825_v25, %v2266_v53  ;;  %v2280_v53 = vor.u32 1.1754944e-38, %v2279_v63 }
 0x552   : > { %v2299_v61 = vmul.f32 %v10134_v35, %v10092_v27  ;;  %vm2289_vm9 = vweird.f32 %v10124_v44  ;;  %vm2304_vm13 = vweird.f32 %v10134_v35 }
 0x553   : > { %v2285_v50 = vsub.f32 1.0, %v2284_v17  ;;  %vm2290_vm11 = vmor %vm2288_vm10, %vm2289_vm9 }
 0x554   : > { %2241 = vadd.xlane.f32.xlu0 %v10118_v5  ;;  %v2164_v16 = vpop.xlane.xlu1 %2163  ;;  %v2300_v30 = vsub.f32 1.0, %v2299_v61  ;;  %v2292_v61 = vand.u32 2147483647, %v10114_v39  ;;  %vm2305_vm15 = vmor %vm2303_vm14, %vm2304_vm13 }
 0x555   : > { %v2184_v1 = vsub.f32 %v9995_v15, %v2164_v16 }
 0x556   : > { %vm2293_vm12 = vcmp.eq.f32.partialorder %v2292_v61, 8.507059e+37 }
 0x557   : > { %v2211_v47 = vmul.f32 1.442695, %v2184_v1  ;;  %v2272_v1 = vadd.f32 %v7788_v57, %v2271_v10  ;;  %v2286_v10 = vmul.f32 %v10124_v44, %v2285_v50  ;;  %v2294_v50 = vand.u32 2147483648, %v10114_v39 }
 0x559   : > { %7795 = vpow2.f32 %v2211_v47  ;;  %v2276_v17 = vsel %vm2275_vm7, %v7788_v57, %v2272_v1  ;;  %v2287_v26 = vadd.f32 %v10124_v44, %v2286_v10  ;;  %v10156_v1 = vpop.f32.mrf.mxu1 }
 0x55a   : > { %7797 = vrcp.f32 %v10112_v4  ;;  %v2281_v31 = vsel %vm2278_vm8, %v2280_v53, %v2276_v17  ;;  %v2301_v17 = vmul.f32 %v10134_v35, %v2300_v30  ;;  %v2309_v30 = vand.u32 2147483648, %v10092_v27 }
 0x55b   : > { %v7465_v15 = vpop.permute.xlu0 %7464  ;;  %v2282_v6 = vmul.f32 %v9868_v42, %v2281_v31  ;;  %v2291_v53 = vsel %vm2290_vm11, %v10124_v44, %v2287_v26  ;;  %v2307_v26 = vand.u32 2147483647, %v10092_v27 }
 0x55c   : > { %v7466_v38 = vunpack.i.l.bf16 %v7465_v15  ;;  %v10132_v16 = vpop.xlane.xlu1 %2233  ;;  %v7467_v40 = vunpack.i.h.bf16 %v7465_v15 }
 0x55d   : > { %vm2308_vm3 = vcmp.eq.f32.partialorder %v2307_v26, 8.507059e+37  ;;  %v2354_v33 = vand.u32 2147483648, %v10132_v16  ;;  %vm2348_vm13 = vweird.f32 %v10132_v16 }
 0x55e   : > { %2555 = vmatpush.msra.mxu0 %v7466_v38 }
 0x55f   : > { %v10139_v47 = vpop.eup %7795 }
 0x560   : > { %2556 = vmatpush.msra.mxu0 %v7467_v40  ;;  %v10147_v58 = vpop.xlane.xlu2 %2235  ;;  %2243 = vadd.xlane.f32.xlu2 %v10139_v47 }
 0x561   : > { %2557 = vmatmul.f32.vlgmr.msra.gmra.mxu0 %v2267_v20  ;;  %v7798_v20 = vpop.eup %7797  ;;  %v10175_v44 = vpop.f32.mrf.mxu1 }
 0x562   : > { %v1700_v25 = vpop.f32.mrf.mxu0  ;;  %v2314_v10 = vmul.f32 %v7798_v20, %v10112_v4  ;;  %vm2319_vm4 = vweird.f32 %v7798_v20 }
 0x563   : > { %v7470_v41 = vpop.permute.xlu0 %7469  ;;  %6913 = vmatmul.msk.f32.gmra.mxu2 %vm462_vm1, %v1700_v25  ;;  %vm2320_vm6 = vmor %vm2318_vm5, %vm2319_vm4  ;;  %vm2363_vm4 = vweird.f32 %v10147_v58 }
 0x564   : > { %v7471_v15 = vunpack.i.l.bf16 %v7470_v41  ;;  %v2170_v38 = vpop.xlane.xlu1 %2169  ;;  %v7472_v57 = vunpack.i.h.bf16 %v7470_v41  ;;  %v2295_v41 = vor.u32 1.1754944e-38, %v2294_v50  ;;  %v2315_v39 = vsub.f32 1.0, %v2314_v10 }
 0x565   : > { %v2187_v40 = vsub.f32 %v10025_v19, %v2170_v38  ;;  %v2302_v38 = vadd.f32 %v10134_v35, %v2301_v17 }
 0x566   : > { %3345 = vmatpush.msra.mxu3 %v7471_v15  ;;  %v2296_v31 = vsel %vm2293_vm12, %v2295_v41, %v2291_v53  ;;  %v2316_v50 = vmul.f32 %v7798_v20, %v2315_v39 }
 0x567   : > { %v2217_v63 = vmul.f32 1.442695, %v2187_v40 }
 0x568   : > { %3346 = vmatpush.msra.mxu3 %v7472_v57  ;;  %v2172_v19 = vpop.xlane.xlu2 %2171  ;;  %v2306_v57 = vsel %vm2305_vm15, %v10134_v35, %v2302_v38  ;;  %v2317_v27 = vadd.f32 %v7798_v20, %v2316_v50  ;;  %v2322_v35 = vand.u32 2147483647, %v10112_v4 }
 0x569   : > { %7799 = vpow2.f32 %v2217_v63  ;;  %v2188_v25 = vsub.f32 %v10035_v12, %v2172_v19  ;;  %2560 = vmatmul.f32.gmra.mxu0 %v2282_v6  ;;  %v2297_v12 = vmul.f32 %v9972_v62, %v2296_v31  ;;  %v2310_v63 = vor.u32 1.1754944e-38, %v2309_v30  ;;  %v10186_v53 = vpop.f32.mrf.mxu1 }
 0x56a   : > { %v2324_v19 = vand.u32 2147483648, %v10112_v4  ;;  %v2321_v10 = vsel %vm2320_vm6, %v7798_v20, %v2317_v27  ;;  %vm2323_vm7 = vcmp.eq.f32.partialorder %v2322_v35, 8.507059e+37  ;;  %v12922_v4 = vld [vmem:[#allocation25_spill] sm:$0xff]  ;;  %v12923_v20 = vld [vmem:[#allocation23_spill] sm:$0xff] }
 0x56b   : > { %v2219_v15 = vmul.f32 1.442695, %v2188_v25  ;;  %v1703_v42 = vpop.f32.mrf.mxu0  ;;  %v2311_v62 = vsel %vm2308_vm3, %v2310_v63, %v2306_v57  ;;  %v12924_v27 = vld [vmem:[#allocation21_spill] sm:$0xff] }
 0x56c   : > { %6914 = vmatmul.msk.f32.gmra.mxu2 %vm462_vm1, %v1703_v42  ;;  %v2312_v17 = vmul.f32 %v9944_v14, %v2311_v62  ;;  %v2325_v25 = vor.u32 1.1754944e-38, %v2324_v19 }
 0x56d   : > { %7801 = vpow2.f32 %v2219_v15 }
 0x56e   : > { %v2326_v15 = vsel %vm2323_vm7, %v2325_v25, %v2321_v10  ;;  %7803 = vrcp.f32 %v10132_v16 }
 0x56f   : > { %v10169_v40 = vpop.eup %7799  ;;  %v2327_v42 = vmul.f32 %v9977_v24, %v2326_v15 }
 0x570   : > { %2249 = vadd.xlane.f32.xlu2 %v10169_v40 }
 0x571   : > { %2563 = vmatmul.f32.gmra.mxu0 %v2297_v12  ;;  %v10191_v14 = vpop.f32.mrf.mxu1 }
 0x573   : > { %v10178_v6 = vpop.eup %7801  ;;  %v1706_v61 = vpop.f32.mrf.mxu0 }
 0x574   : > { %6915 = vmatmul.msk.f32.gmra.mxu2 %vm462_vm1, %v1706_v61  ;;  %2251 = vadd.xlane.f32.xlu1 %v10178_v6  ;;  %v7804_v38 = vpop.eup %7803 }
 0x575   : > { %v2344_v24 = vmul.f32 %v7804_v38, %v10132_v16  ;;  %vm2349_vm11 = vweird.f32 %v7804_v38 }
 0x576   : > { %vm2350_vm14 = vmor %vm2348_vm13, %vm2349_vm11 }
 0x577   : > { %v2345_v57 = vsub.f32 1.0, %v2344_v24 }
 0x579   : > { %2566 = vmatmul.f32.gmra.mxu0 %v2312_v17  ;;  %v10198_v30 = vpop.f32.mrf.mxu1  ;;  %v2346_v15 = vmul.f32 %v7804_v38, %v2345_v57  ;;  %v2352_v57 = vand.u32 2147483647, %v10132_v16  ;;  %v2367_v16 = vand.u32 2147483647, %v10147_v58 }
 0x57b   : > { %v1709_v41 = vpop.f32.mrf.mxu0  ;;  %vm2353_vm15 = vcmp.eq.f32.partialorder %v2352_v57, 8.507059e+37  ;;  %vm2368_vm6 = vcmp.eq.f32.partialorder %v2367_v16, 8.507059e+37 }
 0x57c   : > { %6916 = vmatmul.msk.f32.gmra.mxu2 %vm462_vm1, %v1709_v41 }
 0x581   : > { %2569 = vmatmul.f32.gmra.mxu0 %v2327_v42  ;;  %v10207_v19 = vpop.f32.mrf.mxu1 }
 0x583   : > { %v1712_v31 = vpop.f32.mrf.mxu0 }
 0x584   : > { %6917 = vmatmul.msk.f32.gmra.mxu2 %vm462_vm1, %v1712_v31 }
 0x588   : > { %3586 = vrot.lane.b32.xlu2 %v12922_v4, %s8323_s20 }
 0x58d   : > { %3588 = vrot.lane.b32.xlu1 %v12923_v20, %s8323_s20 }
 0x58e   : > { %v2232_v39 = vpop.xlane.xlu0 %2231 }
 0x58f   : > { %7805 = vrcp.f32 %v2232_v39  ;;  %v2339_v10 = vand.u32 2147483648, %v2232_v39  ;;  %v2337_v41 = vand.u32 2147483647, %v2232_v39  ;;  %vm2333_vm9 = vweird.f32 %v2232_v39 }
 0x590   : > { %7807 = vrcp.f32 %v10147_v58  ;;  %4378 = vrot.lane.b32.xlu2 %v12923_v20, %s8324_s8 }
 0x591   : > { %v2340_v31 = vor.u32 1.1754944e-38, %v2339_v10  ;;  %vm2338_vm12 = vcmp.eq.f32.partialorder %v2337_v41, 8.507059e+37  ;;  %v2355_v10 = vor.u32 1.1754944e-38, %v2354_v33 }
 0x595   : > { %v7806_v12 = vpop.eup %7805 }
 0x596   : > { %v7808_v26 = vpop.eup %7807  ;;  %v2329_v50 = vmul.f32 %v7806_v12, %v2232_v39  ;;  %v2168_v63 = vpop.xlane.xlu0 %2167  ;;  %vm2334_vm8 = vweird.f32 %v7806_v12 }
 0x597   : > { %v2186_v61 = vsub.f32 %v10080_v13, %v2168_v63  ;;  %v2359_v17 = vmul.f32 %v7808_v26, %v10147_v58  ;;  %vm2335_vm10 = vmor %vm2333_vm9, %vm2334_vm8  ;;  %vm2364_vm3 = vweird.f32 %v7808_v26 }
 0x598   : > { %v2330_v62 = vsub.f32 1.0, %v2329_v50  ;;  %3580 = vrot.lane.b32.xlu2 %v12924_v27, %s8323_s20  ;;  %v2347_v50 = vadd.f32 %v7804_v38, %v2346_v15  ;;  %vm2365_vm5 = vmor %vm2363_vm4, %vm2364_vm3 }
 0x599   : > { %v2215_v35 = vmul.f32 1.442695, %v2186_v61  ;;  %v2360_v13 = vsub.f32 1.0, %v2359_v17  ;;  %v12925_v61 = vld [vmem:[#allocation24_spill] sm:$0xff] }
 0x59a   : > { %v2331_v25 = vmul.f32 %v7806_v12, %v2330_v62 }
 0x59b   : > { %7809 = vpow2.f32 %v2215_v35  ;;  %v2361_v17 = vmul.f32 %v7808_v26, %v2360_v13  ;;  %v10219_v35 = vpop.f32.mrf.mxu1 }
 0x59c   : > { %v2332_v42 = vadd.f32 %v7806_v12, %v2331_v25 }
 0x59d   : > { %v2362_v41 = vadd.f32 %v7808_v26, %v2361_v17 }
 0x59e   : > { %v2336_v24 = vsel %vm2335_vm10, %v7806_v12, %v2332_v42  ;;  %v2351_v12 = vsel %vm2350_vm14, %v7804_v38, %v2347_v50 }
 0x59f   : > { %v2341_v63 = vsel %vm2338_vm12, %v2340_v31, %v2336_v24  ;;  %v2356_v25 = vsel %vm2353_vm15, %v2355_v10, %v2351_v12  ;;  %v2366_v42 = vsel %vm2365_vm5, %v7808_v26, %v2362_v41  ;;  %v8163_v24 = vld [vmem:[%s12748_s5] sm:$0xff]  ;;  %v8165_v10 = vld [vmem:[%s12748_s5 + $0x10] sm:$0xff] }
 0x5a0   : > { %4372 = vrot.lane.b32.xlu2 %v12925_v61, %s8324_s8  ;;  %v2342_v62 = vmul.f32 %v10067_v8, %v2341_v63  ;;  %v2369_v8 = vand.u32 2147483648, %v10147_v58  ;;  %v2357_v15 = vmul.f32 %v10007_v51, %v2356_v25  ;;  %v10232_v51 = vadd.f32 %v8163_v24, %v10136_v2  ;;  %v12926_v58 = vld [vmem:[#allocation29_spill] sm:$0xff] }
 0x5a1   : > { %v10216_v39 = vpop.eup %7809  ;;  %v281_v2 = vld [vmem:[%s12746_s3 + $0x8] sm:$0xff]  ;;  %v10261_v25 = vadd.f32 %v8165_v10, %v10175_v44 }
 0x5a2   : > { %2247 = vadd.xlane.f32.xlu0 %v10216_v39  ;;  %2572 = vmatmul.f32.gmra.mxu0 %v2342_v62  ;;  %v2370_v38 = vor.u32 1.1754944e-38, %v2369_v8  ;;  %v3396_v57 = vrot.slane %v281_v2, 4 }
 0x5a3   : > { %v10225_v31 = vpop.f32.mrf.mxu1  ;;  %6967 = vmatpush.msk.msrb.mxu2 %vm1765_vm2, %v281_v2 }
 0x5a4   : > { %v2371_v33 = vsel %vm2368_vm6, %v2370_v38, %v2366_v42  ;;  %7016 = vmatpush.msk.msrb.mxu0 %vm1765_vm2, %v3396_v57 }
 0x5a5   : > { %v2372_v13 = vmul.f32 %v10012_v7, %v2371_v33  ;;  %v8164_v7 = vld [vmem:[%s12748_s5 + $0x8] sm:$0xff] }
 0x5a6   : > { %v10246_v63 = vadd.f32 %v8164_v7, %v10156_v1 }
 0x5aa   : > { %2575 = vmatmul.f32.gmra.mxu0 %v2357_v15 }
 0x5ab   : > { %v10236_v50 = vpop.f32.mrf.mxu1 }
 0x5b2   : > { %2578 = vmatmul.f32.gmra.mxu0 %v2372_v13 }
 0x5b3   : > { %v10238_v26 = vpop.xlane.xlu1 %2239  ;;  %v2913_v17 = vpop.f32.mrf.mxu1 }
 0x5b4   : > { %7811 = vrcp.f32 %v10238_v26  ;;  %v10264_v8 = vadd.f32 %v9963_v3, %v2913_v17  ;;  %v8166_v3 = vld [vmem:[%s12748_s5 + $0x18] sm:$0xff]  ;;  %vm2393_vm12 = vweird.f32 %v10238_v26 }
 0x5b5   : > { %v10275_v2 = vadd.f32 %v8166_v3, %v10186_v53  ;;  %v8167_v3 = vld [vmem:[%s12748_s5 + $0x20] sm:$0xff] }
 0x5b6   : > { %3590 = vrot.lane.b32.xlu0 %v12926_v58, %s8323_s20 }
 0x5b7   : > { %2931 = vmax.xlane.f32.xlu1 %v10232_v51 }
 0x5ba   : > { %v7812_v12 = vpop.eup %7811 }
 0x5bb   : > { %v2389_v1 = vmul.f32 %v7812_v12, %v10238_v26  ;;  %v2916_v13 = vpop.f32.mrf.mxu1  ;;  %vm2394_vm10 = vweird.f32 %v7812_v12 }
 0x5bc   : > { %vm2395_vm13 = vmor %vm2393_vm12, %vm2394_vm10 }
 0x5bd   : > { %v2390_v15 = vsub.f32 1.0, %v2389_v1  ;;  %v10278_v1 = vadd.f32 %v9991_v48, %v2916_v13 }
 0x5be   : > { %4380 = vrot.lane.b32.xlu0 %v12926_v58, %s8324_s8 }
 0x5bf   : > { %v2238_v62 = vpop.xlane.xlu0 %2237  ;;  %2933 = vmax.xlane.f32.xlu1 %v10246_v63  ;;  %v2391_v7 = vmul.f32 %v7812_v12, %v2390_v15 }
 0x5c0   : > { %7813 = vrcp.f32 %v2238_v62  ;;  %v2384_v33 = vand.u32 2147483648, %v2238_v62  ;;  %v2382_v44 = vand.u32 2147483647, %v2238_v62  ;;  %vm2378_vm8 = vweird.f32 %v2238_v62 }
 0x5c1   : > { %v2392_v22 = vadd.f32 %v7812_v12, %v2391_v7 }
 0x5c2   : > { %v2385_v10 = vor.u32 1.1754944e-38, %v2384_v33  ;;  %vm2383_vm11 = vcmp.eq.f32.partialorder %v2382_v44, 8.507059e+37  ;;  %v2397_v33 = vand.u32 2147483647, %v10238_v26 }
 0x5c3   : > { %v2396_v13 = vsel %vm2395_vm13, %v7812_v12, %v2392_v22 }
 0x5c4   : > { %vm2398_vm14 = vcmp.eq.f32.partialorder %v2397_v33, 8.507059e+37 }
 0x5c6   : > { %v7814_v41 = vpop.eup %7813 }
 0x5c7   : > { %v2374_v16 = vmul.f32 %v7814_v41, %v2238_v62  ;;  %v10266_v42 = vpop.xlane.xlu0 %2241  ;;  %2935 = vmax.xlane.f32.xlu1 %v10261_v25  ;;  %vm2379_vm7 = vweird.f32 %v7814_v41 }
 0x5c8   : > { %7815 = vrcp.f32 %v10266_v42  ;;  %vm2380_vm9 = vmor %vm2378_vm8, %vm2379_vm7  ;;  %vm2408_vm3 = vweird.f32 %v10266_v42  ;;  %v2412_v12 = vand.u32 2147483647, %v10266_v42 }
 0x5c9   : > { %v2375_v38 = vsub.f32 1.0, %v2374_v16  ;;  %2951 = vmax.xlane.f32.xlu2 %v10264_v8  ;;  %v10280_v16 = vpop.xlane.xlu1 %2245 }
 0x5ca   : > { %7817 = vrcp.f32 %v10280_v16  ;;  %vm2413_vm5 = vcmp.eq.f32.partialorder %v2412_v12, 8.507059e+37  ;;  %v8169_v12 = vld [vmem:[%s12748_s5 + $0x40] sm:$0xff] }
 0x5cb   : > { %v2376_v24 = vmul.f32 %v7814_v41, %v2375_v38 }
 0x5cd   : > { %v2377_v57 = vadd.f32 %v7814_v41, %v2376_v24  ;;  %v2399_v24 = vand.u32 2147483648, %v10238_v26 }
 0x5ce   : > { %v7816_v17 = vpop.eup %7815 }
 0x5cf   : > { %v2404_v15 = vmul.f32 %v7816_v17, %v10266_v42  ;;  %2937 = vmax.xlane.f32.xlu1 %v10275_v2  ;;  %v2381_v38 = vsel %vm2380_vm9, %v7814_v41, %v2377_v57  ;;  %v2400_v7 = vor.u32 1.1754944e-38, %v2399_v24  ;;  %vm2409_vm15 = vweird.f32 %v7816_v17 }
 0x5d0   : > { %v2386_v53 = vsel %vm2383_vm11, %v2385_v10, %v2381_v38  ;;  %v7818_v10 = vpop.eup %7817  ;;  %vm2410_vm4 = vmor %vm2408_vm3, %vm2409_vm15  ;;  %vm2438_vm11 = vweird.f32 %v10280_v16 }
 0x5d1   : > { %v2405_v62 = vsub.f32 1.0, %v2404_v15  ;;  %2953 = vmax.xlane.f32.xlu2 %v10278_v1  ;;  %v2387_v48 = vmul.f32 %v10107_v23, %v2386_v53  ;;  %v10295_v23 = vadd.f32 %v8167_v3, %v10191_v14  ;;  %v2401_v57 = vsel %vm2398_vm14, %v2400_v7, %v2396_v13 }
 0x5d2   : > { %v2414_v15 = vand.u32 2147483648, %v10266_v42  ;;  %v2402_v22 = vmul.f32 %v10094_v52, %v2401_v57  ;;  %v2434_v14 = vmul.f32 %v7818_v10, %v10280_v16  ;;  %vm2439_vm10 = vweird.f32 %v7818_v10 }
 0x5d3   : > { %2581 = vmatmul.f32.gmra.mxu0 %v2387_v48  ;;  %v2244_v41 = vpop.xlane.xlu2 %2243  ;;  %v2406_v44 = vmul.f32 %v7816_v17, %v2405_v62  ;;  %v8168_v48 = vld [vmem:[%s12748_s5 + $0x38] sm:$0xff]  ;;  %vm2440_vm12 = vmor %vm2438_vm11, %vm2439_vm10 }
 0x5d4   : > { %7819 = vrcp.f32 %v2244_v41  ;;  %v2415_v62 = vor.u32 1.1754944e-38, %v2414_v15  ;;  %v10307_v33 = vadd.f32 %v8168_v48, %v10219_v35  ;;  %v2435_v42 = vsub.f32 1.0, %v2434_v14 }
 0x5d5   : > { %v2407_v26 = vadd.f32 %v7816_v17, %v2406_v44  ;;  %vm2423_vm7 = vweird.f32 %v2244_v41  ;;  %v10316_v14 = vadd.f32 %v8169_v12, %v10225_v31  ;;  %v2444_v31 = vand.u32 2147483648, %v10280_v16 }
 0x5d6   : > { %v2436_v15 = vmul.f32 %v7818_v10, %v2435_v42 }
 0x5d7   : > { %2939 = vmax.xlane.f32.xlu1 %v10295_v23  ;;  %v2411_v24 = vsel %vm2410_vm4, %v7816_v17, %v2407_v26  ;;  %v2429_v17 = vand.u32 2147483648, %v2244_v41  ;;  %v2427_v26 = vand.u32 2147483647, %v2244_v41 }
 0x5d8   : > { %v2416_v44 = vsel %vm2413_vm5, %v2415_v62, %v2411_v24  ;;  %v12927_v62 = vld [vmem:[#allocation28_spill] sm:$0xff] }
 0x5d9   : > { %v2417_v3 = vmul.f32 %v10118_v5, %v2416_v44  ;;  %vm2428_vm9 = vcmp.eq.f32.partialorder %v2427_v26, 8.507059e+37  ;;  %v8170_v5 = vld [vmem:[%s12748_s5 + $0x28] sm:$0xff]  ;;  %v8171_v44 = vld [vmem:[%s12748_s5 + $0x30] sm:$0xff] }
 0x5da   : > { %v7820_v38 = vpop.eup %7819  ;;  %v10337_v42 = vadd.f32 %v8171_v44, %v10207_v19  ;;  %v12929_v26 = vld [vmem:[#allocation17_spill] sm:$0xff] }
 0x5db   : > { %v2419_v53 = vmul.f32 %v7820_v38, %v2244_v41  ;;  %2584 = vmatmul.f32.gmra.mxu0 %v2402_v22  ;;  %vm2424_vm6 = vweird.f32 %v7820_v38  ;;  %v2430_v22 = vor.u32 1.1754944e-38, %v2429_v17 }
 0x5dc   : > { %vm2425_vm8 = vmor %vm2423_vm7, %vm2424_vm6 }
 0x5dd   : > { %v2420_v52 = vsub.f32 1.0, %v2419_v53  ;;  %v10322_v53 = vadd.f32 %v8170_v5, %v10198_v30  ;;  %v2442_v30 = vand.u32 2147483647, %v10280_v16 }
 0x5de   : > { %v2558_v13 = vpop.f32.mrf.mxu0 }
 0x5df   : > { %6968 = vmatmul.msk.f32.vlgmr.msrb.gmra.mxu2 %vm462_vm1, %v2558_v13  ;;  %2945 = vmax.xlane.f32.xlu1 %v10307_v33  ;;  %v2421_v7 = vmul.f32 %v7820_v38, %v2420_v52  ;;  %v2445_v13 = vor.u32 1.1754944e-38, %v2444_v31  ;;  %vm2443_vm13 = vcmp.eq.f32.partialorder %v2442_v30, 8.507059e+37 }
 0x5e1   : > { %v2422_v57 = vadd.f32 %v7820_v38, %v2421_v7 }
 0x5e3   : > { %2587 = vmatmul.f32.gmra.mxu0 %v2417_v3  ;;  %v2426_v35 = vsel %vm2425_vm8, %v7820_v38, %v2422_v57  ;;  %v2437_v38 = vadd.f32 %v7818_v10, %v2436_v15  ;;  %v12930_v15 = vld [vmem:[#allocation11_spill] sm:$0xff] }
 0x5e4   : > { %v2431_v24 = vsel %vm2428_vm9, %v2430_v22, %v2426_v35 }
 0x5e5   : > { %v2432_v48 = vmul.f32 %v10139_v47, %v2431_v24  ;;  %v2441_v52 = vsel %vm2440_vm12, %v7818_v10, %v2437_v38  ;;  %v12928_v47 = vld [vmem:[#allocation9_spill] sm:$0xff] }
 0x5e6   : > { %v2561_v41 = vpop.f32.mrf.mxu0  ;;  %v2446_v17 = vsel %vm2443_vm13, %v2445_v13, %v2441_v52  ;;  %v8172_v10 = vld [vmem:[%s12748_s5 + $0x48] sm:$0xff] }
 0x5e7   : > { %6969 = vmatmul.msk.f32.gmra.mxu2 %vm462_vm1, %v2561_v41  ;;  %2947 = vmax.xlane.f32.xlu1 %v10316_v14  ;;  %v2447_v16 = vmul.f32 %v10102_v18, %v2446_v17  ;;  %v10348_v3 = vadd.f32 %v8172_v10, %v10236_v50  ;;  %v10355_v18 = vpop.f32.mrf.mxu1  ;;  %v2250_v50 = vpop.xlane.xlu2 %2249 }
 0x5e8   : > { %2941 = vmax.xlane.f32.xlu0 %v10322_v53  ;;  %7821 = vrcp.f32 %v2250_v50  ;;  %v10365_v22 = vpop.xlane.xlu1 %2251  ;;  %v2474_v11 = vand.u32 2147483648, %v2250_v50  ;;  %vm2468_vm6 = vweird.f32 %v2250_v50 }
 0x5e9   : > { %3574 = vrot.lane.b32.xlu2 %v12927_v62, %s8323_s20  ;;  %vm2483_vm10 = vweird.f32 %v10365_v22 }
 0x5eb   : > { %2590 = vmatmul.f32.gmra.mxu0 %v2432_v48 }
 0x5ee   : > { %v2564_v7 = vpop.f32.mrf.mxu0  ;;  %v7822_v41 = vpop.eup %7821 }
 0x5ef   : > { %6970 = vmatmul.msk.f32.gmra.mxu2 %vm462_vm1, %v2564_v7  ;;  %v10359_v35 = vpop.f32.mrf.mxu1  ;;  %v2464_v38 = vmul.f32 %v7822_v41, %v2250_v50  ;;  %vm2469_vm4 = vweird.f32 %v7822_v41 }
 0x5f0   : > { %2943 = vmax.xlane.f32.xlu0 %v10337_v42  ;;  %vm2470_vm7 = vmor %vm2468_vm6, %vm2469_vm4 }
 0x5f1   : > { %4366 = vrot.lane.b32.xlu2 %v12928_v47, %s8324_s8  ;;  %v2465_v30 = vsub.f32 1.0, %v2464_v38 }
 0x5f3   : > { %2593 = vmatmul.f32.gmra.mxu0 %v2447_v16  ;;  %v2466_v10 = vmul.f32 %v7822_v41, %v2465_v30 }
 0x5f5   : > { %v2467_v38 = vadd.f32 %v7822_v41, %v2466_v10 }
 0x5f6   : > { %v2567_v19 = vpop.f32.mrf.mxu0 }
 0x5f7   : > { %6971 = vmatmul.msk.f32.gmra.mxu2 %vm462_vm1, %v2567_v19  ;;  %v2925_v12 = vpop.f32.mrf.mxu1 }
 0x5f8   : > { %2949 = vmax.xlane.f32.xlu0 %v10348_v3  ;;  %v10371_v24 = vadd.f32 %v10022_v37, %v2925_v12 }
 0x5fe   : > { %v2570_v57 = vpop.f32.mrf.mxu0 }
 0x5ff   : > { %6972 = vmatmul.msk.f32.gmra.mxu2 %vm462_vm1, %v2570_v57 }
 0x600   : > { %3584 = vrot.lane.b32.xlu1 %v12929_v26, %s8323_s20 }
 0x608   : > { %4376 = vrot.lane.b32.xlu1 %v12922_v4, %s8324_s8 }
 0x60c   : > { %3582 = vrot.lane.b32.xlu0 %v12925_v61, %s8323_s20 }
 0x610   : > { %3578 = vrot.lane.b32.xlu1 %v12930_v15, %s8323_s20 }
 0x614   : > { %4374 = vrot.lane.b32.xlu0 %v12929_v26, %s8324_s8 }
 0x615   : > { %v2248_v5 = vpop.xlane.xlu0 %2247 }
 0x616   : > { %7823 = vrcp.f32 %v2248_v5  ;;  %v2459_v17 = vand.u32 2147483648, %v2248_v5  ;;  %v2457_v37 = vand.u32 2147483647, %v2248_v5  ;;  %vm2453_vm15 = vweird.f32 %v2248_v5 }
 0x617   : > { %7825 = vrcp.f32 %v10365_v22 }
 0x618   : > { %4370 = vrot.lane.b32.xlu1 %v12924_v27, %s8324_s8  ;;  %v2460_v57 = vor.u32 1.1754944e-38, %v2459_v17  ;;  %vm2458_vm5 = vcmp.eq.f32.partialorder %v2457_v37, 8.507059e+37 }
 0x61a   : > { %2959 = vmax.xlane.f32.xlu2 %v10371_v24 }
 0x61c   : > { %v7824_v31 = vpop.eup %7823 }
 0x61d   : > { %v7826_v48 = vpop.eup %7825  ;;  %v2449_v52 = vmul.f32 %v7824_v31, %v2248_v5  ;;  %vm2454_vm14 = vweird.f32 %v7824_v31  ;;  %v2471_v5 = vsel %vm2470_vm7, %v7822_v41, %v2467_v38  ;;  %v10406_v38 = vadd.f32 %v10076_v56, %v10359_v35 }
 0x61e   : > { %v2479_v7 = vmul.f32 %v7826_v48, %v10365_v22  ;;  %vm2455_vm3 = vmor %vm2453_vm15, %vm2454_vm14  ;;  %vm2484_vm9 = vweird.f32 %v7826_v48 }
 0x61f   : > { %v2450_v13 = vsub.f32 1.0, %v2449_v52  ;;  %v2573_v44 = vpop.f32.mrf.mxu0  ;;  %v3589_v52 = vpop.permute.xlu1 %3588  ;;  %vm2485_vm11 = vmor %vm2483_vm10, %vm2484_vm9 }
 0x620   : > { %6973 = vmatmul.msk.f32.gmra.mxu2 %vm462_vm1, %v2573_v44  ;;  %v2480_v12 = vsub.f32 1.0, %v2479_v7  ;;  %v3587_v7 = vpop.permute.xlu2 %3586 }
 0x621   : > { %v2451_v16 = vmul.f32 %v7824_v31, %v2450_v13  ;;  %v2472_v13 = vand.u32 2147483647, %v2250_v50 }
 0x622   : > { %v2481_v30 = vmul.f32 %v7826_v48, %v2480_v12 }
 0x623   : > { %v2452_v19 = vadd.f32 %v7824_v31, %v2451_v16  ;;  %vm2473_vm8 = vcmp.eq.f32.partialorder %v2472_v13, 8.507059e+37  ;;  %v12931_v16 = vld [vmem:[#allocation19_spill] sm:$0xff]  ;;  %v10413_v13 = vpop.f32.mrf.mxu2 }
 0x624   : > { %12934 = vst [vmem:[#allocation25_spill] sm:$0xff] %v10413_v13 }
 0x625   : > { %v2456_v21 = vsel %vm2455_vm3, %v7824_v31, %v2452_v19  ;;  %v2475_v31 = vor.u32 1.1754944e-38, %v2474_v11 }
 0x626   : > { %v2461_v43 = vsel %vm2458_vm5, %v2460_v57, %v2456_v21  ;;  %v2482_v21 = vadd.f32 %v7826_v48, %v2481_v30  ;;  %v12932_v57 = vld [vmem:[#allocation18_spill] sm:$0xff] }
 0x627   : > { %v2576_v46 = vpop.f32.mrf.mxu0  ;;  %v2462_v44 = vmul.f32 %v10216_v39, %v2461_v43  ;;  %v2476_v17 = vsel %vm2473_vm8, %v2475_v31, %v2471_v5  ;;  %v2489_v39 = vand.u32 2147483648, %v10365_v22  ;;  %v12936_v30 = vld [vmem:[#allocation22_spill] sm:$0xff] }
 0x628   : > { %v3591_v55 = vpop.permute.xlu0 %3590  ;;  %6974 = vmatmul.msk.f32.gmra.mxu2 %vm462_vm1, %v2576_v46  ;;  %v2477_v46 = vmul.f32 %v10169_v40, %v2476_v17  ;;  %v2486_v11 = vsel %vm2485_vm11, %v7826_v48, %v2482_v21  ;;  %v4379_v10 = vpop.permute.xlu2 %4378  ;;  %v8173_v48 = vld [vmem:[%s12748_s5 + $0x60] sm:$0xff] }
 0x629   : > { %2596 = vmatmul.f32.gmra.mxu0 %v2462_v44  ;;  %7033 = vmatpush.xpose.msk.msra.mxu2 %vm462_vm1, %v3591_v55  ;;  %v2487_v55 = vand.u32 2147483647, %v10365_v22  ;;  %v2490_v37 = vor.u32 1.1754944e-38, %v2489_v39  ;;  %v10401_v12 = vadd.f32 %v8173_v48, %v10355_v18 }
 0x62a   : > { %v10382_v43 = vpop.xlane.xlu1 %2931 }
 0x62b   : > { %vm2488_vm12 = vcmp.eq.f32.partialorder %v2487_v55, 8.507059e+37  ;;  %v10420_v56 = vpop.f32.mrf.mxu2 }
 0x62c   : > { %v2491_v40 = vsel %vm2488_vm12, %v2490_v37, %v2486_v11  ;;  %12935 = vst [vmem:[#allocation21_spill] sm:$0xff] %v10420_v56 }
 0x62d   : > { %7034 = vmatpush.xpose.msk.msra.mxu2 %vm462_vm1, %v3589_v52  ;;  %v2492_v22 = vmul.f32 %v10178_v6, %v2491_v40  ;;  %v12933_v6 = vld [vmem:[#allocation10_spill] sm:$0xff]  ;;  %v12939_v40 = vld [vmem:[#allocation15_spill] sm:$0xff] }
 0x62f   : > { %v2579_v50 = vpop.f32.mrf.mxu0 }
 0x630   : > { %v4381_v41 = vpop.permute.xlu0 %4380  ;;  %6975 = vmatmul.msk.f32.gmra.mxu2 %vm462_vm1, %v2579_v50 }
 0x631   : > { %2599 = vmatmul.f32.gmra.mxu0 %v2477_v46  ;;  %7035 = vmatpush.xpose.msk.msra.mxu2 %vm462_vm1, %v3587_v7 }
 0x632   : > { %7082 = vmatpush.xpose.msk.msra.mxu0 %vm462_vm1, %v4381_v41  ;;  %3568 = vrot.lane.b32.xlu2 %v12931_v16, %s8323_s20  ;;  %v2934_v19 = vpop.xlane.xlu1 %2933 }
 0x633   : > { %v2964_v31 = vsub.f32 %v10246_v63, %v2934_v19  ;;  %v10430_v39 = vpop.f32.mrf.mxu2 }
 0x634   : > { %12937 = vst [vmem:[#allocation24_spill] sm:$0xff] %v10430_v39 }
 0x635   : > { %v2981_v7 = vmul.f32 1.442695, %v2964_v31 }
 0x636   : > { %7083 = vmatpush.xpose.msk.msra.mxu0 %vm462_vm1, %v4379_v10 }
 0x637   : > { %7827 = vpow2.f32 %v2981_v7  ;;  %v2928_v7 = vpop.f32.mrf.mxu1 }
 0x639   : > { %2602 = vmatmul.f32.gmra.mxu0 %v2492_v22 }
 0x63a   : > { %4360 = vrot.lane.b32.xlu2 %v12932_v57, %s8324_s8  ;;  %v2936_v52 = vpop.xlane.xlu1 %2935 }
 0x63b   : > { %v2965_v46 = vsub.f32 %v10261_v25, %v2936_v52  ;;  %v10438_v11 = vpop.f32.mrf.mxu2 }
 0x63c   : > { %12938 = vst [vmem:[#allocation29_spill] sm:$0xff] %v10438_v11 }
 0x63d   : > { %v2983_v55 = vmul.f32 1.442695, %v2965_v46  ;;  %v10441_v63 = vpop.eup %7827 }
 0x63e   : > { %2955 = vmax.xlane.f32.xlu0 %v10401_v12 }
 0x63f   : > { %7829 = vpow2.f32 %v2983_v55  ;;  %v8174_v55 = vld [vmem:[%s12748_s5 + $0x78] sm:$0xff] }
 0x642   : > { %3562 = vrot.lane.b32.xlu2 %v12933_v6, %s8323_s20  ;;  %2957 = vmax.xlane.f32.xlu1 %v10406_v38  ;;  %v10411_v44 = vpop.xlane.xlu1 %2937 }
 0x643   : > { %v10450_v25 = vpop.f32.mrf.mxu2 }
 0x644   : > { %12940 = vst [vmem:[#allocation28_spill] sm:$0xff] %v10450_v25 }
 0x645   : > { %v10453_v19 = vpop.eup %7829 }
 0x64a   : > { %v10418_v18 = vpop.xlane.xlu1 %2939 }
 0x650   : > { %v2582_v5 = vpop.f32.mrf.mxu0 }
 0x651   : > { %6976 = vmatmul.msk.f32.gmra.mxu2 %vm462_vm1, %v2582_v5 }
 0x652   : > { %3576 = vrot.lane.b32.xlu0 %v12928_v47, %s8323_s20  ;;  %v10428_v17 = vpop.xlane.xlu1 %2945 }
 0x658   : > { %v2585_v35 = vpop.f32.mrf.mxu0 }
 0x659   : > { %6977 = vmatmul.msk.f32.gmra.mxu2 %vm462_vm1, %v2585_v35  ;;  %v2963_v35 = vsub.f32 %v10232_v51, %v10382_v43 }
 0x65a   : > { %4368 = vrot.lane.b32.xlu0 %v12930_v15, %s8324_s8  ;;  %v10443_v37 = vpop.xlane.xlu1 %2947 }
 0x65b   : > { %3572 = vrot.lane.b32.xlu1 %v12936_v30, %s8323_s20  ;;  %v10433_v50 = vpop.xlane.xlu0 %2941  ;;  %v2979_v46 = vmul.f32 1.442695, %v2963_v35  ;;  %v2966_v35 = vsub.f32 %v10275_v2, %v10411_v44 }
 0x65d   : > { %7831 = vpow2.f32 %v2979_v46  ;;  %v10488_v46 = vpop.f32.mrf.mxu2 }
 0x65e   : > { %12942 = vst [vmem:[#allocation9_spill] sm:$0xff] %v10488_v46 }
 0x660   : > { %v2588_v21 = vpop.f32.mrf.mxu0 }
 0x661   : > { %6978 = vmatmul.msk.f32.gmra.mxu2 %vm462_vm1, %v2588_v21  ;;  %v3581_v21 = vpop.permute.xlu2 %3580 }
 0x663   : > { %4364 = vrot.lane.b32.xlu1 %v12927_v62, %s8324_s8  ;;  %v10448_v10 = vpop.xlane.xlu0 %2943  ;;  %v10474_v43 = vpop.eup %7831 }
 0x668   : > { %v2591_v41 = vpop.f32.mrf.mxu0 }
 0x669   : > { %6979 = vmatmul.msk.f32.gmra.mxu2 %vm462_vm1, %v2591_v41  ;;  %v10468_v41 = vadd.f32 %v8174_v55, %v2928_v7  ;;  %v4373_v51 = vpop.permute.xlu2 %4372  ;;  %v2985_v7 = vmul.f32 1.442695, %v2966_v35  ;;  %v2967_v55 = vsub.f32 %v10295_v23, %v10418_v18 }
 0x66b   : > { %3566 = vrot.lane.b32.xlu1 %v12939_v40, %s8323_s20  ;;  %3013 = vadd.xlane.f32.xlu2 %v10441_v63  ;;  %v10459_v52 = vpop.xlane.xlu0 %2949  ;;  %7833 = vpow2.f32 %v2985_v7  ;;  %v2987_v44 = vmul.f32 1.442695, %v2967_v55 }
 0x66d   : > { %7835 = vpow2.f32 %v2987_v44 }
 0x670   : > { %v2594_v22 = vpop.f32.mrf.mxu0 }
 0x671   : > { %6980 = vmatmul.msk.f32.gmra.mxu2 %vm462_vm1, %v2594_v22  ;;  %v10495_v2 = vpop.xlane.xlu2 %2951 }
 0x672   : > { %v3585_v48 = vpop.permute.xlu1 %3584 }
 0x673   : > { %4358 = vrot.lane.b32.xlu1 %v12931_v16, %s8324_s8  ;;  %3015 = vadd.xlane.f32.xlu2 %v10453_v19 }
 0x674   : > { %7036 = vmatpush.xpose.msk.msra.mxu2 %vm462_vm1, %v3585_v48 }
 0x679   : > { %v10504_v23 = vpop.xlane.xlu2 %2953 }
 0x67a   : > { %v4377_v5 = vpop.permute.xlu1 %4376 }
 0x67b   : > { %7084 = vmatpush.xpose.msk.msra.mxu0 %vm462_vm1, %v4377_v5  ;;  %v12941_v5 = vld [vmem:[#allocation14_spill] sm:$0xff] }
 0x67e   : > { %v3583_v31 = vpop.permute.xlu0 %3582 }
 0x67f   : > { %7037 = vmatpush.xpose.msk.msra.mxu2 %vm462_vm1, %v3583_v31 }
 0x682   : > { %v3579_v22 = vpop.permute.xlu1 %3578 }
 0x683   : > { %7038 = vmatpush.xpose.msk.msra.mxu2 %vm462_vm1, %v3581_v21  ;;  %v10483_v21 = vpop.eup %7833 }
 0x684   : > { %2961 = vmax.xlane.f32.xlu0 %v10468_v41  ;;  %v10502_v35 = vpop.eup %7835 }
 0x686   : > { %v4375_v48 = vpop.permute.xlu0 %4374 }
 0x687   : > { %7039 = vmatpush.xpose.msk.msra.mxu2 %vm462_vm1, %v3579_v22  ;;  %7085 = vmatpush.xpose.msk.msra.mxu0 %vm462_vm1, %v4375_v48  ;;  %v10497_v48 = vpop.f32.mrf.mxu2 }
 0x688   : > { %12943 = vst [vmem:[#allocation17_spill] sm:$0xff] %v10497_v48 }
 0x68a   : > { %v4371_v31 = vpop.permute.xlu1 %4370 }
 0x68b   : > { %7086 = vmatpush.xpose.msk.msra.mxu0 %vm462_vm1, %v4373_v51  ;;  %4354 = vrot.lane.b32.xlu2 %v12941_v5, %s8324_s8 }
 0x68c   : > { %3011 = vadd.xlane.f32.xlu0 %v10474_v43 }
 0x68f   : > { %7087 = vmatpush.xpose.msk.msra.mxu0 %vm462_vm1, %v4371_v31  ;;  %v12944_v31 = vld [vmem:[#allocation8_spill] sm:$0xff]  ;;  %v10509_v7 = vpop.f32.mrf.mxu2 }
 0x690   : > { %12945 = vst [vmem:[#allocation11_spill] sm:$0xff] %v10509_v7 }
 0x697   : > { %v10552_v54 = vpop.f32.mrf.mxu2 }
 0x698   : > { %12946 = vst [vmem:[#allocation19_spill] sm:$0xff] %v10552_v54 }
 0x69d   : > { %3017 = vadd.xlane.f32.xlu1 %v10483_v21 }
 0x6a0   : > { %3570 = vrot.lane.b32.xlu0 %v12932_v57, %s8323_s20 }
 0x6a6   : > { %v2597_v22 = vpop.f32.mrf.mxu0 }
 0x6a7   : > { %6981 = vmatmul.msk.f32.gmra.mxu2 %vm462_vm1, %v2597_v22  ;;  %v3575_v22 = vpop.permute.xlu2 %3574 }
 0x6a8   : > { %4362 = vrot.lane.b32.xlu0 %v12936_v30, %s8324_s8 }
 0x6ae   : > { %v2600_v51 = vpop.f32.mrf.mxu0 }
 0x6af   : > { %6982 = vmatmul.msk.f32.gmra.mxu2 %vm462_vm1, %v2600_v51  ;;  %v4367_v48 = vpop.permute.xlu2 %4366 }
 0x6b0   : > { %3564 = vrot.lane.b32.xlu0 %v12941_v5, %s8323_s20 }
 0x6b1   : > { %v10514_v55 = vpop.xlane.xlu0 %2955 }
 0x6b4   : > { %3019 = vadd.xlane.f32.xlu2 %v10502_v35 }
 0x6b5   : > { %v10518_v51 = vpop.xlane.xlu1 %2957 }
 0x6b6   : > { %v2603_v18 = vpop.f32.mrf.mxu0  ;;  %3560 = vrot.lane.b32.xlu1 %v12944_v31, %s8323_s20  ;;  %s8326_s20 = smov 108  }
 0x6b7   : > { %6983 = vmatmul.msk.f32.gmra.mxu2 %vm462_vm1, %v2603_v18  ;;  %v10528_v46 = vpop.xlane.xlu2 %2959 }
 0x6b8   : > { %4356 = vrot.lane.b32.xlu0 %v12939_v40, %s8324_s8 }
 0x6c0   : > { %3528 = vrot.lane.b32.xlu0 %v12944_v31, %s8325_s7 }
 0x6c4   : > { %v3577_v44 = vpop.permute.xlu0 %3576 }
 0x6c5   : > { %7040 = vmatpush.xpose.msk.msra.mxu2 %vm462_vm1, %v3577_v44  ;;  %v2968_v44 = vsub.f32 %v10322_v53, %v10433_v50  ;;  %v2969_v53 = vsub.f32 %v10337_v42, %v10448_v10  ;;  %v10559_v42 = vpop.f32.mrf.mxu2 }
 0x6c6   : > { %12947 = vst [vmem:[#allocation18_spill] sm:$0xff] %v10559_v42 }
 0x6c7   : > { %v2989_v25 = vmul.f32 1.442695, %v2968_v44 }
 0x6c8   : > { %3530 = vrot.lane.b32.xlu0 %v12933_v6, %s8325_s7 }
 0x6c9   : > { %7041 = vmatpush.xpose.msk.msra.mxu2 %vm462_vm1, %v3575_v22  ;;  %7837 = vpow2.f32 %v2989_v25  ;;  %v10534_v22 = vpop.permute.xlu2 %3568 }
 0x6cc   : > { %v4369_v18 = vpop.permute.xlu0 %4368  ;;  %4350 = vrot.lane.b32.xlu2 %v12944_v31, %s8324_s8 }
 0x6cd   : > { %7088 = vmatpush.xpose.msk.msra.mxu0 %vm462_vm1, %v4369_v18  ;;  %v3573_v7 = vpop.permute.xlu1 %3572  ;;  %v10568_v54 = vpop.f32.mrf.mxu2 }
 0x6ce   : > { %7042 = vmatpush.xpose.msk.msra.mxu2 %vm462_vm1, %v3573_v7  ;;  %v2970_v7 = vsub.f32 %v10307_v33, %v10428_v17  ;;  %12948 = vst [vmem:[#allocation22_spill] sm:$0xff] %v10568_v54 }
 0x6cf   : > { %v10536_v11 = vpop.eup %7837 }
 0x6d0   : > { %v2993_v50 = vmul.f32 1.442695, %v2970_v7 }
 0x6d1   : > { %7089 = vmatpush.xpose.msk.msra.mxu0 %vm462_vm1, %v4367_v48  ;;  %v10541_v18 = vpop.permute.xlu2 %4360  ;;  %v2991_v48 = vmul.f32 1.442695, %v2969_v53 }
 0x6d2   : > { %7839 = vpow2.f32 %v2993_v50 }
 0x6d3   : > { %7841 = vpow2.f32 %v2991_v48 }
 0x6d5   : > { %v4365_v32 = vpop.permute.xlu1 %4364  ;;  %v10575_v36 = vpop.f32.mrf.mxu2 }
 0x6d6   : > { %7090 = vmatpush.xpose.msk.msra.mxu0 %vm462_vm1, %v4365_v32  ;;  %12949 = vst [vmem:[#allocation15_spill] sm:$0xff] %v10575_v36 }
 0x6d8   : > { %v10547_v32 = vpop.eup %7839 }
 0x6d9   : > { %v10545_v44 = vpop.permute.xlu2 %3562  ;;  %v10550_v25 = vpop.eup %7841 }
 0x6dd   : > { %v10561_v10 = vpop.permute.xlu1 %3566 }
 0x6e0   : > { %3021 = vadd.xlane.f32.xlu1 %v10536_v11 }
 0x6e1   : > { %v3014_v33 = vpop.xlane.xlu2 %3013 }
 0x6e2   : > { %7843 = vrcp.f32 %v3014_v33  ;;  %v3069_v9 = vand.u32 2147483648, %v3014_v33  ;;  %vm3063_vm5 = vweird.f32 %v3014_v33 }
 0x6e4   : > { %v3070_v20 = vor.u32 1.1754944e-38, %v3069_v9 }
 0x6e5   : > { %v10572_v34 = vpop.permute.xlu1 %4358 }
 0x6e8   : > { %v7844_v7 = vpop.eup %7843 }
 0x6e9   : > { %v10563_v53 = vpop.xlane.xlu2 %3015  ;;  %v3059_v48 = vmul.f32 %v7844_v7, %v3014_v33  ;;  %vm3064_vm3 = vweird.f32 %v7844_v7 }
 0x6ea   : > { %vm3065_vm6 = vmor %vm3063_vm5, %vm3064_vm3  ;;  %vm3078_vm9 = vweird.f32 %v10563_v53 }
 0x6eb   : > { %v3060_v29 = vsub.f32 1.0, %v3059_v48 }
 0x6ed   : > { %v3061_v28 = vmul.f32 %v7844_v7, %v3060_v29 }
 0x6f2   : > { %3025 = vadd.xlane.f32.xlu0 %v10547_v32 }
 0x6f5   : > { %3023 = vadd.xlane.f32.xlu2 %v10550_v25 }
 0x6f7   : > { %v10555_v17 = vpop.xlane.xlu0 %2961 }
 0x6f9   : > { %4352 = vrot.lane.b32.xlu1 %v12933_v6, %s8324_s8  ;;  %s8328_s8 = smov 44  }
 0x6ff   : > { %v3012_v50 = vpop.xlane.xlu0 %3011 }
 0x700   : > { %7845 = vrcp.f32 %v3012_v50  ;;  %v3054_v45 = vand.u32 2147483648, %v3012_v50  ;;  %v3052_v0 = vand.u32 2147483647, %v3012_v50  ;;  %vm3048_vm14 = vweird.f32 %v3012_v50 }
 0x701   : > { %4318 = vrot.lane.b32.xlu1 %v12944_v31, %s8326_s20  ;;  %7847 = vrcp.f32 %v10563_v53 }
 0x702   : > { %v3055_v48 = vor.u32 1.1754944e-38, %v3054_v45  ;;  %vm3053_vm4 = vcmp.eq.f32.partialorder %v3052_v0, 8.507059e+37 }
 0x706   : > { %v7846_v39 = vpop.eup %7845  ;;  %4320 = vrot.lane.b32.xlu0 %v12933_v6, %s8326_s20  ;;  %v3062_v6 = vadd.f32 %v7844_v7, %v3061_v28 }
 0x707   : > { %v3044_v42 = vmul.f32 %v7846_v39, %v3012_v50  ;;  %v7848_v56 = vpop.eup %7847  ;;  %vm3049_vm13 = vweird.f32 %v7846_v39  ;;  %v3067_v50 = vand.u32 2147483647, %v3014_v33  ;;  %v2971_v33 = vsub.f32 %v10316_v14, %v10443_v37 }
 0x708   : > { %v3074_v49 = vmul.f32 %v7848_v56, %v10563_v53  ;;  %vm3050_vm15 = vmor %vm3048_vm14, %vm3049_vm13  ;;  %v3066_v45 = vsel %vm3065_vm6, %v7844_v7, %v3062_v6  ;;  %vm3079_vm8 = vweird.f32 %v7848_v56  ;;  %v3082_v6 = vand.u32 2147483647, %v10563_v53  ;;  %v4355_v7 = vpop.permute.xlu2 %4354 }
 0x709   : > { %v3045_v13 = vsub.f32 1.0, %v3044_v42  ;;  %vm3068_vm7 = vcmp.eq.f32.partialorder %v3067_v50, 8.507059e+37  ;;  %vm3080_vm10 = vmor %vm3078_vm9, %vm3079_vm8 }
 0x70a   : > { %v3075_v42 = vsub.f32 1.0, %v3074_v49  ;;  %v3071_v28 = vsel %vm3068_vm7, %v3070_v20, %v3066_v45  ;;  %vm3083_vm11 = vcmp.eq.f32.partialorder %v3082_v6, 8.507059e+37 }
 0x70b   : > { %v3046_v31 = vmul.f32 %v7846_v39, %v3045_v13  ;;  %v3072_v9 = vmul.f32 %v10441_v63, %v3071_v28 }
 0x70c   : > { %v3076_v60 = vmul.f32 %v7848_v56, %v3075_v42 }
 0x70d   : > { %v3047_v54 = vadd.f32 %v7846_v39, %v3046_v31  ;;  %3532 = vrot.lane.b32.xlu2 %v12941_v5, %s8325_s7 }
 0x70e   : > { %3536 = vrot.lane.b32.xlu0 %v12931_v16, %s8325_s7  ;;  %v3077_v0 = vadd.f32 %v7848_v56, %v3076_v60 }
 0x70f   : > { %v3051_v29 = vsel %vm3050_vm15, %v7846_v39, %v3047_v54  ;;  %v3084_v54 = vand.u32 2147483648, %v10563_v53 }
 0x710   : > { %v3018_v13 = vpop.xlane.xlu1 %3017  ;;  %v3056_v59 = vsel %vm3053_vm4, %v3055_v48, %v3051_v29  ;;  %v3081_v20 = vsel %vm3080_vm10, %v7848_v56, %v3077_v0 }
 0x711   : > { %7849 = vrcp.f32 %v3018_v13  ;;  %v3057_v31 = vmul.f32 %v10474_v43, %v3056_v59  ;;  %v10587_v59 = vpop.f32.mrf.mxu2  ;;  %v3085_v60 = vor.u32 1.1754944e-38, %v3084_v54  ;;  %v3099_v53 = vand.u32 2147483648, %v3018_v13 }
 0x712   : > { %v3571_v36 = vpop.permute.xlu0 %3570  ;;  %12950 = vst [vmem:[#allocation14_spill] sm:$0xff] %v10587_v59  ;;  %vm3093_vm13 = vweird.f32 %v3018_v13  ;;  %v3097_v29 = vand.u32 2147483647, %v3018_v13 }
 0x713   : > { %3347 = vmatmul.f32.vlgmr.msra.gmra.mxu3 %v3057_v31  ;;  %7043 = vmatpush.xpose.msk.msra.mxu2 %vm462_vm1, %v3571_v36  ;;  %v3086_v63 = vsel %vm3083_vm11, %v3085_v60, %v3081_v20  ;;  %v3100_v37 = vor.u32 1.1754944e-38, %v3099_v53 }
 0x714   : > { %v3087_v56 = vmul.f32 %v10453_v19, %v3086_v63  ;;  %vm3098_vm15 = vcmp.eq.f32.partialorder %v3097_v29, 8.507059e+37 }
 0x715   : > { %4322 = vrot.lane.b32.xlu2 %v12941_v5, %s8326_s20 }
 0x716   : > { %4326 = vrot.lane.b32.xlu0 %v12931_v16, %s8326_s20 }
 0x717   : > { %v7850_v49 = vpop.eup %7849  ;;  %7044 = vmatpush.xpose.msk.msra.mxu2 %vm462_vm1, %v10534_v22 }
 0x718   : > { %v3089_v36 = vmul.f32 %v7850_v49, %v3018_v13  ;;  %vm3094_vm12 = vweird.f32 %v7850_v49 }
 0x719   : > { %v10602_v42 = vpop.f32.mrf.mxu2  ;;  %vm3095_vm14 = vmor %vm3093_vm13, %vm3094_vm12 }
 0x71a   : > { %v3090_v39 = vsub.f32 1.0, %v3089_v36  ;;  %v4363_v43 = vpop.permute.xlu0 %4362  ;;  %12951 = vst [vmem:[#allocation48_spill] sm:$0xff] %v10602_v42 }
 0x71b   : > { %3350 = vmatmul.f32.gmra.mxu3 %v3072_v9  ;;  %7045 = vmatpush.xpose.msk.msra.mxu2 %vm462_vm1, %v10561_v10  ;;  %v2995_v10 = vmul.f32 1.442695, %v2971_v33 }
 0x71c   : > { %7091 = vmatpush.xpose.msk.msra.mxu0 %vm462_vm1, %v4363_v43  ;;  %v3091_v22 = vmul.f32 %v7850_v49, %v3090_v39 }
 0x71d   : > { %7851 = vpow2.f32 %v2995_v10 }
 0x71e   : > { %v3092_v48 = vadd.f32 %v7850_v49, %v3091_v22 }
 0x720   : > { %7092 = vmatpush.xpose.msk.msra.mxu0 %vm462_vm1, %v10541_v18  ;;  %v3096_v14 = vsel %vm3095_vm14, %v7850_v49, %v3092_v48 }
 0x721   : > { %v3101_v18 = vsel %vm3098_vm15, %v3100_v37, %v3096_v14  ;;  %v10613_v0 = vpop.f32.mrf.mxu2 }
 0x722   : > { %v3565_v31 = vpop.permute.xlu0 %3564  ;;  %v3102_v13 = vmul.f32 %v10483_v21, %v3101_v18  ;;  %12952 = vst [vmem:[#allocation49_spill] sm:$0xff] %v10613_v0  ;;  %v2974_v21 = vsub.f32 %v10278_v1, %v10504_v23 }
 0x723   : > { %3353 = vmatmul.f32.gmra.mxu3 %v3087_v56  ;;  %7046 = vmatpush.xpose.msk.msra.mxu2 %vm462_vm1, %v3565_v31  ;;  %v10611_v28 = vpop.eup %7851 }
 0x724   : > { %7093 = vmatpush.xpose.msk.msra.mxu0 %vm462_vm1, %v10572_v34  ;;  %v3001_v60 = vmul.f32 1.442695, %v2974_v21 }
 0x727   : > { %7047 = vmatpush.xpose.msk.msra.mxu2 %vm462_vm1, %v10545_v44  ;;  %v3020_v50 = vpop.xlane.xlu2 %3019  ;;  %v2972_v44 = vsub.f32 %v10348_v3, %v10459_v52 }
 0x728   : > { %7853 = vrcp.f32 %v3020_v50  ;;  %v3561_v19 = vpop.permute.xlu1 %3560  ;;  %v3114_v9 = vand.u32 2147483648, %v3020_v50  ;;  %v3112_v43 = vand.u32 2147483647, %v3020_v50  ;;  %vm3108_vm4 = vweird.f32 %v3020_v50 }
 0x729   : > { %v2997_v6 = vmul.f32 1.442695, %v2972_v44  ;;  %v10624_v20 = vpop.f32.mrf.mxu2 }
 0x72a   : > { %v4357_v45 = vpop.permute.xlu0 %4356  ;;  %12953 = vst [vmem:[#allocation50_spill] sm:$0xff] %v10624_v20  ;;  %v3115_v3 = vor.u32 1.1754944e-38, %v3114_v9  ;;  %vm3113_vm6 = vcmp.eq.f32.partialorder %v3112_v43, 8.507059e+37 }
 0x72b   : > { %3356 = vmatmul.f32.gmra.mxu3 %v3102_v13  ;;  %7048 = vmatpush.xpose.msk.msra.mxu2 %vm462_vm1, %v3561_v19  ;;  %7855 = vpow2.f32 %v2997_v6  ;;  %v2973_v19 = vsub.f32 %v10264_v8, %v10495_v2 }
 0x72c   : > { %7094 = vmatpush.xpose.msk.msra.mxu0 %vm462_vm1, %v4357_v45  ;;  %3027 = vadd.xlane.f32.xlu1 %v10611_v28  ;;  %7857 = vpow2.f32 %v3001_v60 }
 0x72e   : > { %v7854_v34 = vpop.eup %7853 }
 0x72f   : > { %v3104_v49 = vmul.f32 %v7854_v34, %v3020_v50  ;;  %vm3109_vm3 = vweird.f32 %v7854_v34  ;;  %v4351_v13 = vpop.permute.xlu2 %4350 }
 0x730   : > { %7095 = vmatpush.xpose.msk.msra.mxu0 %vm462_vm1, %v4355_v7  ;;  %vm3110_vm5 = vmor %vm3108_vm4, %vm3109_vm3 }
 0x731   : > { %v3105_v36 = vsub.f32 1.0, %v3104_v49  ;;  %v10628_v63 = vpop.eup %7855  ;;  %v10630_v7 = vpop.f32.mrf.mxu2  ;;  %v2999_v49 = vmul.f32 1.442695, %v2973_v19 }
 0x732   : > { %v3529_v54 = vpop.permute.xlu0 %3528  ;;  %12954 = vst [vmem:[#allocation51_spill] sm:$0xff] %v10630_v7  ;;  %v10633_v48 = vpop.eup %7857 }
 0x733   : > { %7049 = vmatmul.msk.f32.vlgmr.msra.gmra.mxu2 %vm462_vm1, %v3529_v54  ;;  %v3106_v39 = vmul.f32 %v7854_v34, %v3105_v36 }
 0x735   : > { %v3107_v22 = vadd.f32 %v7854_v34, %v3106_v39 }
 0x737   : > { %v3111_v52 = vsel %vm3110_vm5, %v7854_v34, %v3107_v22 }
 0x738   : > { %v3116_v1 = vsel %vm3113_vm6, %v3115_v3, %v3111_v52 }
 0x739   : > { %v3117_v23 = vmul.f32 %v10502_v35, %v3116_v1  ;;  %v10638_v53 = vpop.f32.mrf.mxu2 }
 0x73a   : > { %v3531_v33 = vpop.permute.xlu0 %3530  ;;  %12955 = vst [vmem:[#allocation52_spill] sm:$0xff] %v10638_v53 }
 0x73b   : > { %7050 = vmatmul.msk.f32.gmra.mxu2 %vm462_vm1, %v3531_v33  ;;  %3359 = vmatmul.f32.gmra.mxu3 %v3117_v23 }
 0x73e   : > { %3029 = vadd.xlane.f32.xlu2 %v10628_v63 }
 0x740   : > { %3033 = vadd.xlane.f32.xlu0 %v10633_v48 }
 0x741   : > { %v10640_v35 = vpop.f32.mrf.mxu2 }
 0x742   : > { %12956 = vst [vmem:[#allocation53_spill] sm:$0xff] %v10640_v35 }
 0x745   : > { %3534 = vrot.lane.b32.xlu1 %v12939_v40, %s8325_s7 }
 0x749   : > { %v10646_v29 = vpop.f32.mrf.mxu2 }
 0x74a   : > { %12957 = vst [vmem:[#allocation54_spill] sm:$0xff] %v10646_v29 }
 0x751   : > { %v10654_v36 = vpop.f32.mrf.mxu2 }
 0x752   : > { %12958 = vst [vmem:[#allocation55_spill] sm:$0xff] %v10654_v36 }
 0x753   : > { %v3022_v10 = vpop.xlane.xlu1 %3021 }
 0x754   : > { %3542 = vrot.lane.b32.xlu0 %v12927_v62, %s8325_s7  ;;  %7859 = vrcp.f32 %v3022_v10  ;;  %v3129_v37 = vand.u32 2147483648, %v3022_v10  ;;  %v3127_v50 = vand.u32 2147483647, %v3022_v10  ;;  %vm3123_vm8 = vweird.f32 %v3022_v10 }
 0x756   : > { %3538 = vrot.lane.b32.xlu2 %v12932_v57, %s8325_s7  ;;  %v3130_v34 = vor.u32 1.1754944e-38, %v3129_v37  ;;  %vm3128_vm10 = vcmp.eq.f32.partialorder %v3127_v50, 8.507059e+37 }
 0x759   : > { %v10658_v39 = vpop.f32.mrf.mxu2 }
 0x75a   : > { %v7860_v56 = vpop.eup %7859  ;;  %12959 = vst [vmem:[#allocation56_spill] sm:$0xff] %v10658_v39 }
 0x75b   : > { %v3119_v31 = vmul.f32 %v7860_v56, %v3022_v10  ;;  %vm3124_vm7 = vweird.f32 %v7860_v56 }
 0x75c   : > { %4332 = vrot.lane.b32.xlu0 %v12927_v62, %s8326_s20  ;;  %vm3125_vm9 = vmor %vm3123_vm8, %vm3124_vm7 }
 0x75d   : > { %v3120_v14 = vsub.f32 1.0, %v3119_v31 }
 0x75e   : > { %4328 = vrot.lane.b32.xlu2 %v12932_v57, %s8326_s20 }
 0x75f   : > { %v3121_v18 = vmul.f32 %v7860_v56, %v3120_v14  ;;  %v2977_v14 = vsub.f32 %v10371_v24, %v10528_v46 }
 0x761   : > { %v3122_v45 = vadd.f32 %v7860_v56, %v3121_v18  ;;  %v10667_v37 = vpop.f32.mrf.mxu2  ;;  %v2975_v18 = vsub.f32 %v10401_v12, %v10514_v55 }
 0x762   : > { %12960 = vst [vmem:[#allocation57_spill] sm:$0xff] %v10667_v37 }
 0x763   : > { %v3126_v44 = vsel %vm3125_vm9, %v7860_v56, %v3122_v45  ;;  %v3003_v24 = vmul.f32 1.442695, %v2975_v18 }
 0x764   : > { %v3131_v21 = vsel %vm3128_vm10, %v3130_v34, %v3126_v44 }
 0x765   : > { %v3026_v54 = vpop.xlane.xlu0 %3025  ;;  %v3132_v9 = vmul.f32 %v10536_v11, %v3131_v21  ;;  %v3007_v21 = vmul.f32 1.442695, %v2977_v14  ;;  %v2976_v14 = vsub.f32 %v10406_v38, %v10518_v51 }
 0x766   : > { %7861 = vrcp.f32 %v3026_v54  ;;  %v3159_v34 = vand.u32 2147483648, %v3026_v54  ;;  %vm3153_vm3 = vweird.f32 %v3026_v54 }
 0x767   : > { %3362 = vmatmul.f32.gmra.mxu3 %v3132_v9  ;;  %7863 = vpow2.f32 %v2999_v49  ;;  %v3157_v49 = vand.u32 2147483647, %v3026_v54 }
 0x768   : > { %v3024_v6 = vpop.xlane.xlu2 %3023  ;;  %v3160_v9 = vor.u32 1.1754944e-38, %v3159_v34  ;;  %v3005_v34 = vmul.f32 1.442695, %v2976_v14  ;;  %v2978_v14 = vsub.f32 %v10468_v41, %v10555_v17 }
 0x769   : > { %7865 = vrcp.f32 %v3024_v6  ;;  %v3144_v23 = vand.u32 2147483648, %v3024_v6  ;;  %v3142_v10 = vand.u32 2147483647, %v3024_v6  ;;  %vm3138_vm12 = vweird.f32 %v3024_v6  ;;  %v10672_v55 = vpop.f32.mrf.mxu2 }
 0x76a   : > { %vm3158_vm5 = vcmp.eq.f32.partialorder %v3157_v49, 8.507059e+37  ;;  %7867 = vpow2.f32 %v3007_v21  ;;  %12961 = vst [vmem:[#allocation58_spill] sm:$0xff] %v10672_v55 }
 0x76b   : > { %v4353_v8 = vpop.permute.xlu1 %4352  ;;  %v3145_v50 = vor.u32 1.1754944e-38, %v3144_v23  ;;  %vm3143_vm14 = vcmp.eq.f32.partialorder %v3142_v10, 8.507059e+37  ;;  %7869 = vpow2.f32 %v3003_v24 }
 0x76c   : > { %v7862_v2 = vpop.eup %7861  ;;  %7096 = vmatpush.xpose.msk.msra.mxu0 %vm462_vm1, %v4353_v8 }
 0x76d   : > { %v3149_v43 = vmul.f32 %v7862_v2, %v3026_v54  ;;  %v10660_v60 = vpop.eup %7863  ;;  %vm3154_vm15 = vweird.f32 %v7862_v2 }
 0x76e   : > { %vm3155_vm4 = vmor %vm3153_vm3, %vm3154_vm15 }
 0x76f   : > { %v7866_v22 = vpop.eup %7865  ;;  %3031 = vadd.xlane.f32.xlu1 %v10660_v60  ;;  %v3150_v3 = vsub.f32 1.0, %v3149_v43 }
 0x770   : > { %v3134_v52 = vmul.f32 %v7866_v22, %v3024_v6  ;;  %v3533_v11 = vpop.permute.xlu2 %3532  ;;  %7097 = vmatpush.xpose.msk.msra.mxu0 %vm462_vm1, %v4351_v13  ;;  %vm3139_vm11 = vweird.f32 %v7866_v22  ;;  %v10675_v8 = vpop.eup %7867 }
 0x771   : > { %7051 = vmatmul.msk.f32.gmra.mxu2 %vm462_vm1, %v3533_v11  ;;  %v3151_v56 = vmul.f32 %v7862_v2, %v3150_v3  ;;  %vm3140_vm13 = vmor %vm3138_vm12, %vm3139_vm11  ;;  %v10683_v54 = vpop.f32.mrf.mxu2 }
 0x772   : > { %v3135_v1 = vsub.f32 1.0, %v3134_v52  ;;  %12962 = vst [vmem:[#allocation59_spill] sm:$0xff] %v10683_v54 }
 0x773   : > { %v3152_v13 = vadd.f32 %v7862_v2, %v3151_v56  ;;  %v10689_v43 = vpop.permute.xlu1 %4318 }
 0x774   : > { %v3136_v33 = vmul.f32 %v7866_v22, %v3135_v1 }
 0x775   : > { %v3156_v46 = vsel %vm3155_vm4, %v7862_v2, %v3152_v13 }
 0x776   : > { %v3137_v31 = vadd.f32 %v7866_v22, %v3136_v33  ;;  %v3161_v12 = vsel %vm3158_vm5, %v3160_v9, %v3156_v46 }
 0x777   : > { %v3162_v6 = vmul.f32 %v10547_v32, %v3161_v12 }
 0x778   : > { %v3141_v19 = vsel %vm3140_vm13, %v7866_v22, %v3137_v31  ;;  %v10706_v10 = vpop.permute.xlu2 %4322  ;;  %v10718_v38 = vpop.permute.xlu0 %4320 }
 0x779   : > { %v3146_v45 = vsel %vm3143_vm14, %v3145_v50, %v3141_v19  ;;  %v10687_v2 = vpop.f32.mrf.mxu2 }
 0x77a   : > { %v3147_v44 = vmul.f32 %v10550_v25, %v3146_v45  ;;  %v10677_v25 = vpop.eup %7869  ;;  %12963 = vst [vmem:[#allocation60_spill] sm:$0xff] %v10687_v2 }
 0x77c   : > { %3365 = vmatmul.f32.gmra.mxu3 %v3147_v44 }
 0x781   : > { %v10694_v22 = vpop.f32.mrf.mxu2 }
 0x782   : > { %12964 = vst [vmem:[#allocation61_spill] sm:$0xff] %v10694_v22 }
 0x784   : > { %3368 = vmatmul.f32.gmra.mxu3 %v3162_v6 }
 0x786   : > { %3039 = vadd.xlane.f32.xlu0 %v10675_v8 }
 0x787   : > { %3035 = vadd.xlane.f32.xlu2 %v10677_v25 }
 0x788   : > { %4324 = vrot.lane.b32.xlu1 %v12939_v40, %s8326_s20 }
 0x789   : > { %v10701_v23 = vpop.f32.mrf.mxu2 }
 0x78a   : > { %12965 = vst [vmem:[#allocation62_spill] sm:$0xff] %v10701_v23 }
 0x790   : > { %3540 = vrot.lane.b32.xlu1 %v12936_v30, %s8325_s7 }
 0x791   : > { %v10713_v21 = vpop.f32.mrf.mxu2 }
 0x792   : > { %12966 = vst [vmem:[#allocation63_spill] sm:$0xff] %v10713_v21 }
 0x796   : > { %v3348_v32 = vpop.f32.mrf.mxu3 }
 0x797   : > { %7017 = vmatmul.msk.f32.vlgmr.msrb.gmra.mxu0 %vm462_vm1, %v3348_v32 }
 0x799   : > { %v10723_v6 = vpop.f32.mrf.mxu2 }
 0x79a   : > { %3548 = vrot.lane.b32.xlu0 %v12924_v27, %s8325_s7  ;;  %12967 = vst [vmem:[#allocation64_spill] sm:$0xff] %v10723_v6 }
 0x79e   : > { %v3351_v3 = vpop.f32.mrf.mxu3 }
 0x79f   : > { %7018 = vmatmul.msk.f32.gmra.mxu0 %vm462_vm1, %v3351_v3  ;;  %v3028_v52 = vpop.xlane.xlu1 %3027  ;;  %3544 = vrot.lane.b32.xlu2 %v12928_v47, %s8325_s7 }
 0x7a0   : > { %7871 = vrcp.f32 %v3028_v52  ;;  %v3174_v31 = vand.u32 2147483648, %v3028_v52  ;;  %v3172_v50 = vand.u32 2147483647, %v3028_v52  ;;  %vm3168_vm7 = vweird.f32 %v3028_v52 }
 0x7a2   : > { %4338 = vrot.lane.b32.xlu0 %v12924_v27, %s8326_s20  ;;  %v3175_v45 = vor.u32 1.1754944e-38, %v3174_v31  ;;  %vm3173_vm9 = vcmp.eq.f32.partialorder %v3172_v50, 8.507059e+37 }
 0x7a6   : > { %v7872_v11 = vpop.eup %7871  ;;  %v3354_v1 = vpop.f32.mrf.mxu3 }
 0x7a7   : > { %v3164_v33 = vmul.f32 %v7872_v11, %v3028_v52  ;;  %7019 = vmatmul.msk.f32.gmra.mxu0 %vm462_vm1, %v3354_v1  ;;  %4334 = vrot.lane.b32.xlu2 %v12928_v47, %s8326_s20  ;;  %vm3169_vm6 = vweird.f32 %v7872_v11 }
 0x7a8   : > { %vm3170_vm8 = vmor %vm3168_vm7, %vm3169_vm6 }
 0x7a9   : > { %v3165_v56 = vsub.f32 1.0, %v3164_v33  ;;  %v3537_v33 = vpop.permute.xlu0 %3536 }
 0x7aa   : > { %3554 = vrot.lane.b32.xlu0 %v12922_v4, %s8325_s7 }
 0x7ab   : > { %v3166_v18 = vmul.f32 %v7872_v11, %v3165_v56 }
 0x7ad   : > { %v3167_v19 = vadd.f32 %v7872_v11, %v3166_v18 }
 0x7ae   : > { %v3357_v13 = vpop.f32.mrf.mxu3 }
 0x7af   : > { %7020 = vmatmul.msk.f32.gmra.mxu0 %vm462_vm1, %v3357_v13  ;;  %v3171_v44 = vsel %vm3170_vm8, %v7872_v11, %v3167_v19  ;;  %v10732_v19 = vpop.f32.mrf.mxu2 }
 0x7b0   : > { %v3176_v49 = vsel %vm3173_vm9, %v3175_v45, %v3171_v44  ;;  %12968 = vst [vmem:[#allocation65_spill] sm:$0xff] %v10732_v19  ;;  %v3009_v45 = vmul.f32 1.442695, %v2978_v14 }
 0x7b1   : > { %v3030_v24 = vpop.xlane.xlu2 %3029  ;;  %v3177_v46 = vmul.f32 %v10611_v28, %v3176_v49  ;;  %v10741_v41 = vpop.permute.xlu0 %4326 }
 0x7b2   : > { %7873 = vrcp.f32 %v3030_v24  ;;  %4344 = vrot.lane.b32.xlu0 %v12922_v4, %s8326_s20  ;;  %v3189_v3 = vand.u32 2147483648, %v3030_v24  ;;  %v3187_v11 = vand.u32 2147483647, %v3030_v24  ;;  %vm3183_vm11 = vweird.f32 %v3030_v24 }
 0x7b3   : > { %7875 = vpow2.f32 %v3005_v34  ;;  %3371 = vmatmul.f32.gmra.mxu3 %v3177_v46  ;;  %v8175_v46 = vld [vmem:[%s12748_s5 + $0x8] sm:$0xff] }
 0x7b4   : > { %v3190_v31 = vor.u32 1.1754944e-38, %v3189_v3  ;;  %vm3188_vm13 = vcmp.eq.f32.partialorder %v3187_v11, 8.507059e+37  ;;  %7877 = vpow2.f32 %v3009_v45 }
 0x7b7   : > { %v3535_v51 = vpop.permute.xlu1 %3534  ;;  %v10736_v44 = vpop.f32.mrf.mxu2 }
 0x7b8   : > { %v7874_v9 = vpop.eup %7873  ;;  %7052 = vmatmul.msk.f32.gmra.mxu2 %vm462_vm1, %v3535_v51  ;;  %12969 = vst [vmem:[#allocation66_spill] sm:$0xff] %v10736_v44  ;;  %v8178_v44 = vld [vmem:[%s12748_s5 + $0x18] sm:$0xff] }
 0x7b9   : > { %v10721_v12 = vpop.eup %7875  ;;  %v3179_v32 = vmul.f32 %v7874_v9, %v3030_v24  ;;  %vm3184_vm10 = vweird.f32 %v7874_v9  ;;  %v3539_v34 = vpop.permute.xlu2 %3538 }
 0x7ba   : > { %4348 = vrot.lane.b32.xlu0 %v12926_v58, %s8326_s20  ;;  %3037 = vadd.xlane.f32.xlu1 %v10721_v12  ;;  %vm3185_vm12 = vmor %vm3183_vm11, %vm3184_vm10  ;;  %v10738_v49 = vpop.eup %7877 }
 0x7bb   : > { %v3180_v28 = vsub.f32 1.0, %v3179_v32 }
 0x7bd   : > { %v3181_v52 = vmul.f32 %v7874_v9, %v3180_v28 }
 0x7be   : > { %v3360_v1 = vpop.f32.mrf.mxu3 }
 0x7bf   : > { %7021 = vmatmul.msk.f32.gmra.mxu0 %vm462_vm1, %v3360_v1  ;;  %v3182_v56 = vadd.f32 %v7874_v9, %v3181_v52  ;;  %v10745_v17 = vpop.f32.mrf.mxu2 }
 0x7c0   : > { %7053 = vmatmul.msk.f32.gmra.mxu2 %vm462_vm1, %v3537_v33 }
 0x7c1   : > { %v3186_v18 = vsel %vm3185_vm12, %v7874_v9, %v3182_v56  ;;  %v10764_v45 = vpop.permute.xlu2 %4328 }
 0x7c2   : > { %v3191_v50 = vsel %vm3188_vm13, %v3190_v31, %v3186_v18 }
 0x7c3   : > { %v3192_v13 = vmul.f32 %v10628_v63, %v3191_v50  ;;  %v3034_v63 = vpop.xlane.xlu0 %3033 }
 0x7c4   : > { %7879 = vrcp.f32 %v3034_v63  ;;  %vm3213_vm6 = vweird.f32 %v3034_v63 }
 0x7c5   : > { %3374 = vmatmul.f32.gmra.mxu3 %v3192_v13 }
 0x7c7   : > { %v3676_v24 = vpop.f32.mrf.mxu2 }
 0x7c8   : > { %7054 = vmatmul.msk.f32.gmra.mxu2 %vm462_vm1, %v3539_v34  ;;  %v10752_v51 = vadd.f32 %v8175_v46, %v3676_v24 }
 0x7ca   : > { %v7880_v32 = vpop.eup %7879 }
 0x7cb   : > { %v3209_v28 = vmul.f32 %v7880_v32, %v3034_v63  ;;  %vm3214_vm5 = vweird.f32 %v7880_v32 }
 0x7cc   : > { %vm3215_vm7 = vmor %vm3213_vm6, %vm3214_vm5 }
 0x7cd   : > { %v3210_v52 = vsub.f32 1.0, %v3209_v28  ;;  %v3219_v28 = vand.u32 2147483648, %v3034_v63 }
 0x7cf   : > { %v3211_v18 = vmul.f32 %v7880_v32, %v3210_v52 }
 0x7d0   : > { %3041 = vadd.xlane.f32.xlu2 %v10738_v49 }
 0x7d1   : > { %v3212_v24 = vadd.f32 %v7880_v32, %v3211_v18 }
 0x7d3   : > { %4330 = vrot.lane.b32.xlu1 %v12936_v30, %s8326_s20 }
 0x7db   : > { %3546 = vrot.lane.b32.xlu1 %v12930_v15, %s8325_s7 }
 0x7e2   : > { %v3032_v9 = vpop.xlane.xlu1 %3031 }
 0x7e3   : > { %7881 = vrcp.f32 %v3032_v9  ;;  %4336 = vrot.lane.b32.xlu1 %v12930_v15, %s8326_s20  ;;  %v3204_v56 = vand.u32 2147483648, %v3032_v9  ;;  %v3202_v14 = vand.u32 2147483647, %v3032_v9  ;;  %vm3198_vm15 = vweird.f32 %v3032_v9 }
 0x7e4   : > { %3723 = vmax.xlane.f32.xlu0 %v10752_v51 }
 0x7e5   : > { %v3205_v13 = vor.u32 1.1754944e-38, %v3204_v56  ;;  %vm3203_vm4 = vcmp.eq.f32.partialorder %v3202_v14, 8.507059e+37 }
 0x7e8   : > { %3550 = vrot.lane.b32.xlu2 %v12925_v61, %s8325_s7 }
 0x7e9   : > { %v7882_v3 = vpop.eup %7881 }
 0x7ea   : > { %v3194_v11 = vmul.f32 %v7882_v3, %v3032_v9  ;;  %v3363_v1 = vpop.f32.mrf.mxu3  ;;  %vm3199_vm14 = vweird.f32 %v7882_v3  ;;  %v3216_v9 = vsel %vm3215_vm7, %v7880_v32, %v3212_v24 }
 0x7eb   : > { %3552 = vrot.lane.b32.xlu1 %v12929_v26, %s8325_s7  ;;  %7022 = vmatmul.msk.f32.gmra.mxu0 %vm462_vm1, %v3363_v1  ;;  %vm3200_vm3 = vmor %vm3198_vm15, %vm3199_vm14  ;;  %v3220_v1 = vor.u32 1.1754944e-38, %v3219_v28 }
 0x7ec   : > { %v3195_v33 = vsub.f32 1.0, %v3194_v11  ;;  %v3217_v11 = vand.u32 2147483647, %v3034_v63 }
 0x7ee   : > { %v3196_v31 = vmul.f32 %v7882_v3, %v3195_v33  ;;  %v12970_v33 = vld [vmem:[#allocation23_spill] sm:$0xff]  ;;  %vm3218_vm8 = vcmp.eq.f32.partialorder %v3217_v11, 8.507059e+37 }
 0x7f0   : > { %4340 = vrot.lane.b32.xlu2 %v12925_v61, %s8326_s20  ;;  %v3197_v50 = vadd.f32 %v7882_v3, %v3196_v31 }
 0x7f2   : > { %v3201_v34 = vsel %vm3200_vm3, %v7882_v3, %v3197_v50  ;;  %v3221_v3 = vsel %vm3218_vm8, %v3220_v1, %v3216_v9 }
 0x7f3   : > { %4342 = vrot.lane.b32.xlu1 %v12929_v26, %s8326_s20  ;;  %v3206_v46 = vsel %vm3203_vm4, %v3205_v13, %v3201_v34 }
 0x7f4   : > { %v3207_v52 = vmul.f32 %v10660_v60, %v3206_v46  ;;  %v3222_v60 = vmul.f32 %v10633_v48, %v3221_v3 }
 0x7f6   : > { %3377 = vmatmul.f32.gmra.mxu3 %v3207_v52  ;;  %v3543_v52 = vpop.permute.xlu0 %3542 }
 0x7f8   : > { %3556 = vrot.lane.b32.xlu2 %v12970_v33, %s8325_s7 }
 0x7fa   : > { %v10771_v56 = vpop.permute.xlu1 %4324  ;;  %v3036_v31 = vpop.xlane.xlu2 %3035 }
 0x7fb   : > { %7883 = vrcp.f32 %v3036_v31  ;;  %3558 = vrot.lane.b32.xlu1 %v12926_v58, %s8325_s7  ;;  %v3234_v13 = vand.u32 2147483648, %v3036_v31  ;;  %v3232_v24 = vand.u32 2147483647, %v3036_v31  ;;  %vm3228_vm10 = vweird.f32 %v3036_v31  ;;  %s8330_s7 = smov 68  }
 0x7fd   : > { %v3235_v28 = vor.u32 1.1754944e-38, %v3234_v13  ;;  %vm3233_vm12 = vcmp.eq.f32.partialorder %v3232_v24, 8.507059e+37 }
 0x7fe   : > { %3380 = vmatmul.f32.gmra.mxu3 %v3222_v60  ;;  %v10784_v60 = vpop.permute.xlu0 %4332 }
 0x7ff   : > { %v3366_v63 = vpop.f32.mrf.mxu3 }
 0x800   : > { %4346 = vrot.lane.b32.xlu2 %v12970_v33, %s8326_s20  ;;  %7023 = vmatmul.msk.f32.gmra.mxu0 %vm462_vm1, %v3366_v63  ;;  %s8327_s20 = smov 48  }
 0x801   : > { %v7884_v32 = vpop.eup %7883 }
 0x802   : > { %v3224_v14 = vmul.f32 %v7884_v32, %v3036_v31  ;;  %v3541_v18 = vpop.permute.xlu1 %3540  ;;  %vm3229_vm9 = vweird.f32 %v7884_v32  ;;  %v3545_v3 = vpop.permute.xlu2 %3544  ;;  %v10789_v31 = vld [vmem:[%s12748_s5] sm:$0xff] }
 0x803   : > { %7055 = vmatmul.msk.f32.gmra.mxu2 %vm462_vm1, %v3541_v18  ;;  %vm3230_vm11 = vmor %vm3228_vm10, %vm3229_vm9  ;;  %v10793_v63 = vadd.f32 %v10789_v31, %v10745_v17 }
 0x804   : > { %v3225_v50 = vsub.f32 1.0, %v3224_v14 }
 0x806   : > { %v3226_v34 = vmul.f32 %v7884_v32, %v3225_v50  ;;  %v3040_v14 = vpop.xlane.xlu0 %3039 }
 0x807   : > { %v3369_v46 = vpop.f32.mrf.mxu3  ;;  %7885 = vrcp.f32 %v3040_v14  ;;  %vm3258_vm5 = vweird.f32 %v3040_v14 }
 0x808   : > { %7024 = vmatmul.msk.f32.gmra.mxu0 %vm462_vm1, %v3369_v46  ;;  %v3227_v48 = vadd.f32 %v7884_v32, %v3226_v34 }
 0x80a   : > { %v3231_v11 = vsel %vm3230_vm11, %v7884_v32, %v3227_v48  ;;  %v3679_v32 = vpop.f32.mrf.mxu2 }
 0x80b   : > { %7056 = vmatmul.msk.f32.gmra.mxu2 %vm462_vm1, %v3543_v52  ;;  %v3236_v9 = vsel %vm3233_vm12, %v3235_v28, %v3231_v11 }
 0x80c   : > { %v3237_v1 = vmul.f32 %v10677_v25, %v3236_v9  ;;  %v8177_v25 = vld [vmem:[%s12748_s5 + $0x10] sm:$0xff] }
 0x80d   : > { %v10799_v18 = vadd.f32 %v8177_v25, %v3679_v32  ;;  %v7886_v13 = vpop.eup %7885 }
 0x80e   : > { %3383 = vmatmul.f32.gmra.mxu3 %v3237_v1  ;;  %v3254_v34 = vmul.f32 %v7886_v13, %v3040_v14  ;;  %vm3259_vm4 = vweird.f32 %v7886_v13 }
 0x80f   : > { %vm3260_vm6 = vmor %vm3258_vm5, %vm3259_vm4 }
 0x810   : > { %v3255_v17 = vsub.f32 1.0, %v3254_v34 }
 0x812   : > { %v3256_v1 = vmul.f32 %v7886_v13, %v3255_v17 }
 0x813   : > { %7057 = vmatmul.msk.f32.gmra.mxu2 %vm462_vm1, %v3545_v3  ;;  %v10803_v3 = vpop.permute.xlu2 %4334 }
 0x825   : > { %3721 = vmax.xlane.f32.xlu1 %v10793_v63 }
 0x829   : > { %3725 = vmax.xlane.f32.xlu2 %v10799_v18 }
 0x82d   : > { %v3038_v50 = vpop.xlane.xlu1 %3037 }
 0x82e   : > { %7887 = vrcp.f32 %v3038_v50  ;;  %v3249_v52 = vand.u32 2147483648, %v3038_v50  ;;  %v3247_v9 = vand.u32 2147483647, %v3038_v50  ;;  %vm3243_vm14 = vweird.f32 %v3038_v50 }
 0x830   : > { %vm3248_vm3 = vcmp.eq.f32.partialorder %v3247_v9, 8.507059e+37 }
 0x834   : > { %v7888_v24 = vpop.eup %7887 }
 0x835   : > { %v3239_v46 = vmul.f32 %v7888_v24, %v3038_v50  ;;  %vm3244_vm13 = vweird.f32 %v7888_v24  ;;  %v3262_v50 = vand.u32 2147483647, %v3040_v14 }
 0x836   : > { %v3372_v48 = vpop.f32.mrf.mxu3  ;;  %vm3245_vm15 = vmor %vm3243_vm14, %vm3244_vm13 }
 0x837   : > { %v3240_v28 = vsub.f32 1.0, %v3239_v46  ;;  %7025 = vmatmul.msk.f32.gmra.mxu0 %vm462_vm1, %v3372_v48  ;;  %v3250_v46 = vor.u32 1.1754944e-38, %v3249_v52  ;;  %v3257_v48 = vadd.f32 %v7886_v13, %v3256_v1  ;;  %vm3263_vm7 = vcmp.eq.f32.partialorder %v3262_v50, 8.507059e+37 }
 0x839   : > { %v3241_v11 = vmul.f32 %v7888_v24, %v3240_v28  ;;  %v3264_v28 = vand.u32 2147483648, %v3040_v14 }
 0x83b   : > { %v3682_v32 = vpop.f32.mrf.mxu2  ;;  %v3242_v25 = vadd.f32 %v7888_v24, %v3241_v11  ;;  %v3261_v11 = vsel %vm3260_vm6, %v7886_v13, %v3257_v48  ;;  %v3265_v0 = vor.u32 1.1754944e-38, %v3264_v28 }
 0x83c   : > { %v10808_v34 = vadd.f32 %v8178_v44, %v3682_v32 }
 0x83d   : > { %v3246_v20 = vsel %vm3245_vm15, %v7888_v24, %v3242_v25  ;;  %v8179_v24 = vld [vmem:[%s12748_s5 + $0x20] sm:$0xff]  ;;  %v8180_v25 = vld [vmem:[%s12748_s5 + $0x28] sm:$0xff] }
 0x83e   : > { %3727 = vmax.xlane.f32.xlu1 %v10808_v34  ;;  %v3251_v17 = vsel %vm3248_vm3, %v3250_v46, %v3246_v20  ;;  %v3266_v20 = vsel %vm3263_vm7, %v3265_v0, %v3261_v11 }
 0x83f   : > { %v3252_v19 = vmul.f32 %v10721_v12, %v3251_v17  ;;  %v3267_v12 = vmul.f32 %v10675_v8, %v3266_v20  ;;  %v3549_v20 = vpop.permute.xlu0 %3548 }
 0x841   : > { %3386 = vmatmul.f32.gmra.mxu3 %v3252_v19 }
 0x843   : > { %v3685_v44 = vpop.f32.mrf.mxu2  ;;  %v3042_v32 = vpop.xlane.xlu2 %3041 }
 0x844   : > { %v10815_v52 = vadd.f32 %v8179_v24, %v3685_v44  ;;  %7889 = vrcp.f32 %v3042_v32  ;;  %v3279_v8 = vand.u32 2147483648, %v3042_v32  ;;  %v3277_v28 = vand.u32 2147483647, %v3042_v32 }
 0x845   : > { %v10817_v9 = vpop.permute.xlu1 %4330  ;;  %vm3273_vm9 = vweird.f32 %v3042_v32 }
 0x846   : > { %3729 = vmax.xlane.f32.xlu0 %v10815_v52  ;;  %v3280_v11 = vor.u32 1.1754944e-38, %v3279_v8  ;;  %vm3278_vm11 = vcmp.eq.f32.partialorder %v3277_v28, 8.507059e+37  ;;  %v12974_v28 = vld [vmem:[#allocation12_spill] sm:$0xff] }
 0x848   : > { %v3375_v19 = vpop.f32.mrf.mxu3 }
 0x849   : > { %3389 = vmatmul.f32.gmra.mxu3 %v3267_v12  ;;  %7026 = vmatmul.msk.f32.gmra.mxu0 %vm462_vm1, %v3375_v19  ;;  %v12971_v19 = vld [vmem:[#allocation27_spill] sm:$0xff] }
 0x84a   : > { %v7890_v14 = vpop.eup %7889 }
 0x84b   : > { %v3269_v13 = vmul.f32 %v7890_v14, %v3042_v32  ;;  %v3688_v1 = vpop.f32.mrf.mxu2  ;;  %vm3274_vm8 = vweird.f32 %v7890_v14  ;;  %v3551_v32 = vpop.permute.xlu2 %3550 }
 0x84c   : > { %v10825_v46 = vadd.f32 %v8180_v25, %v3688_v1  ;;  %vm3275_vm10 = vmor %vm3273_vm9, %vm3274_vm8 }
 0x84d   : > { %v3270_v0 = vsub.f32 1.0, %v3269_v13  ;;  %v3547_v48 = vpop.permute.xlu1 %3546  ;;  %v12972_v13 = vld [vmem:[#allocation30_spill] sm:$0xff] }
 0x84e   : > { %7058 = vmatmul.msk.f32.gmra.mxu2 %vm462_vm1, %v3547_v48  ;;  %3731 = vmax.xlane.f32.xlu2 %v10825_v46 }
 0x84f   : > { %v3271_v17 = vmul.f32 %v7890_v14, %v3270_v0 }
 0x851   : > { %v3272_v50 = vadd.f32 %v7890_v14, %v3271_v17 }
 0x853   : > { %v3276_v44 = vsel %vm3275_vm10, %v7890_v14, %v3272_v50  ;;  %v12973_v14 = vld [vmem:[#allocation26_spill] sm:$0xff]  ;;  %v10847_v0 = vpop.permute.xlu2 %4340 }
 0x854   : > { %v3281_v24 = vsel %vm3278_vm11, %v3280_v11, %v3276_v44  ;;  %v12975_v44 = vld [vmem:[#allocation16_spill] sm:$0xff] }
 0x855   : > { %v3282_v12 = vmul.f32 %v10738_v49, %v3281_v24  ;;  %v10835_v1 = vpop.permute.xlu1 %4336  ;;  %v10842_v49 = vpop.permute.xlu0 %4338 }
 0x856   : > { %7059 = vmatmul.msk.f32.gmra.mxu2 %vm462_vm1, %v3549_v20 }
 0x857   : > { %7484 = vrot.lane.b32.xlu1 %v12971_v19, %s8327_s20  ;;  %3392 = vmatmul.f32.gmra.mxu3 %v3282_v12  ;;  %v10865_v12 = vld [vmem:[%s12748_s5 + $0x30] sm:$0xff] }
 0x85a   : > { %7474 = vrot.lane.b32.xlu0 %v12972_v13, %s8327_s20 }
 0x85b   : > { %v3557_v17 = vpop.permute.xlu2 %3556 }
 0x85d   : > { %v3553_v25 = vpop.permute.xlu1 %3552  ;;  %v3555_v48 = vpop.permute.xlu0 %3554 }
 0x85e   : > { %7060 = vmatmul.msk.f32.gmra.mxu2 %vm462_vm1, %v3551_v32 }
 0x85f   : > { %7499 = vrot.lane.b32.xlu1 %v12973_v14, %s8328_s8 }
 0x862   : > { %7489 = vrot.lane.b32.xlu0 %v12971_v19, %s8328_s8 }
 0x865   : > { %v10852_v8 = vpop.permute.xlu1 %4342 }
 0x866   : > { %7061 = vmatmul.msk.f32.gmra.mxu2 %vm462_vm1, %v3553_v25  ;;  %7479 = vrot.lane.b32.xlu2 %v12972_v13, %s8328_s8  ;;  %v10871_v25 = vpop.permute.xlu0 %4344 }
 0x86d   : > { %v3559_v11 = vpop.permute.xlu1 %3558 }
 0x86e   : > { %7062 = vmatmul.msk.f32.gmra.mxu2 %vm462_vm1, %v3555_v48  ;;  %7494 = vrot.lane.b32.xlu2 %v12973_v14, %s8327_s20 }
 0x876   : > { %7063 = vmatmul.msk.f32.gmra.mxu2 %vm462_vm1, %v3557_v17  ;;  %7509 = vrot.lane.b32.xlu2 %v12974_v28, %s8328_s8 }
 0x879   : > { %v3378_v50 = vpop.f32.mrf.mxu3 }
 0x87a   : > { %7027 = vmatmul.msk.f32.gmra.mxu0 %vm462_vm1, %v3378_v50 }
 0x87e   : > { %7064 = vmatmul.msk.f32.gmra.mxu2 %vm462_vm1, %v3559_v11  ;;  %7539 = vrot.lane.b32.xlu2 %v12975_v44, %s8328_s8  ;;  %v10875_v11 = vpop.permute.xlu0 %4348 }
 0x881   : > { %v3381_v24 = vpop.f32.mrf.mxu3 }
 0x882   : > { %7028 = vmatmul.msk.f32.gmra.mxu0 %vm462_vm1, %v3381_v24 }
 0x886   : > { %v3691_v20 = vpop.f32.mrf.mxu2  ;;  %v3724_v6 = vpop.xlane.xlu0 %3723 }
 0x887   : > { %v10868_v32 = vadd.f32 %v10865_v12, %v3691_v20  ;;  %v3754_v42 = vsub.f32 %v10752_v51, %v3724_v6  ;;  %v10896_v6 = vpop.permute.xlu2 %4346 }
 0x889   : > { %v3771_v59 = vmul.f32 1.442695, %v3754_v42  ;;  %v12977_v42 = vld [vmem:[#allocation20_spill] sm:$0xff] }
 0x88c   : > { %3733 = vmax.xlane.f32.xlu0 %v10868_v32 }
 0x88e   : > { %v3694_v21 = vpop.f32.mrf.mxu2 }
 0x891   : > { %v3384_v48 = vpop.f32.mrf.mxu3 }
 0x892   : > { %7029 = vmatmul.msk.f32.gmra.mxu0 %vm462_vm1, %v3384_v48  ;;  %v12976_v48 = vld [vmem:[#allocation32_spill] sm:$0xff] }
 0x896   : > { %v3697_v22 = vpop.f32.mrf.mxu2 }
 0x898   : > { %v3722_v17 = vpop.xlane.xlu1 %3721 }
 0x899   : > { %v3753_v50 = vsub.f32 %v10793_v63, %v3722_v17  ;;  %v10888_v63 = vld [vmem:[%s12748_s5 + $0x38] sm:$0xff] }
 0x89a   : > { %v10891_v17 = vadd.f32 %v10888_v63, %v3694_v21 }
 0x89b   : > { %v3769_v24 = vmul.f32 1.442695, %v3753_v50 }
 0x89c   : > { %v3726_v50 = vpop.xlane.xlu2 %3725 }
 0x89d   : > { %7891 = vpow2.f32 %v3769_v24 }
 0x89e   : > { %7893 = vpow2.f32 %v3771_v59 }
 0x8a0   : > { %7504 = vrot.lane.b32.xlu0 %v12974_v28, %s8327_s20 }
 0x8a3   : > { %v10879_v20 = vpop.eup %7891 }
 0x8a4   : > { %3801 = vadd.xlane.f32.xlu1 %v10879_v20  ;;  %v10898_v51 = vpop.eup %7893 }
 0x8a8   : > { %7514 = vrot.lane.b32.xlu0 %v12976_v48, %s8327_s20 }
 0x8ac   : > { %3735 = vmax.xlane.f32.xlu1 %v10891_v17 }
 0x8b0   : > { %7519 = vrot.lane.b32.xlu0 %v12976_v48, %s8328_s8 }
 0x8b1   : > { %v10905_v21 = vpop.xlane.xlu1 %3727 }
 0x8b4   : > { %3803 = vadd.xlane.f32.xlu1 %v10898_v51 }
 0x8b8   : > { %7524 = vrot.lane.b32.xlu0 %v12977_v42, %s8327_s20 }
 0x8b9   : > { %v10907_v23 = vpop.xlane.xlu0 %3729 }
 0x8c1   : > { %v10903_v24 = vpop.xlane.xlu2 %3731 }
 0x8c4   : > { %v3387_v59 = vpop.f32.mrf.mxu3 }
 0x8c5   : > { %7030 = vmatmul.msk.f32.gmra.mxu0 %vm462_vm1, %v3387_v59 }
 0x8c9   : > { %v7480_v2 = vpop.permute.xlu2 %7479  ;;  %v7485_v55 = vpop.permute.xlu1 %7484 }
 0x8ca   : > { %v7481_v54 = vunpack.i.l.bf16 %v7480_v2  ;;  %v7482_v37 = vunpack.i.h.bf16 %v7480_v2  ;;  %v7486_v53 = vunpack.i.l.bf16 %v7485_v55  ;;  %v7487_v48 = vunpack.i.h.bf16 %v7485_v55 }
 0x8cc   : > { %v3390_v39 = vpop.f32.mrf.mxu3  ;;  %4911 = vmatpush.msrb.mxu2 %v7481_v54  ;;  %v7475_v36 = vpop.permute.xlu0 %7474 }
 0x8cd   : > { %v7476_v29 = vunpack.i.l.bf16 %v7475_v36  ;;  %7031 = vmatmul.msk.f32.gmra.mxu0 %vm462_vm1, %v3390_v39  ;;  %7529 = vrot.lane.b32.xlu1 %v12977_v42, %s8328_s8  ;;  %v7477_v35 = vunpack.i.h.bf16 %v7475_v36 }
 0x8ce   : > { %4912 = vmatpush.msrb.mxu2 %v7482_v37 }
 0x8cf   : > { %4121 = vmatpush.msrb.mxu1 %v7476_v29 }
 0x8d1   : > { %v3700_v7 = vpop.f32.mrf.mxu2  ;;  %v7495_v59 = vpop.permute.xlu2 %7494  ;;  %4122 = vmatpush.msrb.mxu1 %v7477_v35 }
 0x8d2   : > { %v7496_v2 = vunpack.i.l.bf16 %v7495_v59  ;;  %v7500_v39 = vpop.permute.xlu1 %7499  ;;  %v7497_v54 = vunpack.i.h.bf16 %v7495_v59 }
 0x8d3   : > { %4123 = vmatpush.msrb.mxu1 %v7486_v53  ;;  %v7501_v36 = vunpack.i.l.bf16 %v7500_v39  ;;  %v3755_v53 = vsub.f32 %v10799_v18, %v3726_v50  ;;  %v7502_v55 = vunpack.i.h.bf16 %v7500_v39  ;;  %v10955_v39 = vld [vmem:[%s12748_s5 + $0x48] sm:$0xff] }
 0x8d4   : > { %v7490_v14 = vpop.permute.xlu0 %7489 }
 0x8d5   : > { %v7491_v28 = vunpack.i.l.bf16 %v7490_v14  ;;  %7534 = vrot.lane.b32.xlu1 %v12975_v44, %s8327_s20  ;;  %4124 = vmatpush.msrb.mxu1 %v7487_v48  ;;  %v7492_v13 = vunpack.i.h.bf16 %v7490_v14  ;;  %v3773_v48 = vmul.f32 1.442695, %v3755_v53  ;;  %v10920_v14 = vld [vmem:[%s12748_s5 + $0x40] sm:$0xff] }
 0x8d7   : > { %4125 = vmatpush.msrb.mxu1 %v7496_v2  ;;  %4913 = vmatpush.msrb.mxu2 %v7491_v28  ;;  %7895 = vpow2.f32 %v3773_v48 }
 0x8d9   : > { %v3703_v29 = vpop.f32.mrf.mxu2  ;;  %4126 = vmatpush.msrb.mxu1 %v7497_v54  ;;  %4914 = vmatpush.msrb.mxu2 %v7492_v13  ;;  %v7510_v37 = vpop.permute.xlu2 %7509  ;;  %v10923_v13 = vadd.f32 %v10920_v14, %v3697_v22  ;;  %v12980_v54 = vld [vmem:[#allocation13_spill] sm:$0xff] }
 0x8da   : > { %v3393_v35 = vpop.f32.mrf.mxu3  ;;  %v7511_v42 = vunpack.i.l.bf16 %v7510_v37  ;;  %v7512_v44 = vunpack.i.h.bf16 %v7510_v37  ;;  %v10939_v22 = vpop.f32.mrf.mxu0 }
 0x8db   : > { %4915 = vmatpush.msrb.mxu2 %v7501_v36  ;;  %7032 = vmatmul.msk.f32.gmra.mxu0 %vm462_vm1, %v3393_v35  ;;  %12978 = vst [vmem:[#allocation23_spill] sm:$0xff] %v10939_v22 }
 0x8dd   : > { %4916 = vmatpush.msrb.mxu2 %v7502_v55  ;;  %v10928_v18 = vpop.eup %7895 }
 0x8df   : > { %4917 = vmatpush.msrb.mxu2 %v7511_v42  ;;  %v10933_v42 = vld [vmem:[%s12748_s5 + $0x60] sm:$0xff] }
 0x8e1   : > { %v3706_v28 = vpop.f32.mrf.mxu2  ;;  %4918 = vmatpush.msrb.mxu2 %v7512_v44  ;;  %v3756_v44 = vsub.f32 %v10808_v34, %v10905_v21 }
 0x8e2   : > { %3737 = vmax.xlane.f32.xlu0 %v10923_v13 }
 0x8e3   : > { %7098 = vmatmul.msk.f32.vlgmr.msra.gmra.mxu0 %vm462_vm1, %v10689_v43  ;;  %v10946_v43 = vpop.f32.mrf.mxu0  ;;  %v3775_v2 = vmul.f32 1.442695, %v3756_v44 }
 0x8e4   : > { %12979 = vst [vmem:[#allocation27_spill] sm:$0xff] %v10946_v43 }
 0x8e5   : > { %7897 = vpow2.f32 %v3775_v2 }
 0x8e9   : > { %v3709_v50 = vpop.f32.mrf.mxu2 }
 0x8ea   : > { %v10936_v59 = vadd.f32 %v10933_v42, %v3709_v50  ;;  %3805 = vadd.xlane.f32.xlu0 %v10928_v18 }
 0x8eb   : > { %7099 = vmatmul.msk.f32.gmra.mxu0 %vm462_vm1, %v10718_v38  ;;  %v10958_v38 = vadd.f32 %v10955_v39, %v3700_v7  ;;  %v3757_v7 = vsub.f32 %v10815_v52, %v10907_v23 }
 0x8ec   : > { %3745 = vmax.xlane.f32.xlu2 %v10936_v59 }
 0x8ed   : > { %v3777_v36 = vmul.f32 1.442695, %v3757_v7  ;;  %v11004_v7 = vld [vmem:[%s12748_s5 + $0x58] sm:$0xff] }
 0x8ef   : > { %7899 = vpow2.f32 %v3777_v36  ;;  %v11007_v36 = vadd.f32 %v11004_v7, %v3706_v28 }
 0x8f1   : > { %v3712_v50 = vpop.f32.mrf.mxu2 }
 0x8f3   : > { %7100 = vmatmul.msk.f32.gmra.mxu0 %vm462_vm1, %v10706_v10  ;;  %v10962_v10 = vpop.f32.mrf.mxu0 }
 0x8f4   : > { %12981 = vst [vmem:[#allocation67_spill] sm:$0xff] %v10962_v10 }
 0x8f9   : > { %v3715_v28 = vpop.f32.mrf.mxu2 }
 0x8fb   : > { %7101 = vmatmul.msk.f32.gmra.mxu0 %vm462_vm1, %v10771_v56  ;;  %v10967_v56 = vpop.eup %7897  ;;  %v10974_v34 = vpop.f32.mrf.mxu0 }
 0x8fc   : > { %12982 = vst [vmem:[#allocation68_spill] sm:$0xff] %v10974_v34  ;;  %v10991_v53 = vpop.eup %7899 }
 0x8fe   : > { %7544 = vrot.lane.b32.xlu0 %v12980_v54, %s8327_s20  ;;  %s8332_s20 = smov 100  }
 0x8ff   : > { %3739 = vmax.xlane.f32.xlu1 %v10958_v38  ;;  %v3734_v21 = vpop.xlane.xlu0 %3733 }
 0x903   : > { %7102 = vmatmul.msk.f32.gmra.mxu0 %vm462_vm1, %v10741_v41  ;;  %v10981_v41 = vld [vmem:[%s12748_s5 + $0x50] sm:$0xff]  ;;  %v10987_v35 = vpop.f32.mrf.mxu0 }
 0x904   : > { %v10984_v37 = vadd.f32 %v10981_v41, %v3703_v29  ;;  %12983 = vst [vmem:[#allocation69_spill] sm:$0xff] %v10987_v35  ;;  %v3759_v29 = vsub.f32 %v10868_v32, %v3734_v21 }
 0x906   : > { %7549 = vrot.lane.b32.xlu0 %v12980_v54, %s8328_s8 }
 0x907   : > { %3807 = vadd.xlane.f32.xlu1 %v10967_v56 }
 0x90b   : > { %7103 = vmatmul.msk.f32.gmra.mxu0 %vm462_vm1, %v10764_v45  ;;  %v10997_v48 = vpop.f32.mrf.mxu0 }
 0x90c   : > { %12984 = vst [vmem:[#allocation70_spill] sm:$0xff] %v10997_v48 }
 0x90f   : > { %3741 = vmax.xlane.f32.xlu1 %v10984_v37 }
 0x912   : > { %v7505_v23 = vpop.permute.xlu0 %7504 }
 0x913   : > { %v7506_v52 = vunpack.i.l.bf16 %v7505_v23  ;;  %7104 = vmatmul.msk.f32.gmra.mxu0 %vm462_vm1, %v10817_v9  ;;  %v7507_v45 = vunpack.i.h.bf16 %v7505_v23  ;;  %v3781_v9 = vmul.f32 1.442695, %v3759_v29 }
 0x915   : > { %4127 = vmatpush.msrb.mxu1 %v7506_v52  ;;  %7901 = vpow2.f32 %v3781_v9  ;;  %v11013_v52 = vpop.f32.mrf.mxu0 }
 0x916   : > { %12985 = vst [vmem:[#allocation71_spill] sm:$0xff] %v11013_v52 }
 0x917   : > { %3809 = vadd.xlane.f32.xlu1 %v10991_v53  ;;  %v10994_v55 = vpop.xlane.xlu1 %3801  ;;  %4128 = vmatpush.msrb.mxu1 %v7507_v45 }
 0x918   : > { %vm3838_vm13 = vweird.f32 %v10994_v55 }
 0x91a   : > { %v7515_v44 = vpop.permute.xlu0 %7514 }
 0x91b   : > { %v7516_v2 = vunpack.i.l.bf16 %v7515_v44  ;;  %7105 = vmatmul.msk.f32.gmra.mxu0 %vm462_vm1, %v10784_v60  ;;  %v7517_v23 = vunpack.i.h.bf16 %v7515_v44  ;;  %v3758_v60 = vsub.f32 %v10825_v46, %v10903_v24 }
 0x91d   : > { %4129 = vmatpush.msrb.mxu1 %v7516_v2  ;;  %v3779_v44 = vmul.f32 1.442695, %v3758_v60 }
 0x91f   : > { %3743 = vmax.xlane.f32.xlu1 %v11007_v36  ;;  %v3736_v32 = vpop.xlane.xlu1 %3735  ;;  %4130 = vmatpush.msrb.mxu1 %v7517_v23  ;;  %v11017_v23 = vpop.eup %7901 }
 0x920   : > { %v3760_v21 = vsub.f32 %v10891_v17, %v3736_v32 }
 0x922   : > { %v3783_v45 = vmul.f32 1.442695, %v3760_v21  ;;  %v7520_v29 = vpop.permute.xlu0 %7519  ;;  %v3718_v21 = vpop.f32.mrf.mxu2 }
 0x923   : > { %v7521_v48 = vunpack.i.l.bf16 %v7520_v29  ;;  %7106 = vmatmul.msk.f32.gmra.mxu0 %vm462_vm1, %v10803_v3  ;;  %v7522_v2 = vunpack.i.h.bf16 %v7520_v29  ;;  %v11025_v3 = vpop.f32.mrf.mxu0 }
 0x924   : > { %7903 = vpow2.f32 %v3783_v45  ;;  %12986 = vst [vmem:[#allocation72_spill] sm:$0xff] %v11025_v3 }
 0x925   : > { %4919 = vmatpush.msrb.mxu2 %v7521_v48  ;;  %7905 = vpow2.f32 %v3779_v44  ;;  %v11030_v48 = vld [vmem:[%s12748_s5 + $0x70] sm:$0xff] }
 0x926   : > { %v11033_v9 = vadd.f32 %v11030_v48, %v3715_v28  ;;  %v11055_v28 = vld [vmem:[%s12748_s5 + $0x68] sm:$0xff]  ;;  %7907 = vrcp.f32 %v10994_v55 }
 0x927   : > { %3813 = vadd.xlane.f32.xlu1 %v11017_v23  ;;  %4920 = vmatpush.msrb.mxu2 %v7522_v2  ;;  %v11058_v44 = vadd.f32 %v11055_v28, %v3712_v50  ;;  %v11060_v2 = vpop.xlane.xlu1 %3803 }
 0x928   : > { %vm3853_vm4 = vweird.f32 %v11060_v2 }
 0x92a   : > { %v11020_v46 = vpop.eup %7903  ;;  %v7525_v17 = vpop.permute.xlu0 %7524 }
 0x92b   : > { %v7526_v24 = vunpack.i.l.bf16 %v7525_v17  ;;  %3815 = vadd.xlane.f32.xlu2 %v11020_v46  ;;  %7107 = vmatmul.msk.f32.gmra.mxu0 %vm462_vm1, %v10835_v1  ;;  %v7527_v32 = vunpack.i.h.bf16 %v7525_v17  ;;  %v11035_v60 = vpop.eup %7905  ;;  %v11042_v1 = vld [vmem:[%s12748_s5 + $0x78] sm:$0xff]  ;;  %v11050_v29 = vpop.f32.mrf.mxu0 }
 0x92c   : > { %v11045_v45 = vadd.f32 %v11042_v1, %v3718_v21  ;;  %12987 = vst [vmem:[#allocation73_spill] sm:$0xff] %v11050_v29 }
 0x92d   : > { %4131 = vmatpush.msrb.mxu1 %v7526_v24 }
 0x92f   : > { %3749 = vmax.xlane.f32.xlu1 %v11033_v9  ;;  %4132 = vmatpush.msrb.mxu1 %v7527_v32  ;;  %v7540_v32 = vpop.permute.xlu2 %7539 }
 0x930   : > { %3811 = vadd.xlane.f32.xlu0 %v11035_v60  ;;  %v7541_v29 = vunpack.i.l.bf16 %v7540_v32  ;;  %v7542_v3 = vunpack.i.h.bf16 %v7540_v32 }
 0x933   : > { %3751 = vmax.xlane.f32.xlu2 %v11045_v45  ;;  %7108 = vmatmul.msk.f32.gmra.mxu0 %vm462_vm1, %v10842_v49  ;;  %v11065_v17 = vpop.f32.mrf.mxu0 }
 0x934   : > { %12988 = vst [vmem:[#allocation74_spill] sm:$0xff] %v11065_v17 }
 0x938   : > { %3747 = vmax.xlane.f32.xlu0 %v11058_v44 }
 0x93b   : > { %7109 = vmatmul.msk.f32.gmra.mxu0 %vm462_vm1, %v10847_v0  ;;  %v11069_v50 = vpop.f32.mrf.mxu0 }
 0x93c   : > { %12989 = vst [vmem:[#allocation75_spill] sm:$0xff] %v11069_v50 }
 0x93f   : > { %v7530_v49 = vpop.permute.xlu1 %7529 }
 0x940   : > { %v7531_v24 = vunpack.i.l.bf16 %v7530_v49  ;;  %v7532_v21 = vunpack.i.h.bf16 %v7530_v49 }
 0x942   : > { %4921 = vmatpush.msrb.mxu2 %v7531_v24 }
 0x943   : > { %7110 = vmatmul.msk.f32.gmra.mxu0 %vm462_vm1, %v10852_v8  ;;  %v11073_v49 = vpop.f32.mrf.mxu0 }
 0x944   : > { %4922 = vmatpush.msrb.mxu2 %v7532_v21  ;;  %12990 = vst [vmem:[#allocation76_spill] sm:$0xff] %v11073_v49 }
 0x946   : > { %4923 = vmatpush.msrb.mxu2 %v7541_v29 }
 0x947   : > { %v7535_v52 = vpop.permute.xlu1 %7534 }
 0x948   : > { %v7536_v35 = vunpack.i.l.bf16 %v7535_v52  ;;  %4924 = vmatpush.msrb.mxu2 %v7542_v3  ;;  %v7537_v0 = vunpack.i.h.bf16 %v7535_v52  ;;  %v7908_v52 = vpop.eup %7907 }
 0x949   : > { %vm3839_vm12 = vweird.f32 %v7908_v52 }
 0x94a   : > { %4133 = vmatpush.msrb.mxu1 %v7536_v35  ;;  %vm3840_vm14 = vmor %vm3838_vm13, %vm3839_vm12 }
 0x94b   : > { %7111 = vmatmul.msk.f32.gmra.mxu0 %vm462_vm1, %v10871_v25  ;;  %v11078_v24 = vpop.f32.mrf.mxu0  ;;  %v3834_v25 = vmul.f32 %v7908_v52, %v10994_v55 }
 0x94c   : > { %4134 = vmatpush.msrb.mxu1 %v7537_v0  ;;  %12991 = vst [vmem:[#allocation77_spill] sm:$0xff] %v11078_v24 }
 0x94d   : > { %v3835_v3 = vsub.f32 1.0, %v3834_v25  ;;  %v3842_v25 = vand.u32 2147483647, %v10994_v55 }
 0x94f   : > { %v3836_v0 = vmul.f32 %v7908_v52, %v3835_v3  ;;  %vm3843_vm15 = vcmp.eq.f32.partialorder %v3842_v25, 8.507059e+37 }
 0x953   : > { %7112 = vmatmul.msk.f32.gmra.mxu0 %vm462_vm1, %v10896_v6  ;;  %v11085_v35 = vpop.f32.mrf.mxu0 }
 0x954   : > { %12992 = vst [vmem:[#allocation78_spill] sm:$0xff] %v11085_v35  ;;  %v3844_v35 = vand.u32 2147483648, %v10994_v55 }
 0x955   : > { %v3738_v8 = vpop.xlane.xlu0 %3737 }
 0x956   : > { %v3761_v29 = vsub.f32 %v10923_v13, %v3738_v8  ;;  %v3845_v17 = vor.u32 1.1754944e-38, %v3844_v35  ;;  %v3857_v35 = vand.u32 2147483647, %v11060_v2 }
 0x958   : > { %v3785_v32 = vmul.f32 1.442695, %v3761_v29  ;;  %v3837_v29 = vadd.f32 %v7908_v52, %v3836_v0  ;;  %vm3858_vm6 = vcmp.eq.f32.partialorder %v3857_v35, 8.507059e+37 }
 0x95a   : > { %7909 = vpow2.f32 %v3785_v32  ;;  %v3841_v49 = vsel %vm3840_vm14, %v7908_v52, %v3837_v29  ;;  %v3859_v52 = vand.u32 2147483648, %v11060_v2 }
 0x95b   : > { %7113 = vmatmul.msk.f32.gmra.mxu0 %vm462_vm1, %v10875_v11  ;;  %7911 = vrcp.f32 %v11060_v2  ;;  %v11094_v11 = vpop.f32.mrf.mxu0  ;;  %v3846_v34 = vsel %vm3843_vm15, %v3845_v17, %v3841_v49 }
 0x95c   : > { %12993 = vst [vmem:[#allocation79_spill] sm:$0xff] %v11094_v11 }
 0x95d   : > { %v11090_v21 = vpop.xlane.xlu0 %3805 }
 0x95e   : > { %7913 = vrcp.f32 %v11090_v21  ;;  %vm3868_vm8 = vweird.f32 %v11090_v21 }
 0x95f   : > { %v3746_v29 = vpop.xlane.xlu2 %3745 }
 0x960   : > { %v11087_v6 = vpop.eup %7909  ;;  %v3765_v49 = vsub.f32 %v10936_v59, %v3746_v29 }
 0x961   : > { %3817 = vadd.xlane.f32.xlu0 %v11087_v6  ;;  %v7912_v13 = vpop.eup %7911 }
 0x962   : > { %v3849_v8 = vmul.f32 %v7912_v13, %v11060_v2  ;;  %vm3854_vm3 = vweird.f32 %v7912_v13 }
 0x963   : > { %v11103_v11 = vpop.f32.mrf.mxu0  ;;  %vm3855_vm5 = vmor %vm3853_vm4, %vm3854_vm3 }
 0x964   : > { %v3850_v32 = vsub.f32 1.0, %v3849_v8  ;;  %v11096_v24 = vpop.eup %7913  ;;  %12994 = vst [vmem:[#allocation80_spill] sm:$0xff] %v11103_v11 }
 0x965   : > { %v3864_v3 = vmul.f32 %v11096_v24, %v11090_v21  ;;  %vm3869_vm7 = vweird.f32 %v11096_v24 }
 0x966   : > { %v3851_v50 = vmul.f32 %v7912_v13, %v3850_v32  ;;  %v3847_v32 = vmul.f32 %v10879_v20, %v3846_v34  ;;  %vm3870_vm9 = vmor %vm3868_vm8, %vm3869_vm7 }
 0x967   : > { %v3865_v10 = vsub.f32 1.0, %v3864_v3 }
 0x968   : > { %v3852_v22 = vadd.f32 %v7912_v13, %v3851_v50 }
 0x969   : > { %v3866_v50 = vmul.f32 %v11096_v24, %v3865_v10  ;;  %v3872_v10 = vand.u32 2147483647, %v11090_v21 }
 0x96a   : > { %v3856_v17 = vsel %vm3855_vm5, %v7912_v13, %v3852_v22  ;;  %v3874_v22 = vand.u32 2147483648, %v11090_v21 }
 0x96b   : > { %v11112_v20 = vpop.f32.mrf.mxu0  ;;  %v3867_v2 = vadd.f32 %v11096_v24, %v3866_v50  ;;  %vm3873_vm10 = vcmp.eq.f32.partialorder %v3872_v10, 8.507059e+37 }
 0x970   : > { %v7545_v0 = vpop.permute.xlu0 %7544 }
 0x971   : > { %v7546_v8 = vunpack.i.l.bf16 %v7545_v0  ;;  %v7547_v54 = vunpack.i.h.bf16 %v7545_v0 }
 0x972   : > { %v3740_v43 = vpop.xlane.xlu1 %3739 }
 0x973   : > { %v3762_v55 = vsub.f32 %v10958_v38, %v3740_v43  ;;  %4135 = vmatpush.msrb.mxu1 %v7546_v8  ;;  %v3860_v43 = vor.u32 1.1754944e-38, %v3859_v52  ;;  %v3875_v52 = vor.u32 1.1754944e-38, %v3874_v22 }
 0x975   : > { %v3787_v25 = vmul.f32 1.442695, %v3762_v55  ;;  %4136 = vmatpush.msrb.mxu1 %v7547_v54  ;;  %v3861_v0 = vsel %vm3858_vm6, %v3860_v43, %v3856_v17  ;;  %v3793_v54 = vmul.f32 1.442695, %v3765_v49  ;;  %v3871_v55 = vsel %vm3870_vm9, %v11096_v24, %v3867_v2  ;;  %v11125_v17 = vpop.f32.mrf.mxu0 }
 0x976   : > { %4137 = vmatmul.f32.vlgmr.msrb.gmra.mxu1 %v3847_v32  ;;  %v3862_v59 = vmul.f32 %v10898_v51, %v3861_v0  ;;  %v3876_v32 = vsel %vm3873_vm10, %v3875_v52, %v3871_v55 }
 0x977   : > { %7915 = vpow2.f32 %v3787_v25  ;;  %v3877_v50 = vmul.f32 %v10928_v18, %v3876_v32 }
 0x978   : > { %v7550_v38 = vpop.permute.xlu0 %7549 }
 0x979   : > { %v7551_v3 = vunpack.i.l.bf16 %v7550_v38  ;;  %v7552_v8 = vunpack.i.h.bf16 %v7550_v38 }
 0x97a   : > { %v3808_v34 = vpop.xlane.xlu1 %3807 }
 0x97b   : > { %7917 = vrcp.f32 %v3808_v34  ;;  %4925 = vmatpush.msrb.mxu2 %v7551_v3  ;;  %v3889_v38 = vand.u32 2147483648, %v3808_v34  ;;  %v3887_v3 = vand.u32 2147483647, %v3808_v34  ;;  %vm3883_vm12 = vweird.f32 %v3808_v34 }
 0x97c   : > { %7919 = vpow2.f32 %v3793_v54 }
 0x97d   : > { %v11120_v13 = vpop.eup %7915  ;;  %4926 = vmatpush.msrb.mxu2 %v7552_v8  ;;  %vm3888_vm14 = vcmp.eq.f32.partialorder %v3887_v3, 8.507059e+37 }
 0x97e   : > { %3819 = vadd.xlane.f32.xlu1 %v11120_v13  ;;  %4140 = vmatmul.f32.gmra.mxu1 %v3862_v59  ;;  %v11134_v59 = vpop.f32.mrf.mxu0 }
 0x981   : > { %v7918_v29 = vpop.eup %7917 }
 0x982   : > { %v3879_v35 = vmul.f32 %v7918_v29, %v3808_v34  ;;  %v3742_v51 = vpop.xlane.xlu1 %3741  ;;  %v11128_v49 = vpop.eup %7919  ;;  %vm3884_vm11 = vweird.f32 %v7918_v29 }
 0x983   : > { %v3763_v25 = vsub.f32 %v10984_v37, %v3742_v51  ;;  %vm3885_vm13 = vmor %vm3883_vm12, %vm3884_vm11  ;;  %v3890_v37 = vor.u32 1.1754944e-38, %v3889_v38 }
 0x984   : > { %v3880_v21 = vsub.f32 1.0, %v3879_v35 }
 0x985   : > { %v3789_v43 = vmul.f32 1.442695, %v3763_v25 }
 0x986   : > { %3825 = vadd.xlane.f32.xlu1 %v11128_v49  ;;  %4143 = vmatmul.f32.gmra.mxu1 %v3877_v50  ;;  %v3881_v24 = vmul.f32 %v7918_v29, %v3880_v21 }
 0x987   : > { %7921 = vpow2.f32 %v3789_v43 }
 0x988   : > { %v3882_v0 = vadd.f32 %v7918_v29, %v3881_v24 }
 0x98a   : > { %v3810_v2 = vpop.xlane.xlu1 %3809  ;;  %v3886_v54 = vsel %vm3885_vm13, %v7918_v29, %v3882_v0 }
 0x98b   : > { %7923 = vrcp.f32 %v3810_v2  ;;  %v3891_v18 = vsel %vm3888_vm14, %v3890_v37, %v3886_v54  ;;  %v3904_v29 = vand.u32 2147483648, %v3810_v2  ;;  %v3902_v25 = vand.u32 2147483647, %v3810_v2 }
 0x98c   : > { %v3892_v8 = vmul.f32 %v10967_v56, %v3891_v18  ;;  %v11138_v56 = vpop.f32.mrf.mxu0  ;;  %vm3898_vm3 = vweird.f32 %v3810_v2 }
 0x98d   : > { %v11132_v22 = vpop.eup %7921  ;;  %v3905_v50 = vor.u32 1.1754944e-38, %v3904_v29  ;;  %vm3903_vm5 = vcmp.eq.f32.partialorder %v3902_v25, 8.507059e+37 }
 0x98e   : > { %3821 = vadd.xlane.f32.xlu0 %v11132_v22  ;;  %4146 = vmatmul.f32.gmra.mxu1 %v3892_v8 }
 0x991   : > { %v7924_v10 = vpop.eup %7923 }
 0x992   : > { %v3894_v55 = vmul.f32 %v7924_v10, %v3810_v2  ;;  %v3744_v52 = vpop.xlane.xlu1 %3743  ;;  %vm3899_vm15 = vweird.f32 %v7924_v10 }
 0x993   : > { %v3764_v34 = vsub.f32 %v11007_v36, %v3744_v52  ;;  %vm3900_vm4 = vmor %vm3898_vm3, %vm3899_vm15 }
 0x994   : > { %v3895_v32 = vsub.f32 1.0, %v3894_v55  ;;  %v11149_v37 = vpop.f32.mrf.mxu0 }
 0x995   : > { %v3791_v35 = vmul.f32 1.442695, %v3764_v34 }
 0x996   : > { %v3896_v51 = vmul.f32 %v7924_v10, %v3895_v32 }
 0x997   : > { %7925 = vpow2.f32 %v3791_v35 }
 0x998   : > { %v3897_v21 = vadd.f32 %v7924_v10, %v3896_v51 }
 0x99a   : > { %v11140_v43 = vpop.xlane.xlu1 %3813  ;;  %v3901_v38 = vsel %vm3900_vm4, %v7924_v10, %v3897_v21 }
 0x99b   : > { %v3906_v24 = vsel %vm3903_vm5, %v3905_v50, %v3901_v38  ;;  %7927 = vrcp.f32 %v11140_v43  ;;  %vm3928_vm11 = vweird.f32 %v11140_v43 }
 0x99c   : > { %v3907_v36 = vmul.f32 %v10991_v53, %v3906_v24 }
 0x99d   : > { %v11143_v3 = vpop.eup %7925 }
 0x99e   : > { %v11146_v0 = vpop.xlane.xlu2 %3815  ;;  %3823 = vadd.xlane.f32.xlu2 %v11143_v3  ;;  %4149 = vmatmul.f32.gmra.mxu1 %v3907_v36 }
 0x99f   : > { %vm3943_vm15 = vweird.f32 %v11146_v0 }
 0x9a1   : > { %v7928_v8 = vpop.eup %7927 }
 0x9a2   : > { %v3750_v2 = vpop.xlane.xlu1 %3749  ;;  %v3924_v55 = vmul.f32 %v7928_v8, %v11140_v43  ;;  %vm3929_vm9 = vweird.f32 %v7928_v8 }
 0x9a3   : > { %v3767_v54 = vsub.f32 %v11033_v9, %v3750_v2  ;;  %v3812_v18 = vpop.xlane.xlu0 %3811  ;;  %v11155_v9 = vpop.f32.mrf.mxu0  ;;  %vm3930_vm12 = vmor %vm3928_vm11, %vm3929_vm9 }
 0x9a4   : > { %7929 = vrcp.f32 %v3812_v18  ;;  %v3925_v35 = vsub.f32 1.0, %v3924_v55  ;;  %v3917_v36 = vand.u32 2147483647, %v3812_v18  ;;  %v3919_v2 = vand.u32 2147483648, %v3812_v18 }
 0x9a5   : > { %v3797_v10 = vmul.f32 1.442695, %v3767_v54  ;;  %7931 = vrcp.f32 %v11146_v0  ;;  %vm3913_vm7 = vweird.f32 %v3812_v18 }
 0x9a6   : > { %v3752_v53 = vpop.xlane.xlu2 %3751  ;;  %vm3918_vm10 = vcmp.eq.f32.partialorder %v3917_v36, 8.507059e+37 }
 0x9a7   : > { %7933 = vpow2.f32 %v3797_v10  ;;  %v3768_v52 = vsub.f32 %v11045_v45, %v3752_v53  ;;  %v3926_v10 = vmul.f32 %v7928_v8, %v3925_v35  ;;  %v3934_v35 = vand.u32 2147483648, %v11140_v43 }
 0x9a9   : > { %v3799_v34 = vmul.f32 1.442695, %v3768_v52 }
 0x9aa   : > { %v7930_v32 = vpop.eup %7929 }
 0x9ab   : > { %v3909_v29 = vmul.f32 %v7930_v32, %v3812_v18  ;;  %7935 = vpow2.f32 %v3799_v34  ;;  %v3748_v51 = vpop.xlane.xlu0 %3747  ;;  %v7932_v25 = vpop.eup %7931  ;;  %vm3914_vm6 = vweird.f32 %v7930_v32  ;;  %v3932_v18 = vand.u32 2147483647, %v11140_v43 }
 0x9ac   : > { %v3766_v21 = vsub.f32 %v11058_v44, %v3748_v51  ;;  %v3939_v45 = vmul.f32 %v7932_v25, %v11146_v0  ;;  %vm3915_vm8 = vmor %vm3913_vm7, %vm3914_vm6  ;;  %v3920_v44 = vor.u32 1.1754944e-38, %v3919_v2  ;;  %v11167_v51 = vadd.f32 %v10789_v31, %v11112_v20  ;;  %v11175_v2 = vpop.f32.mrf.mxu0 }
 0x9ad   : > { %v11158_v50 = vpop.eup %7933  ;;  %v3910_v38 = vsub.f32 1.0, %v3909_v29  ;;  %v3927_v29 = vadd.f32 %v7928_v8, %v3926_v10  ;;  %v3935_v43 = vor.u32 1.1754944e-38, %v3934_v35  ;;  %vm3933_vm13 = vcmp.eq.f32.partialorder %v3932_v18, 8.507059e+37 }
 0x9ae   : > { %v3795_v24 = vmul.f32 1.442695, %v3766_v21  ;;  %3829 = vadd.xlane.f32.xlu2 %v11158_v50  ;;  %v3940_v52 = vsub.f32 1.0, %v3939_v45  ;;  %vm3944_vm14 = vweird.f32 %v7932_v25 }
 0x9af   : > { %v3911_v54 = vmul.f32 %v7930_v32, %v3910_v38  ;;  %v3931_v31 = vsel %vm3930_vm12, %v7928_v8, %v3927_v29  ;;  %v3947_v8 = vand.u32 2147483647, %v11146_v0  ;;  %vm3945_vm3 = vmor %vm3943_vm15, %vm3944_vm14 }
 0x9b0   : > { %7937 = vpow2.f32 %v3795_v24  ;;  %v3941_v20 = vmul.f32 %v7932_v25, %v3940_v52  ;;  %v3936_v36 = vsel %vm3933_vm13, %v3935_v43, %v3931_v31 }
 0x9b1   : > { %v11162_v53 = vpop.eup %7935  ;;  %v3912_v55 = vadd.f32 %v7930_v32, %v3911_v54  ;;  %v3949_v54 = vand.u32 2147483648, %v11146_v0  ;;  %v3937_v10 = vmul.f32 %v11017_v23, %v3936_v36  ;;  %vm3948_vm4 = vcmp.eq.f32.partialorder %v3947_v8, 8.507059e+37 }
 0x9b2   : > { %3831 = vadd.xlane.f32.xlu1 %v11162_v53  ;;  %v3942_v45 = vadd.f32 %v7932_v25, %v3941_v20 }
 0x9b3   : > { %v3916_v34 = vsel %vm3915_vm8, %v7930_v32, %v3912_v55 }
 0x9b4   : > { %v3921_v21 = vsel %vm3918_vm10, %v3920_v44, %v3916_v34  ;;  %v3946_v55 = vsel %vm3945_vm3, %v7932_v25, %v3942_v45  ;;  %v3950_v44 = vor.u32 1.1754944e-38, %v3949_v54 }
 0x9b5   : > { %v3922_v38 = vmul.f32 %v11035_v60, %v3921_v21  ;;  %v8191_v60 = vld [vmem:[%s12748_s5 + $0x8] sm:$0xff] }
 0x9b6   : > { %v11173_v24 = vpop.eup %7937  ;;  %4511 = vmax.xlane.f32.xlu2 %v11167_v51  ;;  %v11183_v32 = vadd.f32 %v8191_v60, %v11125_v17  ;;  %v11190_v17 = vpop.f32.mrf.mxu0  ;;  %v3951_v52 = vsel %vm3948_vm4, %v3950_v44, %v3946_v55 }
 0x9b7   : > { %3827 = vadd.xlane.f32.xlu0 %v11173_v24  ;;  %4152 = vmatmul.f32.gmra.mxu1 %v3922_v38  ;;  %v3952_v34 = vmul.f32 %v11020_v46, %v3951_v52  ;;  %v282_v46 = vld [vmem:[%s12746_s3 + $0x10] sm:$0xff] }
 0x9b8   : > { %7065 = vmatpush.msk.msrb.mxu3 %vm1765_vm2, %v282_v46  ;;  %v4976_v21 = vrot.slane %v282_v46, 4 }
 0x9ba   : > { %4513 = vmax.xlane.f32.xlu1 %v11183_v32  ;;  %7114 = vmatpush.msk.msra.mxu1 %vm1765_vm2, %v4976_v21 }
 0x9be   : > { %v11193_v29 = vpop.f32.mrf.mxu0 }
 0x9bf   : > { %4155 = vmatmul.f32.gmra.mxu1 %v3937_v10 }
 0x9c6   : > { %v4490_v23 = vpop.f32.mrf.mxu0 }
 0x9c7   : > { %4158 = vmatmul.f32.gmra.mxu1 %v3952_v34  ;;  %v8192_v34 = vld [vmem:[%s12748_s5 + $0x18] sm:$0xff] }
 0x9cb   : > { %5170 = vrot.lane.b32.xlu0 %v12926_v58, %s8329_s26 }
 0x9ce   : > { %5166 = vrot.lane.b32.xlu2 %v12922_v4, %s8329_s26  ;;  %v4493_v38 = vpop.f32.mrf.mxu0 }
 0x9d3   : > { %5168 = vrot.lane.b32.xlu1 %v12970_v33, %s8329_s26  ;;  %5960 = vrot.lane.b32.xlu0 %v12926_v58, %s8330_s7 }
 0x9d4   : > { %v3818_v0 = vpop.xlane.xlu0 %3817 }
 0x9d5   : > { %7939 = vrcp.f32 %v3818_v0  ;;  %v3964_v31 = vand.u32 2147483648, %v3818_v0  ;;  %v3962_v60 = vand.u32 2147483647, %v3818_v0  ;;  %vm3958_vm6 = vweird.f32 %v3818_v0 }
 0x9d6   : > { %v4496_v8 = vpop.f32.mrf.mxu0 }
 0x9d7   : > { %v3965_v36 = vor.u32 1.1754944e-38, %v3964_v31  ;;  %vm3963_vm8 = vcmp.eq.f32.partialorder %v3962_v60, 8.507059e+37 }
 0x9db   : > { %v7940_v25 = vpop.eup %7939 }
 0x9dc   : > { %v3954_v35 = vmul.f32 %v7940_v25, %v3818_v0  ;;  %vm3959_vm5 = vweird.f32 %v7940_v25  ;;  %v11214_v0 = vadd.f32 %v8192_v34, %v11138_v56  ;;  %v11246_v34 = vadd.f32 %v10955_v39, %v4490_v23 }
 0x9dd   : > { %vm3960_vm7 = vmor %vm3958_vm6, %vm3959_vm5 }
 0x9de   : > { %v3955_v18 = vsub.f32 1.0, %v3954_v35  ;;  %v4499_v44 = vpop.f32.mrf.mxu0  ;;  %v8194_v35 = vld [vmem:[%s12748_s5 + $0x20] sm:$0xff] }
 0x9df   : > { %v11263_v23 = vadd.f32 %v10933_v42, %v4499_v44 }
 0x9e0   : > { %v3956_v20 = vmul.f32 %v7940_v25, %v3955_v18  ;;  %v11227_v18 = vadd.f32 %v8194_v35, %v11149_v37 }
 0x9e2   : > { %v3957_v43 = vadd.f32 %v7940_v25, %v3956_v20 }
 0x9e4   : > { %v3961_v45 = vsel %vm3960_vm7, %v7940_v25, %v3957_v43  ;;  %v11234_v43 = vadd.f32 %v10865_v12, %v11175_v2  ;;  %v8195_v12 = vld [vmem:[%s12748_s5 + $0x28] sm:$0xff] }
 0x9e5   : > { %v3966_v54 = vsel %vm3963_vm8, %v3965_v36, %v3961_v45  ;;  %v11243_v2 = vadd.f32 %v8195_v12, %v11155_v9 }
 0x9e6   : > { %v3967_v10 = vmul.f32 %v11087_v6, %v3966_v54  ;;  %v8193_v6 = vld [vmem:[%s12748_s5 + $0x10] sm:$0xff]  ;;  %v11229_v20 = vpop.f32.mrf.mxu0 }
 0x9e7   : > { %v11221_v21 = vadd.f32 %v8193_v6, %v11134_v59 }
 0x9e8   : > { %4161 = vmatmul.f32.gmra.mxu1 %v3967_v10 }
 0x9ee   : > { %v4505_v6 = vpop.f32.mrf.mxu0 }
 0x9f1   : > { %v3820_v55 = vpop.xlane.xlu1 %3819 }
 0x9f2   : > { %7941 = vrcp.f32 %v3820_v55  ;;  %v3979_v60 = vand.u32 2147483648, %v3820_v55  ;;  %v3977_v36 = vand.u32 2147483647, %v3820_v55  ;;  %vm3973_vm10 = vweird.f32 %v3820_v55 }
 0x9f3   : > { %v4138_v52 = vpop.f32.mrf.mxu1 }
 0x9f4   : > { %7066 = vmatmul.msk.f32.vlgmr.msrb.gmra.mxu3 %vm462_vm1, %v4138_v52  ;;  %v3980_v45 = vor.u32 1.1754944e-38, %v3979_v60  ;;  %vm3978_vm12 = vcmp.eq.f32.partialorder %v3977_v36, 8.507059e+37 }
 0x9f7   : > { %4517 = vmax.xlane.f32.xlu2 %v11214_v0 }
 0x9f8   : > { %v7942_v46 = vpop.eup %7941 }
 0x9f9   : > { %v3969_v25 = vmul.f32 %v7942_v46, %v3820_v55  ;;  %vm3974_vm9 = vweird.f32 %v7942_v46  ;;  %v11256_v35 = vpop.xlane.xlu1 %3825 }
 0x9fa   : > { %vm3975_vm11 = vmor %vm3973_vm10, %vm3974_vm9  ;;  %vm4018_vm9 = vweird.f32 %v11256_v35 }
 0x9fb   : > { %v3970_v56 = vsub.f32 1.0, %v3969_v25  ;;  %v4141_v31 = vpop.f32.mrf.mxu1 }
 0x9fc   : > { %7067 = vmatmul.msk.f32.gmra.mxu3 %vm462_vm1, %v4141_v31  ;;  %v11268_v31 = vadd.f32 %v11004_v7, %v4496_v8  ;;  %v11275_v8 = vadd.f32 %v10920_v14, %v11193_v29 }
 0x9fd   : > { %4519 = vmax.xlane.f32.xlu1 %v11227_v18  ;;  %4515 = vmax.xlane.f32.xlu0 %v11221_v21  ;;  %v3971_v59 = vmul.f32 %v7942_v46, %v3970_v56 }
 0x9ff   : > { %4523 = vmax.xlane.f32.xlu2 %v11234_v43  ;;  %v3972_v37 = vadd.f32 %v7942_v46, %v3971_v59 }
 0xa01   : > { %v3822_v54 = vpop.xlane.xlu0 %3821  ;;  %v3976_v10 = vsel %vm3975_vm11, %v7942_v46, %v3972_v37  ;;  %v11251_v46 = vadd.f32 %v10981_v41, %v4493_v38 }
 0xa02   : > { %7943 = vrcp.f32 %v3822_v54  ;;  %v3981_v52 = vsel %vm3978_vm12, %v3980_v45, %v3976_v10  ;;  %v3994_v56 = vand.u32 2147483648, %v3822_v54  ;;  %vm3988_vm14 = vweird.f32 %v3822_v54 }
 0xa03   : > { %v4144_v25 = vpop.f32.mrf.mxu1  ;;  %v3982_v55 = vmul.f32 %v11120_v13, %v3981_v52  ;;  %v11260_v13 = vadd.f32 %v10888_v63, %v11190_v17  ;;  %7945 = vrcp.f32 %v11256_v35  ;;  %v3992_v63 = vand.u32 2147483647, %v3822_v54  ;;  %v4508_v17 = vpop.f32.mrf.mxu0 }
 0xa04   : > { %7068 = vmatmul.msk.f32.gmra.mxu3 %vm462_vm1, %v4144_v25  ;;  %v3995_v44 = vor.u32 1.1754944e-38, %v3994_v56  ;;  %v11278_v45 = vadd.f32 %v11042_v1, %v4508_v17  ;;  %v11290_v1 = vadd.f32 %v11055_v28, %v11229_v20 }
 0xa05   : > { %4521 = vmax.xlane.f32.xlu1 %v11243_v2  ;;  %4529 = vmax.xlane.f32.xlu0 %v11246_v34  ;;  %vm3993_vm3 = vcmp.eq.f32.partialorder %v3992_v63, 8.507059e+37 }
 0xa06   : > { %4164 = vmatmul.f32.gmra.mxu1 %v3982_v55 }
 0xa07   : > { %4531 = vmax.xlane.f32.xlu2 %v11251_v46 }
 0xa08   : > { %v7944_v9 = vpop.eup %7943 }
 0xa09   : > { %v3984_v39 = vmul.f32 %v7944_v9, %v3822_v54  ;;  %vm3989_vm13 = vweird.f32 %v7944_v9  ;;  %v7946_v37 = vpop.eup %7945  ;;  %v11282_v54 = vadd.f32 %v11030_v48, %v4505_v6 }
 0xa0a   : > { %vm3990_vm15 = vmor %vm3988_vm14, %vm3989_vm13  ;;  %v4014_v52 = vmul.f32 %v7946_v37, %v11256_v35  ;;  %vm4019_vm8 = vweird.f32 %v7946_v37 }
 0xa0b   : > { %v3985_v41 = vsub.f32 1.0, %v3984_v39  ;;  %v4147_v38 = vpop.f32.mrf.mxu1  ;;  %vm4020_vm10 = vmor %vm4018_vm9, %vm4019_vm8 }
 0xa0c   : > { %7069 = vmatmul.msk.f32.gmra.mxu3 %vm462_vm1, %v4147_v38  ;;  %v4015_v14 = vsub.f32 1.0, %v4014_v52 }
 0xa0d   : > { %4525 = vmax.xlane.f32.xlu1 %v11260_v13  ;;  %4535 = vmax.xlane.f32.xlu0 %v11263_v23  ;;  %v3986_v60 = vmul.f32 %v7944_v9, %v3985_v41 }
 0xa0f   : > { %4533 = vmax.xlane.f32.xlu2 %v11268_v31  ;;  %v3987_v42 = vadd.f32 %v7944_v9, %v3986_v60  ;;  %v4024_v60 = vand.u32 2147483648, %v11256_v35 }
 0xa11   : > { %v3824_v59 = vpop.xlane.xlu2 %3823  ;;  %v3991_v36 = vsel %vm3990_vm15, %v7944_v9, %v3987_v42  ;;  %v4016_v9 = vmul.f32 %v7946_v37, %v4015_v14  ;;  %v4022_v42 = vand.u32 2147483647, %v11256_v35 }
 0xa12   : > { %7947 = vrcp.f32 %v3824_v59  ;;  %v3996_v7 = vsel %vm3993_vm3, %v3995_v44, %v3991_v36  ;;  %v4009_v48 = vand.u32 2147483648, %v3824_v59  ;;  %v4007_v6 = vand.u32 2147483647, %v3824_v59 }
 0xa13   : > { %v3997_v10 = vmul.f32 %v11132_v22, %v3996_v7  ;;  %vm4003_vm5 = vweird.f32 %v3824_v59  ;;  %v4017_v28 = vadd.f32 %v7946_v37, %v4016_v9  ;;  %vm4023_vm11 = vcmp.eq.f32.partialorder %v4022_v42, 8.507059e+37 }
 0xa14   : > { %v4010_v41 = vor.u32 1.1754944e-38, %v4009_v48  ;;  %vm4008_vm7 = vcmp.eq.f32.partialorder %v4007_v6, 8.507059e+37 }
 0xa15   : > { %4527 = vmax.xlane.f32.xlu1 %v11275_v8  ;;  %4541 = vmax.xlane.f32.xlu0 %v11278_v45  ;;  %v4021_v44 = vsel %vm4020_vm10, %v7946_v37, %v4017_v28 }
 0xa16   : > { %4167 = vmatmul.f32.gmra.mxu1 %v3997_v10 }
 0xa17   : > { %4539 = vmax.xlane.f32.xlu2 %v11282_v54 }
 0xa18   : > { %v7948_v12 = vpop.eup %7947 }
 0xa19   : > { %v3999_v29 = vmul.f32 %v7948_v12, %v3824_v59  ;;  %vm4004_vm4 = vweird.f32 %v7948_v12  ;;  %v4025_v59 = vor.u32 1.1754944e-38, %v4024_v60 }
 0xa1a   : > { %vm4005_vm6 = vmor %vm4003_vm5, %vm4004_vm4 }
 0xa1b   : > { %v4000_v22 = vsub.f32 1.0, %v3999_v29  ;;  %v4150_v25 = vpop.f32.mrf.mxu1  ;;  %v4026_v36 = vsel %vm4023_vm11, %v4025_v59, %v4021_v44 }
 0xa1c   : > { %7070 = vmatmul.msk.f32.gmra.mxu3 %vm462_vm1, %v4150_v25 }
 0xa1d   : > { %4537 = vmax.xlane.f32.xlu1 %v11290_v1  ;;  %v4001_v55 = vmul.f32 %v7948_v12, %v4000_v22 }
 0xa1f   : > { %v4002_v39 = vadd.f32 %v7948_v12, %v4001_v55 }
 0xa21   : > { %v11294_v38 = vpop.xlane.xlu2 %3829  ;;  %v4006_v56 = vsel %vm4005_vm6, %v7948_v12, %v4002_v39 }
 0xa22   : > { %v4011_v20 = vsel %vm4008_vm7, %v4010_v41, %v4006_v56  ;;  %7949 = vrcp.f32 %v11294_v38  ;;  %vm4048_vm4 = vweird.f32 %v11294_v38 }
 0xa23   : > { %v4012_v63 = vmul.f32 %v11143_v3, %v4011_v20  ;;  %v4027_v3 = vmul.f32 %v11128_v49, %v4026_v36  ;;  %v4054_v36 = vand.u32 2147483648, %v11294_v38 }
 0xa25   : > { %v11301_v17 = vpop.xlane.xlu1 %3831  ;;  %4170 = vmatmul.f32.gmra.mxu1 %v4012_v63 }
 0xa26   : > { %vm4063_vm8 = vweird.f32 %v11301_v17 }
 0xa28   : > { %v7950_v12 = vpop.eup %7949 }
 0xa29   : > { %v4512_v7 = vpop.xlane.xlu2 %4511  ;;  %v4044_v29 = vmul.f32 %v7950_v12, %v11294_v38  ;;  %vm4049_vm15 = vweird.f32 %v7950_v12 }
 0xa2a   : > { %v4543_v10 = vsub.f32 %v11167_v51, %v4512_v7  ;;  %v3828_v52 = vpop.xlane.xlu0 %3827  ;;  %vm4050_vm5 = vmor %vm4048_vm4, %vm4049_vm15 }
 0xa2b   : > { %7951 = vrcp.f32 %v3828_v52  ;;  %v4045_v48 = vsub.f32 1.0, %v4044_v29  ;;  %v4037_v41 = vand.u32 2147483647, %v3828_v52  ;;  %v4039_v56 = vand.u32 2147483648, %v3828_v52 }
 0xa2c   : > { %7953 = vrcp.f32 %v11301_v17  ;;  %v4559_v35 = vmul.f32 1.442695, %v4543_v10  ;;  %vm4033_vm13 = vweird.f32 %v3828_v52 }
 0xa2d   : > { %v4514_v14 = vpop.xlane.xlu1 %4513  ;;  %4173 = vmatmul.f32.gmra.mxu1 %v4027_v3  ;;  %v4046_v28 = vmul.f32 %v7950_v12, %v4045_v48  ;;  %v4040_v60 = vor.u32 1.1754944e-38, %v4039_v56  ;;  %vm4038_vm3 = vcmp.eq.f32.partialorder %v4037_v41, 8.507059e+37 }
 0xa2e   : > { %7955 = vpow2.f32 %v4559_v35  ;;  %v4544_v37 = vsub.f32 %v11183_v32, %v4514_v14  ;;  %v4052_v35 = vand.u32 2147483647, %v11294_v38  ;;  %v4069_v38 = vand.u32 2147483648, %v11301_v17 }
 0xa2f   : > { %v4047_v44 = vadd.f32 %v7950_v12, %v4046_v28 }
 0xa30   : > { %v4561_v55 = vmul.f32 1.442695, %v4544_v37  ;;  %v4055_v37 = vor.u32 1.1754944e-38, %v4054_v36  ;;  %vm4053_vm6 = vcmp.eq.f32.partialorder %v4052_v35, 8.507059e+37 }
 0xa31   : > { %v7952_v22 = vpop.eup %7951  ;;  %v4051_v14 = vsel %vm4050_vm5, %v7950_v12, %v4047_v44  ;;  %v5167_v41 = vpop.permute.xlu2 %5166 }
 0xa32   : > { %v11308_v25 = vpop.eup %7953  ;;  %v4029_v51 = vmul.f32 %v7952_v22, %v3828_v52  ;;  %7957 = vpow2.f32 %v4561_v55  ;;  %vm4034_vm12 = vweird.f32 %v7952_v22  ;;  %v4067_v55 = vand.u32 2147483647, %v11301_v17 }
 0xa33   : > { %v4059_v39 = vmul.f32 %v11308_v25, %v11301_v17  ;;  %vm4035_vm14 = vmor %vm4033_vm13, %vm4034_vm12  ;;  %vm4064_vm7 = vweird.f32 %v11308_v25 }
 0xa34   : > { %v11310_v6 = vpop.eup %7955  ;;  %v4030_v9 = vsub.f32 1.0, %v4029_v51  ;;  %v4153_v49 = vpop.f32.mrf.mxu1  ;;  %vm4065_vm9 = vmor %vm4063_vm8, %vm4064_vm7  ;;  %vm4068_vm10 = vcmp.eq.f32.partialorder %v4067_v55, 8.507059e+37 }
 0xa35   : > { %4591 = vadd.xlane.f32.xlu2 %v11310_v6  ;;  %7071 = vmatmul.msk.f32.gmra.mxu3 %vm462_vm1, %v4153_v49  ;;  %v4060_v63 = vsub.f32 1.0, %v4059_v39  ;;  %v4070_v39 = vor.u32 1.1754944e-38, %v4069_v38 }
 0xa36   : > { %v4031_v32 = vmul.f32 %v7952_v22, %v4030_v9 }
 0xa37   : > { %v4061_v29 = vmul.f32 %v11308_v25, %v4060_v63 }
 0xa38   : > { %v4032_v20 = vadd.f32 %v7952_v22, %v4031_v32  ;;  %v11317_v7 = vpop.eup %7957 }
 0xa3a   : > { %v4036_v42 = vsel %vm4035_vm14, %v7952_v22, %v4032_v20  ;;  %v4062_v22 = vadd.f32 %v11308_v25, %v4061_v29 }
 0xa3b   : > { %v4041_v59 = vsel %vm4038_vm3, %v4040_v60, %v4036_v42 }
 0xa3c   : > { %v4156_v10 = vpop.f32.mrf.mxu1  ;;  %v4042_v3 = vmul.f32 %v11173_v24, %v4041_v59  ;;  %v4056_v24 = vsel %vm4053_vm6, %v4055_v37, %v4051_v14  ;;  %v4066_v49 = vsel %vm4065_vm9, %v11308_v25, %v4062_v22 }
 0xa3d   : > { %v5171_v52 = vpop.permute.xlu0 %5170  ;;  %4593 = vadd.xlane.f32.xlu2 %v11317_v7  ;;  %7072 = vmatmul.msk.f32.gmra.mxu3 %vm462_vm1, %v4156_v10  ;;  %v4057_v51 = vmul.f32 %v11158_v50, %v4056_v24  ;;  %v4071_v50 = vsel %vm4068_vm10, %v4070_v39, %v4066_v49 }
 0xa3e   : > { %4176 = vmatmul.f32.gmra.mxu1 %v4042_v3  ;;  %7131 = vmatpush.xpose.msk.msra.mxu3 %vm462_vm1, %v5171_v52  ;;  %v4072_v17 = vmul.f32 %v11162_v53, %v4071_v50 }
 0xa44   : > { %v4159_v48 = vpop.f32.mrf.mxu1 }
 0xa45   : > { %v5961_v9 = vpop.permute.xlu0 %5960  ;;  %v5169_v12 = vpop.permute.xlu1 %5168  ;;  %7073 = vmatmul.msk.f32.gmra.mxu3 %vm462_vm1, %v4159_v48 }
 0xa46   : > { %4179 = vmatmul.f32.gmra.mxu1 %v4057_v51  ;;  %7132 = vmatpush.xpose.msk.msra.mxu3 %vm462_vm1, %v5169_v12 }
 0xa47   : > { %7180 = vmatpush.xpose.msk.msrb.mxu1 %vm462_vm1, %v5961_v9 }
 0xa4a   : > { %7133 = vmatpush.xpose.msk.msra.mxu3 %vm462_vm1, %v5167_v41 }
 0xa4e   : > { %4182 = vmatmul.f32.gmra.mxu1 %v4072_v17 }
 0xa65   : > { %v4162_v56 = vpop.f32.mrf.mxu1 }
 0xa66   : > { %7074 = vmatmul.msk.f32.gmra.mxu3 %vm462_vm1, %v4162_v56 }
 0xa6a   : > { %v4518_v32 = vpop.xlane.xlu2 %4517 }
 0xa6b   : > { %v4546_v28 = vsub.f32 %v11214_v0, %v4518_v32 }
 0xa6d   : > { %v4565_v20 = vmul.f32 1.442695, %v4546_v28 }
 0xa6f   : > { %7959 = vpow2.f32 %v4565_v20 }
 0xa70   : > { %v4516_v25 = vpop.xlane.xlu0 %4515  ;;  %v4520_v60 = vpop.xlane.xlu1 %4519 }
 0xa71   : > { %v4545_v63 = vsub.f32 %v11221_v21, %v4516_v25  ;;  %v4547_v59 = vsub.f32 %v11227_v18, %v4520_v60 }
 0xa72   : > { %v4524_v3 = vpop.xlane.xlu2 %4523 }
 0xa73   : > { %v4563_v42 = vmul.f32 1.442695, %v4545_v63  ;;  %v4567_v36 = vmul.f32 1.442695, %v4547_v59  ;;  %v4549_v21 = vsub.f32 %v11234_v43, %v4524_v3 }
 0xa75   : > { %v11342_v44 = vpop.eup %7959  ;;  %7961 = vpow2.f32 %v4563_v42  ;;  %v4571_v14 = vmul.f32 1.442695, %v4549_v21 }
 0xa76   : > { %4597 = vadd.xlane.f32.xlu1 %v11342_v44  ;;  %7963 = vpow2.f32 %v4567_v36 }
 0xa78   : > { %v4522_v53 = vpop.xlane.xlu1 %4521  ;;  %v4530_v29 = vpop.xlane.xlu0 %4529 }
 0xa79   : > { %v4548_v10 = vsub.f32 %v11243_v2, %v4522_v53  ;;  %v4552_v38 = vsub.f32 %v11246_v34, %v4530_v29 }
 0xa7a   : > { %v4532_v55 = vpop.xlane.xlu2 %4531 }
 0xa7b   : > { %v11347_v0 = vpop.eup %7961  ;;  %v4569_v35 = vmul.f32 1.442695, %v4548_v10  ;;  %v4577_v48 = vmul.f32 1.442695, %v4552_v38  ;;  %v4553_v34 = vsub.f32 %v11251_v46, %v4532_v55 }
 0xa7c   : > { %4595 = vadd.xlane.f32.xlu2 %v11347_v0  ;;  %v11352_v37 = vpop.eup %7963 }
 0xa7d   : > { %7965 = vpow2.f32 %v4569_v35  ;;  %v4579_v49 = vmul.f32 1.442695, %v4553_v34 }
 0xa7e   : > { %7967 = vpow2.f32 %v4571_v14 }
 0xa80   : > { %v4526_v52 = vpop.xlane.xlu1 %4525 }
 0xa81   : > { %v4550_v18 = vsub.f32 %v11260_v13, %v4526_v52 }
 0xa83   : > { %v4573_v24 = vmul.f32 1.442695, %v4550_v18  ;;  %v4165_v22 = vpop.f32.mrf.mxu1  ;;  %v11354_v2 = vpop.eup %7965 }
 0xa84   : > { %7075 = vmatmul.msk.f32.gmra.mxu3 %vm462_vm1, %v4165_v22  ;;  %4599 = vadd.xlane.f32.xlu2 %v11352_v37  ;;  %v11361_v51 = vpop.eup %7967 }
 0xa85   : > { %4601 = vadd.xlane.f32.xlu1 %v11354_v2  ;;  %7969 = vpow2.f32 %v4573_v24 }
 0xa86   : > { %7971 = vpow2.f32 %v4577_v48 }
 0xa88   : > { %v4528_v43 = vpop.xlane.xlu1 %4527 }
 0xa89   : > { %v4551_v13 = vsub.f32 %v11275_v8, %v4528_v43  ;;  %v4534_v8 = vpop.xlane.xlu2 %4533 }
 0xa8a   : > { %v4554_v22 = vsub.f32 %v11268_v31, %v4534_v8 }
 0xa8b   : > { %v4575_v9 = vmul.f32 1.442695, %v4551_v13  ;;  %v11363_v12 = vpop.eup %7969 }
 0xa8c   : > { %4603 = vadd.xlane.f32.xlu2 %v11361_v51  ;;  %4605 = vadd.xlane.f32.xlu0 %v11363_v12  ;;  %v11368_v39 = vpop.eup %7971  ;;  %v4581_v55 = vmul.f32 1.442695, %v4554_v22 }
 0xa8d   : > { %7973 = vpow2.f32 %v4575_v9 }
 0xa8e   : > { %7975 = vpow2.f32 %v4579_v49  ;;  %v4536_v49 = vpop.xlane.xlu0 %4535 }
 0xa8f   : > { %v4555_v31 = vsub.f32 %v11263_v23, %v4536_v49 }
 0xa91   : > { %v11378_v46 = vpop.xlane.xlu2 %4539 }
 0xa93   : > { %v4168_v41 = vpop.f32.mrf.mxu1  ;;  %v11370_v50 = vpop.eup %7973 }
 0xa94   : > { %7076 = vmatmul.msk.f32.gmra.mxu3 %vm462_vm1, %v4168_v41  ;;  %4609 = vadd.xlane.f32.xlu2 %v11368_v39  ;;  %v11375_v17 = vpop.eup %7975 }
 0xa95   : > { %4607 = vadd.xlane.f32.xlu1 %v11370_v50 }
 0xa9d   : > { %4611 = vadd.xlane.f32.xlu1 %v11375_v17 }
 0xaa0   : > { %5958 = vrot.lane.b32.xlu0 %v12970_v33, %s8330_s7 }
 0xaa2   : > { %v4171_v56 = vpop.f32.mrf.mxu1 }
 0xaa3   : > { %7077 = vmatmul.msk.f32.gmra.mxu3 %vm462_vm1, %v4171_v56  ;;  %v4583_v56 = vmul.f32 1.442695, %v4555_v31 }
 0xaa8   : > { %v4592_v32 = vpop.xlane.xlu2 %4591 }
 0xaa9   : > { %7977 = vrcp.f32 %v4592_v32  ;;  %v4634_v42 = vand.u32 2147483648, %v4592_v32  ;;  %v4632_v53 = vand.u32 2147483647, %v4592_v32  ;;  %vm4628_vm12 = vweird.f32 %v4592_v32 }
 0xaaa   : > { %v4174_v28 = vpop.f32.mrf.mxu1 }
 0xaab   : > { %7078 = vmatmul.msk.f32.gmra.mxu3 %vm462_vm1, %v4174_v28  ;;  %v4635_v3 = vor.u32 1.1754944e-38, %v4634_v42  ;;  %vm4633_vm14 = vcmp.eq.f32.partialorder %v4632_v53, 8.507059e+37  ;;  %v4538_v28 = vpop.xlane.xlu1 %4537 }
 0xaac   : > { %5162 = vrot.lane.b32.xlu2 %v12925_v61, %s8329_s26 }
 0xaaf   : > { %v7978_v20 = vpop.eup %7977 }
 0xab0   : > { %v4624_v25 = vmul.f32 %v7978_v20, %v4592_v32  ;;  %v4594_v60 = vpop.xlane.xlu2 %4593  ;;  %vm4629_vm11 = vweird.f32 %v7978_v20 }
 0xab1   : > { %7979 = vrcp.f32 %v4594_v60  ;;  %vm4630_vm13 = vmor %vm4628_vm12, %vm4629_vm11  ;;  %v4649_v24 = vand.u32 2147483648, %v4594_v60  ;;  %v4647_v43 = vand.u32 2147483647, %v4594_v60  ;;  %vm4643_vm3 = vweird.f32 %v4594_v60 }
 0xab2   : > { %v4625_v63 = vsub.f32 1.0, %v4624_v25  ;;  %7981 = vpow2.f32 %v4581_v55 }
 0xab3   : > { %v4650_v13 = vor.u32 1.1754944e-38, %v4649_v24  ;;  %vm4648_vm5 = vcmp.eq.f32.partialorder %v4647_v43, 8.507059e+37  ;;  %7983 = vpow2.f32 %v4583_v56 }
 0xab4   : > { %v4626_v59 = vmul.f32 %v7978_v20, %v4625_v63 }
 0xab6   : > { %v4627_v36 = vadd.f32 %v7978_v20, %v4626_v59  ;;  %5164 = vrot.lane.b32.xlu1 %v12929_v26, %s8329_s26 }
 0xab7   : > { %v7980_v10 = vpop.eup %7979 }
 0xab8   : > { %v4631_v35 = vsel %vm4630_vm13, %v7978_v20, %v4627_v36  ;;  %v4639_v21 = vmul.f32 %v7980_v10, %v4594_v60  ;;  %vm4644_vm15 = vweird.f32 %v7980_v10  ;;  %v11394_v8 = vpop.eup %7981 }
 0xab9   : > { %v4636_v52 = vsel %vm4633_vm14, %v4635_v3, %v4631_v35  ;;  %vm4645_vm4 = vmor %vm4643_vm3, %vm4644_vm15  ;;  %v11399_v20 = vpop.eup %7983 }
 0xaba   : > { %v4640_v14 = vsub.f32 1.0, %v4639_v21  ;;  %v4637_v18 = vmul.f32 %v11310_v6, %v4636_v52 }
 0xabb   : > { %v4177_v29 = vpop.f32.mrf.mxu1 }
 0xabc   : > { %7079 = vmatmul.msk.f32.gmra.mxu3 %vm462_vm1, %v4177_v29  ;;  %4927 = vmatmul.f32.vlgmr.msrb.gmra.mxu2 %v4637_v18  ;;  %v4641_v38 = vmul.f32 %v7980_v10, %v4640_v14 }
 0xabe   : > { %v4642_v48 = vadd.f32 %v7980_v10, %v4641_v38 }
 0xac0   : > { %v4646_v9 = vsel %vm4645_vm4, %v7980_v10, %v4642_v48  ;;  %v11430_v48 = vpop.xlane.xlu0 %4541 }
 0xac1   : > { %v4651_v34 = vsel %vm4648_vm5, %v4650_v13, %v4646_v9 }
 0xac2   : > { %v4652_v6 = vmul.f32 %v11317_v7, %v4651_v34  ;;  %v4556_v7 = vsub.f32 %v11290_v1, %v4538_v28 }
 0xac3   : > { %v4180_v41 = vpop.f32.mrf.mxu1 }
 0xac4   : > { %7080 = vmatmul.msk.f32.gmra.mxu3 %vm462_vm1, %v4180_v41  ;;  %4930 = vmatmul.f32.gmra.mxu2 %v4652_v6  ;;  %v4585_v25 = vmul.f32 1.442695, %v4556_v7 }
 0xac6   : > { %7985 = vpow2.f32 %v4585_v25 }
 0xaca   : > { %4613 = vadd.xlane.f32.xlu0 %v11394_v8 }
 0xacb   : > { %v4183_v32 = vpop.f32.mrf.mxu1 }
 0xacc   : > { %7081 = vmatmul.msk.f32.gmra.mxu3 %vm462_vm1, %v4183_v32  ;;  %v11402_v60 = vpop.eup %7985 }
 0xad5   : > { %4615 = vadd.xlane.f32.xlu2 %v11399_v20 }
 0xade   : > { %5160 = vrot.lane.b32.xlu0 %v12924_v27, %s8329_s26 }
 0xae0   : > { %4617 = vadd.xlane.f32.xlu1 %v11402_v60 }
 0xae6   : > { %5952 = vrot.lane.b32.xlu0 %v12925_v61, %s8330_s7 }
 0xae9   : > { %v4598_v23 = vpop.xlane.xlu1 %4597 }
 0xaea   : > { %7987 = vrcp.f32 %v4598_v23  ;;  %v4679_v6 = vand.u32 2147483648, %v4598_v23  ;;  %vm4673_vm11 = vweird.f32 %v4598_v23  ;;  %v4677_v31 = vand.u32 2147483647, %v4598_v23 }
 0xaec   : > { %v4680_v7 = vor.u32 1.1754944e-38, %v4679_v6  ;;  %vm4678_vm13 = vcmp.eq.f32.partialorder %v4677_v31, 8.507059e+37 }
 0xaed   : > { %5954 = vrot.lane.b32.xlu2 %v12929_v26, %s8330_s7 }
 0xaee   : > { %5154 = vrot.lane.b32.xlu0 %v12927_v62, %s8329_s26 }
 0xaef   : > { %v4596_v1 = vpop.xlane.xlu2 %4595 }
 0xaf0   : > { %7989 = vrcp.f32 %v4596_v1  ;;  %v7988_v63 = vpop.eup %7987  ;;  %v4664_v21 = vand.u32 2147483648, %v4596_v1  ;;  %v4662_v14 = vand.u32 2147483647, %v4596_v1  ;;  %vm4658_vm7 = vweird.f32 %v4596_v1 }
 0xaf1   : > { %v4669_v42 = vmul.f32 %v7988_v63, %v4598_v23  ;;  %vm4674_vm10 = vweird.f32 %v7988_v63 }
 0xaf2   : > { %v4665_v22 = vor.u32 1.1754944e-38, %v4664_v21  ;;  %vm4663_vm9 = vcmp.eq.f32.partialorder %v4662_v14, 8.507059e+37  ;;  %vm4675_vm12 = vmor %vm4673_vm11, %vm4674_vm10 }
 0xaf3   : > { %v4670_v10 = vsub.f32 1.0, %v4669_v42 }
 0xaf5   : > { %5156 = vrot.lane.b32.xlu2 %v12928_v47, %s8329_s26  ;;  %v4671_v18 = vmul.f32 %v7988_v63, %v4670_v10 }
 0xaf6   : > { %v7990_v59 = vpop.eup %7989  ;;  %5946 = vrot.lane.b32.xlu0 %v12928_v47, %s8330_s7 }
 0xaf7   : > { %v4654_v53 = vmul.f32 %v7990_v59, %v4596_v1  ;;  %v11417_v36 = vpop.xlane.xlu2 %4599  ;;  %vm4659_vm6 = vweird.f32 %v7990_v59  ;;  %v4672_v9 = vadd.f32 %v7988_v63, %v4671_v18 }
 0xaf8   : > { %7991 = vrcp.f32 %v11417_v36  ;;  %v11420_v3 = vpop.xlane.xlu1 %4601  ;;  %vm4660_vm8 = vmor %vm4658_vm7, %vm4659_vm6  ;;  %vm4688_vm15 = vweird.f32 %v11417_v36 }
 0xaf9   : > { %v4655_v35 = vsub.f32 1.0, %v4654_v53  ;;  %5956 = vrot.lane.b32.xlu1 %v12922_v4, %s8330_s7  ;;  %7993 = vrcp.f32 %v11420_v3  ;;  %v4676_v32 = vsel %vm4675_vm12, %v7988_v63, %v4672_v9  ;;  %v4694_v63 = vand.u32 2147483648, %v11417_v36 }
 0xafa   : > { %v4681_v25 = vsel %vm4678_vm13, %v4680_v7, %v4676_v32  ;;  %v4692_v53 = vand.u32 2147483647, %v11417_v36  ;;  %vm4703_vm6 = vweird.f32 %v11420_v3 }
 0xafb   : > { %v4656_v52 = vmul.f32 %v7990_v59, %v4655_v35 }
 0xafc   : > { %vm4693_vm4 = vcmp.eq.f32.partialorder %v4692_v53, 8.507059e+37 }
 0xafd   : > { %5948 = vrot.lane.b32.xlu2 %v12930_v15, %s8330_s7  ;;  %v4657_v29 = vadd.f32 %v7990_v59, %v4656_v52  ;;  %v4695_v52 = vor.u32 1.1754944e-38, %v4694_v63 }
 0xafe   : > { %v7992_v24 = vpop.eup %7991  ;;  %5148 = vrot.lane.b32.xlu0 %v12931_v16, %s8329_s26 }
 0xaff   : > { %v4684_v38 = vmul.f32 %v7992_v24, %v11417_v36  ;;  %v4661_v43 = vsel %vm4660_vm8, %v7990_v59, %v4657_v29  ;;  %v11432_v13 = vpop.xlane.xlu2 %4603  ;;  %v11434_v34 = vpop.eup %7993  ;;  %vm4689_vm14 = vweird.f32 %v7992_v24  ;;  %v4682_v59 = vmul.f32 %v11342_v44, %v4681_v25  ;;  %v12995_v44 = vld [vmem:[#allocation10_spill] sm:$0xff] }
 0xb00   : > { %v4666_v55 = vsel %vm4663_vm9, %v4665_v22, %v4661_v43  ;;  %7995 = vrcp.f32 %v11432_v13  ;;  %v4699_v56 = vmul.f32 %v11434_v34, %v11420_v3  ;;  %v11446_v23 = vpop.xlane.xlu0 %4605  ;;  %vm4690_vm3 = vmor %vm4688_vm15, %vm4689_vm14  ;;  %vm4704_vm5 = vweird.f32 %v11434_v34 }
 0xb01   : > { %v4685_v49 = vsub.f32 1.0, %v4684_v38  ;;  %5158 = vrot.lane.b32.xlu1 %v12930_v15, %s8329_s26  ;;  %v4667_v41 = vmul.f32 %v11347_v0, %v4666_v55  ;;  %7997 = vrcp.f32 %v11446_v23  ;;  %v4707_v43 = vand.u32 2147483647, %v11420_v3  ;;  %vm4705_vm7 = vmor %vm4703_vm6, %vm4704_vm5 }
 0xb02   : > { %v4700_v0 = vsub.f32 1.0, %v4699_v56  ;;  %vm4718_vm10 = vweird.f32 %v11432_v13  ;;  %v4722_v7 = vand.u32 2147483647, %v11432_v13  ;;  %vm4733_vm14 = vweird.f32 %v11446_v23 }
 0xb03   : > { %4933 = vmatmul.f32.gmra.mxu2 %v4667_v41  ;;  %v4686_v28 = vmul.f32 %v7992_v24, %v4685_v49  ;;  %vm4708_vm8 = vcmp.eq.f32.partialorder %v4707_v43, 8.507059e+37 }
 0xb04   : > { %v4701_v10 = vmul.f32 %v11434_v34, %v4700_v0  ;;  %vm4723_vm12 = vcmp.eq.f32.partialorder %v4722_v7, 8.507059e+37 }
 0xb05   : > { %5150 = vrot.lane.b32.xlu2 %v12932_v57, %s8329_s26  ;;  %v4687_v1 = vadd.f32 %v7992_v24, %v4686_v28 }
 0xb06   : > { %5940 = vrot.lane.b32.xlu0 %v12932_v57, %s8330_s7  ;;  %v7996_v42 = vpop.eup %7995  ;;  %v4702_v29 = vadd.f32 %v11434_v34, %v4701_v10 }
 0xb07   : > { %v4714_v35 = vmul.f32 %v7996_v42, %v11432_v13  ;;  %v4691_v21 = vsel %vm4690_vm3, %v7992_v24, %v4687_v1  ;;  %v11465_v22 = vpop.eup %7997  ;;  %v4709_v24 = vand.u32 2147483648, %v11420_v3  ;;  %v11482_v31 = vpop.xlane.xlu2 %4609  ;;  %vm4719_vm9 = vweird.f32 %v7996_v42 }
 0xb08   : > { %v4696_v14 = vsel %vm4693_vm4, %v4695_v52, %v4691_v21  ;;  %v11461_v36 = vpop.xlane.xlu1 %4607  ;;  %v4729_v9 = vmul.f32 %v11465_v22, %v11446_v23  ;;  %v4706_v6 = vsel %vm4705_vm7, %v11434_v34, %v4702_v29  ;;  %v4724_v34 = vand.u32 2147483648, %v11432_v13  ;;  %vm4720_vm11 = vmor %vm4718_vm10, %vm4719_vm9 }
 0xb09   : > { %5950 = vrot.lane.b32.xlu1 %v12924_v27, %s8330_s7  ;;  %v4715_v18 = vsub.f32 1.0, %v4714_v35  ;;  %v4697_v38 = vmul.f32 %v11352_v37, %v4696_v14  ;;  %7999 = vrcp.f32 %v11461_v36  ;;  %v4710_v41 = vor.u32 1.1754944e-38, %v4709_v24 }
 0xb0a   : > { %v4730_v3 = vsub.f32 1.0, %v4729_v9  ;;  %8001 = vrcp.f32 %v11482_v31  ;;  %v4725_v63 = vor.u32 1.1754944e-38, %v4724_v34  ;;  %vm4734_vm13 = vweird.f32 %v11465_v22 }
 0xb0b   : > { %4936 = vmatmul.f32.gmra.mxu2 %v4682_v59  ;;  %v4716_v49 = vmul.f32 %v7996_v42, %v4715_v18  ;;  %v4711_v37 = vsel %vm4708_vm8, %v4710_v41, %v4706_v6  ;;  %v4739_v21 = vand.u32 2147483648, %v11446_v23  ;;  %v4737_v52 = vand.u32 2147483647, %v11446_v23  ;;  %vm4735_vm15 = vmor %vm4733_vm14, %vm4734_vm13 }
 0xb0c   : > { %v4712_v28 = vmul.f32 %v11354_v2, %v4711_v37  ;;  %v4731_v25 = vmul.f32 %v11465_v22, %v4730_v3  ;;  %v12996_v2 = vld [vmem:[#allocation8_spill] sm:$0xff]  ;;  %v4754_v9 = vand.u32 2147483648, %v11461_v36  ;;  %vm4748_vm5 = vweird.f32 %v11461_v36 }
 0xb0d   : > { %5942 = vrot.lane.b32.xlu2 %v12936_v30, %s8330_s7  ;;  %v4717_v56 = vadd.f32 %v7996_v42, %v4716_v49  ;;  %v4740_v24 = vor.u32 1.1754944e-38, %v4739_v21  ;;  %vm4738_vm3 = vcmp.eq.f32.partialorder %v4737_v52, 8.507059e+37  ;;  %v4752_v6 = vand.u32 2147483647, %v11461_v36 }
 0xb0e   : > { %5142 = vrot.lane.b32.xlu0 %v12995_v44, %s8329_s26  ;;  %v4732_v10 = vadd.f32 %v11465_v22, %v4731_v25  ;;  %vm4763_vm9 = vweird.f32 %v11482_v31  ;;  %v4767_v7 = vand.u32 2147483647, %v11482_v31 }
 0xb0f   : > { %v11484_v32 = vpop.eup %7999  ;;  %v4721_v1 = vsel %vm4720_vm11, %v7996_v42, %v4717_v56  ;;  %v5163_v49 = vpop.permute.xlu2 %5162  ;;  %v4755_v56 = vor.u32 1.1754944e-38, %v4754_v9  ;;  %vm4753_vm7 = vcmp.eq.f32.partialorder %v4752_v6, 8.507059e+37 }
 0xb10   : > { %v4744_v0 = vmul.f32 %v11484_v32, %v11461_v36  ;;  %v4726_v59 = vsel %vm4723_vm12, %v4725_v63, %v4721_v1  ;;  %v11500_v53 = vpop.xlane.xlu1 %4611  ;;  %v8002_v35 = vpop.eup %8001  ;;  %v4736_v29 = vsel %vm4735_vm15, %v11465_v22, %v4732_v10  ;;  %vm4749_vm4 = vweird.f32 %v11484_v32 }
 0xb11   : > { %5152 = vrot.lane.b32.xlu1 %v12936_v30, %s8329_s26  ;;  %v4727_v42 = vmul.f32 %v11361_v51, %v4726_v59  ;;  %8003 = vrcp.f32 %v11500_v53  ;;  %v4759_v14 = vmul.f32 %v8002_v35, %v11482_v31  ;;  %v4741_v51 = vsel %vm4738_vm3, %v4740_v24, %v4736_v29  ;;  %vm4750_vm6 = vmor %vm4748_vm5, %vm4749_vm4 }
 0xb12   : > { %v5959_v55 = vpop.permute.xlu0 %5958  ;;  %v4745_v13 = vsub.f32 1.0, %v4744_v0  ;;  %v4742_v22 = vmul.f32 %v11363_v12, %v4741_v51  ;;  %vm4764_vm8 = vweird.f32 %v8002_v35  ;;  %vm4768_vm11 = vcmp.eq.f32.partialorder %v4767_v7, 8.507059e+37 }
 0xb13   : > { %4939 = vmatmul.f32.gmra.mxu2 %v4697_v38  ;;  %7181 = vmatpush.xpose.msk.msrb.mxu1 %vm462_vm1, %v5959_v55  ;;  %v4760_v23 = vsub.f32 1.0, %v4759_v14  ;;  %vm4765_vm10 = vmor %vm4763_vm9, %vm4764_vm8  ;;  %vm4778_vm13 = vweird.f32 %v11500_v53  ;;  %v4782_v59 = vand.u32 2147483647, %v11500_v53 }
 0xb14   : > { %v4746_v18 = vmul.f32 %v11484_v32, %v4745_v13 }
 0xb15   : > { %5144 = vrot.lane.b32.xlu2 %v12941_v5, %s8329_s26  ;;  %v4761_v3 = vmul.f32 %v8002_v35, %v4760_v23  ;;  %vm4783_vm15 = vcmp.eq.f32.partialorder %v4782_v59, 8.507059e+37 }
 0xb16   : > { %5934 = vrot.lane.b32.xlu0 %v12941_v5, %s8330_s7  ;;  %v4747_v43 = vadd.f32 %v11484_v32, %v4746_v18 }
 0xb17   : > { %v8004_v55 = vpop.eup %8003  ;;  %v4762_v34 = vadd.f32 %v8002_v35, %v4761_v3 }
 0xb18   : > { %v4774_v41 = vmul.f32 %v8004_v55, %v11500_v53  ;;  %v4751_v37 = vsel %vm4750_vm6, %v11484_v32, %v4747_v43  ;;  %v4769_v32 = vand.u32 2147483648, %v11482_v31  ;;  %vm4779_vm12 = vweird.f32 %v8004_v55 }
 0xb19   : > { %5944 = vrot.lane.b32.xlu1 %v12927_v62, %s8330_s7  ;;  %v4756_v12 = vsel %vm4753_vm7, %v4755_v56, %v4751_v37  ;;  %v4766_v0 = vsel %vm4765_vm10, %v8002_v35, %v4762_v34  ;;  %vm4780_vm14 = vmor %vm4778_vm13, %vm4779_vm12 }
 0xb1a   : > { %v4775_v36 = vsub.f32 1.0, %v4774_v41 }
 0xb1b   : > { %4942 = vmatmul.f32.gmra.mxu2 %v4712_v28  ;;  %v4757_v28 = vmul.f32 %v11370_v50, %v4756_v12  ;;  %v4784_v50 = vand.u32 2147483648, %v11500_v53 }
 0xb1c   : > { %v4776_v25 = vmul.f32 %v8004_v55, %v4775_v36 }
 0xb1d   : > { %5936 = vrot.lane.b32.xlu2 %v12939_v40, %s8330_s7  ;;  %v4785_v10 = vor.u32 1.1754944e-38, %v4784_v50 }
 0xb1e   : > { %5930 = vrot.lane.b32.xlu0 %v12996_v2, %s8330_s7  ;;  %v4777_v63 = vadd.f32 %v8004_v55, %v4776_v25 }
 0xb20   : > { %v4781_v13 = vsel %vm4780_vm14, %v8004_v55, %v4777_v63 }
 0xb21   : > { %5146 = vrot.lane.b32.xlu1 %v12939_v40, %s8329_s26 }
 0xb23   : > { %4945 = vmatmul.f32.gmra.mxu2 %v4727_v42  ;;  %v4786_v42 = vsel %vm4783_vm15, %v4785_v10, %v4781_v13  ;;  %v4558_v13 = vsub.f32 %v11278_v45, %v11430_v48 }
 0xb25   : > { %5108 = vrot.lane.b32.xlu2 %v12996_v2, %s8331_s17 }
 0xb26   : > { %5112 = vrot.lane.b32.xlu0 %v12941_v5, %s8331_s17 }
 0xb28   : > { %v5165_v38 = vpop.permute.xlu1 %5164 }
 0xb29   : > { %5938 = vrot.lane.b32.xlu1 %v12931_v16, %s8330_s7  ;;  %7134 = vmatpush.xpose.msk.msra.mxu3 %vm462_vm1, %v5165_v38 }
 0xb2b   : > { %4948 = vmatmul.f32.gmra.mxu2 %v4742_v22  ;;  %v4557_v22 = vsub.f32 %v11282_v54, %v11378_v46 }
 0xb2d   : > { %7135 = vmatpush.xpose.msk.msra.mxu3 %vm462_vm1, %v5163_v49  ;;  %5110 = vrot.lane.b32.xlu2 %v12995_v44, %s8331_s17  ;;  %v4587_v56 = vmul.f32 1.442695, %v4557_v22 }
 0xb2e   : > { %5902 = vrot.lane.b32.xlu0 %v12941_v5, %s8332_s20  ;;  %v4770_v5 = vor.u32 1.1754944e-38, %v4769_v32 }
 0xb30   : > { %v4771_v1 = vsel %vm4768_vm11, %v4770_v5, %v4766_v0 }
 0xb31   : > { %5140 = vrot.lane.b32.xlu1 %v12996_v2, %s8329_s26  ;;  %v4772_v31 = vmul.f32 %v11368_v39, %v4771_v1  ;;  %v4787_v39 = vmul.f32 %v11375_v17, %v4786_v42  ;;  %s8334_s26 = smov 36  }
 0xb33   : > { %4951 = vmatmul.f32.gmra.mxu2 %v4757_v28 }
 0xb35   : > { %5900 = vrot.lane.b32.xlu2 %v12995_v44, %s8332_s20 }
 0xb36   : > { %5118 = vrot.lane.b32.xlu0 %v12932_v57, %s8331_s17 }
 0xb39   : > { %5932 = vrot.lane.b32.xlu1 %v12995_v44, %s8330_s7 }
 0xb3b   : > { %4954 = vmatmul.f32.gmra.mxu2 %v4772_v31 }
 0xb3d   : > { %5116 = vrot.lane.b32.xlu2 %v12931_v16, %s8331_s17  ;;  %v4614_v35 = vpop.xlane.xlu0 %4613 }
 0xb3e   : > { %8005 = vrcp.f32 %v4614_v35  ;;  %v4799_v29 = vand.u32 2147483648, %v4614_v35  ;;  %vm4793_vm4 = vweird.f32 %v4614_v35 }
 0xb3f   : > { %v4928_v21 = vpop.f32.mrf.mxu2 }
 0xb40   : > { %7115 = vmatmul.msk.f32.vlgmr.msra.gmra.mxu1 %vm462_vm1, %v4928_v21  ;;  %v4800_v51 = vor.u32 1.1754944e-38, %v4799_v29 }
 0xb41   : > { %5898 = vrot.lane.b32.xlu1 %v12996_v2, %s8332_s20  ;;  %v4797_v2 = vand.u32 2147483647, %v4614_v35 }
 0xb43   : > { %4957 = vmatmul.f32.gmra.mxu2 %v4787_v39  ;;  %vm4798_vm6 = vcmp.eq.f32.partialorder %v4797_v2, 8.507059e+37 }
 0xb44   : > { %v8006_v44 = vpop.eup %8005 }
 0xb45   : > { %5906 = vrot.lane.b32.xlu2 %v12931_v16, %s8332_s20  ;;  %v4789_v53 = vmul.f32 %v8006_v44, %v4614_v35  ;;  %vm4794_vm3 = vweird.f32 %v8006_v44  ;;  %v4589_v35 = vmul.f32 1.442695, %v4558_v13 }
 0xb46   : > { %vm4795_vm5 = vmor %vm4793_vm4, %vm4794_vm3 }
 0xb47   : > { %v4931_v52 = vpop.f32.mrf.mxu2  ;;  %v4790_v14 = vsub.f32 1.0, %v4789_v53 }
 0xb48   : > { %v4616_v18 = vpop.xlane.xlu2 %4615  ;;  %7116 = vmatmul.msk.f32.gmra.mxu1 %vm462_vm1, %v4931_v52 }
 0xb49   : > { %8007 = vrcp.f32 %v4616_v18  ;;  %5114 = vrot.lane.b32.xlu1 %v12939_v40, %s8331_s17  ;;  %v4791_v24 = vmul.f32 %v8006_v44, %v4790_v14  ;;  %v4814_v41 = vand.u32 2147483648, %v4616_v18  ;;  %v4812_v3 = vand.u32 2147483647, %v4616_v18 }
 0xb4a   : > { %vm4808_vm8 = vweird.f32 %v4616_v18 }
 0xb4b   : > { %v4792_v17 = vadd.f32 %v8006_v44, %v4791_v24  ;;  %vm4813_vm10 = vcmp.eq.f32.partialorder %v4812_v3, 8.507059e+37 }
 0xb4d   : > { %5122 = vrot.lane.b32.xlu2 %v12927_v62, %s8331_s17  ;;  %v4796_v16 = vsel %vm4795_vm5, %v8006_v44, %v4792_v17 }
 0xb4e   : > { %v4801_v38 = vsel %vm4798_vm6, %v4800_v51, %v4796_v16 }
 0xb4f   : > { %v8008_v23 = vpop.eup %8007  ;;  %v4802_v55 = vmul.f32 %v11394_v8, %v4801_v38  ;;  %v4815_v8 = vor.u32 1.1754944e-38, %v4814_v41 }
 0xb50   : > { %v4804_v43 = vmul.f32 %v8008_v23, %v4616_v18  ;;  %v5161_v9 = vpop.permute.xlu0 %5160  ;;  %vm4809_vm7 = vweird.f32 %v8008_v23  ;;  %v5955_v28 = vpop.permute.xlu2 %5954 }
 0xb51   : > { %5904 = vrot.lane.b32.xlu1 %v12939_v40, %s8332_s20  ;;  %4960 = vmatmul.f32.gmra.mxu2 %v4802_v55  ;;  %vm4810_vm9 = vmor %vm4808_vm8, %vm4809_vm7 }
 0xb52   : > { %v4805_v6 = vsub.f32 1.0, %v4804_v43  ;;  %7136 = vmatpush.xpose.msk.msra.mxu3 %vm462_vm1, %v5161_v9 }
 0xb53   : > { %v4618_v49 = vpop.xlane.xlu1 %4617 }
 0xb54   : > { %8009 = vrcp.f32 %v4618_v49  ;;  %v4806_v37 = vmul.f32 %v8008_v23, %v4805_v6  ;;  %v4829_v7 = vand.u32 2147483648, %v4618_v49  ;;  %v4827_v0 = vand.u32 2147483647, %v4618_v49 }
 0xb55   : > { %8011 = vpow2.f32 %v4587_v56  ;;  %vm4823_vm12 = vweird.f32 %v4618_v49 }
 0xb56   : > { %v4807_v12 = vadd.f32 %v8008_v23, %v4806_v37  ;;  %v4830_v63 = vor.u32 1.1754944e-38, %v4829_v7  ;;  %vm4828_vm14 = vcmp.eq.f32.partialorder %v4827_v0, 8.507059e+37  ;;  %8013 = vpow2.f32 %v4589_v35 }
 0xb58   : > { %v4811_v36 = vsel %vm4810_vm9, %v8008_v23, %v4807_v12  ;;  %v5953_v59 = vpop.permute.xlu0 %5952  ;;  %v5157_v10 = vpop.permute.xlu2 %5156 }
 0xb59   : > { %5120 = vrot.lane.b32.xlu1 %v12936_v30, %s8331_s17  ;;  %v4816_v40 = vsel %vm4813_vm10, %v4815_v8, %v4811_v36 }
 0xb5a   : > { %v8010_v54 = vpop.eup %8009  ;;  %v4817_v46 = vmul.f32 %v11399_v20, %v4816_v40 }
 0xb5b   : > { %v4819_v34 = vmul.f32 %v8010_v54, %v4618_v49  ;;  %vm4824_vm11 = vweird.f32 %v8010_v54  ;;  %v11572_v5 = vpop.eup %8011 }
 0xb5c   : > { %4963 = vmatmul.f32.gmra.mxu2 %v4817_v46  ;;  %vm4825_vm13 = vmor %vm4823_vm12, %vm4824_vm11  ;;  %v11588_v45 = vpop.eup %8013 }
 0xb5d   : > { %v4820_v32 = vsub.f32 1.0, %v4819_v34 }
 0xb5f   : > { %v4821_v25 = vmul.f32 %v8010_v54, %v4820_v32 }
 0xb60   : > { %4619 = vadd.xlane.f32.xlu0 %v11572_v5 }
 0xb61   : > { %5910 = vrot.lane.b32.xlu1 %v12936_v30, %s8332_s20  ;;  %v4822_v1 = vadd.f32 %v8010_v54, %v4821_v25  ;;  %v5155_v30 = vpop.permute.xlu0 %5154 }
 0xb63   : > { %v4826_v20 = vsel %vm4825_vm13, %v8010_v54, %v4822_v1 }
 0xb64   : > { %v4831_v50 = vsel %vm4828_vm14, %v4830_v63, %v4826_v20 }
 0xb65   : > { %v4832_v31 = vmul.f32 %v11402_v60, %v4831_v50  ;;  %v5949_v60 = vpop.permute.xlu2 %5948 }
 0xb67   : > { %4966 = vmatmul.f32.gmra.mxu2 %v4832_v31 }
 0xb69   : > { %5126 = vrot.lane.b32.xlu1 %v12930_v15, %s8331_s17  ;;  %v5947_v48 = vpop.permute.xlu0 %5946 }
 0xb6b   : > { %v5957_v21 = vpop.permute.xlu1 %5956 }
 0xb6c   : > { %7182 = vmatpush.xpose.msk.msrb.mxu1 %vm462_vm1, %v5957_v21 }
 0xb6d   : > { %v5151_v39 = vpop.permute.xlu2 %5150 }
 0xb70   : > { %7183 = vmatpush.xpose.msk.msrb.mxu1 %vm462_vm1, %v5955_v28 }
 0xb71   : > { %5916 = vrot.lane.b32.xlu1 %v12930_v15, %s8332_s20  ;;  %v5149_v44 = vpop.permute.xlu0 %5148 }
 0xb73   : > { %v5159_v42 = vpop.permute.xlu1 %5158 }
 0xb74   : > { %7137 = vmatpush.xpose.msk.msra.mxu3 %vm462_vm1, %v5159_v42  ;;  %7184 = vmatpush.xpose.msk.msrb.mxu1 %vm462_vm1, %v5953_v59 }
 0xb75   : > { %5908 = vrot.lane.b32.xlu0 %v12932_v57, %s8332_s20  ;;  %v5943_v53 = vpop.permute.xlu2 %5942 }
 0xb76   : > { %4621 = vadd.xlane.f32.xlu2 %v11588_v45 }
 0xb78   : > { %7138 = vmatpush.xpose.msk.msra.mxu3 %vm462_vm1, %v5157_v10 }
 0xb79   : > { %5132 = vrot.lane.b32.xlu1 %v12929_v26, %s8331_s17 }
 0xb7b   : > { %v5951_v15 = vpop.permute.xlu1 %5950 }
 0xb7c   : > { %7139 = vmatpush.xpose.msk.msra.mxu3 %vm462_vm1, %v5155_v30  ;;  %7185 = vmatpush.xpose.msk.msrb.mxu1 %vm462_vm1, %v5951_v15 }
 0xb7d   : > { %5124 = vrot.lane.b32.xlu0 %v12928_v47, %s8331_s17  ;;  %v5145_v18 = vpop.permute.xlu2 %5144 }
 0xb80   : > { %7186 = vmatpush.xpose.msk.msrb.mxu1 %vm462_vm1, %v5949_v60 }
 0xb81   : > { %5922 = vrot.lane.b32.xlu1 %v12929_v26, %s8332_s20  ;;  %v5941_v26 = vpop.permute.xlu0 %5940 }
 0xb83   : > { %v5153_v57 = vpop.permute.xlu1 %5152 }
 0xb84   : > { %7140 = vmatpush.xpose.msk.msra.mxu3 %vm462_vm1, %v5153_v57  ;;  %7187 = vmatpush.xpose.msk.msrb.mxu1 %vm462_vm1, %v5947_v48 }
 0xb85   : > { %5914 = vrot.lane.b32.xlu0 %v12928_v47, %s8332_s20  ;;  %v5937_v17 = vpop.permute.xlu2 %5936 }
 0xb86   : > { %v4934_v52 = vpop.f32.mrf.mxu2 }
 0xb87   : > { %7117 = vmatmul.msk.f32.gmra.mxu1 %vm462_vm1, %v4934_v52 }
 0xb88   : > { %7141 = vmatpush.xpose.msk.msra.mxu3 %vm462_vm1, %v5151_v39 }
 0xb89   : > { %5138 = vrot.lane.b32.xlu1 %v12926_v58, %s8331_s17  ;;  %v5143_v2 = vpop.permute.xlu0 %5142 }
 0xb8b   : > { %v5945_v14 = vpop.permute.xlu1 %5944 }
 0xb8c   : > { %7142 = vmatpush.xpose.msk.msra.mxu3 %vm462_vm1, %v5149_v44  ;;  %7188 = vmatpush.xpose.msk.msrb.mxu1 %vm462_vm1, %v5945_v14 }
 0xb8d   : > { %5130 = vrot.lane.b32.xlu0 %v12925_v61, %s8331_s17  ;;  %v5109_v43 = vpop.permute.xlu2 %5108 }
 0xb8e   : > { %5912 = vrot.lane.b32.xlu2 %v12927_v62, %s8332_s20  ;;  %v4937_v47 = vpop.f32.mrf.mxu2  ;;  %v11627_v62 = vpop.f32.mrf.mxu3 }
 0xb8f   : > { %7118 = vmatmul.msk.f32.gmra.mxu1 %vm462_vm1, %v4937_v47 }
 0xb90   : > { %7189 = vmatpush.xpose.msk.msrb.mxu1 %vm462_vm1, %v5943_v53 }
 0xb91   : > { %v5935_v16 = vpop.permute.xlu0 %5934 }
 0xb93   : > { %v5147_v29 = vpop.permute.xlu1 %5146 }
 0xb94   : > { %7143 = vmatpush.xpose.msk.msra.mxu3 %vm462_vm1, %v5147_v29  ;;  %7190 = vmatpush.xpose.msk.msrb.mxu1 %vm462_vm1, %v5941_v26 }
 0xb95   : > { %5920 = vrot.lane.b32.xlu0 %v12925_v61, %s8332_s20  ;;  %v5111_v6 = vpop.permute.xlu2 %5110 }
 0xb96   : > { %5128 = vrot.lane.b32.xlu2 %v12924_v27, %s8331_s17  ;;  %v4940_v24 = vpop.f32.mrf.mxu2  ;;  %v11637_v38 = vpop.f32.mrf.mxu3 }
 0xb97   : > { %7119 = vmatmul.msk.f32.gmra.mxu1 %vm462_vm1, %v4940_v24 }
 0xb98   : > { %7144 = vmatpush.xpose.msk.msra.mxu3 %vm462_vm1, %v5145_v18 }
 0xb99   : > { %v5931_v9 = vpop.permute.xlu0 %5930 }
 0xb9b   : > { %v5939_v51 = vpop.permute.xlu1 %5938 }
 0xb9c   : > { %7145 = vmatpush.xpose.msk.msra.mxu3 %vm462_vm1, %v5143_v2  ;;  %7191 = vmatpush.xpose.msk.msrb.mxu1 %vm462_vm1, %v5939_v51 }
 0xb9d   : > { %5136 = vrot.lane.b32.xlu0 %v12970_v33, %s8331_s17 }
 0xb9e   : > { %5918 = vrot.lane.b32.xlu2 %v12924_v27, %s8332_s20  ;;  %v4943_v61 = vpop.f32.mrf.mxu2  ;;  %v11648_v22 = vpop.f32.mrf.mxu3 }
 0xb9f   : > { %7120 = vmatmul.msk.f32.gmra.mxu1 %vm462_vm1, %v4943_v61 }
 0xba0   : > { %7192 = vmatpush.xpose.msk.msrb.mxu1 %vm462_vm1, %v5937_v17 }
 0xba1   : > { %v5113_v41 = vpop.permute.xlu0 %5112 }
 0xba3   : > { %v5141_v23 = vpop.permute.xlu1 %5140 }
 0xba4   : > { %7146 = vmatpush.xpose.msk.msra.mxu3 %vm462_vm1, %v5141_v23  ;;  %7193 = vmatpush.xpose.msk.msrb.mxu1 %vm462_vm1, %v5935_v16 }
 0xba5   : > { %5926 = vrot.lane.b32.xlu0 %v12970_v33, %s8332_s20 }
 0xba6   : > { %5134 = vrot.lane.b32.xlu2 %v12922_v4, %s8331_s17  ;;  %v4946_v27 = vpop.f32.mrf.mxu2  ;;  %v11660_v3 = vpop.f32.mrf.mxu3 }
 0xba7   : > { %7147 = vmatmul.msk.f32.vlgmr.msra.gmra.mxu3 %vm462_vm1, %v5109_v43  ;;  %7121 = vmatmul.msk.f32.gmra.mxu1 %vm462_vm1, %v4946_v27 }
 0xba9   : > { %v11669_v36 = vpop.permute.xlu0 %5902 }
 0xbab   : > { %v5933_v55 = vpop.permute.xlu1 %5932 }
 0xbac   : > { %7194 = vmatpush.xpose.msk.msrb.mxu1 %vm462_vm1, %v5933_v55 }
 0xbae   : > { %5924 = vrot.lane.b32.xlu2 %v12922_v4, %s8332_s20  ;;  %v4949_v49 = vpop.f32.mrf.mxu2  ;;  %v11663_v4 = vpop.permute.xlu2 %5900 }
 0xbaf   : > { %7148 = vmatmul.msk.f32.gmra.mxu3 %vm462_vm1, %v5111_v6  ;;  %7122 = vmatmul.msk.f32.gmra.mxu1 %vm462_vm1, %v4949_v49  ;;  %v11666_v8 = vpop.f32.mrf.mxu3 }
 0xbb0   : > { %7195 = vmatpush.xpose.msk.msrb.mxu1 %vm462_vm1, %v5931_v9 }
 0xbb1   : > { %v5119_v46 = vpop.permute.xlu0 %5118 }
 0xbb3   : > { %v11655_v33 = vpop.permute.xlu1 %5898 }
 0xbb6   : > { %5928 = vrot.lane.b32.xlu2 %v12926_v58, %s8332_s20  ;;  %v4952_v37 = vpop.f32.mrf.mxu2  ;;  %v5117_v58 = vpop.permute.xlu2 %5116  ;;  %s8333_s20 = smov 40  }
 0xbb7   : > { %7149 = vmatmul.msk.f32.gmra.mxu3 %vm462_vm1, %v5113_v41  ;;  %7123 = vmatmul.msk.f32.gmra.mxu1 %vm462_vm1, %v4952_v37  ;;  %v11672_v54 = vpop.f32.mrf.mxu3 }
 0xbb8   : > { %12997 = vst [vmem:[#allocation10_spill] sm:$0xff] %v11672_v54 }
 0xbbb   : > { %v5115_v56 = vpop.permute.xlu1 %5114 }
 0xbbe   : > { %v4955_v12 = vpop.f32.mrf.mxu2  ;;  %v11680_v28 = vpop.permute.xlu2 %5906 }
 0xbbf   : > { %7150 = vmatmul.msk.f32.gmra.mxu3 %vm462_vm1, %v5115_v56  ;;  %7124 = vmatmul.msk.f32.gmra.mxu1 %vm462_vm1, %v4955_v12  ;;  %v11678_v32 = vpop.f32.mrf.mxu3 }
 0xbc0   : > { %12998 = vst [vmem:[#allocation8_spill] sm:$0xff] %v11678_v32 }
 0xbc3   : > { %v11675_v34 = vpop.permute.xlu1 %5904 }
 0xbc6   : > { %v4958_v40 = vpop.f32.mrf.mxu2  ;;  %v5123_v50 = vpop.permute.xlu2 %5122 }
 0xbc7   : > { %7151 = vmatmul.msk.f32.gmra.mxu3 %vm462_vm1, %v5117_v58  ;;  %7125 = vmatmul.msk.f32.gmra.mxu1 %vm462_vm1, %v4958_v40  ;;  %v11684_v63 = vpop.f32.mrf.mxu3 }
 0xbc8   : > { %12999 = vst [vmem:[#allocation81_spill] sm:$0xff] %v11684_v63 }
 0xbcb   : > { %v5121_v0 = vpop.permute.xlu1 %5120 }
 0xbcf   : > { %7152 = vmatmul.msk.f32.gmra.mxu3 %vm462_vm1, %v5119_v46  ;;  %v11688_v60 = vpop.f32.mrf.mxu3 }
 0xbd0   : > { %13000 = vst [vmem:[#allocation82_spill] sm:$0xff] %v11688_v60 }
 0xbd3   : > { %v4620_v7 = vpop.xlane.xlu0 %4619  ;;  %v11696_v52 = vpop.permute.xlu1 %5910 }
 0xbd4   : > { %8015 = vrcp.f32 %v4620_v7  ;;  %v4961_v25 = vpop.f32.mrf.mxu2  ;;  %v4844_v59 = vand.u32 2147483648, %v4620_v7  ;;  %v4842_v35 = vand.u32 2147483647, %v4620_v7  ;;  %vm4838_vm3 = vweird.f32 %v4620_v7 }
 0xbd5   : > { %7126 = vmatmul.msk.f32.gmra.mxu1 %vm462_vm1, %v4961_v25 }
 0xbd6   : > { %v4845_v30 = vor.u32 1.1754944e-38, %v4844_v59  ;;  %vm4843_vm5 = vcmp.eq.f32.partialorder %v4842_v35, 8.507059e+37 }
 0xbd7   : > { %7153 = vmatmul.msk.f32.gmra.mxu3 %vm462_vm1, %v5121_v0  ;;  %v11694_v53 = vpop.f32.mrf.mxu3 }
 0xbd8   : > { %13001 = vst [vmem:[#allocation83_spill] sm:$0xff] %v11694_v53 }
 0xbda   : > { %v8016_v1 = vpop.eup %8015 }
 0xbdb   : > { %v4834_v20 = vmul.f32 %v8016_v1, %v4620_v7  ;;  %vm4839_vm15 = vweird.f32 %v8016_v1  ;;  %v5127_v51 = vpop.permute.xlu1 %5126 }
 0xbdc   : > { %vm4840_vm4 = vmor %vm4838_vm3, %vm4839_vm15 }
 0xbdd   : > { %v4835_v31 = vsub.f32 1.0, %v4834_v20 }
 0xbdf   : > { %7154 = vmatmul.msk.f32.gmra.mxu3 %vm462_vm1, %v5123_v50  ;;  %v4964_v13 = vpop.f32.mrf.mxu2  ;;  %v4836_v10 = vmul.f32 %v8016_v1, %v4835_v31  ;;  %v11699_v29 = vpop.f32.mrf.mxu3  ;;  %v11734_v50 = vld [vmem:[%s12748_s5] sm:$0xff] }
 0xbe0   : > { %7127 = vmatmul.msk.f32.gmra.mxu1 %vm462_vm1, %v4964_v13  ;;  %13002 = vst [vmem:[#allocation84_spill] sm:$0xff] %v11699_v29  ;;  %v11740_v13 = vld [vmem:[%s12748_s5 + $0x8] sm:$0xff] }
 0xbe1   : > { %v4837_v21 = vadd.f32 %v8016_v1, %v4836_v10 }
 0xbe3   : > { %v4841_v42 = vsel %vm4840_vm4, %v8016_v1, %v4837_v21  ;;  %v11710_v49 = vpop.permute.xlu1 %5916  ;;  %v11749_v21 = vld [vmem:[%s12748_s5 + $0x10] sm:$0xff] }
 0xbe4   : > { %v4846_v48 = vsel %vm4843_vm5, %v4845_v30, %v4841_v42 }
 0xbe5   : > { %v4847_v15 = vmul.f32 %v11572_v5, %v4846_v48  ;;  %v11758_v48 = vld [vmem:[%s12748_s5 + $0x18] sm:$0xff] }
 0xbe7   : > { %v11691_v39 = vpop.permute.xlu0 %5908  ;;  %4969 = vmatmul.f32.gmra.mxu2 %v4847_v15  ;;  %v11705_v55 = vpop.f32.mrf.mxu3 }
 0xbe8   : > { %13003 = vst [vmem:[#allocation85_spill] sm:$0xff] %v11705_v55 }
 0xbe9   : > { %v4622_v57 = vpop.xlane.xlu2 %4621 }
 0xbea   : > { %8017 = vrcp.f32 %v4622_v57  ;;  %v4967_v44 = vpop.f32.mrf.mxu2  ;;  %v4859_v5 = vand.u32 2147483648, %v4622_v57  ;;  %v4857_v17 = vand.u32 2147483647, %v4622_v57  ;;  %vm4853_vm7 = vweird.f32 %v4622_v57 }
 0xbeb   : > { %7128 = vmatmul.msk.f32.gmra.mxu1 %vm462_vm1, %v4967_v44  ;;  %v11767_v44 = vld [vmem:[%s12748_s5 + $0x20] sm:$0xff] }
 0xbec   : > { %v4860_v16 = vor.u32 1.1754944e-38, %v4859_v5  ;;  %vm4858_vm9 = vcmp.eq.f32.partialorder %v4857_v17, 8.507059e+37  ;;  %v13008_v5 = vld [vmem:[#allocation30_spill] sm:$0xff] }
 0xbef   : > { %v5125_v14 = vpop.permute.xlu0 %5124  ;;  %v11712_v41 = vpop.f32.mrf.mxu3 }
 0xbf0   : > { %v8018_v26 = vpop.eup %8017  ;;  %7155 = vmatmul.msk.f32.gmra.mxu3 %vm462_vm1, %v5125_v14  ;;  %13004 = vst [vmem:[#allocation86_spill] sm:$0xff] %v11712_v41 }
 0xbf1   : > { %v4849_v47 = vmul.f32 %v8018_v26, %v4622_v57  ;;  %v11701_v2 = vpop.permute.xlu2 %5912  ;;  %vm4854_vm6 = vweird.f32 %v8018_v26 }
 0xbf2   : > { %vm4855_vm8 = vmor %vm4853_vm7, %vm4854_vm6 }
 0xbf3   : > { %v4850_v18 = vsub.f32 1.0, %v4849_v47  ;;  %v11776_v47 = vld [vmem:[%s12748_s5 + $0x28] sm:$0xff] }
 0xbf5   : > { %v4851_v24 = vmul.f32 %v8018_v26, %v4850_v18 }
 0xbf7   : > { %v4852_v61 = vadd.f32 %v8018_v26, %v4851_v24  ;;  %v11707_v9 = vpop.permute.xlu0 %5914  ;;  %v11717_v12 = vpop.f32.mrf.mxu3  ;;  %v13009_v24 = vld [vmem:[#allocation12_spill] sm:$0xff] }
 0xbf8   : > { %7156 = vmatmul.msk.f32.gmra.mxu3 %vm462_vm1, %v5127_v51  ;;  %13005 = vst [vmem:[#allocation87_spill] sm:$0xff] %v11717_v12  ;;  %v13010_v51 = vld [vmem:[#allocation20_spill] sm:$0xff] }
 0xbf9   : > { %v4856_v23 = vsel %vm4855_vm8, %v8018_v26, %v4852_v61  ;;  %v5129_v6 = vpop.permute.xlu2 %5128  ;;  %v11795_v61 = vpop.f32.mrf.mxu1 }
 0xbfa   : > { %v4861_v43 = vsel %vm4858_vm9, %v4860_v16, %v4856_v23  ;;  %v13011_v16 = vld [vmem:[#allocation26_spill] sm:$0xff] }
 0xbfb   : > { %v4862_v27 = vmul.f32 %v11588_v45, %v4861_v43  ;;  %v5133_v45 = vpop.permute.xlu1 %5132 }
 0xbfd   : > { %4972 = vmatmul.f32.gmra.mxu2 %v4862_v27 }
 0xbff   : > { %v5131_v37 = vpop.permute.xlu0 %5130  ;;  %v11722_v46 = vpop.f32.mrf.mxu3 }
 0xc00   : > { %7157 = vmatmul.msk.f32.gmra.mxu3 %vm462_vm1, %v5129_v6  ;;  %13006 = vst [vmem:[#allocation88_spill] sm:$0xff] %v11722_v46 }
 0xc01   : > { %v11715_v56 = vpop.permute.xlu2 %5918  ;;  %v11801_v23 = vpop.f32.mrf.mxu1 }
 0xc03   : > { %v11725_v7 = vpop.permute.xlu1 %5922 }
 0xc07   : > { %v11720_v58 = vpop.permute.xlu0 %5920  ;;  %v11728_v0 = vpop.f32.mrf.mxu3 }
 0xc08   : > { %7158 = vmatmul.msk.f32.gmra.mxu3 %vm462_vm1, %v5131_v37  ;;  %13007 = vst [vmem:[#allocation89_spill] sm:$0xff] %v11728_v0  ;;  %v11813_v37 = vld [vmem:[%s12748_s5 + $0x30] sm:$0xff] }
 0xc09   : > { %v5135_v40 = vpop.permute.xlu2 %5134  ;;  %v11804_v27 = vpop.f32.mrf.mxu1 }
 0xc0b   : > { %v5139_v1 = vpop.permute.xlu1 %5138 }
 0xc0f   : > { %v5137_v25 = vpop.permute.xlu0 %5136 }
 0xc10   : > { %7159 = vmatmul.msk.f32.gmra.mxu3 %vm462_vm1, %v5133_v45 }
 0xc11   : > { %v11808_v6 = vpop.f32.mrf.mxu1 }
 0xc18   : > { %7160 = vmatmul.msk.f32.gmra.mxu3 %vm462_vm1, %v5135_v40 }
 0xc20   : > { %7161 = vmatmul.msk.f32.gmra.mxu3 %vm462_vm1, %v5137_v25 }
 0xc28   : > { %7162 = vmatmul.msk.f32.gmra.mxu3 %vm462_vm1, %v5139_v1 }
 0xc2a   : > { %v5253_v20 = vpop.f32.mrf.mxu3 }
 0xc2b   : > { %v5254_v31 = vadd.f32 %v11734_v50, %v5253_v20 }
 0xc2d   : > { %5301 = vmax.xlane.f32.xlu1 %v5254_v31 }
 0xc32   : > { %v5256_v59 = vpop.f32.mrf.mxu3 }
 0xc33   : > { %v11743_v10 = vadd.f32 %v11740_v13, %v5256_v59  ;;  %v11829_v59 = vpop.permute.xlu2 %5924 }
 0xc35   : > { %5303 = vmax.xlane.f32.xlu2 %v11743_v10 }
 0xc3a   : > { %v5259_v35 = vpop.f32.mrf.mxu3 }
 0xc3b   : > { %v11752_v30 = vadd.f32 %v11749_v21, %v5259_v35 }
 0xc3d   : > { %5305 = vmax.xlane.f32.xlu0 %v11752_v30 }
 0xc42   : > { %v5262_v42 = vpop.f32.mrf.mxu3 }
 0xc43   : > { %v11761_v15 = vadd.f32 %v11758_v48, %v5262_v42 }
 0xc45   : > { %5307 = vmax.xlane.f32.xlu1 %v11761_v15 }
 0xc4a   : > { %v5265_v57 = vpop.f32.mrf.mxu3 }
 0xc4b   : > { %v11770_v14 = vadd.f32 %v11767_v44, %v5265_v57  ;;  %v11854_v57 = vpop.permute.xlu0 %5926 }
 0xc4d   : > { %5309 = vmax.xlane.f32.xlu2 %v11770_v14 }
 0xc52   : > { %v5268_v26 = vpop.f32.mrf.mxu3 }
 0xc53   : > { %v11779_v18 = vadd.f32 %v11776_v47, %v5268_v26  ;;  %v13017_v26 = vld [vmem:[#allocation32_spill] sm:$0xff] }
 0xc55   : > { %5311 = vmax.xlane.f32.xlu0 %v11779_v18 }
 0xc5e   : > { %7564 = vrot.lane.b32.xlu1 %v12971_v19, %s8333_s20 }
 0xc65   : > { %7554 = vrot.lane.b32.xlu2 %v13008_v5, %s8333_s20 }
 0xc66   : > { %7589 = vrot.lane.b32.xlu1 %v13009_v24, %s8334_s26 }
 0xc69   : > { %7559 = vrot.lane.b32.xlu0 %v13008_v5, %s8334_s26 }
 0xc6a   : > { %v4970_v17 = vpop.f32.mrf.mxu2 }
 0xc6b   : > { %7129 = vmatmul.msk.f32.gmra.mxu1 %vm462_vm1, %v4970_v17 }
 0xc6d   : > { %7569 = vrot.lane.b32.xlu2 %v12971_v19, %s8334_s26  ;;  %v5271_v19 = vpop.f32.mrf.mxu3 }
 0xc6e   : > { %7609 = vrot.lane.b32.xlu1 %v13010_v51, %s8334_s26  ;;  %v11816_v45 = vadd.f32 %v11813_v37, %v5271_v19 }
 0xc75   : > { %7574 = vrot.lane.b32.xlu2 %v13011_v16, %s8333_s20 }
 0xc7d   : > { %7579 = vrot.lane.b32.xlu2 %v13011_v16, %s8334_s26 }
 0xc80   : > { %v4973_v43 = vpop.f32.mrf.mxu2 }
 0xc81   : > { %7130 = vmatmul.msk.f32.gmra.mxu1 %vm462_vm1, %v4973_v43  ;;  %v11871_v43 = vld [vmem:[%s12748_s5 + $0x38] sm:$0xff] }
 0xc89   : > { %7196 = vmatmul.msk.f32.vlgmr.msrb.gmra.mxu1 %vm462_vm1, %v11655_v33  ;;  %v11823_v33 = vpop.f32.mrf.mxu1 }
 0xc8a   : > { %13012 = vst [vmem:[#allocation30_spill] sm:$0xff] %v11823_v33 }
 0xc91   : > { %7197 = vmatmul.msk.f32.gmra.mxu1 %vm462_vm1, %v11663_v4  ;;  %v11827_v20 = vpop.f32.mrf.mxu1 }
 0xc92   : > { %13013 = vst [vmem:[#allocation12_spill] sm:$0xff] %v11827_v20 }
 0xc93   : > { %5313 = vmax.xlane.f32.xlu0 %v11816_v45 }
 0xc99   : > { %7198 = vmatmul.msk.f32.gmra.mxu1 %vm462_vm1, %v11669_v36  ;;  %v11838_v36 = vpop.f32.mrf.mxu1 }
 0xc9a   : > { %13014 = vst [vmem:[#allocation20_spill] sm:$0xff] %v11838_v36 }
 0xca0   : > { %v5302_v40 = vpop.xlane.xlu1 %5301 }
 0xca1   : > { %v5333_v25 = vsub.f32 %v5254_v31, %v5302_v40  ;;  %7199 = vmatmul.msk.f32.gmra.mxu1 %vm462_vm1, %v11675_v34  ;;  %v11840_v31 = vpop.permute.xlu2 %5928  ;;  %v11844_v34 = vpop.f32.mrf.mxu1 }
 0xca2   : > { %13015 = vst [vmem:[#allocation26_spill] sm:$0xff] %v11844_v34 }
 0xca3   : > { %v5349_v1 = vmul.f32 1.442695, %v5333_v25 }
 0xca5   : > { %8019 = vpow2.f32 %v5349_v1 }
 0xca7   : > { %7584 = vrot.lane.b32.xlu0 %v13009_v24, %s8333_s20 }
 0xca9   : > { %7200 = vmatmul.msk.f32.gmra.mxu1 %vm462_vm1, %v11680_v28  ;;  %v5304_v35 = vpop.xlane.xlu2 %5303  ;;  %v11852_v28 = vpop.f32.mrf.mxu1 }
 0xcaa   : > { %13016 = vst [vmem:[#allocation90_spill] sm:$0xff] %v11852_v28 }
 0xcab   : > { %v11835_v4 = vpop.eup %8019 }
 0xcac   : > { %5381 = vadd.xlane.f32.xlu2 %v11835_v4 }
 0xcb1   : > { %7201 = vmatmul.msk.f32.gmra.mxu1 %vm462_vm1, %v11691_v39  ;;  %v11864_v16 = vpop.f32.mrf.mxu1 }
 0xcb2   : > { %13018 = vst [vmem:[#allocation32_spill] sm:$0xff] %v11864_v16 }
 0xcb8   : > { %v11858_v5 = vpop.xlane.xlu1 %5307 }
 0xcb9   : > { %7202 = vmatmul.msk.f32.gmra.mxu1 %vm462_vm1, %v11696_v52  ;;  %v11862_v52 = vpop.xlane.xlu0 %5305 }
 0xcc0   : > { %v11848_v42 = vpop.xlane.xlu2 %5309 }
 0xcc1   : > { %7203 = vmatmul.msk.f32.gmra.mxu1 %vm462_vm1, %v11701_v2  ;;  %v5274_v2 = vpop.f32.mrf.mxu3 }
 0xcc2   : > { %v11874_v19 = vadd.f32 %v11871_v43, %v5274_v2 }
 0xcc4   : > { %7594 = vrot.lane.b32.xlu2 %v13017_v26, %s8333_s20 }
 0xcc8   : > { %v7555_v39 = vpop.permute.xlu2 %7554  ;;  %v11879_v1 = vpop.xlane.xlu0 %5311 }
 0xcc9   : > { %v7556_v24 = vunpack.i.l.bf16 %v7555_v39  ;;  %7204 = vmatmul.msk.f32.gmra.mxu1 %vm462_vm1, %v11707_v9  ;;  %v7557_v17 = vunpack.i.h.bf16 %v7555_v39  ;;  %v11881_v39 = vpop.f32.mrf.mxu1 }
 0xcca   : > { %13019 = vst [vmem:[#allocation91_spill] sm:$0xff] %v11881_v39 }
 0xccb   : > { %5701 = vmatpush.msrb.mxu0 %v7556_v24 }
 0xccc   : > { %7599 = vrot.lane.b32.xlu2 %v13017_v26, %s8334_s26 }
 0xccd   : > { %5702 = vmatpush.msrb.mxu0 %v7557_v17 }
 0xcd0   : > { %v7570_v9 = vpop.permute.xlu2 %7569  ;;  %v7565_v40 = vpop.permute.xlu1 %7564 }
 0xcd1   : > { %v7566_v25 = vunpack.i.l.bf16 %v7565_v40  ;;  %5315 = vmax.xlane.f32.xlu0 %v11874_v19  ;;  %7205 = vmatmul.msk.f32.gmra.mxu1 %vm462_vm1, %v11710_v49  ;;  %v7567_v26 = vunpack.i.h.bf16 %v7565_v40  ;;  %v11885_v46 = vpop.f32.mrf.mxu1  ;;  %v7571_v12 = vunpack.i.l.bf16 %v7570_v9 }
 0xcd2   : > { %13020 = vst [vmem:[#allocation92_spill] sm:$0xff] %v11885_v46 }
 0xcd3   : > { %5703 = vmatpush.msrb.mxu0 %v7566_v25  ;;  %v7572_v25 = vunpack.i.h.bf16 %v7570_v9 }
 0xcd5   : > { %5704 = vmatpush.msrb.mxu0 %v7567_v26 }
 0xcd8   : > { %v7575_v24 = vpop.permute.xlu2 %7574 }
 0xcd9   : > { %v7576_v17 = vunpack.i.l.bf16 %v7575_v24  ;;  %7206 = vmatmul.msk.f32.gmra.mxu1 %vm462_vm1, %v11715_v56  ;;  %v7577_v2 = vunpack.i.h.bf16 %v7575_v24  ;;  %v7590_v56 = vpop.permute.xlu1 %7589  ;;  %v11891_v24 = vpop.f32.mrf.mxu1 }
 0xcda   : > { %13021 = vst [vmem:[#allocation93_spill] sm:$0xff] %v11891_v24  ;;  %v7592_v9 = vunpack.i.h.bf16 %v7590_v56 }
 0xcdb   : > { %v7560_v0 = vpop.permute.xlu0 %7559  ;;  %5705 = vmatpush.msrb.mxu0 %v7576_v17  ;;  %v5334_v17 = vsub.f32 %v11743_v10, %v5304_v35  ;;  %v8204_v35 = vld [vmem:[%s12748_s5 + $0x40] sm:$0xff] }
 0xcdc   : > { %v7561_v11 = vunpack.i.l.bf16 %v7560_v0  ;;  %v7562_v49 = vunpack.i.h.bf16 %v7560_v0 }
 0xcdd   : > { %5706 = vmatpush.msrb.mxu0 %v7577_v2 }
 0xcde   : > { %6491 = vmatpush.msrb.mxu3 %v7561_v11  ;;  %v7591_v11 = vunpack.i.l.bf16 %v7590_v56 }
 0xce0   : > { %6492 = vmatpush.msrb.mxu3 %v7562_v49  ;;  %v7580_v40 = vpop.permute.xlu2 %7579 }
 0xce1   : > { %7207 = vmatmul.msk.f32.gmra.mxu1 %vm462_vm1, %v11720_v58  ;;  %v7581_v26 = vunpack.i.l.bf16 %v7580_v40  ;;  %v7582_v0 = vunpack.i.h.bf16 %v7580_v40  ;;  %v5351_v58 = vmul.f32 1.442695, %v5334_v17  ;;  %v11898_v2 = vpop.f32.mrf.mxu1 }
 0xce2   : > { %6493 = vmatpush.msrb.mxu3 %v7571_v12  ;;  %v13022_v12 = vld [vmem:[#allocation16_spill] sm:$0xff] }
 0xce3   : > { %13023 = vst [vmem:[#allocation16_spill] sm:$0xff] %v11898_v2  ;;  %8021 = vpow2.f32 %v5351_v58 }
 0xce4   : > { %6494 = vmatpush.msrb.mxu3 %v7572_v25 }
 0xce5   : > { %7604 = vrot.lane.b32.xlu0 %v13010_v51, %s8333_s20 }
 0xce6   : > { %6495 = vmatpush.msrb.mxu3 %v7581_v26 }
 0xce8   : > { %6496 = vmatpush.msrb.mxu3 %v7582_v0 }
 0xce9   : > { %7208 = vmatmul.msk.f32.gmra.mxu1 %vm462_vm1, %v11725_v7  ;;  %v11902_v10 = vpop.eup %8021  ;;  %v11905_v51 = vpop.f32.mrf.mxu1 }
 0xcea   : > { %6497 = vmatpush.msrb.mxu3 %v7591_v11  ;;  %13024 = vst [vmem:[#allocation94_spill] sm:$0xff] %v11905_v51  ;;  %v5277_v7 = vpop.f32.mrf.mxu3 }
 0xceb   : > { %v11912_v49 = vadd.f32 %v8204_v35, %v5277_v7 }
 0xcec   : > { %6498 = vmatpush.msrb.mxu3 %v7592_v9 }
 0xced   : > { %7619 = vrot.lane.b32.xlu0 %v13022_v12, %s8334_s26 }
 0xcf1   : > { %7209 = vmatmul.msk.f32.gmra.mxu1 %vm462_vm1, %v11829_v59 }
 0xcf5   : > { %5383 = vadd.xlane.f32.xlu2 %v11902_v10 }
 0xcf9   : > { %7210 = vmatmul.msk.f32.gmra.mxu1 %vm462_vm1, %v11854_v57 }
 0xcfd   : > { %5317 = vmax.xlane.f32.xlu2 %v11912_v49 }
 0xcfe   : > { %v11915_v40 = vpop.f32.mrf.mxu1 }
 0xcff   : > { %13025 = vst [vmem:[#allocation95_spill] sm:$0xff] %v11915_v40 }
 0xd01   : > { %7211 = vmatmul.msk.f32.gmra.mxu1 %vm462_vm1, %v11840_v31 }
 0xd06   : > { %v6043_v59 = vpop.f32.mrf.mxu1  ;;  %v11922_v56 = vpop.xlane.xlu0 %5313 }
 0xd07   : > { %v11926_v57 = vadd.f32 %v11734_v50, %v6043_v59 }
 0xd0e   : > { %v6046_v25 = vpop.f32.mrf.mxu1 }
 0xd0f   : > { %v11920_v26 = vadd.f32 %v11740_v13, %v6046_v25 }
 0xd11   : > { %6093 = vmax.xlane.f32.xlu1 %v11920_v26 }
 0xd15   : > { %7614 = vrot.lane.b32.xlu2 %v13022_v12, %s8333_s20 }
 0xd16   : > { %v6049_v17 = vpop.f32.mrf.mxu1 }
 0xd17   : > { %6091 = vmax.xlane.f32.xlu0 %v11926_v57 }
 0xd19   : > { %v7585_v0 = vpop.permute.xlu0 %7584 }
 0xd1a   : > { %v7586_v31 = vunpack.i.l.bf16 %v7585_v0  ;;  %v7587_v11 = vunpack.i.h.bf16 %v7585_v0 }
 0xd1c   : > { %5707 = vmatpush.msrb.mxu0 %v7586_v31 }
 0xd1e   : > { %5708 = vmatpush.msrb.mxu0 %v7587_v11  ;;  %v6052_v13 = vpop.f32.mrf.mxu1 }
 0xd1f   : > { %v11932_v58 = vadd.f32 %v11758_v48, %v6052_v13  ;;  %v11934_v9 = vpop.xlane.xlu2 %5381  ;;  %v7610_v13 = vpop.permute.xlu1 %7609 }
 0xd20   : > { %v7612_v51 = vunpack.i.h.bf16 %v7610_v13  ;;  %vm5418_vm11 = vweird.f32 %v11934_v9 }
 0xd21   : > { %6097 = vmax.xlane.f32.xlu0 %v11932_v58 }
 0xd26   : > { %v6055_v50 = vpop.f32.mrf.mxu1 }
 0xd27   : > { %v11938_v7 = vadd.f32 %v11767_v44, %v6055_v50  ;;  %v7595_v12 = vpop.permute.xlu2 %7594  ;;  %v7611_v44 = vunpack.i.l.bf16 %v7610_v13  ;;  %v13026_v50 = vld [vmem:[#allocation13_spill] sm:$0xff] }
 0xd28   : > { %v7596_v59 = vunpack.i.l.bf16 %v7595_v12  ;;  %v7597_v25 = vunpack.i.h.bf16 %v7595_v12 }
 0xd29   : > { %6099 = vmax.xlane.f32.xlu1 %v11938_v7 }
 0xd2a   : > { %5709 = vmatpush.msrb.mxu0 %v7596_v59  ;;  %v5335_v59 = vsub.f32 %v11752_v30, %v11862_v52 }
 0xd2c   : > { %5710 = vmatpush.msrb.mxu0 %v7597_v25  ;;  %v5353_v25 = vmul.f32 1.442695, %v5335_v59 }
 0xd2e   : > { %v6058_v0 = vpop.f32.mrf.mxu1  ;;  %8023 = vpow2.f32 %v5353_v25 }
 0xd2f   : > { %v11942_v31 = vadd.f32 %v11776_v47, %v6058_v0  ;;  %v7600_v48 = vpop.permute.xlu2 %7599  ;;  %v11954_v0 = vadd.f32 %v11749_v21, %v6049_v17  ;;  %v8205_v21 = vld [vmem:[%s12748_s5 + $0x48] sm:$0xff] }
 0xd30   : > { %v7601_v11 = vunpack.i.l.bf16 %v7600_v48  ;;  %v7602_v40 = vunpack.i.h.bf16 %v7600_v48 }
 0xd31   : > { %6101 = vmax.xlane.f32.xlu1 %v11942_v31 }
 0xd32   : > { %6499 = vmatpush.msrb.mxu3 %v7601_v11 }
 0xd34   : > { %6500 = vmatpush.msrb.mxu3 %v7602_v40  ;;  %v11961_v30 = vpop.eup %8023 }
 0xd35   : > { %7624 = vrot.lane.b32.xlu0 %v13026_v50, %s8333_s20  ;;  %s12578_s20 = scalar_lea.vmem [#allocation5], %s6819_s28  ;;  %s7237_s28 = sshll.u32 %s8393_s25, 7 }
 0xd36   : > { %6501 = vmatpush.msrb.mxu3 %v7611_v44  ;;  %v6061_v12 = vpop.f32.mrf.mxu1  ;;  %s6735_s14 = scalar_lea.hbm %s12749_s6, %s7237_s28  ;;  %s6736_s11 = sshll.u32 %s12578_s20, 4  ;;  %s6737_s11 = int_to_ptr.vmem [resolvable:$true] %s6736_s11 }
 0xd37   : > { %v11950_v47 = vadd.f32 %v11813_v37, %v6061_v12  ;;  %s6724_s25 = scalar_lea.sflag [#allocation4], %s8458_s18 }
 0xd38   : > { %6502 = vmatpush.msrb.mxu3 %v7612_v51  ;;  %v5280_v51 = vpop.f32.mrf.mxu3 }
 0xd39   : > { %6103 = vmax.xlane.f32.xlu1 %v11950_v47  ;;  %v11970_v17 = vadd.f32 %v8205_v21, %v5280_v51  ;;  %v8206_v51 = vld [vmem:[%s12748_s5 + $0x50] sm:$0xff] }
 0xd3e   : > { %6095 = vmax.xlane.f32.xlu2 %v11954_v0  ;;  %v6064_v40 = vpop.f32.mrf.mxu1 }
 0xd3f   : > { %v11958_v48 = vadd.f32 %v11871_v43, %v6064_v40 }
 0xd40   : > { %v5283_v25 = vpop.f32.mrf.mxu3 }
 0xd41   : > { %6105 = vmax.xlane.f32.xlu1 %v11958_v48  ;;  %v11983_v2 = vadd.f32 %v8206_v51, %v5283_v25 }
 0xd44   : > { %v11973_v11 = vpop.xlane.xlu0 %5315 }
 0xd46   : > { %5385 = vadd.xlane.f32.xlu2 %v11961_v30  ;;  %v6067_v37 = vpop.f32.mrf.mxu1 }
 0xd47   : > { %v11964_v52 = vadd.f32 %v8204_v35, %v6067_v37  ;;  %v5337_v35 = vsub.f32 %v11770_v14, %v11848_v42 }
 0xd49   : > { %6107 = vmax.xlane.f32.xlu1 %v11964_v52  ;;  %v5357_v37 = vmul.f32 1.442695, %v5337_v35 }
 0xd4b   : > { %8025 = vpow2.f32 %v5357_v37 }
 0xd4e   : > { %5319 = vmax.xlane.f32.xlu2 %v11970_v17  ;;  %v6070_v43 = vpop.f32.mrf.mxu1 }
 0xd4f   : > { %v11975_v13 = vadd.f32 %v8205_v21, %v6070_v43 }
 0xd51   : > { %v11989_v35 = vpop.eup %8025 }
 0xd56   : > { %6109 = vmax.xlane.f32.xlu2 %v11975_v13  ;;  %v6073_v12 = vpop.f32.mrf.mxu1 }
 0xd57   : > { %v7605_v44 = vpop.permute.xlu0 %7604  ;;  %v11985_v21 = vadd.f32 %v8206_v51, %v6073_v12 }
 0xd58   : > { %v7606_v59 = vunpack.i.l.bf16 %v7605_v44  ;;  %v7607_v40 = vunpack.i.h.bf16 %v7605_v44 }
 0xd5a   : > { %5711 = vmatpush.msrb.mxu0 %v7606_v59  ;;  %v8207_v59 = vld [vmem:[%s12748_s5 + $0x58] sm:$0xff] }
 0xd5c   : > { %5712 = vmatpush.msrb.mxu0 %v7607_v40  ;;  %v5286_v40 = vpop.f32.mrf.mxu3 }
 0xd5d   : > { %v12000_v37 = vadd.f32 %v8207_v59, %v5286_v40 }
 0xd5e   : > { %5321 = vmax.xlane.f32.xlu2 %v11983_v2  ;;  %v6076_v43 = vpop.f32.mrf.mxu1 }
 0xd5f   : > { %v7620_v14 = vpop.permute.xlu0 %7619  ;;  %6111 = vmax.xlane.f32.xlu0 %v11985_v21  ;;  %v11994_v25 = vadd.f32 %v8207_v59, %v6076_v43 }
 0xd60   : > { %v7621_v42 = vunpack.i.l.bf16 %v7620_v14  ;;  %v7622_v44 = vunpack.i.h.bf16 %v7620_v14 }
 0xd62   : > { %6503 = vmatpush.msrb.mxu3 %v7621_v42 }
 0xd64   : > { %6504 = vmatpush.msrb.mxu3 %v7622_v44 }
 0xd66   : > { %5389 = vadd.xlane.f32.xlu2 %v11989_v35  ;;  %v6079_v34 = vpop.f32.mrf.mxu1 }
 0xd67   : > { %6113 = vmax.xlane.f32.xlu0 %v11994_v25 }
 0xd68   : > { %v11998_v12 = vpop.xlane.xlu2 %5383 }
 0xd69   : > { %vm5433_vm15 = vweird.f32 %v11998_v12 }
 0xd6e   : > { %5323 = vmax.xlane.f32.xlu2 %v12000_v37 }
 0xd70   : > { %v12003_v51 = vpop.xlane.xlu2 %5317 }
 0xd78   : > { %v7615_v14 = vpop.permute.xlu2 %7614 }
 0xd79   : > { %v7616_v42 = vunpack.i.l.bf16 %v7615_v14  ;;  %v7617_v44 = vunpack.i.h.bf16 %v7615_v14 }
 0xd7b   : > { %5713 = vmatpush.msrb.mxu0 %v7616_v42 }
 0xd7d   : > { %5714 = vmatpush.msrb.mxu0 %v7617_v44 }
 0xd84   : > { %v6094_v43 = vpop.xlane.xlu1 %6093 }
 0xd85   : > { %v6124_v24 = vsub.f32 %v11920_v26, %v6094_v43 }
 0xd87   : > { %v6141_v41 = vmul.f32 1.442695, %v6124_v24 }
 0xd89   : > { %8027 = vpow2.f32 %v6141_v41 }
 0xd8a   : > { %v6092_v46 = vpop.xlane.xlu0 %6091  ;;  %8029 = vrcp.f32 %v11934_v9 }
 0xd8b   : > { %v6123_v55 = vsub.f32 %v11926_v57, %v6092_v46 }
 0xd8d   : > { %v6139_v59 = vmul.f32 1.442695, %v6123_v55  ;;  %v5338_v55 = vsub.f32 %v11779_v18, %v11879_v1  ;;  %v5422_v18 = vand.u32 2147483647, %v11934_v9 }
 0xd8f   : > { %v12008_v40 = vpop.eup %8027  ;;  %8031 = vpow2.f32 %v6139_v59  ;;  %v5359_v43 = vmul.f32 1.442695, %v5338_v55  ;;  %vm5423_vm13 = vcmp.eq.f32.partialorder %v5422_v18, 8.507059e+37  ;;  %v12044_v18 = vld [vmem:[%s12748_s5 + $0x60] sm:$0xff] }
 0xd90   : > { %6173 = vadd.xlane.f32.xlu0 %v12008_v40  ;;  %v8030_v39 = vpop.eup %8029  ;;  %8033 = vrcp.f32 %v11998_v12 }
 0xd91   : > { %v5414_v24 = vmul.f32 %v8030_v39, %v11934_v9  ;;  %vm5419_vm10 = vweird.f32 %v8030_v39 }
 0xd92   : > { %vm5420_vm12 = vmor %vm5418_vm11, %vm5419_vm10 }
 0xd93   : > { %v5415_v26 = vsub.f32 1.0, %v5414_v24 }
 0xd94   : > { %v6098_v14 = vpop.xlane.xlu0 %6097 }
 0xd95   : > { %v12012_v42 = vpop.eup %8031  ;;  %v6126_v41 = vsub.f32 %v11932_v58, %v6098_v14  ;;  %v5416_v59 = vmul.f32 %v8030_v39, %v5415_v26 }
 0xd96   : > { %6171 = vadd.xlane.f32.xlu1 %v12012_v42  ;;  %v8034_v57 = vpop.eup %8033 }
 0xd97   : > { %v6145_v46 = vmul.f32 1.442695, %v6126_v41  ;;  %v5429_v29 = vmul.f32 %v8034_v57, %v11998_v12  ;;  %v5417_v58 = vadd.f32 %v8030_v39, %v5416_v59  ;;  %v5424_v41 = vand.u32 2147483648, %v11934_v9 }
 0xd98   : > { %vm5434_vm14 = vweird.f32 %v8034_v57  ;;  %v5439_v9 = vand.u32 2147483648, %v11998_v12 }
 0xd99   : > { %8035 = vpow2.f32 %v6145_v46  ;;  %v5430_v14 = vsub.f32 1.0, %v5429_v29  ;;  %v5421_v24 = vsel %vm5420_vm12, %v8030_v39, %v5417_v58  ;;  %v5425_v55 = vor.u32 1.1754944e-38, %v5424_v41  ;;  %v12033_v29 = vpop.f32.mrf.mxu3  ;;  %vm5435_vm3 = vmor %vm5433_vm15, %vm5434_vm14 }
 0xd9a   : > { %8037 = vpow2.f32 %v5359_v43  ;;  %v5437_v58 = vand.u32 2147483647, %v11998_v12 }
 0xd9b   : > { %v5431_v46 = vmul.f32 %v8034_v57, %v5430_v14  ;;  %v5426_v43 = vsel %vm5423_vm13, %v5425_v55, %v5421_v24  ;;  %v5440_v24 = vor.u32 1.1754944e-38, %v5439_v9 }
 0xd9c   : > { %v12019_v44 = vpop.xlane.xlu1 %6099  ;;  %v5427_v39 = vmul.f32 %v11835_v4, %v5426_v43  ;;  %vm5438_vm4 = vcmp.eq.f32.partialorder %v5437_v58, 8.507059e+37 }
 0xd9d   : > { %v5432_v28 = vadd.f32 %v8034_v57, %v5431_v46 }
 0xd9f   : > { %v12022_v16 = vpop.eup %8035  ;;  %v5436_v41 = vsel %vm5435_vm3, %v8034_v57, %v5432_v28 }
 0xda0   : > { %6177 = vadd.xlane.f32.xlu2 %v12022_v16  ;;  %v12030_v26 = vpop.eup %8037  ;;  %v5441_v4 = vsel %vm5438_vm4, %v5440_v24, %v5436_v41 }
 0xda1   : > { %v5292_v28 = vpop.f32.mrf.mxu3  ;;  %v5442_v57 = vmul.f32 %v11902_v10, %v5441_v4 }
 0xda4   : > { %v12028_v1 = vpop.xlane.xlu1 %6101 }
 0xda7   : > { %v7625_v53 = vpop.permute.xlu0 %7624 }
 0xda8   : > { %v7626_v59 = vunpack.i.l.bf16 %v7625_v53  ;;  %5391 = vadd.xlane.f32.xlu2 %v12030_v26  ;;  %v7627_v60 = vunpack.i.h.bf16 %v7625_v53  ;;  %v12047_v53 = vadd.f32 %v12044_v18, %v6079_v34  ;;  %v12058_v34 = vld [vmem:[%s12748_s5 + $0x68] sm:$0xff] }
 0xdaa   : > { %5715 = vmatpush.msrb.mxu0 %v7626_v59  ;;  %v5339_v59 = vsub.f32 %v11816_v45, %v11922_v56  ;;  %v6127_v45 = vsub.f32 %v11938_v7, %v12019_v44  ;;  %v6128_v44 = vsub.f32 %v11942_v31, %v12028_v1 }
 0xdac   : > { %v12039_v14 = vpop.xlane.xlu1 %6103  ;;  %5716 = vmatpush.msrb.mxu0 %v7627_v60 }
 0xdad   : > { %5717 = vmatmul.f32.vlgmr.msrb.gmra.mxu0 %v5427_v39  ;;  %v5361_v39 = vmul.f32 1.442695, %v5339_v59 }
 0xdaf   : > { %7629 = vrot.lane.b32.xlu1 %v13026_v50, %s8334_s26  ;;  %v12061_v50 = vadd.f32 %v12058_v34, %v5292_v28  ;;  %s6738_s26 = sshll.u32 %s6735_s14, 4  ;;  %s6739_s26 = int_to_ptr.hbm [resolvable:$true] %s6738_s26 }
 0xdb0   : > { %6115 = vmax.xlane.f32.xlu2 %v12047_v53  ;;  %s8256_s16 = sshra.s32 %s6739_s26, 4  ;;  %s8257_s16 = int_to_ptr.hbm [resolvable:$true] %s8256_s16 }
 0xdb1   : > { %v6096_v60 = vpop.xlane.xlu2 %6095  ;;  %s8258_s29 = scalar_lea.hbm %s8257_s16, 128  ;;  %p8263_p0 = scmp.lt.s32.totalorder %s8257_s16, %s12749_s6 }
 0xdb2   : > { %v6125_v12 = vsub.f32 %v11954_v0, %v6096_v60  ;;  %v12065_v0 = vpop.f32.mrf.mxu1  ;;  %v6147_v60 = vmul.f32 1.442695, %v6127_v45  ;;  %p8259_p6 = scmp.ne.s32.totalorder %s8257_s16, %s8258_s29  ;;  %p8264_p1 = scmp.lt.s32.totalorder %s8262_s13, %s8258_s29 }
 0xdb4   : > { %v6143_v46 = vmul.f32 1.442695, %v6125_v12  ;;  %v6106_v55 = vpop.xlane.xlu1 %6105  ;;  %p8260_p9 = pnand %p8259_p6, %p8422_p11  ;;  %p8265_p3 = por %p8264_p1, %p8263_p0 }
 0xdb5   : > { %v6130_v43 = vsub.f32 %v11958_v48, %v6106_v55  ;;  %5720 = vmatmul.f32.gmra.mxu0 %v5442_v57  ;;  %v5341_v48 = vsub.f32 %v11912_v49, %v12003_v51 }
 0xdb6   : > { %8039 = vpow2.f32 %v6143_v46  ;;  %p8261_p13 = pneg %p8260_p9 }
 0xdb7   : > { %v6153_v10 = vmul.f32 1.442695, %v6130_v43  ;;  %v5365_v41 = vmul.f32 1.442695, %v5341_v48 }
 0xdb8   : > { %5327 = vmax.xlane.f32.xlu2 %v12061_v50  ;;  %p8266_p4 = pnand %p8265_p3, %p8261_p13 }
 0xdb9   : > { %8041 = vpow2.f32 %v6153_v10  ;;  %v5386_v9 = vpop.xlane.xlu2 %5385 }
 0xdba   : > { %8043 = vrcp.f32 %v5386_v9  ;;  %v12078_v49 = vpop.f32.mrf.mxu1  ;;  %v5454_v57 = vand.u32 2147483648, %v5386_v9  ;;  %v5452_v7 = vand.u32 2147483647, %v5386_v9  ;;  %vm5448_vm6 = vweird.f32 %v5386_v9 }
 0xdbb   : > { %8045 = vpow2.f32 %v5361_v39  ;;  %v5336_v39 = vsub.f32 %v11761_v15, %v11858_v5 }
 0xdbc   : > { %v12070_v58 = vpop.eup %8039  ;;  %8047 = vpow2.f32 %v5365_v41  ;;  %v5455_v59 = vor.u32 1.1754944e-38, %v5454_v57  ;;  %vm5453_vm8 = vcmp.eq.f32.partialorder %v5452_v7, 8.507059e+37  ;;  %v6149_v41 = vmul.f32 1.442695, %v6128_v44 }
 0xdbd   : > { %6175 = vadd.xlane.f32.xlu0 %v12070_v58  ;;  %8049 = vpow2.f32 %v6147_v60  ;;  %v12101_v60 = vld [vmem:[%s12748_s5 + $0x78] sm:$0xff]  ;;  %v5340_v7 = vsub.f32 %v11874_v19, %v11973_v11  ;;  %v12128_v19 = vadd.f32 %v12044_v18, %v12033_v29  ;;  %v5295_v11 = vpop.f32.mrf.mxu3 }
 0xdbe   : > { %8051 = vpow2.f32 %v6149_v41 }
 0xdbf   : > { %v12075_v56 = vpop.eup %8041  ;;  %v5363_v41 = vmul.f32 1.442695, %v5340_v7 }
 0xdc0   : > { %v8044_v24 = vpop.eup %8043  ;;  %6185 = vadd.xlane.f32.xlu2 %v12075_v56 }
 0xdc1   : > { %v5444_v51 = vmul.f32 %v8044_v24, %v5386_v9  ;;  %v12080_v4 = vpop.xlane.xlu2 %5319  ;;  %v12082_v28 = vpop.eup %8045  ;;  %vm5449_vm5 = vweird.f32 %v8044_v24  ;;  %v5355_v9 = vmul.f32 1.442695, %v5336_v39 }
 0xdc2   : > { %v12087_v55 = vpop.eup %8047  ;;  %vm5450_vm7 = vmor %vm5448_vm6, %vm5449_vm5  ;;  %v5342_v18 = vsub.f32 %v11970_v17, %v12080_v4 }
 0xdc3   : > { %v5445_v12 = vsub.f32 1.0, %v5444_v51  ;;  %v6088_v51 = vpop.f32.mrf.mxu1  ;;  %v12095_v1 = vpop.eup %8049  ;;  %8053 = vpow2.f32 %v5355_v9 }
 0xdc5   : > { %v5446_v46 = vmul.f32 %v8044_v24, %v5445_v12  ;;  %5393 = vadd.xlane.f32.xlu0 %v12082_v28  ;;  %v12108_v12 = vpop.eup %8051  ;;  %v5298_v7 = vpop.f32.mrf.mxu3 }
 0xdc7   : > { %v5447_v43 = vadd.f32 %v8044_v24, %v5446_v46 }
 0xdc8   : > { %5397 = vadd.xlane.f32.xlu2 %v12087_v55 }
 0xdc9   : > { %v12090_v10 = vpop.xlane.xlu2 %6109  ;;  %v5451_v48 = vsel %vm5450_vm7, %v8044_v24, %v5447_v43  ;;  %v12104_v24 = vadd.f32 %v12101_v60, %v6088_v51  ;;  %v12111_v46 = vpop.eup %8053  ;;  %v12118_v43 = vadd.f32 %v12058_v34, %v12065_v0  ;;  %v8211_v0 = vld [vmem:[%s12748_s5 + $0x70] sm:$0xff] }
 0xdca   : > { %v5456_v45 = vsel %vm5453_vm8, %v5455_v59, %v5451_v48  ;;  %v12136_v51 = vadd.f32 %v8211_v0, %v5295_v11 }
 0xdcb   : > { %v5457_v31 = vmul.f32 %v11961_v30, %v5456_v45 }
 0xdcd   : > { %6179 = vadd.xlane.f32.xlu0 %v12095_v1  ;;  %5723 = vmatmul.f32.gmra.mxu0 %v5457_v31 }
 0xdd0   : > { %6121 = vmax.xlane.f32.xlu2 %v12104_v24 }
 0xdd1   : > { %v5322_v15 = vpop.xlane.xlu2 %5321 }
 0xdd2   : > { %v5343_v5 = vsub.f32 %v11983_v2, %v5322_v15  ;;  %v6112_v30 = vpop.xlane.xlu0 %6111  ;;  %v6108_v2 = vpop.xlane.xlu1 %6107 }
 0xdd3   : > { %v6131_v45 = vsub.f32 %v11964_v52, %v6108_v2  ;;  %v6133_v9 = vsub.f32 %v11985_v21, %v6112_v30  ;;  %v6132_v21 = vsub.f32 %v11975_v13, %v12090_v10  ;;  %v283_v10 = vld [vmem:[%s12746_s3 + $0x18] sm:$0xff] }
 0xdd4   : > { %v5369_v57 = vmul.f32 1.442695, %v5343_v5  ;;  %7163 = vmatpush.msk.msra.mxu2 %vm1765_vm2, %v283_v10 }
 0xdd5   : > { %6181 = vadd.xlane.f32.xlu0 %v12108_v12  ;;  %v6155_v34 = vmul.f32 1.442695, %v6131_v45  ;;  %v6159_v17 = vmul.f32 1.442695, %v6133_v9 }
 0xdd6   : > { %8055 = vpow2.f32 %v5369_v57  ;;  %v12160_v57 = vadd.f32 %v8211_v0, %v12078_v49 }
 0xdd9   : > { %5387 = vadd.xlane.f32.xlu1 %v12111_v46  ;;  %v12156_v5 = vpop.xlane.xlu2 %5389 }
 0xdda   : > { %v6114_v44 = vpop.xlane.xlu0 %6113 }
 0xddb   : > { %v6134_v59 = vsub.f32 %v11994_v25, %v6114_v44  ;;  %v6129_v25 = vsub.f32 %v11950_v47, %v12039_v14  ;;  %v5367_v47 = vmul.f32 1.442695, %v5342_v18  ;;  %v6157_v44 = vmul.f32 1.442695, %v6132_v21 }
 0xddc   : > { %v12121_v48 = vpop.eup %8055 }
 0xddd   : > { %v6161_v39 = vmul.f32 1.442695, %v6134_v59  ;;  %6117 = vmax.xlane.f32.xlu0 %v12118_v43  ;;  %5401 = vadd.xlane.f32.xlu2 %v12121_v48  ;;  %v6151_v29 = vmul.f32 1.442695, %v6129_v25  ;;  %v12169_v59 = vadd.f32 %v12101_v60, %v5298_v7  ;;  %v6556_v60 = vrot.slane %v283_v10, 4 }
 0xddf   : > { %8057 = vpow2.f32 %v6161_v39  ;;  %7212 = vmatpush.msk.msra.mxu0 %vm1765_vm2, %v6556_v60 }
 0xde0   : > { %8059 = vpow2.f32 %v5363_v41 }
 0xde1   : > { %5325 = vmax.xlane.f32.xlu1 %v12128_v19  ;;  %8061 = vpow2.f32 %v6155_v34  ;;  %v5324_v2 = vpop.xlane.xlu2 %5323 }
 0xde2   : > { %8063 = vpow2.f32 %v6151_v29  ;;  %v5344_v39 = vsub.f32 %v12000_v37, %v5324_v2 }
 0xde3   : > { %8065 = vpow2.f32 %v5367_v47 }
 0xde4   : > { %8067 = vpow2.f32 %v6159_v17  ;;  %v5371_v49 = vmul.f32 1.442695, %v5344_v39 }
 0xde5   : > { %v12138_v52 = vpop.eup %8057  ;;  %5329 = vmax.xlane.f32.xlu0 %v12136_v51  ;;  %8069 = vpow2.f32 %v6157_v44 }
 0xde6   : > { %6193 = vadd.xlane.f32.xlu2 %v12138_v52  ;;  %v12144_v31 = vpop.eup %8059  ;;  %8071 = vpow2.f32 %v5371_v49 }
 0xde7   : > { %v12147_v14 = vpop.eup %8061 }
 0xde8   : > { %v12151_v15 = vpop.eup %8063 }
 0xde9   : > { %5395 = vadd.xlane.f32.xlu1 %v12144_v31  ;;  %v12154_v4 = vpop.eup %8065 }
 0xdea   : > { %v12165_v30 = vpop.eup %8067 }
 0xdeb   : > { %v12173_v41 = vpop.eup %8069 }
 0xdec   : > { %v12181_v37 = vpop.eup %8071 }
 0xded   : > { %6187 = vadd.xlane.f32.xlu0 %v12147_v14 }
 0xdf1   : > { %6183 = vadd.xlane.f32.xlu1 %v12151_v15 }
 0xdf5   : > { %5399 = vadd.xlane.f32.xlu0 %v12154_v4 }
 0xdf9   : > { %6119 = vmax.xlane.f32.xlu1 %v12160_v57 }
 0xdfd   : > { %6191 = vadd.xlane.f32.xlu0 %v12165_v30 }
 0xe01   : > { %5331 = vmax.xlane.f32.xlu1 %v12169_v59 }
 0xe03   : > { %v6174_v45 = vpop.xlane.xlu0 %6173 }
 0xe04   : > { %vm6223_vm13 = vweird.f32 %v6174_v45 }
 0xe09   : > { %6189 = vadd.xlane.f32.xlu1 %v12173_v41  ;;  %v6172_v13 = vpop.xlane.xlu1 %6171 }
 0xe0a   : > { %8073 = vrcp.f32 %v6172_v13  ;;  %v6214_v7 = vand.u32 2147483648, %v6172_v13  ;;  %vm6208_vm2 = vweird.f32 %v6172_v13  ;;  %v6212_v44 = vand.u32 2147483647, %v6172_v13 }
 0xe0b   : > { %8075 = vrcp.f32 %v6174_v45 }
 0xe0c   : > { %v6215_v49 = vor.u32 1.1754944e-38, %v6214_v7  ;;  %vm6213_vm11 = vcmp.eq.f32.partialorder %v6212_v44, 8.507059e+37 }
 0xe10   : > { %v8074_v11 = vpop.eup %8073 }
 0xe11   : > { %v6204_v25 = vmul.f32 %v8074_v11, %v6172_v13  ;;  %5403 = vadd.xlane.f32.xlu1 %v12181_v37  ;;  %v8076_v29 = vpop.eup %8075  ;;  %vm6209_vm9 = vweird.f32 %v8074_v11  ;;  %v6227_v13 = vand.u32 2147483647, %v6174_v45 }
 0xe12   : > { %v6219_v18 = vmul.f32 %v8076_v29, %v6174_v45  ;;  %vm6210_vm10 = vmor %vm6208_vm2, %vm6209_vm9  ;;  %vm6224_vm12 = vweird.f32 %v8076_v29 }
 0xe13   : > { %v6205_v34 = vsub.f32 1.0, %v6204_v25  ;;  %v12184_v0 = vpop.xlane.xlu2 %6177  ;;  %vm6225_vm14 = vmor %vm6223_vm13, %vm6224_vm12  ;;  %vm6228_vm15 = vcmp.eq.f32.partialorder %v6227_v13, 8.507059e+37 }
 0xe14   : > { %v6220_v9 = vsub.f32 1.0, %v6219_v18  ;;  %vm6253_vm8 = vweird.f32 %v12184_v0 }
 0xe15   : > { %v6206_v47 = vmul.f32 %v8074_v11, %v6205_v34  ;;  %v6229_v34 = vand.u32 2147483648, %v6174_v45 }
 0xe16   : > { %v6221_v2 = vmul.f32 %v8076_v29, %v6220_v9 }
 0xe17   : > { %v6207_v17 = vadd.f32 %v8074_v11, %v6206_v47  ;;  %v6230_v9 = vor.u32 1.1754944e-38, %v6229_v34 }
 0xe18   : > { %v6222_v36 = vadd.f32 %v8076_v29, %v6221_v2 }
 0xe19   : > { %v6211_v39 = vsel %vm6210_vm10, %v8074_v11, %v6207_v17 }
 0xe1a   : > { %v6216_v60 = vsel %vm6213_vm11, %v6215_v49, %v6211_v39  ;;  %v6226_v11 = vsel %vm6225_vm14, %v8076_v29, %v6222_v36 }
 0xe1b   : > { %v12186_v21 = vpop.xlane.xlu2 %5391  ;;  %v6217_v32 = vmul.f32 %v12012_v42, %v6216_v60  ;;  %v6231_v7 = vsel %vm6228_vm15, %v6230_v9, %v6226_v11 }
 0xe1c   : > { %v6232_v42 = vmul.f32 %v12008_v40, %v6231_v7  ;;  %v6259_v7 = vand.u32 2147483648, %v12184_v0 }
 0xe21   : > { %v7630_v10 = vpop.permute.xlu1 %7629 }
 0xe22   : > { %v7631_v25 = vunpack.i.l.bf16 %v7630_v10  ;;  %v7632_v18 = vunpack.i.h.bf16 %v7630_v10 }
 0xe23   : > { %v6116_v63 = vpop.xlane.xlu2 %6115 }
 0xe24   : > { %v6135_v47 = vsub.f32 %v12047_v53, %v6116_v63  ;;  %6505 = vmatpush.msrb.mxu3 %v7631_v25 }
 0xe26   : > { %v6163_v20 = vmul.f32 1.442695, %v6135_v47  ;;  %6506 = vmatpush.msrb.mxu3 %v7632_v18 }
 0xe27   : > { %6507 = vmatmul.f32.vlgmr.msrb.gmra.mxu3 %v6217_v32 }
 0xe28   : > { %8077 = vpow2.f32 %v6163_v20 }
 0xe29   : > { %8079 = vrcp.f32 %v12184_v0 }
 0xe2a   : > { %v5718_v17 = vpop.f32.mrf.mxu0 }
 0xe2b   : > { %v5328_v44 = vpop.xlane.xlu2 %5327  ;;  %7164 = vmatmul.msk.f32.vlgmr.msra.gmra.mxu2 %vm462_vm1, %v5718_v17 }
 0xe2c   : > { %v5346_v63 = vsub.f32 %v12061_v50, %v5328_v44 }
 0xe2e   : > { %v12194_v53 = vpop.eup %8077  ;;  %v5375_v45 = vmul.f32 1.442695, %v5346_v63 }
 0xe2f   : > { %6510 = vmatmul.f32.gmra.mxu3 %v6232_v42  ;;  %6195 = vadd.xlane.f32.xlu1 %v12194_v53  ;;  %v8080_v20 = vpop.eup %8079  ;;  %v6257_v42 = vand.u32 2147483647, %v12184_v0 }
 0xe30   : > { %8081 = vpow2.f32 %v5375_v45  ;;  %v6176_v32 = vpop.xlane.xlu0 %6175  ;;  %v6249_v29 = vmul.f32 %v8080_v20, %v12184_v0  ;;  %vm6254_vm7 = vweird.f32 %v8080_v20 }
 0xe31   : > { %8083 = vrcp.f32 %v6176_v32  ;;  %v6244_v60 = vand.u32 2147483648, %v6176_v32  ;;  %v6242_v18 = vand.u32 2147483647, %v6176_v32  ;;  %vm6238_vm4 = vweird.f32 %v6176_v32  ;;  %vm6255_vm9 = vmor %vm6253_vm8, %vm6254_vm7 }
 0xe32   : > { %v5721_v36 = vpop.f32.mrf.mxu0  ;;  %v6250_v40 = vsub.f32 1.0, %v6249_v29  ;;  %vm6258_vm2 = vcmp.eq.f32.partialorder %v6257_v42, 8.507059e+37 }
 0xe33   : > { %7165 = vmatmul.msk.f32.gmra.mxu2 %vm462_vm1, %v5721_v36  ;;  %v6245_v13 = vor.u32 1.1754944e-38, %v6244_v60  ;;  %vm6243_vm6 = vcmp.eq.f32.partialorder %v6242_v18, 8.507059e+37  ;;  %v12209_v36 = vpop.xlane.xlu2 %6185 }
 0xe34   : > { %v6251_v25 = vmul.f32 %v8080_v20, %v6250_v40 }
 0xe36   : > { %v12199_v2 = vpop.eup %8081  ;;  %v6252_v17 = vadd.f32 %v8080_v20, %v6251_v25 }
 0xe37   : > { %v8084_v50 = vpop.eup %8083  ;;  %5407 = vadd.xlane.f32.xlu2 %v12199_v2 }
 0xe38   : > { %v6234_v39 = vmul.f32 %v8084_v50, %v6176_v32  ;;  %v12202_v49 = vpop.xlane.xlu0 %5393  ;;  %vm6239_vm3 = vweird.f32 %v8084_v50  ;;  %v6256_v45 = vsel %vm6255_vm9, %v8080_v20, %v6252_v17  ;;  %v6260_v32 = vor.u32 1.1754944e-38, %v6259_v7 }
 0xe39   : > { %vm6240_vm5 = vmor %vm6238_vm4, %vm6239_vm3 }
 0xe3a   : > { %v6235_v10 = vsub.f32 1.0, %v6234_v39 }
 0xe3c   : > { %v6236_v34 = vmul.f32 %v8084_v50, %v6235_v10 }
 0xe3e   : > { %v6237_v47 = vadd.f32 %v8084_v50, %v6236_v34 }
 0xe40   : > { %v6180_v11 = vpop.xlane.xlu0 %6179  ;;  %v6241_v9 = vsel %vm6240_vm5, %v8084_v50, %v6237_v47  ;;  %v6261_v50 = vsel %vm6258_vm2, %v6260_v32, %v6256_v45  ;;  %vm5478_vm2 = vweird.f32 %v12156_v5 }
 0xe41   : > { %8085 = vrcp.f32 %v6180_v11  ;;  %v6246_v44 = vsel %vm6243_vm6, %v6245_v13, %v6241_v9  ;;  %v6262_v0 = vmul.f32 %v12022_v16, %v6261_v50  ;;  %v6274_v25 = vand.u32 2147483648, %v6180_v11  ;;  %v12221_v16 = vpop.xlane.xlu2 %5397 }
 0xe42   : > { %v6247_v63 = vmul.f32 %v12070_v58, %v6246_v44  ;;  %8087 = vrcp.f32 %v12156_v5  ;;  %v6272_v47 = vand.u32 2147483647, %v6180_v11  ;;  %vm6268_vm11 = vweird.f32 %v6180_v11 }
 0xe43   : > { %v6275_v17 = vor.u32 1.1754944e-38, %v6274_v25 }
 0xe44   : > { %6513 = vmatmul.f32.gmra.mxu3 %v6247_v63  ;;  %vm6273_vm13 = vcmp.eq.f32.partialorder %v6272_v47, 8.507059e+37 }
 0xe47   : > { %v8086_v29 = vpop.eup %8085 }
 0xe48   : > { %v6264_v40 = vmul.f32 %v8086_v29, %v6180_v11  ;;  %v6182_v39 = vpop.xlane.xlu0 %6181  ;;  %v12211_v10 = vpop.eup %8087  ;;  %vm6269_vm10 = vweird.f32 %v8086_v29 }
 0xe49   : > { %8089 = vrcp.f32 %v6182_v39  ;;  %v5474_v18 = vmul.f32 %v12211_v10, %v12156_v5  ;;  %vm6270_vm12 = vmor %vm6268_vm11, %vm6269_vm10  ;;  %v6287_v11 = vand.u32 2147483647, %v6182_v39  ;;  %vm6283_vm15 = vweird.f32 %v6182_v39 }
 0xe4a   : > { %v6265_v60 = vsub.f32 1.0, %v6264_v40  ;;  %v5724_v58 = vpop.f32.mrf.mxu0  ;;  %8091 = vrcp.f32 %v12186_v21  ;;  %vm5479_vm6 = vweird.f32 %v12211_v10 }
 0xe4b   : > { %7166 = vmatmul.msk.f32.gmra.mxu2 %vm462_vm1, %v5724_v58  ;;  %v5475_v42 = vsub.f32 1.0, %v5474_v18  ;;  %vm6288_vm4 = vcmp.eq.f32.partialorder %v6287_v11, 8.507059e+37  ;;  %vm12261_vm10 = vmor %vm5478_vm2, %vm5479_vm6 }
 0xe4c   : > { %v6266_v20 = vmul.f32 %v8086_v29, %v6265_v60  ;;  %v12216_v34 = vpop.xlane.xlu1 %5387  ;;  %6516 = vmatmul.f32.gmra.mxu3 %v6262_v0  ;;  %v6289_v60 = vand.u32 2147483648, %v6182_v39 }
 0xe4d   : > { %8093 = vrcp.f32 %v12216_v34  ;;  %v5476_v25 = vmul.f32 %v12211_v10, %v5475_v42  ;;  %v5467_v33 = vand.u32 2147483647, %v12216_v34  ;;  %vm5463_vm7 = vweird.f32 %v12216_v34 }
 0xe4e   : > { %v6267_v13 = vadd.f32 %v8086_v29, %v6266_v20  ;;  %8095 = vrcp.f32 %v12202_v49 }
 0xe4f   : > { %v8090_v9 = vpop.eup %8089  ;;  %vm5468_vm9 = vcmp.eq.f32.partialorder %v5467_v33, 8.507059e+37 }
 0xe50   : > { %v6279_v7 = vmul.f32 %v8090_v9, %v6182_v39  ;;  %v6118_v44 = vpop.xlane.xlu0 %6117  ;;  %v6271_v63 = vsel %vm6270_vm12, %v8086_v29, %v6267_v13  ;;  %v12223_v45 = vpop.eup %8091  ;;  %vm6284_vm14 = vweird.f32 %v8090_v9 }
 0xe51   : > { %v6276_v50 = vsel %vm6273_vm13, %v6275_v17, %v6271_v63  ;;  %v5489_v29 = vmul.f32 %v12223_v45, %v12186_v21  ;;  %v5469_v17 = vand.u32 2147483648, %v12216_v34  ;;  %vm6285_vm3 = vmor %vm6283_vm15, %vm6284_vm14  ;;  %v6136_v42 = vsub.f32 %v12118_v43, %v6118_v44 }
 0xe52   : > { %v6280_v32 = vsub.f32 1.0, %v6279_v7  ;;  %v6277_v58 = vmul.f32 %v12095_v1, %v6276_v50  ;;  %v6290_v1 = vor.u32 1.1754944e-38, %v6289_v60  ;;  %vm5494_vm11 = vweird.f32 %v12223_v45 }
 0xe53   : > { %v8094_v40 = vpop.eup %8093  ;;  %v5470_v44 = vor.u32 1.1754944e-38, %v5469_v17  ;;  %vm5493_vm13 = vweird.f32 %v12186_v21 }
 0xe54   : > { %v6281_v0 = vmul.f32 %v8090_v9, %v6280_v32  ;;  %v5459_v20 = vmul.f32 %v8094_v40, %v12216_v34  ;;  %v5326_v54 = vpop.xlane.xlu1 %5325  ;;  %6519 = vmatmul.f32.gmra.mxu3 %v6277_v58  ;;  %vm5464_vm5 = vweird.f32 %v8094_v40  ;;  %v5490_v58 = vsub.f32 1.0, %v5489_v29  ;;  %v12239_v43 = vpop.eup %8095  ;;  %vm5495_vm14 = vmor %vm5493_vm13, %vm5494_vm11 }
 0xe55   : > { %v5345_v18 = vsub.f32 %v12128_v19, %v5326_v54  ;;  %v6122_v54 = vpop.xlane.xlu2 %6121  ;;  %vm5465_vm8 = vmor %vm5463_vm7, %vm5464_vm5  ;;  %v6165_v29 = vmul.f32 1.442695, %v6136_v42  ;;  %vm6313_vm5 = vweird.f32 %v12209_v36 }
 0xe56   : > { %v5460_v47 = vsub.f32 1.0, %v5459_v20  ;;  %v6282_v13 = vadd.f32 %v8090_v9, %v6281_v0 }
 0xe57   : > { %v5373_v7 = vmul.f32 1.442695, %v5345_v18  ;;  %v5491_v18 = vmul.f32 %v12223_v45, %v5490_v58 }
 0xe58   : > { %v5461_v63 = vmul.f32 %v8094_v40, %v5460_v47  ;;  %v5330_v32 = vpop.xlane.xlu0 %5329  ;;  %v6286_v50 = vsel %vm6285_vm3, %v8090_v9, %v6282_v13  ;;  %v6138_v9 = vsub.f32 %v12104_v24, %v6122_v54  ;;  %v5504_v24 = vmul.f32 %v12239_v43, %v12202_v49 }
 0xe59   : > { %8097 = vpow2.f32 %v5373_v7  ;;  %v5347_v19 = vsub.f32 %v12136_v51, %v5330_v32  ;;  %v6291_v39 = vsel %vm6288_vm4, %v6290_v1, %v6286_v50  ;;  %v5477_v51 = vadd.f32 %v12211_v10, %v5476_v25 }
 0xe5a   : > { %v6292_v11 = vmul.f32 %v12108_v12, %v6291_v39  ;;  %v5462_v0 = vadd.f32 %v8094_v40, %v5461_v63  ;;  %8099 = vrcp.f32 %v12209_v36  ;;  %v5484_v12 = vand.u32 2147483648, %v12156_v5 }
 0xe5b   : > { %v5377_v60 = vmul.f32 1.442695, %v5347_v19  ;;  %v5482_v25 = vand.u32 2147483647, %v12156_v5  ;;  %v6169_v17 = vmul.f32 1.442695, %v6138_v9  ;;  %v5492_v63 = vadd.f32 %v12223_v45, %v5491_v18 }
 0xe5c   : > { %v12243_v20 = vpop.xlane.xlu1 %5395  ;;  %6522 = vmatmul.f32.gmra.mxu3 %v6292_v11  ;;  %v5466_v34 = vsel %vm5465_vm8, %v8094_v40, %v5462_v0  ;;  %v5485_v7 = vor.u32 1.1754944e-38, %v5484_v12  ;;  %v5499_v32 = vand.u32 2147483648, %v12186_v21  ;;  %v5505_v50 = vsub.f32 1.0, %v5504_v24 }
 0xe5d   : > { %8101 = vpow2.f32 %v5377_v60  ;;  %v5471_v47 = vsel %vm5468_vm9, %v5470_v44, %v5466_v34  ;;  %vm5483_vm12 = vcmp.eq.f32.partialorder %v5482_v25, 8.507059e+37  ;;  %v5497_v19 = vand.u32 2147483647, %v12186_v21 }
 0xe5e   : > { %v5472_v1 = vmul.f32 %v12111_v46, %v5471_v47  ;;  %8103 = vrcp.f32 %v12243_v20  ;;  %v5481_v46 = vsel %vm12261_vm10, %v12211_v10, %v5477_v51  ;;  %v5496_v60 = vsel %vm5495_vm14, %v12223_v45, %v5492_v63 }
 0xe5f   : > { %v12248_v13 = vpop.eup %8097  ;;  %8105 = vpow2.f32 %v6165_v29  ;;  %v5486_v10 = vsel %vm5483_vm12, %v5485_v7, %v5481_v46  ;;  %v5500_v0 = vor.u32 1.1754944e-38, %v5499_v32  ;;  %v5506_v9 = vmul.f32 %v12239_v43, %v5505_v50 }
 0xe60   : > { %v12256_v33 = vpop.xlane.xlu0 %6187  ;;  %5405 = vadd.xlane.f32.xlu0 %v12248_v13  ;;  %5726 = vmatmul.f32.gmra.mxu0 %v5472_v1  ;;  %v12268_v5 = vpop.eup %8099  ;;  %8107 = vpow2.f32 %v6169_v17  ;;  %v5487_v21 = vmul.f32 %v11989_v35, %v5486_v10  ;;  %vm5498_vm15 = vcmp.eq.f32.partialorder %v5497_v19, 8.507059e+37  ;;  %vm5509_vm3 = vweird.f32 %v12239_v43 }
 0xe61   : > { %v6309_v58 = vmul.f32 %v12268_v5, %v12209_v36  ;;  %v5501_v51 = vsel %vm5498_vm15, %v5500_v0, %v5496_v60  ;;  %v5507_v18 = vadd.f32 %v12239_v43, %v5506_v9  ;;  %vm5508_vm4 = vweird.f32 %v12202_v49 }
 0xe62   : > { %v5502_v1 = vmul.f32 %v12030_v26, %v5501_v51  ;;  %v5514_v17 = vand.u32 2147483648, %v12202_v49  ;;  %vm12316_vm6 = vmor %vm5508_vm4, %vm5509_vm3  ;;  %v5512_v32 = vand.u32 2147483647, %v12202_v49  ;;  %v6319_v9 = vand.u32 2147483648, %v12209_v36  ;;  %v12334_v51 = vpop.xlane.xlu2 %5401 }
 0xe63   : > { %v12272_v42 = vpop.eup %8101  ;;  %v6310_v45 = vsub.f32 1.0, %v6309_v58  ;;  %v5511_v19 = vsel %vm12316_vm6, %v12239_v43, %v5507_v18  ;;  %v6317_v43 = vand.u32 2147483647, %v12209_v36  ;;  %vm6314_vm10 = vweird.f32 %v12268_v5 }
 0xe64   : > { %5409 = vadd.xlane.f32.xlu1 %v12272_v42  ;;  %v12277_v54 = vpop.xlane.xlu1 %6183  ;;  %v12281_v39 = vpop.eup %8103  ;;  %v5515_v49 = vor.u32 1.1754944e-38, %v5514_v17  ;;  %vm5513_vm9 = vcmp.eq.f32.partialorder %v5512_v32, 8.507059e+37  ;;  %vm5523_vm13 = vweird.f32 %v12243_v20  ;;  %vm12359_vm14 = vmor %vm6313_vm5, %vm6314_vm10 }
 0xe65   : > { %8109 = vrcp.f32 %v12277_v54  ;;  %v12287_v11 = vpop.eup %8105  ;;  %v5519_v44 = vmul.f32 %v12281_v39, %v12243_v20  ;;  %v6311_v7 = vmul.f32 %v12268_v5, %v6310_v45  ;;  %v6302_v0 = vand.u32 2147483647, %v12277_v54 }
 0xe66   : > { %8111 = vrcp.f32 %v12221_v16  ;;  %v12295_v29 = vpop.eup %8107  ;;  %vm6298_vm8 = vweird.f32 %v12277_v54  ;;  %v5516_v18 = vsel %vm5513_vm9, %v5515_v49, %v5511_v19  ;;  %vm5524_vm12 = vweird.f32 %v12281_v39 }
 0xe67   : > { %8113 = vrcp.f32 %v12256_v33  ;;  %v5520_v40 = vsub.f32 1.0, %v5519_v44  ;;  %vm6303_vm11 = vcmp.eq.f32.partialorder %v6302_v0, 8.507059e+37  ;;  %v5527_v19 = vand.u32 2147483647, %v12243_v20  ;;  %vm12368_vm15 = vmor %vm5523_vm13, %vm5524_vm12 }
 0xe68   : > { %6197 = vadd.xlane.f32.xlu0 %v12287_v11  ;;  %5729 = vmatmul.f32.gmra.mxu0 %v5487_v21  ;;  %v12297_v34 = vpop.xlane.xlu0 %5399  ;;  %vm6318_vm3 = vcmp.eq.f32.partialorder %v6317_v43, 8.507059e+37 }
 0xe69   : > { %8115 = vrcp.f32 %v12297_v34  ;;  %v5521_v21 = vmul.f32 %v12281_v39, %v5520_v40  ;;  %vm5528_vm4 = vcmp.eq.f32.partialorder %v5527_v19, 8.507059e+37  ;;  %vm5553_vm13 = vweird.f32 %v12297_v34 }
 0xe6b   : > { %v8110_v12 = vpop.eup %8109  ;;  %v5522_v32 = vadd.f32 %v12281_v39, %v5521_v21  ;;  %v12379_v21 = vpop.xlane.xlu2 %6193 }
 0xe6c   : > { %v12301_v47 = vpop.eup %8111  ;;  %v6294_v35 = vmul.f32 %v8110_v12, %v12277_v54  ;;  %6201 = vadd.xlane.f32.xlu1 %v12295_v29  ;;  %v6120_v24 = vpop.xlane.xlu1 %6119  ;;  %vm6299_vm7 = vweird.f32 %v8110_v12 }
 0xe6d   : > { %v12306_v25 = vpop.eup %8113  ;;  %v6137_v46 = vsub.f32 %v12160_v57, %v6120_v24  ;;  %v5534_v50 = vmul.f32 %v12301_v47, %v12221_v16  ;;  %v6304_v57 = vand.u32 2147483648, %v12277_v54  ;;  %vm6300_vm2 = vmor %vm6298_vm8, %vm6299_vm7  ;;  %v5526_v0 = vsel %vm12368_vm15, %v12281_v39, %v5522_v32 }
 0xe6e   : > { %v6295_v63 = vsub.f32 1.0, %v6294_v35  ;;  %v6324_v58 = vmul.f32 %v12306_v25, %v12256_v33  ;;  %v6312_v35 = vadd.f32 %v12268_v5, %v6311_v7  ;;  %v5529_v7 = vand.u32 2147483648, %v12243_v20 }
 0xe6f   : > { %v6167_v10 = vmul.f32 1.442695, %v6137_v46  ;;  %v6305_v45 = vor.u32 1.1754944e-38, %v6304_v57  ;;  %v12338_v24 = vpop.eup %8115  ;;  %v5535_v17 = vsub.f32 1.0, %v5534_v50  ;;  %v5517_v57 = vmul.f32 %v12082_v28, %v5516_v18 }
 0xe70   : > { %v6296_v60 = vmul.f32 %v8110_v12, %v6295_v63  ;;  %5732 = vmatmul.f32.gmra.mxu0 %v5502_v1  ;;  %v6325_v40 = vsub.f32 1.0, %v6324_v58  ;;  %v12340_v1 = vpop.xlane.xlu0 %6191  ;;  %v6316_v36 = vsel %vm12359_vm14, %v12268_v5, %v6312_v35  ;;  %v6320_v20 = vor.u32 1.1754944e-38, %v6319_v9 }
 0xe71   : > { %8117 = vpow2.f32 %v6167_v10  ;;  %v5530_v49 = vor.u32 1.1754944e-38, %v5529_v7  ;;  %v5544_v18 = vand.u32 2147483648, %v12221_v16  ;;  %vm6329_vm5 = vweird.f32 %v12306_v25 }
 0xe72   : > { %v6297_v44 = vadd.f32 %v8110_v12, %v6296_v60  ;;  %8119 = vrcp.f32 %v12340_v1  ;;  %v6326_v28 = vmul.f32 %v12306_v25, %v6325_v40  ;;  %v5536_v60 = vmul.f32 %v12301_v47, %v5535_v17 }
 0xe73   : > { %8121 = vrcp.f32 %v12334_v51  ;;  %v5531_v5 = vsel %vm5528_vm4, %v5530_v49, %v5526_v0  ;;  %v6334_v39 = vand.u32 2147483648, %v12256_v33  ;;  %vm5539_vm6 = vweird.f32 %v12301_v47 }
 0xe74   : > { %v5332_v54 = vpop.xlane.xlu1 %5331  ;;  %v6301_v46 = vsel %vm6300_vm2, %v8110_v12, %v6297_v44  ;;  %v5549_v12 = vmul.f32 %v12338_v24, %v12297_v34  ;;  %v6327_v9 = vadd.f32 %v12306_v25, %v6326_v28  ;;  %v5537_v43 = vadd.f32 %v12301_v47, %v5536_v60 }
 0xe75   : > { %v5348_v63 = vsub.f32 %v12169_v59, %v5332_v54  ;;  %v6306_v26 = vsel %vm6303_vm11, %v6305_v45, %v6301_v46  ;;  %v6321_v45 = vsel %vm6318_vm3, %v6320_v20, %v6316_v36  ;;  %vm6328_vm7 = vweird.f32 %v12256_v33 }
 0xe76   : > { %v6307_v50 = vmul.f32 %v12151_v15, %v6306_v26  ;;  %v5550_v44 = vsub.f32 1.0, %v5549_v12  ;;  %v6322_v54 = vmul.f32 %v12075_v56, %v6321_v45  ;;  %v6332_v46 = vand.u32 2147483647, %v12256_v33  ;;  %vm6330_vm9 = vmor %vm6328_vm7, %vm6329_vm5 }
 0xe77   : > { %v12349_v10 = vpop.eup %8117  ;;  %v5379_v59 = vmul.f32 1.442695, %v5348_v63  ;;  %vm5538_vm8 = vweird.f32 %v12221_v16  ;;  %v5532_v32 = vmul.f32 %v12144_v31, %v5531_v5  ;;  %v5542_v7 = vand.u32 2147483647, %v12221_v16 }
 0xe78   : > { %6199 = vadd.xlane.f32.xlu2 %v12349_v10  ;;  %6525 = vmatmul.f32.gmra.mxu3 %v6307_v50  ;;  %v12386_v35 = vpop.eup %8119  ;;  %v5551_v26 = vmul.f32 %v12338_v24, %v5550_v44  ;;  %vm12411_vm2 = vmor %vm5538_vm8, %vm5539_vm6  ;;  %v6331_v33 = vsel %vm6330_vm9, %v12306_v25, %v6327_v9  ;;  %v6335_v16 = vor.u32 1.1754944e-38, %v6334_v39  ;;  %v5545_v12 = vor.u32 1.1754944e-38, %v5544_v18 }
 0xe79   : > { %8123 = vpow2.f32 %v5379_v59  ;;  %5735 = vmatmul.f32.gmra.mxu0 %v5517_v57  ;;  %v12392_v17 = vpop.eup %8121  ;;  %v6354_v57 = vmul.f32 %v12386_v35, %v12340_v1  ;;  %v5541_v50 = vsel %vm12411_vm2, %v12301_v47, %v5537_v43  ;;  %vm6333_vm10 = vcmp.eq.f32.partialorder %v6332_v46, 8.507059e+37 }
 0xe7a   : > { %v5564_v31 = vmul.f32 %v12392_v17, %v12334_v51  ;;  %vm5543_vm11 = vcmp.eq.f32.partialorder %v5542_v7, 8.507059e+37  ;;  %v6336_v19 = vsel %vm6333_vm10, %v6335_v16, %v6331_v33  ;;  %v5552_v58 = vadd.f32 %v12338_v24, %v5551_v26 }
 0xe7b   : > { %vm5554_vm12 = vweird.f32 %v12338_v24  ;;  %v6355_v25 = vsub.f32 1.0, %v6354_v57  ;;  %v5546_v20 = vsel %vm5543_vm11, %v5545_v12, %v5541_v50  ;;  %v5559_v47 = vand.u32 2147483648, %v12297_v34 }
 0xe7c   : > { %v12382_v40 = vpop.xlane.xlu1 %6189  ;;  %v5565_v60 = vsub.f32 1.0, %v5564_v31  ;;  %v6337_v49 = vmul.f32 %v12147_v14, %v6336_v19  ;;  %vm12432_vm14 = vmor %vm5553_vm13, %vm5554_vm12  ;;  %v5557_v45 = vand.u32 2147483647, %v12297_v34  ;;  %v5547_v9 = vmul.f32 %v12087_v55, %v5546_v20 }
 0xe7d   : > { %8125 = vrcp.f32 %v12382_v40  ;;  %v6349_v5 = vand.u32 2147483648, %v12382_v40  ;;  %v5556_v39 = vsel %vm12432_vm14, %v12338_v24, %v5552_v58  ;;  %v6356_v43 = vmul.f32 %v12386_v35, %v6355_v25 }
 0xe7e   : > { %8127 = vrcp.f32 %v12379_v21  ;;  %v5566_v34 = vmul.f32 %v12392_v17, %v5565_v60  ;;  %v5560_v46 = vor.u32 1.1754944e-38, %v5559_v47  ;;  %v5574_v26 = vand.u32 2147483648, %v12334_v51 }
 0xe7f   : > { %v12398_v63 = vpop.eup %8123  ;;  %vm6343_vm3 = vweird.f32 %v12382_v40  ;;  %vm5558_vm4 = vcmp.eq.f32.partialorder %v5557_v45, 8.507059e+37  ;;  %v6350_v24 = vor.u32 1.1754944e-38, %v6349_v5  ;;  %vm6359_vm6 = vweird.f32 %v12386_v35 }
 0xe80   : > { %5411 = vadd.xlane.f32.xlu0 %v12398_v63  ;;  %6528 = vmatmul.f32.gmra.mxu3 %v6322_v54  ;;  %v6347_v54 = vand.u32 2147483647, %v12382_v40  ;;  %v5561_v57 = vsel %vm5558_vm4, %v5560_v46, %v5556_v39  ;;  %v6357_v31 = vadd.f32 %v12386_v35, %v6356_v43  ;;  %v6364_v16 = vand.u32 2147483648, %v12340_v1 }
 0xe81   : > { %5738 = vmatmul.f32.gmra.mxu0 %v5532_v32  ;;  %vm5569_vm8 = vweird.f32 %v12392_v17  ;;  %vm6358_vm9 = vweird.f32 %v12340_v1  ;;  %v6362_v58 = vand.u32 2147483647, %v12340_v1  ;;  %vm5568_vm2 = vweird.f32 %v12334_v51 }
 0xe82   : > { %vm6348_vm7 = vcmp.eq.f32.partialorder %v6347_v54, 8.507059e+37  ;;  %v5572_v25 = vand.u32 2147483647, %v12334_v51  ;;  %vm6360_vm10 = vmor %vm6358_vm9, %vm6359_vm6  ;;  %v6365_v60 = vor.u32 1.1754944e-38, %v6364_v16  ;;  %v5575_v1 = vor.u32 1.1754944e-38, %v5574_v26 }
 0xe83   : > { %v8126_v59 = vpop.eup %8125  ;;  %vm5570_vm11 = vmor %vm5568_vm2, %vm5569_vm8  ;;  %v6361_v20 = vsel %vm6360_vm10, %v12386_v35, %v6357_v31  ;;  %vm6363_vm12 = vcmp.eq.f32.partialorder %v6362_v58, 8.507059e+37 }
 0xe84   : > { %v12423_v28 = vpop.eup %8127  ;;  %v6339_v15 = vmul.f32 %v8126_v59, %v12382_v40  ;;  %v12426_v36 = vpop.xlane.xlu1 %5403  ;;  %vm6344_vm15 = vweird.f32 %v8126_v59  ;;  %v5567_v40 = vadd.f32 %v12392_v17, %v5566_v34  ;;  %vm5573_vm13 = vcmp.eq.f32.partialorder %v5572_v25, 8.507059e+37 }
 0xe85   : > { %8129 = vrcp.f32 %v12426_v36  ;;  %v6369_v18 = vmul.f32 %v12423_v28, %v12379_v21  ;;  %vm6345_vm5 = vmor %vm6343_vm3, %vm6344_vm15  ;;  %vm6374_vm14 = vweird.f32 %v12423_v28  ;;  %vm6373_vm3 = vweird.f32 %v12379_v21 }
 0xe86   : > { %v6340_v0 = vsub.f32 1.0, %v6339_v15  ;;  %v5589_v35 = vand.u32 2147483648, %v12426_v36  ;;  %vm5583_vm4 = vweird.f32 %v12426_v36  ;;  %v5587_v5 = vand.u32 2147483647, %v12426_v36 }
 0xe87   : > { %v6370_v7 = vsub.f32 1.0, %v6369_v18 }
 0xe88   : > { %v6341_v14 = vmul.f32 %v8126_v59, %v6340_v0  ;;  %6531 = vmatmul.f32.gmra.mxu3 %v6337_v49  ;;  %v6379_v49 = vand.u32 2147483648, %v12379_v21  ;;  %vm5588_vm8 = vcmp.eq.f32.partialorder %v5587_v5, 8.507059e+37 }
 0xe89   : > { %5741 = vmatmul.f32.gmra.mxu0 %v5547_v9  ;;  %v6371_v15 = vmul.f32 %v12423_v28, %v6370_v7 }
 0xe8a   : > { %v6342_v55 = vadd.f32 %v8126_v59, %v6341_v14  ;;  %v6380_v39 = vor.u32 1.1754944e-38, %v6379_v49  ;;  %v5590_v14 = vor.u32 1.1754944e-38, %v5589_v35 }
 0xe8b   : > { %v8130_v32 = vpop.eup %8129  ;;  %v6372_v51 = vadd.f32 %v12423_v28, %v6371_v15 }
 0xe8c   : > { %v5579_v56 = vmul.f32 %v8130_v32, %v12426_v36  ;;  %v6346_v33 = vsel %vm6345_vm5, %v8126_v59, %v6342_v55  ;;  %v5562_v59 = vmul.f32 %v12154_v4, %v5561_v57  ;;  %v6366_v4 = vsel %vm6363_vm12, %v6365_v60, %v6361_v20  ;;  %vm6375_vm5 = vmor %vm6373_vm3, %vm6374_vm14 }
 0xe8d   : > { %v6351_v50 = vsel %vm6348_vm7, %v6350_v24, %v6346_v33  ;;  %vm5584_vm15 = vweird.f32 %v8130_v32  ;;  %v6367_v45 = vmul.f32 %v12165_v30, %v6366_v4  ;;  %v6376_v9 = vsel %vm6375_vm5, %v12423_v28, %v6372_v51 }
 0xe8e   : > { %v5580_v12 = vsub.f32 1.0, %v5579_v56  ;;  %v6352_v19 = vmul.f32 %v12173_v41, %v6351_v50  ;;  %v5571_v41 = vsel %vm5570_vm11, %v12392_v17, %v5567_v40  ;;  %v6377_v17 = vand.u32 2147483647, %v12379_v21  ;;  %vm5585_vm6 = vmor %vm5583_vm4, %vm5584_vm15 }
 0xe8f   : > { %v5576_v0 = vsel %vm5573_vm13, %v5575_v1, %v5571_v41 }
 0xe90   : > { %6534 = vmatmul.f32.gmra.mxu3 %v6352_v19  ;;  %v5581_v47 = vmul.f32 %v8130_v32, %v5580_v12  ;;  %v5577_v18 = vmul.f32 %v12121_v48, %v5576_v0  ;;  %vm6378_vm7 = vcmp.eq.f32.partialorder %v6377_v17, 8.507059e+37 }
 0xe91   : > { %5744 = vmatmul.f32.gmra.mxu0 %v5562_v59  ;;  %v6381_v30 = vsel %vm6378_vm7, %v6380_v39, %v6376_v9 }
 0xe92   : > { %v5582_v44 = vadd.f32 %v8130_v32, %v5581_v47  ;;  %v6382_v21 = vmul.f32 %v12138_v52, %v6381_v30 }
 0xe94   : > { %v5586_v43 = vsel %vm5585_vm6, %v8130_v32, %v5582_v44 }
 0xe95   : > { %v5591_v54 = vsel %vm5588_vm8, %v5590_v14, %v5586_v43 }
 0xe96   : > { %v5592_v34 = vmul.f32 %v12181_v37, %v5591_v54 }
 0xe98   : > { %6537 = vmatmul.f32.gmra.mxu3 %v6367_v45 }
 0xe99   : > { %5747 = vmatmul.f32.gmra.mxu0 %v5577_v18 }
 0xea0   : > { %6540 = vmatmul.f32.gmra.mxu3 %v6382_v21 }
 0xea1   : > { %5750 = vmatmul.f32.gmra.mxu0 %v5592_v34 }
 0xea2   : > { %v6196_v48 = vpop.xlane.xlu1 %6195 }
 0xea3   : > { %8131 = vrcp.f32 %v6196_v48  ;;  %v6394_v28 = vand.u32 2147483648, %v6196_v48  ;;  %v6392_v32 = vand.u32 2147483647, %v6196_v48  ;;  %vm6388_vm2 = vweird.f32 %v6196_v48 }
 0xea5   : > { %v6395_v24 = vor.u32 1.1754944e-38, %v6394_v28  ;;  %vm6393_vm11 = vcmp.eq.f32.partialorder %v6392_v32, 8.507059e+37 }
 0xea9   : > { %v8132_v36 = vpop.eup %8131 }
 0xeaa   : > { %v6384_v46 = vmul.f32 %v8132_v36, %v6196_v48  ;;  %vm6389_vm9 = vweird.f32 %v8132_v36  ;;  %v5408_v56 = vpop.xlane.xlu2 %5407 }
 0xeab   : > { %vm6390_vm10 = vmor %vm6388_vm2, %vm6389_vm9  ;;  %8133 = vrcp.f32 %v5408_v56  ;;  %vm5613_vm4 = vweird.f32 %v5408_v56  ;;  %v5619_v45 = vand.u32 2147483648, %v5408_v56  ;;  %v5617_v43 = vand.u32 2147483647, %v5408_v56 }
 0xeac   : > { %v6385_v26 = vsub.f32 1.0, %v6384_v46 }
 0xead   : > { %vm5618_vm8 = vcmp.eq.f32.partialorder %v5617_v43, 8.507059e+37 }
 0xeae   : > { %v6386_v55 = vmul.f32 %v8132_v36, %v6385_v26 }
 0xeb0   : > { %v6387_v7 = vadd.f32 %v8132_v36, %v6386_v55 }
 0xeb1   : > { %v8134_v33 = vpop.eup %8133 }
 0xeb2   : > { %v6391_v57 = vsel %vm6390_vm10, %v8132_v36, %v6387_v7  ;;  %v5609_v16 = vmul.f32 %v8134_v33, %v5408_v56  ;;  %vm5614_vm15 = vweird.f32 %v8134_v33 }
 0xeb3   : > { %v6396_v52 = vsel %vm6393_vm11, %v6395_v24, %v6391_v57  ;;  %vm12491_vm5 = vmor %vm5613_vm4, %vm5614_vm15 }
 0xeb4   : > { %v6397_v37 = vmul.f32 %v12194_v53, %v6396_v52  ;;  %v5610_v12 = vsub.f32 1.0, %v5609_v16 }
 0xeb6   : > { %6543 = vmatmul.f32.gmra.mxu3 %v6397_v37  ;;  %v5611_v53 = vmul.f32 %v8134_v33, %v5610_v12 }
 0xeb8   : > { %v5612_v51 = vadd.f32 %v8134_v33, %v5611_v53 }
 0xeba   : > { %v5616_v54 = vsel %vm12491_vm5, %v8134_v33, %v5612_v51  ;;  %v6508_v51 = vpop.f32.mrf.mxu3 }
 0xed3   : > { %v5406_v31 = vpop.xlane.xlu0 %5405 }
 0xed4   : > { %8135 = vrcp.f32 %v5406_v31  ;;  %v5604_v15 = vand.u32 2147483648, %v5406_v31  ;;  %v5602_v41 = vand.u32 2147483647, %v5406_v31  ;;  %vm5598_vm13 = vweird.f32 %v5406_v31 }
 0xed6   : > { %v5605_v0 = vor.u32 1.1754944e-38, %v5604_v15  ;;  %vm5603_vm3 = vcmp.eq.f32.partialorder %v5602_v41, 8.507059e+37 }
 0xed7   : > { %v12480_v50 = vpop.xlane.xlu1 %5409 }
 0xed8   : > { %8137 = vrcp.f32 %v12480_v50  ;;  %v5634_v7 = vand.u32 2147483648, %v12480_v50  ;;  %vm5628_vm11 = vweird.f32 %v12480_v50  ;;  %v5632_v37 = vand.u32 2147483647, %v12480_v50 }
 0xeda   : > { %v8136_v40 = vpop.eup %8135  ;;  %v5635_v16 = vor.u32 1.1754944e-38, %v5634_v7 }
 0xedb   : > { %v5594_v19 = vmul.f32 %v8136_v40, %v5406_v31  ;;  %v6198_v58 = vpop.xlane.xlu0 %6197  ;;  %vm5599_vm12 = vweird.f32 %v8136_v40 }
 0xedc   : > { %8139 = vrcp.f32 %v6198_v58  ;;  %vm5600_vm14 = vmor %vm5598_vm13, %vm5599_vm12  ;;  %v6409_v14 = vand.u32 2147483648, %v6198_v58  ;;  %v6407_v48 = vand.u32 2147483647, %v6198_v58  ;;  %vm6403_vm7 = vweird.f32 %v6198_v58 }
 0xedd   : > { %v5595_v59 = vsub.f32 1.0, %v5594_v19  ;;  %v5727_v20 = vpop.f32.mrf.mxu0  ;;  %vm5633_vm13 = vcmp.eq.f32.partialorder %v5632_v37, 8.507059e+37 }
 0xede   : > { %v12483_v25 = vpop.eup %8137  ;;  %7167 = vmatmul.msk.f32.gmra.mxu2 %vm462_vm1, %v5727_v20  ;;  %v6410_v26 = vor.u32 1.1754944e-38, %v6409_v14  ;;  %vm6408_vm10 = vcmp.eq.f32.partialorder %v6407_v48, 8.507059e+37 }
 0xedf   : > { %v5596_v60 = vmul.f32 %v8136_v40, %v5595_v59  ;;  %v5624_v47 = vmul.f32 %v12483_v25, %v12480_v50  ;;  %v12488_v17 = vpop.xlane.xlu1 %6201  ;;  %vm5629_vm2 = vweird.f32 %v12483_v25 }
 0xee0   : > { %8141 = vrcp.f32 %v12488_v17  ;;  %vm5630_vm12 = vmor %vm5628_vm11, %vm5629_vm2 }
 0xee1   : > { %v5597_v1 = vadd.f32 %v8136_v40, %v5596_v60  ;;  %v5625_v49 = vsub.f32 1.0, %v5624_v47 }
 0xee2   : > { %v8140_v4 = vpop.eup %8139 }
 0xee3   : > { %v6399_v44 = vmul.f32 %v8140_v4, %v6198_v58  ;;  %v5601_v35 = vsel %vm5600_vm14, %v8136_v40, %v5597_v1  ;;  %v5626_v21 = vmul.f32 %v12483_v25, %v5625_v49  ;;  %vm6404_vm6 = vweird.f32 %v8140_v4 }
 0xee4   : > { %v5606_v18 = vsel %vm5603_vm3, %v5605_v0, %v5601_v35  ;;  %vm6405_vm9 = vmor %vm6403_vm7, %vm6404_vm6  ;;  %vm6433_vm6 = vweird.f32 %v12488_v17 }
 0xee5   : > { %v6400_v5 = vsub.f32 1.0, %v6399_v44  ;;  %v5607_v9 = vmul.f32 %v12248_v13, %v5606_v18  ;;  %v5730_v30 = vpop.f32.mrf.mxu0  ;;  %v5620_v13 = vor.u32 1.1754944e-38, %v5619_v45  ;;  %v5627_v32 = vadd.f32 %v12483_v25, %v5626_v21 }
 0xee6   : > { %7168 = vmatmul.msk.f32.gmra.mxu2 %vm462_vm1, %v5730_v30  ;;  %v12503_v24 = vpop.eup %8141  ;;  %v6439_v44 = vand.u32 2147483648, %v12488_v17  ;;  %v6437_v18 = vand.u32 2147483647, %v12488_v17 }
 0xee7   : > { %v6401_v34 = vmul.f32 %v8140_v4, %v6400_v5  ;;  %5753 = vmatmul.f32.gmra.mxu0 %v5607_v9  ;;  %v5621_v46 = vsel %vm5618_vm8, %v5620_v13, %v5616_v54  ;;  %v5631_v31 = vsel %vm5630_vm12, %v12483_v25, %v5627_v32  ;;  %v6429_v40 = vmul.f32 %v12503_v24, %v12488_v17 }
 0xee8   : > { %v5622_v57 = vmul.f32 %v12199_v2, %v5621_v46  ;;  %v5636_v2 = vsel %vm5633_vm13, %v5635_v16, %v5631_v31  ;;  %vm6434_vm5 = vweird.f32 %v12503_v24  ;;  %v6440_v30 = vor.u32 1.1754944e-38, %v6439_v44  ;;  %v13049_v44 = vld [vmem:[#allocation52_spill] sm:$0xff] }
 0xee9   : > { %v6402_v36 = vadd.f32 %v8140_v4, %v6401_v34  ;;  %v6430_v50 = vsub.f32 1.0, %v6429_v40  ;;  %vm12522_vm7 = vmor %vm6433_vm6, %vm6434_vm5  ;;  %vm6438_vm2 = vcmp.eq.f32.partialorder %v6437_v18, 8.507059e+37 }
 0xeeb   : > { %v6200_v28 = vpop.xlane.xlu2 %6199  ;;  %v6406_v55 = vsel %vm6405_vm9, %v8140_v4, %v6402_v36  ;;  %v6431_v60 = vmul.f32 %v12503_v24, %v6430_v50  ;;  %v6511_v36 = vpop.f32.mrf.mxu3 }
 0xeec   : > { %8143 = vrcp.f32 %v6200_v28  ;;  %v6411_v52 = vsel %vm6408_vm10, %v6410_v26, %v6406_v55  ;;  %v6424_v53 = vand.u32 2147483648, %v6200_v28  ;;  %v6422_v25 = vand.u32 2147483647, %v6200_v28 }
 0xeed   : > { %v5733_v56 = vpop.f32.mrf.mxu0  ;;  %v6412_v33 = vmul.f32 %v12287_v11, %v6411_v52  ;;  %v5637_v11 = vmul.f32 %v12272_v42, %v5636_v2  ;;  %vm6418_vm15 = vweird.f32 %v6200_v28  ;;  %v6432_v42 = vadd.f32 %v12503_v24, %v6431_v60 }
 0xeee   : > { %7169 = vmatmul.msk.f32.gmra.mxu2 %vm462_vm1, %v5733_v56  ;;  %v6425_v1 = vor.u32 1.1754944e-38, %v6424_v53  ;;  %vm6423_vm4 = vcmp.eq.f32.partialorder %v6422_v25, 8.507059e+37 }
 0xeef   : > { %5756 = vmatmul.f32.gmra.mxu0 %v5622_v57  ;;  %6546 = vmatmul.f32.gmra.mxu3 %v6412_v33 }
 0xef2   : > { %v8144_v12 = vpop.eup %8143 }
 0xef3   : > { %v6414_v19 = vmul.f32 %v8144_v12, %v6200_v28  ;;  %v5412_v58 = vpop.xlane.xlu0 %5411  ;;  %vm6419_vm14 = vweird.f32 %v8144_v12  ;;  %v6514_v28 = vpop.f32.mrf.mxu3 }
 0xef4   : > { %8145 = vrcp.f32 %v5412_v58  ;;  %vm6420_vm3 = vmor %vm6418_vm15, %vm6419_vm14  ;;  %v5649_v5 = vand.u32 2147483648, %v5412_v58  ;;  %v5647_v14 = vand.u32 2147483647, %v5412_v58  ;;  %vm5643_vm9 = vweird.f32 %v5412_v58 }
 0xef5   : > { %v6415_v59 = vsub.f32 1.0, %v6414_v19  ;;  %v5834_v19 = vpop.f32.mrf.mxu2 }
 0xef6   : > { %v5736_v15 = vpop.f32.mrf.mxu0  ;;  %v5650_v17 = vor.u32 1.1754944e-38, %v5649_v5  ;;  %vm5648_vm11 = vcmp.eq.f32.partialorder %v5647_v14, 8.507059e+37  ;;  %v12567_v5 = vld [vmem:[%s12747_s4] ss:$0 sm:$0xff] }
 0xef7   : > { %v6416_v20 = vmul.f32 %v8144_v12, %v6415_v59  ;;  %7170 = vmatmul.msk.f32.gmra.mxu2 %vm462_vm1, %v5736_v15  ;;  %5759 = vmatmul.f32.gmra.mxu0 %v5637_v11  ;;  %v13043_v59 = vld [vmem:[#allocation25_spill] sm:$0xff]  ;;  %v13044_v11 = vld [vmem:[#allocation31_spill] sm:$0xff] }
 0xef8   : > { %v1901_v53 = vadd.f32 %v13044_v11, %v13043_v59 }
 0xef9   : > { %v6417_v47 = vadd.f32 %v8144_v12, %v6416_v20  ;;  %v13045_v20 = vld [vmem:[#allocation51_spill] sm:$0xff] }
 0xefa   : > { %v8146_v41 = vpop.eup %8145  ;;  %v2722_v25 = vadd.f32 %v13045_v20, %v1901_v53  ;;  %v13062_v53 = vld [vmem:[#allocation69_spill] sm:$0xff] }
 0xefb   : > { %v5639_v4 = vmul.f32 %v8146_v41, %v5412_v58  ;;  %v6421_v0 = vsel %vm6420_vm3, %v8144_v12, %v6417_v47  ;;  %vm5644_vm8 = vweird.f32 %v8146_v41  ;;  %v13046_v47 = vld [vmem:[#allocation23_spill] sm:$0xff] }
 0xefc   : > { %v6426_v49 = vsel %vm6423_vm4, %v6425_v1, %v6421_v0  ;;  %vm5645_vm10 = vmor %vm5643_vm9, %vm5644_vm8  ;;  %v13047_v0 = vld [vmem:[#allocation21_spill] sm:$0xff] }
 0xefd   : > { %v5640_v35 = vsub.f32 1.0, %v5639_v4  ;;  %v6427_v45 = vmul.f32 %v12349_v10, %v6426_v49  ;;  %v6436_v10 = vsel %vm12522_vm7, %v12503_v24, %v6432_v42  ;;  %v5837_v50 = vpop.f32.mrf.mxu2 }
 0xefe   : > { %v5739_v9 = vpop.f32.mrf.mxu0  ;;  %v6441_v34 = vsel %vm6438_vm2, %v6440_v30, %v6436_v10  ;;  %v13051_v30 = vld [vmem:[#allocation24_spill] sm:$0xff] }
 0xeff   : > { %v5641_v43 = vmul.f32 %v8146_v41, %v5640_v35  ;;  %7171 = vmatmul.msk.f32.gmra.mxu2 %vm462_vm1, %v5739_v9  ;;  %6549 = vmatmul.f32.gmra.mxu3 %v6427_v45  ;;  %v6442_v26 = vmul.f32 %v12295_v29, %v6441_v34  ;;  %v13053_v34 = vld [vmem:[#allocation53_spill] sm:$0xff] }
 0xf01   : > { %v5642_v54 = vadd.f32 %v8146_v41, %v5641_v43 }
 0xf03   : > { %v5646_v21 = vsel %vm5645_vm10, %v8146_v41, %v5642_v54  ;;  %v3512_v41 = vadd.f32 %v13046_v47, %v2722_v25  ;;  %v13052_v54 = vld [vmem:[#allocation36_spill] sm:$0xff]  ;;  %v13064_v47 = vld [vmem:[#allocation37_spill] sm:$0xff] }
 0xf04   : > { %v5651_v13 = vsel %vm5648_vm11, %v5650_v17, %v5646_v21  ;;  %v1907_v17 = vadd.f32 %v13052_v54, %v13051_v30 }
 0xf05   : > { %v5652_v48 = vmul.f32 %v12398_v63, %v5651_v13  ;;  %v6517_v63 = vpop.f32.mrf.mxu3  ;;  %v4302_v1 = vadd.f32 %v11627_v62, %v3512_v41  ;;  %v5840_v4 = vpop.f32.mrf.mxu2  ;;  %v13050_v62 = vld [vmem:[#allocation27_spill] sm:$0xff] }
 0xf06   : > { %v5742_v46 = vpop.f32.mrf.mxu0  ;;  %v2724_v13 = vadd.f32 %v13053_v34, %v1907_v17 }
 0xf07   : > { %7172 = vmatmul.msk.f32.gmra.mxu2 %vm462_vm1, %v5742_v46  ;;  %5762 = vmatmul.f32.gmra.mxu0 %v5652_v48  ;;  %v5092_v49 = vadd.f32 %v11795_v61, %v4302_v1  ;;  %v13065_v1 = vld [vmem:[#allocation30_spill] sm:$0xff] }
 0xf08   : > { %6552 = vmatmul.f32.gmra.mxu3 %v6442_v26 }
 0xf09   : > { %v5882_v45 = vadd.f32 %v5834_v19, %v5092_v49  ;;  %v13061_v19 = vld [vmem:[#allocation55_spill] sm:$0xff]  ;;  %v13067_v49 = vld [vmem:[#allocation70_spill] sm:$0xff] }
 0xf0d   : > { %v6520_v29 = vpop.f32.mrf.mxu3 }
 0xf0e   : > { %v5745_v55 = vpop.f32.mrf.mxu0 }
 0xf0f   : > { %7173 = vmatmul.msk.f32.gmra.mxu2 %vm462_vm1, %v5745_v55  ;;  %7213 = vmatmul.msk.f32.vlgmr.msra.gmra.mxu0 %vm462_vm1, %v6508_v51  ;;  %v13048_v51 = vld [vmem:[#allocation34_spill] sm:$0xff] }
 0xf10   : > { %v1904_v42 = vadd.f32 %v13048_v51, %v13047_v0 }
 0xf12   : > { %v2723_v35 = vadd.f32 %v13049_v44, %v1904_v42 }
 0xf14   : > { %v3513_v39 = vadd.f32 %v13050_v62, %v2723_v35  ;;  %v13069_v62 = vld [vmem:[#allocation17_spill] sm:$0xff] }
 0xf15   : > { %v6523_v24 = vpop.f32.mrf.mxu3 }
 0xf16   : > { %v5748_v32 = vpop.f32.mrf.mxu0  ;;  %v4303_v14 = vadd.f32 %v11637_v38, %v3513_v39  ;;  %v13054_v38 = vld [vmem:[#allocation67_spill] sm:$0xff] }
 0xf17   : > { %7174 = vmatmul.msk.f32.gmra.mxu2 %vm462_vm1, %v5748_v32  ;;  %7214 = vmatmul.msk.f32.gmra.mxu0 %vm462_vm1, %v6511_v36  ;;  %v3514_v46 = vadd.f32 %v13054_v38, %v2724_v13  ;;  %v13056_v32 = vld [vmem:[#allocation33_spill] sm:$0xff]  ;;  %v13070_v39 = vld [vmem:[#allocation39_spill] sm:$0xff] }
 0xf18   : > { %v5093_v21 = vadd.f32 %v11801_v23, %v4303_v14  ;;  %v13055_v23 = vld [vmem:[#allocation29_spill] sm:$0xff]  ;;  %v13071_v14 = vld [vmem:[#allocation12_spill] sm:$0xff] }
 0xf1a   : > { %v5883_v48 = vadd.f32 %v5837_v50, %v5093_v21  ;;  %v13073_v21 = vld [vmem:[#allocation71_spill] sm:$0xff] }
 0xf1d   : > { %v6526_v57 = vpop.f32.mrf.mxu3 }
 0xf1e   : > { %v5751_v7 = vpop.f32.mrf.mxu0 }
 0xf1f   : > { %7175 = vmatmul.msk.f32.gmra.mxu2 %vm462_vm1, %v5751_v7  ;;  %7215 = vmatmul.msk.f32.gmra.mxu0 %vm462_vm1, %v6514_v28  ;;  %v4304_v28 = vadd.f32 %v11648_v22, %v3514_v46 }
 0xf21   : > { %v5094_v7 = vadd.f32 %v11804_v27, %v4304_v28  ;;  %v13076_v28 = vld [vmem:[#allocation38_spill] sm:$0xff] }
 0xf25   : > { %v6529_v52 = vpop.f32.mrf.mxu3 }
 0xf27   : > { %7216 = vmatmul.msk.f32.gmra.mxu0 %vm462_vm1, %v6517_v63  ;;  %v1910_v63 = vadd.f32 %v13056_v32, %v13055_v23  ;;  %v13077_v23 = vld [vmem:[#allocation20_spill] sm:$0xff] }
 0xf2d   : > { %v6532_v37 = vpop.f32.mrf.mxu3 }
 0xf2f   : > { %7217 = vmatmul.msk.f32.gmra.mxu0 %vm462_vm1, %v6520_v29 }
 0xf35   : > { %v6535_v56 = vpop.f32.mrf.mxu3 }
 0xf37   : > { %7218 = vmatmul.msk.f32.gmra.mxu0 %vm462_vm1, %v6523_v24  ;;  %v13057_v24 = vld [vmem:[#allocation54_spill] sm:$0xff] }
 0xf3d   : > { %v6538_v33 = vpop.f32.mrf.mxu3 }
 0xf3f   : > { %7219 = vmatmul.msk.f32.gmra.mxu0 %vm462_vm1, %v6526_v57  ;;  %v2725_v57 = vadd.f32 %v13057_v24, %v1910_v63  ;;  %v13078_v63 = vld [vmem:[#allocation58_spill] sm:$0xff] }
 0xf45   : > { %v6541_v16 = vpop.f32.mrf.mxu3 }
 0xf47   : > { %7220 = vmatmul.msk.f32.gmra.mxu0 %vm462_vm1, %v6529_v52  ;;  %v5884_v52 = vadd.f32 %v5840_v4, %v5094_v7  ;;  %v13066_v4 = vld [vmem:[#allocation56_spill] sm:$0xff] }
 0xf4d   : > { %v6544_v12 = vpop.f32.mrf.mxu3 }
 0xf4f   : > { %7221 = vmatmul.msk.f32.gmra.mxu0 %vm462_vm1, %v6532_v37 }
 0xf57   : > { %7222 = vmatmul.msk.f32.gmra.mxu0 %vm462_vm1, %v6535_v56  ;;  %v13058_v56 = vld [vmem:[#allocation68_spill] sm:$0xff] }
 0xf5f   : > { %7223 = vmatmul.msk.f32.gmra.mxu0 %vm462_vm1, %v6538_v33  ;;  %v3515_v33 = vadd.f32 %v13058_v56, %v2725_v57  ;;  %v13079_v57 = vld [vmem:[#allocation72_spill] sm:$0xff]  ;;  %v13080_v56 = vld [vmem:[#allocation81_spill] sm:$0xff] }
 0xf61   : > { %v5843_v61 = vpop.f32.mrf.mxu2  ;;  %v4305_v22 = vadd.f32 %v11660_v3, %v3515_v33 }
 0xf63   : > { %v5095_v27 = vadd.f32 %v11808_v6, %v4305_v22  ;;  %v13081_v22 = vld [vmem:[#allocation19_spill] sm:$0xff] }
 0xf64   : > { %v5754_v31 = vpop.f32.mrf.mxu0 }
 0xf65   : > { %7176 = vmatmul.msk.f32.gmra.mxu2 %vm462_vm1, %v5754_v31  ;;  %v5885_v50 = vadd.f32 %v5843_v61, %v5095_v27  ;;  %v13072_v61 = vld [vmem:[#allocation57_spill] sm:$0xff] }
 0xf67   : > { %7224 = vmatmul.msk.f32.gmra.mxu0 %vm462_vm1, %v6541_v16 }
 0xf69   : > { %v5846_v29 = vpop.f32.mrf.mxu2 }
 0xf6c   : > { %v5757_v40 = vpop.f32.mrf.mxu0 }
 0xf6d   : > { %7177 = vmatmul.msk.f32.gmra.mxu2 %vm462_vm1, %v5757_v40  ;;  %v13059_v40 = vld [vmem:[#allocation28_spill] sm:$0xff] }
 0xf6f   : > { %7225 = vmatmul.msk.f32.gmra.mxu0 %vm462_vm1, %v6544_v12  ;;  %v13060_v12 = vld [vmem:[#allocation35_spill] sm:$0xff] }
 0xf71   : > { %v5849_v59 = vpop.f32.mrf.mxu2 }
 0xf72   : > { %v6547_v58 = vpop.f32.mrf.mxu3 }
 0xf74   : > { %v5760_v2 = vpop.f32.mrf.mxu0 }
 0xf75   : > { %7178 = vmatmul.msk.f32.gmra.mxu2 %vm462_vm1, %v5760_v2  ;;  %v1913_v2 = vadd.f32 %v13060_v12, %v13059_v40  ;;  %v13083_v12 = vld [vmem:[#allocation26_spill] sm:$0xff] }
 0xf77   : > { %7226 = vmatmul.msk.f32.gmra.mxu0 %vm462_vm1, %v6547_v58  ;;  %v2726_v58 = vadd.f32 %v13061_v19, %v1913_v2  ;;  %v13084_v19 = vld [vmem:[#allocation59_spill] sm:$0xff] }
 0xf82   : > { %v6550_v15 = vpop.f32.mrf.mxu3 }
 0xf83   : > { %7227 = vmatmul.msk.f32.gmra.mxu0 %vm462_vm1, %v6550_v15  ;;  %v3516_v15 = vadd.f32 %v13062_v53, %v2726_v58 }
 0xf84   : > { %v5763_v60 = vpop.f32.mrf.mxu0 }
 0xf85   : > { %7179 = vmatmul.msk.f32.gmra.mxu2 %vm462_vm1, %v5763_v60  ;;  %v4306_v3 = vadd.f32 %v11666_v8, %v3516_v15  ;;  %v13063_v60 = vld [vmem:[#allocation9_spill] sm:$0xff] }
 0xf86   : > { %v1916_v41 = vadd.f32 %v13064_v47, %v13063_v60  ;;  %v13087_v60 = vld [vmem:[#allocation18_spill] sm:$0xff]  ;;  %v13088_v47 = vld [vmem:[#allocation41_spill] sm:$0xff] }
 0xf87   : > { %v5096_v6 = vadd.f32 %v13065_v1, %v4306_v3  ;;  %v13089_v1 = vld [vmem:[#allocation90_spill] sm:$0xff] }
 0xf88   : > { %v2727_v0 = vadd.f32 %v13066_v4, %v1916_v41  ;;  %v1928_v41 = vadd.f32 %v13088_v47, %v13087_v60  ;;  %v13090_v4 = vld [vmem:[#allocation60_spill] sm:$0xff] }
 0xf89   : > { %v5886_v51 = vadd.f32 %v5846_v29, %v5096_v6  ;;  %v13111_v47 = vld [vmem:[#allocation48_spill] sm:$0xff] }
 0xf8a   : > { %v3517_v44 = vadd.f32 %v13067_v49, %v2727_v0  ;;  %v2731_v0 = vadd.f32 %v13090_v4, %v1928_v41  ;;  %v13112_v41 = vld [vmem:[#allocation45_spill] sm:$0xff] }
 0xf8b   : > { %v6553_v18 = vpop.f32.mrf.mxu3 }
 0xf8c   : > { %7228 = vmatmul.msk.f32.gmra.mxu0 %vm462_vm1, %v6553_v18  ;;  %v6624_v9 = vpop.f32.mrf.mxu0  ;;  %v13068_v18 = vld [vmem:[#allocation10_spill] sm:$0xff] }
 0xf8d   : > { %v6672_v43 = vadd.f32 %v6624_v9, %v5882_v45  ;;  %v5852_v45 = vpop.f32.mrf.mxu2  ;;  %v4307_v8 = vadd.f32 %v13068_v18, %v3517_v44  ;;  %v13091_v44 = vld [vmem:[#allocation74_spill] sm:$0xff]  ;;  %v13092_v18 = vld [vmem:[#allocation83_spill] sm:$0xff] }
 0xf8f   : > { %v6691_v10 = vadd.f32 %v12567_v5, %v6672_v43  ;;  %v1919_v43 = vadd.f32 %v13070_v39, %v13069_v62  ;;  %v13093_v62 = vld [vmem:[#allocation22_spill] sm:$0xff] }
 0xf90   : > { %v13094_v39 = vld [vmem:[#allocation42_spill] sm:$0xff] }
 0xf91   : > { %6707 = vst.msk [vmem:[%s12578_s20] sm:$0xff] %vm340_vm0, %v6691_v10  ;;  %v5097_v10 = vadd.f32 %v13071_v14, %v4307_v8  ;;  %v2728_v30 = vadd.f32 %v13072_v61, %v1919_v43  ;;  %v1931_v43 = vadd.f32 %v13094_v39, %v13093_v62  ;;  %v13095_v14 = vld [vmem:[#allocation32_spill] sm:$0xff]  ;;  %v13096_v61 = vld [vmem:[#allocation61_spill] sm:$0xff] }
 0xf92   : > { %v13117_v39 = vld [vmem:[#allocation16_spill] sm:$0xff] }
 0xf93   : > { %v5887_v54 = vadd.f32 %v5849_v59, %v5097_v10  ;;  %v3518_v34 = vadd.f32 %v13073_v21, %v2728_v30  ;;  %v2732_v30 = vadd.f32 %v13096_v61, %v1931_v43  ;;  %v13097_v21 = vld [vmem:[#allocation75_spill] sm:$0xff]  ;;  %v13118_v61 = vld [vmem:[#allocation49_spill] sm:$0xff] }
 0xf94   : > { %v6627_v36 = vpop.f32.mrf.mxu0 }
 0xf95   : > { %v6673_v26 = vadd.f32 %v6627_v36, %v5883_v48  ;;  %v13074_v48 = vld [vmem:[#allocation8_spill] sm:$0xff]  ;;  %v5855_v46 = vpop.f32.mrf.mxu2 }
 0xf96   : > { %v4308_v36 = vadd.f32 %v13074_v48, %v3518_v34  ;;  %v3522_v34 = vadd.f32 %v13097_v21, %v2732_v30  ;;  %v13119_v30 = vld [vmem:[#allocation46_spill] sm:$0xff]  ;;  %v13120_v21 = vld [vmem:[#allocation65_spill] sm:$0xff] }
 0xf97   : > { %v6692_v55 = vadd.f32 %v12567_v5, %v6673_v26  ;;  %v13075_v26 = vld [vmem:[#allocation11_spill] sm:$0xff] }
 0xf98   : > { %v5098_v32 = vadd.f32 %v13077_v23, %v4308_v36  ;;  %v13098_v36 = vld [vmem:[#allocation84_spill] sm:$0xff]  ;;  %v13101_v23 = vld [vmem:[#allocation91_spill] sm:$0xff] }
 0xf99   : > { %6708 = vst.msk [vmem:[%s12578_s20 + $0x8] sm:$0xff] %vm340_vm0, %v6692_v55  ;;  %v1922_v55 = vadd.f32 %v13076_v28, %v13075_v26  ;;  %v13099_v26 = vld [vmem:[#allocation15_spill] sm:$0xff] }
 0xf9a   : > { %v5888_v29 = vadd.f32 %v5852_v45, %v5098_v32  ;;  %v13100_v28 = vld [vmem:[#allocation43_spill] sm:$0xff] }
 0xf9b   : > { %v2729_v7 = vadd.f32 %v13078_v63, %v1922_v55  ;;  %v1934_v55 = vadd.f32 %v13100_v28, %v13099_v26  ;;  %v13102_v63 = vld [vmem:[#allocation62_spill] sm:$0xff] }
 0xf9c   : > { %v6630_v37 = vpop.f32.mrf.mxu0  ;;  %v13123_v28 = vld [vmem:[#allocation94_spill] sm:$0xff] }
 0xf9d   : > { %v6674_v31 = vadd.f32 %v6630_v37, %v5884_v52  ;;  %v3519_v52 = vadd.f32 %v13079_v57, %v2729_v7  ;;  %v5858_v27 = vpop.f32.mrf.mxu2  ;;  %v2733_v7 = vadd.f32 %v13102_v63, %v1934_v55  ;;  %v13103_v57 = vld [vmem:[#allocation76_spill] sm:$0xff] }
 0xf9f   : > { %v6693_v16 = vadd.f32 %v12567_v5, %v6674_v31  ;;  %v4309_v33 = vadd.f32 %v13080_v56, %v3519_v52  ;;  %v3523_v52 = vadd.f32 %v13103_v57, %v2733_v7  ;;  %v13104_v56 = vld [vmem:[#allocation85_spill] sm:$0xff] }
 0xfa1   : > { %6709 = vst.msk [vmem:[%s12578_s20 + $0x10] sm:$0xff] %vm340_vm0, %v6693_v16  ;;  %v13082_v16 = vld [vmem:[#allocation40_spill] sm:$0xff]  ;;  %v5099_v2 = vadd.f32 %v13083_v12, %v4309_v33  ;;  %v4313_v33 = vadd.f32 %v13104_v56, %v3523_v52 }
 0xfa2   : > { %v1925_v40 = vadd.f32 %v13082_v16, %v13081_v22  ;;  %v13105_v16 = vld [vmem:[#allocation14_spill] sm:$0xff] }
 0xfa4   : > { %v6633_v11 = vpop.f32.mrf.mxu0  ;;  %v2730_v58 = vadd.f32 %v13084_v19, %v1925_v40  ;;  %v13106_v40 = vld [vmem:[#allocation44_spill] sm:$0xff]  ;;  %v13108_v19 = vld [vmem:[#allocation63_spill] sm:$0xff] }
 0xfa5   : > { %v6675_v20 = vadd.f32 %v6633_v11, %v5885_v50  ;;  %v5889_v50 = vadd.f32 %v5855_v46, %v5099_v2  ;;  %v13085_v11 = vld [vmem:[#allocation73_spill] sm:$0xff]  ;;  %v1937_v12 = vadd.f32 %v13106_v40, %v13105_v16  ;;  %v13107_v2 = vld [vmem:[#allocation92_spill] sm:$0xff]  ;;  %v13129_v16 = vld [vmem:[#allocation95_spill] sm:$0xff] }
 0xfa6   : > { %v3520_v53 = vadd.f32 %v13085_v11, %v2730_v58  ;;  %v13109_v11 = vld [vmem:[#allocation77_spill] sm:$0xff] }
 0xfa7   : > { %v6694_v25 = vadd.f32 %v12567_v5, %v6675_v20  ;;  %v13086_v20 = vld [vmem:[#allocation82_spill] sm:$0xff]  ;;  %v2734_v58 = vadd.f32 %v13108_v19, %v1937_v12 }
 0xfa8   : > { %v4310_v3 = vadd.f32 %v13086_v20, %v3520_v53  ;;  %v13110_v20 = vld [vmem:[#allocation86_spill] sm:$0xff] }
 0xfa9   : > { %6710 = vst.msk [vmem:[%s12578_s20 + $0x18] sm:$0xff] %vm340_vm0, %v6694_v25  ;;  %v3524_v53 = vadd.f32 %v13109_v11, %v2734_v58 }
 0xfaa   : > { %v5100_v6 = vadd.f32 %v13089_v1, %v4310_v3  ;;  %v1940_v1 = vadd.f32 %v13112_v41, %v13111_v47 }
 0xfab   : > { %v4314_v3 = vadd.f32 %v13110_v20, %v3524_v53 }
 0xfac   : > { %v6636_v42 = vpop.f32.mrf.mxu0 }
 0xfad   : > { %v6676_v35 = vadd.f32 %v6636_v42, %v5886_v51  ;;  %v5890_v51 = vadd.f32 %v5858_v27, %v5100_v6  ;;  %v5861_v42 = vpop.f32.mrf.mxu2  ;;  %v5103_v27 = vadd.f32 %v13107_v2, %v4313_v33  ;;  %v13113_v6 = vld [vmem:[#allocation93_spill] sm:$0xff] }
 0xfae   : > { %v5104_v4 = vadd.f32 %v13113_v6, %v4314_v3 }
 0xfaf   : > { %v6695_v9 = vadd.f32 %v12567_v5, %v6676_v35  ;;  %v3521_v35 = vadd.f32 %v13091_v44, %v2731_v0  ;;  %v13114_v0 = vld [vmem:[#allocation64_spill] sm:$0xff]  ;;  %v13115_v44 = vld [vmem:[#allocation78_spill] sm:$0xff] }
 0xfb1   : > { %6711 = vst.msk [vmem:[%s12578_s20 + $0x20] sm:$0xff] %vm340_vm0, %v6695_v9  ;;  %v4311_v8 = vadd.f32 %v13092_v18, %v3521_v35  ;;  %v13116_v18 = vld [vmem:[#allocation87_spill] sm:$0xff] }
 0xfb3   : > { %v5101_v10 = vadd.f32 %v13095_v14, %v4311_v8 }
 0xfb4   : > { %v6639_v17 = vpop.f32.mrf.mxu0 }
 0xfb5   : > { %v6677_v13 = vadd.f32 %v6639_v17, %v5887_v54  ;;  %v5891_v54 = vadd.f32 %v5861_v42, %v5101_v10  ;;  %v5864_v48 = vpop.f32.mrf.mxu2 }
 0xfb7   : > { %v6696_v38 = vadd.f32 %v12567_v5, %v6677_v13 }
 0xfb9   : > { %6712 = vst.msk [vmem:[%s12578_s20 + $0x28] sm:$0xff] %vm340_vm0, %v6696_v38  ;;  %v4312_v38 = vadd.f32 %v13098_v36, %v3522_v34 }
 0xfbb   : > { %v5102_v32 = vadd.f32 %v13101_v23, %v4312_v38  ;;  %v13122_v38 = vld [vmem:[#allocation88_spill] sm:$0xff]  ;;  %v13124_v23 = vld [vmem:[#allocation50_spill] sm:$0xff] }
 0xfbc   : > { %v6642_v24 = vpop.f32.mrf.mxu0 }
 0xfbd   : > { %v6678_v37 = vadd.f32 %v6642_v24, %v5888_v29  ;;  %v5892_v29 = vadd.f32 %v5864_v48, %v5102_v32  ;;  %v5867_v22 = vpop.f32.mrf.mxu2  ;;  %v13121_v48 = vld [vmem:[#allocation79_spill] sm:$0xff] }
 0xfbe   : > { %v13125_v32 = vld [vmem:[#allocation47_spill] sm:$0xff] }
 0xfbf   : > { %v6697_v31 = vadd.f32 %v12567_v5, %v6678_v37  ;;  %v1946_v63 = vadd.f32 %v13125_v32, %v13124_v23 }
 0xfc1   : > { %6713 = vst.msk [vmem:[%s12578_s20 + $0x30] sm:$0xff] %vm340_vm0, %v6697_v31 }
 0xfc4   : > { %v6645_v59 = vpop.f32.mrf.mxu0 }
 0xfc5   : > { %v6679_v15 = vadd.f32 %v6645_v59, %v5889_v50  ;;  %v5893_v50 = vadd.f32 %v5867_v22, %v5103_v27 }
 0xfc7   : > { %v6698_v25 = vadd.f32 %v12567_v5, %v6679_v15 }
 0xfc9   : > { %6714 = vst.msk [vmem:[%s12578_s20 + $0x38] sm:$0xff] %vm340_vm0, %v6698_v25 }
 0xfcc   : > { %v6648_v49 = vpop.f32.mrf.mxu0 }
 0xfcd   : > { %v6680_v45 = vadd.f32 %v6648_v49, %v5890_v51  ;;  %v2735_v51 = vadd.f32 %v13114_v0, %v1940_v1 }
 0xfcf   : > { %v6699_v9 = vadd.f32 %v12567_v5, %v6680_v45  ;;  %v3525_v35 = vadd.f32 %v13115_v44, %v2735_v51 }
 0xfd1   : > { %6715 = vst.msk [vmem:[%s12578_s20 + $0x40] sm:$0xff] %vm340_vm0, %v6699_v9  ;;  %v4315_v8 = vadd.f32 %v13116_v18, %v3525_v35 }
 0xfd3   : > { %v5105_v43 = vadd.f32 %v13117_v39, %v4315_v8 }
 0xfd4   : > { %v6651_v17 = vpop.f32.mrf.mxu0 }
 0xfd5   : > { %v6681_v13 = vadd.f32 %v6651_v17, %v5891_v54  ;;  %v1943_v54 = vadd.f32 %v13119_v30, %v13118_v61 }
 0xfd7   : > { %v6700_v46 = vadd.f32 %v12567_v5, %v6681_v13  ;;  %v2736_v34 = vadd.f32 %v13120_v21, %v1943_v54 }
 0xfd9   : > { %6716 = vst.msk [vmem:[%s12578_s20 + $0x48] sm:$0xff] %vm340_vm0, %v6700_v46  ;;  %v3526_v36 = vadd.f32 %v13121_v48, %v2736_v34 }
 0xfdb   : > { %v4316_v46 = vadd.f32 %v13122_v38, %v3526_v36 }
 0xfdc   : > { %v6654_v24 = vpop.f32.mrf.mxu0 }
 0xfdd   : > { %v6682_v37 = vadd.f32 %v6654_v24, %v5892_v29  ;;  %v5106_v55 = vadd.f32 %v13123_v28, %v4316_v46  ;;  %v13126_v24 = vld [vmem:[#allocation66_spill] sm:$0xff] }
 0xfde   : > { %v2737_v57 = vadd.f32 %v13126_v24, %v1946_v63 }
 0xfdf   : > { %v6701_v31 = vadd.f32 %v12567_v5, %v6682_v37  ;;  %v13127_v37 = vld [vmem:[#allocation80_spill] sm:$0xff] }
 0xfe0   : > { %v3527_v56 = vadd.f32 %v13127_v37, %v2737_v57 }
 0xfe1   : > { %6717 = vst.msk [vmem:[%s12578_s20 + $0x50] sm:$0xff] %vm340_vm0, %v6701_v31  ;;  %v13128_v31 = vld [vmem:[#allocation89_spill] sm:$0xff] }
 0xfe2   : > { %v4317_v22 = vadd.f32 %v13128_v31, %v3527_v56 }
 0xfe4   : > { %v6657_v59 = vpop.f32.mrf.mxu0  ;;  %v5107_v40 = vadd.f32 %v13129_v16, %v4317_v22 }
 0xfe5   : > { %v6683_v15 = vadd.f32 %v6657_v59, %v5893_v50 }
 0xfe7   : > { %v6702_v25 = vadd.f32 %v12567_v5, %v6683_v15 }
 0xfe8   : > { %v5870_v60 = vpop.f32.mrf.mxu2 }
 0xfe9   : > { %6718 = vst.msk [vmem:[%s12578_s20 + $0x58] sm:$0xff] %vm340_vm0, %v6702_v25  ;;  %v5894_v42 = vadd.f32 %v5870_v60, %v5104_v4 }
 0xfec   : > { %v6660_v49 = vpop.f32.mrf.mxu0 }
 0xfed   : > { %v6684_v45 = vadd.f32 %v6660_v49, %v5894_v42 }
 0xfef   : > { %v6703_v9 = vadd.f32 %v12567_v5, %v6684_v45 }
 0xff0   : > { %v5873_v62 = vpop.f32.mrf.mxu2 }
 0xff1   : > { %6719 = vst.msk [vmem:[%s12578_s20 + $0x60] sm:$0xff] %vm340_vm0, %v6703_v9  ;;  %v5895_v14 = vadd.f32 %v5873_v62, %v5105_v43 }
 0xff4   : > { %v6663_v10 = vpop.f32.mrf.mxu0 }
 0xff5   : > { %v6685_v17 = vadd.f32 %v6663_v10, %v5895_v14 }
 0xff7   : > { %v6704_v13 = vadd.f32 %v12567_v5, %v6685_v17 }
 0xff8   : > { %v5876_v26 = vpop.f32.mrf.mxu2 }
 0xff9   : > { %6720 = vst.msk [vmem:[%s12578_s20 + $0x68] sm:$0xff] %vm340_vm0, %v6704_v13  ;;  %v5896_v7 = vadd.f32 %v5876_v26, %v5106_v55 }
0x1000   : > { %v6666_v29 = vpop.f32.mrf.mxu0 }
0x1001   : > { %v6686_v52 = vadd.f32 %v6666_v29, %v5896_v7 }
0x1003   : > { %v6705_v33 = vadd.f32 %v12567_v5, %v6686_v52 }
0x1005   : > { %6721 = vst.msk [vmem:[%s12578_s20 + $0x70] sm:$0xff] %vm340_vm0, %v6705_v33 }
0x1008   : > { %v5879_v12 = vpop.f32.mrf.mxu2 }
0x1009   : > { %v5897_v2 = vadd.f32 %v5879_v12, %v5107_v40  ;;  %v6669_v27 = vpop.f32.mrf.mxu0 }
0x100b   : > { %v6687_v19 = vadd.f32 %v6669_v27, %v5897_v2 }
0x100d   : > { %v6706_v58 = vadd.f32 %v12567_v5, %v6687_v19 }
0x100f   : > { %6722 = vst.msk [vmem:[%s12578_s20 + $0x78] sm:$0xff] %vm340_vm0, %v6706_v58 }
0x1010   : > { %8269 = shalt.err (!%p8266_p4)
}
0x1011   : > { %s8335_s18 = smov 128   ;;  %s8336_s20 = smov 8  }
0x1012   : > { %7242 = dma.vmem_to_hbm [thread:$0]  (%p8422_p11), %s6737_s11, 2048, %s6739_s26, %s6724_s25, %s8335_s18, %s8335_s18, %s8336_s20  }
0x1013 PF: > { %s6753_s28 = sand.u32 1, %s8296_s21   ;;  %p13130_p7 = scmp.ge.s32.totalorder %s8308_s24, 2 }
0x1014   : > { %s6754_s7 = scalar_lea.sflag [#allocation4], %s6753_s28 }
0x1015   : > { %p7249_p5 = pnand %p13130_p7, %p8426_p12 }
0x1017   : > { %p7250_p8 = pneg %p7249_p5 }
0x1019   : > { %8291 = dma.done.wait (%p7250_p8), %s6754_s7, 2048  }
0x101a   : > { %8293 = vsyncadd (%p7250_p8), %s6754_s7, 4294965248  ;;  %p19_p10 = scmp.ge.s32.totalorder %s8397_s27, 4   ;;  %s13131_s21 = smov %s8300_s22 }
0x101b   : > { %s13132_s22 = smov %s8304_s23  ;;  %s13133_s23 = smov %s8409_s30 }
0x101c   : > { %s13134_s24 = smov %s8397_s27  ;;  %21 = sbr.rel (!%p19_p10) target bundleno = 5 (0x5), region = 89 }
0x1021   :  { %6760 = vsyncpa [#allocation3], 1 }
0x1022   :  { %6762 = vsyncpa [#allocation3 + $0x1], 1 }
0x1023   :  { %6763 = vsyncpa [#allocation4], 1 }
0x1024   :  { %6765 = vsyncpa [#allocation4 + $0x1], 1 }

</bundles_post_ra>
